<compile_context>
chip_gen: v5e
topology: v5e:2x2
jax: 0.10.0
libtpu: 0.0.40
codegen_flags: <defaults>
</compile_context>

<pallas_src>
import functools

import jax
import jax.numpy as jnp
from jax import lax
from jax.experimental import pallas as pl
from jax.experimental.pallas import tpu as pltpu


def _round_up(a, b):
    return (a + b - 1) // b * b


@functools.lru_cache(maxsize=None)
def _vmem_limit_bytes():
    """Generation-aware scoped-VMEM limit (3/4 of physical, capped)."""
    cap = 64 * 1024 * 1024          # conservative default (v7x per-core VMEM)
    try:
        cap = int(pltpu.get_tpu_info().vmem_capacity_bytes)
    except Exception:
        pass
    return int(min(cap * 3 // 4, 96 * 1024 * 1024))


# ----------------------------------------------------------------------------
# Kernel A (grid over batch): in-VMEM channels-major im2col + ONE fused GEMM.
#   P_big = [P ; P*P]                 (2K, S)   built in scratch
#   Z     = W_big @ P_big + b_big     (C1+2C2, S) single MXU pass
#     rows [0:C1]      -> conv(x; W1) + b1        (pre-BN ReLU branch)
#     rows [C1:C1+C2]  -> convr(x; Wr) + br
#     rows [C1+C2:]    -> conv(x^2; Wr^2) + br^2
#   y[:C1]  = Z[:C1] ;  y[C1:] = Z[C1:C1+C2]^2 - Z[C1+C2:]   (ReSqU s-term)
#   stats   = [y ; y*y] @ ones(S,1)   (per-image BN partials, on the MXU)
# ----------------------------------------------------------------------------
def _conv_split_kernel(x_ref, w_ref, b_ref, y_ref, st_ref, p_ref,
                       *, cin, kh, kw, stride, oh, ow, c1, c2, s, s_pad,
                       mm_dtype):
    k = kh * kw * cin
    x = x_ref[0]                                     # (Cin, Hp, Wp) f32

    # im2col directly in (K, S) orientation: taps on sublanes, output
    # positions on lanes.  Each tap row (and its square, for the ReSqU
    # variance term) is written straight into the VMEM scratch so live
    # ranges stay bounded.
    for i in range(kh):
        for j in range(kw):
            for c in range(cin):
                tap = (i * kw + j) * cin + c
                if stride == 1:
                    win = x[c, i:i + oh, j:j + ow]
                else:
                    win = x[c, i:i + (oh - 1) * stride + 1:stride,
                             j:j + (ow - 1) * stride + 1:stride]
                row = win.reshape(1, s)
                p_ref[tap:tap + 1, :] = row
                p_ref[k + tap:k + tap + 1, :] = row * row

    # One fused MXU pass for both branches (contraction depth 2K).
    pmat = p_ref[...].astype(mm_dtype)               # (2K, S)
    z = jnp.dot(w_ref[...], pmat,
                preferred_element_type=jnp.float32) + b_ref[...]   # (C1+2C2, S)

    y1 = z[:c1, :]                                   # pre-BN ReLU branch
    zr = z[c1:c1 + c2, :]
    v = z[c1 + c2:, :]
    y = jnp.concatenate([y1, zr * zr - v], axis=0)   # (Csum, S) sublane concat

    # BatchNorm partial sums on the (near-idle) MXU instead of XLU reductions.
    ones = jnp.ones((s, 1), jnp.float32)
    st_ref[0] = jnp.dot(jnp.concatenate([y, y * y], axis=0), ones,
                        preferred_element_type=jnp.float32)         # (2Csum, 1)

    if s == s_pad:
        y_ref[0] = y
    else:
        y_ref[0, :, :s] = y
        y_ref[0, :, s:] = jnp.zeros((c1 + c2, s_pad - s), jnp.float32)


# ----------------------------------------------------------------------------
# Kernel B: lane-dense tiled BN-apply + BatchBound + (implicit) concat + ReLU.
# Block = all N batch rows x all channels x a 128-multiple spatial tile, so
# the batch max of BatchBound lives entirely inside the block.
# ----------------------------------------------------------------------------
def _apply_kernel(y_ref, pr_ref, o_ref, *, c1):
    y = y_ref[...]                         # (N, Csum, TS) f32
    mean = pr_ref[:, 0:1][None]            # (1, Csum, 1)
    scale = pr_ref[:, 1:2][None]           # inv_std for ReLU chans, 1.0 ReSqU
    yn = (y - mean) * scale
    y1 = yn[:, :c1, :]
    yr = yn[:, c1:, :]
    maxi = jnp.max(jnp.abs(yr), axis=0, keepdims=True)   # max over batch
    yr = yr * pl.reciprocal(maxi, approx=True)
    o_ref[...] = jnp.maximum(jnp.concatenate([y1, yr], axis=1), 0.0)


# ----------------------------------------------------------------------------
# Wrapper.
# ----------------------------------------------------------------------------
@functools.partial(jax.jit, static_argnames=("stride", "padding", "mm_dtype"))
def split_resqu_conv(x_nchw, w1, b1, wr, br, *, stride=1, padding=1,
                     mm_dtype=jnp.float32):
    n, cin, h, w = x_nchw.shape
    c1, kh, kw = w1.shape[0], w1.shape[2], w1.shape[3]
    c2 = wr.shape[0]
    csum = c1 + c2
    oh = (h + 2 * padding - kh) // stride + 1
    ow = (w + 2 * padding - kw) // stride + 1
    s = oh * ow
    hp, wp = h + 2 * padding, w + 2 * padding
    k = kh * kw * cin

    vmem_limit = _vmem_limit_bytes()

    # Kernel-B spatial tile (lane dim): largest multiple of 128 that fits a
    # conservative slice of the per-generation VMEM budget; also sets S_pad.
    s128 = _round_up(max(s, 1), 128)
    budget = vmem_limit // 3
    ts_cap = max(128, (budget // (16 * n * csum)) // 128 * 128)
    ts = min(s128, ts_cap)
    s_pad = _round_up(s, ts)

    # NCHW stays NCHW: only a spatial zero-pad (single cheap HBM pass, no
    # layout transpose).  Channels-first blocks keep W on the lane axis.
    xp = jnp.pad(x_nchw.astype(jnp.float32),
                 ((0, 0), (0, 0), (padding, padding), (padding, padding)))

    # Fused block weight [[W1;Wr | 0], [0 | Wr^2]] with feature order
    # (kh, kw, cin) along the contraction axis, matching the kernel's im2col.
    def to_mat(wt):     # (Cout, Cin, KH, KW) -> (Cout, KH*KW*Cin)
        return jnp.transpose(wt, (0, 2, 3, 1)).reshape(wt.shape[0], k)

    wbig = jnp.concatenate(
        [jnp.concatenate([jnp.concatenate([to_mat(w1), to_mat(wr)], axis=0),
                          jnp.zeros((c1 + c2, k), jnp.float32)], axis=1),
         jnp.concatenate([jnp.zeros((c2, k), jnp.float32),
                          to_mat(wr * wr)], axis=1)],
        axis=0).astype(mm_dtype)                                 # (C1+2C2, 2K)
    bbig = jnp.concatenate([b1, br, br * br])[:, None].astype(jnp.float32)

    conv_kernel = functools.partial(
        _conv_split_kernel, cin=cin, kh=kh, kw=kw, stride=stride, oh=oh,
        ow=ow, c1=c1, c2=c2, s=s, s_pad=s_pad, mm_dtype=mm_dtype)

    y, stats = pl.pallas_call(
        conv_kernel,
        out_shape=(jax.ShapeDtypeStruct((n, csum, s_pad), jnp.float32),
                   jax.ShapeDtypeStruct((n, 2 * csum, 1), jnp.float32)),
        grid_spec=pltpu.PrefetchScalarGridSpec(
            num_scalar_prefetch=0,
            grid=(n,),
            in_specs=[
                pl.BlockSpec((1, cin, hp, wp), lambda i: (i, 0, 0, 0)),
                pl.BlockSpec((c1 + 2 * c2, 2 * k), lambda i: (0, 0)),
                pl.BlockSpec((c1 + 2 * c2, 1), lambda i: (0, 0)),
            ],
            out_specs=(
                pl.BlockSpec((1, csum, s_pad), lambda i: (i, 0, 0)),
                pl.BlockSpec((1, 2 * csum, 1), lambda i: (i, 0, 0)),
            ),
            scratch_shapes=[pltpu.VMEM((2 * k, s), jnp.float32)],
        ),
        compiler_params=pltpu.CompilerParams(
            dimension_semantics=("parallel",),
            vmem_limit_bytes=vmem_limit),
    )(xp, wbig, bbig)

    # Tiny global combine of the fused per-image BN partials.
    tot = jnp.sum(stats[:, :, 0], axis=0)                  # (2*Csum,)
    cnt = jnp.float32(n * s)
    mean = tot[:csum] / cnt
    var = jnp.maximum(tot[csum:] / cnt - mean * mean, 0.0)  # cancellation guard
    inv_std = lax.rsqrt(var + 1e-5)
    # ReSqU branch: the BN 1/std cancels exactly inside BatchBound -> scale=1.
    scale = jnp.where(jnp.arange(csum) < c1, inv_std, 1.0)
    params = jnp.stack([mean, scale], axis=1)              # (Csum, 2)

    apply_kernel = functools.partial(_apply_kernel, c1=c1)
    out = pl.pallas_call(
        apply_kernel,
        out_shape=jax.ShapeDtypeStruct((n, csum, s_pad), jnp.float32),
        grid_spec=pltpu.PrefetchScalarGridSpec(
            num_scalar_prefetch=0,
            grid=(s_pad // ts,),
            in_specs=[
                pl.BlockSpec((n, csum, ts), lambda j: (0, 0, j)),
                pl.BlockSpec((csum, 2), lambda j: (0, 0)),
            ],
            out_specs=pl.BlockSpec((n, csum, ts), lambda j: (0, 0, j)),
        ),
        compiler_params=pltpu.CompilerParams(
            dimension_semantics=("parallel",),
            vmem_limit_bytes=vmem_limit),
    )(y, params)

    # Lane dim is already spatial and the slab is channel-major == NCHW:
    # only a pad-tail slice and a contiguous reshape remain (no transpose).
    if s_pad != s:
        out = out[:, :, :s]
    return out.reshape(n, csum, oh, ow)


# ----------------------------------------------------------------------------
# Pure-JAX reference (same math, lax convs) for the correctness check.
# ----------------------------------------------------------------------------
def _reference(x, w1, b1, wr, br, stride=1, padding=1):
    dn = ("NCHW", "OIHW", "NCHW")

    def conv(inp, wgt, bias):
        y = lax.conv_general_dilated(
            inp, wgt, (stride, stride),
            [(padding, padding), (padding, padding)],
            dimension_numbers=dn)
        return y + bias[None, :, None, None]

    y1 = conv(x, w1, b1)
    z = conv(x, wr, br) ** 2
    v = conv(x * x, wr * wr, br * br)
    s = z - v

    def bn(t):
        m = jnp.mean(t, axis=(0, 2, 3), keepdims=True)
        var = jnp.mean((t - m) ** 2, axis=(0, 2, 3), keepdims=True)
        return (t - m) / jnp.sqrt(var + 1e-5)

    n1 = bn(y1)
    n2 = bn(s)
    maxi = jnp.max(jnp.abs(n2), axis=0, keepdims=True)
    oc = jnp.concatenate([n1, n2 / maxi], axis=1)
    return jnp.maximum(oc, 0.0)


if __name__ == "__main__":
    # Small deterministic setup: batch=2, in_channels=4, spatial=16x16,
    # relu_channels=4, resqu_channels=4, kernel=3, stride=1, padding=1.
    N, CIN, H, W = 2, 4, 16, 16
    C1, C2, KH, KW = 4, 4, 3, 3
    STRIDE, PADDING = 1, 1

    key = jax.random.PRNGKey(0)
    k1, k2, k3, k4, k5 = jax.random.split(key, 5)

    fan_in = CIN * KH * KW
    fan_out_r = C2 * KH * KW
    bnd = 1.0 / (fan_in ** 0.5)                       # ~ PyTorch default conv init
    xav = 0.2 * (6.0 / (fan_in + fan_out_r)) ** 0.5   # xavier_uniform(gain=0.2)

    w1 = jax.random.uniform(k1, (C1, CIN, KH, KW), jnp.float32, -bnd, bnd)
    b1 = jax.random.uniform(k2, (C1,), jnp.float32, -bnd, bnd)
    wr = jax.random.uniform(k3, (C2, CIN, KH, KW), jnp.float32, -xav, xav)
    br = jax.random.uniform(k4, (C2,), jnp.float32, -bnd, bnd)
    x = jax.random.normal(k5, (N, CIN, H, W), dtype=jnp.float32)

    # f32 GEMM-operand path: strict check against the reference.
    out = split_resqu_conv(x, w1, b1, wr, br, stride=STRIDE, padding=PADDING)
    out = jax.block_until_ready(out)

    ref = _reference(x, w1, b1, wr, br, stride=STRIDE, padding=PADDING)
    ref = jax.block_until_ready(ref)

    assert out.shape == (N, C1 + C2, H, W), out.shape
    max_err = float(jnp.max(jnp.abs(out - ref)))
    assert max_err < 3e-2, f"max abs error too large: {max_err}"

    # bf16 GEMM-operand path (v6e/v7x MXU-rate option): loose sanity check
    # only, since the N=2 BatchBound batch-max amplifies operand rounding.
    out_bf16 = split_resqu_conv(x, w1, b1, wr, br, stride=STRIDE,
                                padding=PADDING, mm_dtype=jnp.bfloat16)
    out_bf16 = jax.block_until_ready(out_bf16)
    assert out_bf16.shape == (N, C1 + C2, H, W), out_bf16.shape
    assert bool(jnp.all(jnp.isfinite(out_bf16)))

    print("KERNEL_OK")
</pallas_src>

<mosaic_0001>
module attributes {stable_mosaic.version = 11 : i64} {
  func.func @_conv_split_kernel(%arg0: i32, %arg1: memref<1x4x18x18xf32, #tpu.memory_space<vmem>>, %arg2: memref<12x72xf32, #tpu.memory_space<vmem>>, %arg3: memref<12x1xf32, #tpu.memory_space<vmem>>, %arg4: memref<1x8x256xf32, #tpu.memory_space<vmem>>, %arg5: memref<1x16x1xf32, #tpu.memory_space<vmem>>, %arg6: memref<72x256xf32, #tpu.memory_space<vmem>>) attributes {dimension_semantics = [#tpu.dimension_semantics<parallel>], iteration_bounds = array<i64: 2>, scalar_prefetch = 0 : i64, scratch_operands = 1 : i64, tpu.core_type = #tpu.core_type<tc>, window_params = [{transform_indices = @transform_0, window_bounds = array<i64: 1, 4, 18, 18>}, {pipeline_mode = #tpu.pipeline_mode<synchronous>, transform_indices = @transform_1, window_bounds = array<i64: 12, 72>}, {pipeline_mode = #tpu.pipeline_mode<synchronous>, transform_indices = @transform_2, window_bounds = array<i64: 12, 1>}, {transform_indices = @transform_3, window_bounds = array<i64: 1, 8, 256>}, {transform_indices = @transform_4, window_bounds = array<i64: 1, 16, 1>}]} {
    %c0 = arith.constant 0 : index
    %c0_0 = arith.constant 0 : index
    %c0_1 = arith.constant 0 : index
    %c0_2 = arith.constant 0 : index
    %0 = vector.load %arg1[%c0, %c0_0, %c0_1, %c0_2] : memref<1x4x18x18xf32, #tpu.memory_space<vmem>>, vector<1x4x18x18xf32>
    %1 = vector.shape_cast %0 : vector<1x4x18x18xf32> to vector<4x18x18xf32>
    %2 = vector.extract_strided_slice %1 {offsets = [0, 0, 0], sizes = [1, 16, 16], strides = [1, 1, 1]} : vector<4x18x18xf32> to vector<1x16x16xf32>
    %3 = vector.shape_cast %2 : vector<1x16x16xf32> to vector<16x16xf32>
    %4 = vector.shape_cast %3 : vector<16x16xf32> to vector<1x256xf32>
    %c0_3 = arith.constant 0 : index
    %c0_4 = arith.constant 0 : index
    %5 = vector.load %arg6[%c0_3, %c0_4] : memref<72x256xf32, #tpu.memory_space<vmem>>, vector<1x256xf32>
    tpu.vector_store %arg6[%c0_3, %c0_4], %4 {strides = array<i32>} : memref<72x256xf32, #tpu.memory_space<vmem>>, vector<1x256xf32>,
    %6 = arith.mulf %4, %4 : vector<1x256xf32>
    %c36 = arith.constant 36 : index
    %c0_5 = arith.constant 0 : index
    %7 = vector.load %arg6[%c36, %c0_5] : memref<72x256xf32, #tpu.memory_space<vmem>>, vector<1x256xf32>
    tpu.vector_store %arg6[%c36, %c0_5], %6 {strides = array<i32>} : memref<72x256xf32, #tpu.memory_space<vmem>>, vector<1x256xf32>,
    %8 = vector.extract_strided_slice %1 {offsets = [1, 0, 0], sizes = [1, 16, 16], strides = [1, 1, 1]} : vector<4x18x18xf32> to vector<1x16x16xf32>
    %9 = vector.shape_cast %8 : vector<1x16x16xf32> to vector<16x16xf32>
    %10 = vector.shape_cast %9 : vector<16x16xf32> to vector<1x256xf32>
    %c1 = arith.constant 1 : index
    %c0_6 = arith.constant 0 : index
    %11 = vector.load %arg6[%c1, %c0_6] : memref<72x256xf32, #tpu.memory_space<vmem>>, vector<1x256xf32>
    tpu.vector_store %arg6[%c1, %c0_6], %10 {strides = array<i32>} : memref<72x256xf32, #tpu.memory_space<vmem>>, vector<1x256xf32>,
    %12 = arith.mulf %10, %10 : vector<1x256xf32>
    %c37 = arith.constant 37 : index
    %c0_7 = arith.constant 0 : index
    %13 = vector.load %arg6[%c37, %c0_7] : memref<72x256xf32, #tpu.memory_space<vmem>>, vector<1x256xf32>
    tpu.vector_store %arg6[%c37, %c0_7], %12 {strides = array<i32>} : memref<72x256xf32, #tpu.memory_space<vmem>>, vector<1x256xf32>,
    %14 = vector.extract_strided_slice %1 {offsets = [2, 0, 0], sizes = [1, 16, 16], strides = [1, 1, 1]} : vector<4x18x18xf32> to vector<1x16x16xf32>
    %15 = vector.shape_cast %14 : vector<1x16x16xf32> to vector<16x16xf32>
    %16 = vector.shape_cast %15 : vector<16x16xf32> to vector<1x256xf32>
    %c2 = arith.constant 2 : index
    %c0_8 = arith.constant 0 : index
    %17 = vector.load %arg6[%c2, %c0_8] : memref<72x256xf32, #tpu.memory_space<vmem>>, vector<1x256xf32>
    tpu.vector_store %arg6[%c2, %c0_8], %16 {strides = array<i32>} : memref<72x256xf32, #tpu.memory_space<vmem>>, vector<1x256xf32>,
    %18 = arith.mulf %16, %16 : vector<1x256xf32>
    %c38 = arith.constant 38 : index
    %c0_9 = arith.constant 0 : index
    %19 = vector.load %arg6[%c38, %c0_9] : memref<72x256xf32, #tpu.memory_space<vmem>>, vector<1x256xf32>
    tpu.vector_store %arg6[%c38, %c0_9], %18 {strides = array<i32>} : memref<72x256xf32, #tpu.memory_space<vmem>>, vector<1x256xf32>,
    %20 = vector.extract_strided_slice %1 {offsets = [3, 0, 0], sizes = [1, 16, 16], strides = [1, 1, 1]} : vector<4x18x18xf32> to vector<1x16x16xf32>
    %21 = vector.shape_cast %20 : vector<1x16x16xf32> to vector<16x16xf32>
    %22 = vector.shape_cast %21 : vector<16x16xf32> to vector<1x256xf32>
    %c3 = arith.constant 3 : index
    %c0_10 = arith.constant 0 : index
    %23 = vector.load %arg6[%c3, %c0_10] : memref<72x256xf32, #tpu.memory_space<vmem>>, vector<1x256xf32>
    tpu.vector_store %arg6[%c3, %c0_10], %22 {strides = array<i32>} : memref<72x256xf32, #tpu.memory_space<vmem>>, vector<1x256xf32>,
    %24 = arith.mulf %22, %22 : vector<1x256xf32>
    %c39 = arith.constant 39 : index
    %c0_11 = arith.constant 0 : index
    %25 = vector.load %arg6[%c39, %c0_11] : memref<72x256xf32, #tpu.memory_space<vmem>>, vector<1x256xf32>
    tpu.vector_store %arg6[%c39, %c0_11], %24 {strides = array<i32>} : memref<72x256xf32, #tpu.memory_space<vmem>>, vector<1x256xf32>,
    %26 = vector.extract_strided_slice %1 {offsets = [0, 0, 1], sizes = [1, 16, 16], strides = [1, 1, 1]} : vector<4x18x18xf32> to vector<1x16x16xf32>
    %27 = vector.shape_cast %26 : vector<1x16x16xf32> to vector<16x16xf32>
    %28 = vector.shape_cast %27 : vector<16x16xf32> to vector<1x256xf32>
    %c4 = arith.constant 4 : index
    %c0_12 = arith.constant 0 : index
    %29 = vector.load %arg6[%c4, %c0_12] : memref<72x256xf32, #tpu.memory_space<vmem>>, vector<1x256xf32>
    tpu.vector_store %arg6[%c4, %c0_12], %28 {strides = array<i32>} : memref<72x256xf32, #tpu.memory_space<vmem>>, vector<1x256xf32>,
    %30 = arith.mulf %28, %28 : vector<1x256xf32>
    %c40 = arith.constant 40 : index
    %c0_13 = arith.constant 0 : index
    %31 = vector.load %arg6[%c40, %c0_13] : memref<72x256xf32, #tpu.memory_space<vmem>>, vector<1x256xf32>
    tpu.vector_store %arg6[%c40, %c0_13], %30 {strides = array<i32>} : memref<72x256xf32, #tpu.memory_space<vmem>>, vector<1x256xf32>,
    %32 = vector.extract_strided_slice %1 {offsets = [1, 0, 1], sizes = [1, 16, 16], strides = [1, 1, 1]} : vector<4x18x18xf32> to vector<1x16x16xf32>
    %33 = vector.shape_cast %32 : vector<1x16x16xf32> to vector<16x16xf32>
    %34 = vector.shape_cast %33 : vector<16x16xf32> to vector<1x256xf32>
    %c5 = arith.constant 5 : index
    %c0_14 = arith.constant 0 : index
    %35 = vector.load %arg6[%c5, %c0_14] : memref<72x256xf32, #tpu.memory_space<vmem>>, vector<1x256xf32>
    tpu.vector_store %arg6[%c5, %c0_14], %34 {strides = array<i32>} : memref<72x256xf32, #tpu.memory_space<vmem>>, vector<1x256xf32>,
    %36 = arith.mulf %34, %34 : vector<1x256xf32>
    %c41 = arith.constant 41 : index
    %c0_15 = arith.constant 0 : index
    %37 = vector.load %arg6[%c41, %c0_15] : memref<72x256xf32, #tpu.memory_space<vmem>>, vector<1x256xf32>
    tpu.vector_store %arg6[%c41, %c0_15], %36 {strides = array<i32>} : memref<72x256xf32, #tpu.memory_space<vmem>>, vector<1x256xf32>,
    %38 = vector.extract_strided_slice %1 {offsets = [2, 0, 1], sizes = [1, 16, 16], strides = [1, 1, 1]} : vector<4x18x18xf32> to vector<1x16x16xf32>
    %39 = vector.shape_cast %38 : vector<1x16x16xf32> to vector<16x16xf32>
    %40 = vector.shape_cast %39 : vector<16x16xf32> to vector<1x256xf32>
    %c6 = arith.constant 6 : index
    %c0_16 = arith.constant 0 : index
    %41 = vector.load %arg6[%c6, %c0_16] : memref<72x256xf32, #tpu.memory_space<vmem>>, vector<1x256xf32>
    tpu.vector_store %arg6[%c6, %c0_16], %40 {strides = array<i32>} : memref<72x256xf32, #tpu.memory_space<vmem>>, vector<1x256xf32>,
    %42 = arith.mulf %40, %40 : vector<1x256xf32>
    %c42 = arith.constant 42 : index
    %c0_17 = arith.constant 0 : index
    %43 = vector.load %arg6[%c42, %c0_17] : memref<72x256xf32, #tpu.memory_space<vmem>>, vector<1x256xf32>
    tpu.vector_store %arg6[%c42, %c0_17], %42 {strides = array<i32>} : memref<72x256xf32, #tpu.memory_space<vmem>>, vector<1x256xf32>,
    %44 = vector.extract_strided_slice %1 {offsets = [3, 0, 1], sizes = [1, 16, 16], strides = [1, 1, 1]} : vector<4x18x18xf32> to vector<1x16x16xf32>
    %45 = vector.shape_cast %44 : vector<1x16x16xf32> to vector<16x16xf32>
    %46 = vector.shape_cast %45 : vector<16x16xf32> to vector<1x256xf32>
    %c7 = arith.constant 7 : index
    %c0_18 = arith.constant 0 : index
    %47 = vector.load %arg6[%c7, %c0_18] : memref<72x256xf32, #tpu.memory_space<vmem>>, vector<1x256xf32>
    tpu.vector_store %arg6[%c7, %c0_18], %46 {strides = array<i32>} : memref<72x256xf32, #tpu.memory_space<vmem>>, vector<1x256xf32>,
    %48 = arith.mulf %46, %46 : vector<1x256xf32>
    %c43 = arith.constant 43 : index
    %c0_19 = arith.constant 0 : index
    %49 = vector.load %arg6[%c43, %c0_19] : memref<72x256xf32, #tpu.memory_space<vmem>>, vector<1x256xf32>
    tpu.vector_store %arg6[%c43, %c0_19], %48 {strides = array<i32>} : memref<72x256xf32, #tpu.memory_space<vmem>>, vector<1x256xf32>,
    %50 = vector.extract_strided_slice %1 {offsets = [0, 0, 2], sizes = [1, 16, 16], strides = [1, 1, 1]} : vector<4x18x18xf32> to vector<1x16x16xf32>
    %51 = vector.shape_cast %50 : vector<1x16x16xf32> to vector<16x16xf32>
    %52 = vector.shape_cast %51 : vector<16x16xf32> to vector<1x256xf32>
    %c8 = arith.constant 8 : index
    %c0_20 = arith.constant 0 : index
    %53 = vector.load %arg6[%c8, %c0_20] : memref<72x256xf32, #tpu.memory_space<vmem>>, vector<1x256xf32>
    tpu.vector_store %arg6[%c8, %c0_20], %52 {strides = array<i32>} : memref<72x256xf32, #tpu.memory_space<vmem>>, vector<1x256xf32>,
    %54 = arith.mulf %52, %52 : vector<1x256xf32>
    %c44 = arith.constant 44 : index
    %c0_21 = arith.constant 0 : index
    %55 = vector.load %arg6[%c44, %c0_21] : memref<72x256xf32, #tpu.memory_space<vmem>>, vector<1x256xf32>
    tpu.vector_store %arg6[%c44, %c0_21], %54 {strides = array<i32>} : memref<72x256xf32, #tpu.memory_space<vmem>>, vector<1x256xf32>,
    %56 = vector.extract_strided_slice %1 {offsets = [1, 0, 2], sizes = [1, 16, 16], strides = [1, 1, 1]} : vector<4x18x18xf32> to vector<1x16x16xf32>
    %57 = vector.shape_cast %56 : vector<1x16x16xf32> to vector<16x16xf32>
    %58 = vector.shape_cast %57 : vector<16x16xf32> to vector<1x256xf32>
    %c9 = arith.constant 9 : index
    %c0_22 = arith.constant 0 : index
    %59 = vector.load %arg6[%c9, %c0_22] : memref<72x256xf32, #tpu.memory_space<vmem>>, vector<1x256xf32>
    tpu.vector_store %arg6[%c9, %c0_22], %58 {strides = array<i32>} : memref<72x256xf32, #tpu.memory_space<vmem>>, vector<1x256xf32>,
    %60 = arith.mulf %58, %58 : vector<1x256xf32>
    %c45 = arith.constant 45 : index
    %c0_23 = arith.constant 0 : index
    %61 = vector.load %arg6[%c45, %c0_23] : memref<72x256xf32, #tpu.memory_space<vmem>>, vector<1x256xf32>
    tpu.vector_store %arg6[%c45, %c0_23], %60 {strides = array<i32>} : memref<72x256xf32, #tpu.memory_space<vmem>>, vector<1x256xf32>,
    %62 = vector.extract_strided_slice %1 {offsets = [2, 0, 2], sizes = [1, 16, 16], strides = [1, 1, 1]} : vector<4x18x18xf32> to vector<1x16x16xf32>
    %63 = vector.shape_cast %62 : vector<1x16x16xf32> to vector<16x16xf32>
    %64 = vector.shape_cast %63 : vector<16x16xf32> to vector<1x256xf32>
    %c10 = arith.constant 10 : index
    %c0_24 = arith.constant 0 : index
    %65 = vector.load %arg6[%c10, %c0_24] : memref<72x256xf32, #tpu.memory_space<vmem>>, vector<1x256xf32>
    tpu.vector_store %arg6[%c10, %c0_24], %64 {strides = array<i32>} : memref<72x256xf32, #tpu.memory_space<vmem>>, vector<1x256xf32>,
    %66 = arith.mulf %64, %64 : vector<1x256xf32>
    %c46 = arith.constant 46 : index
    %c0_25 = arith.constant 0 : index
    %67 = vector.load %arg6[%c46, %c0_25] : memref<72x256xf32, #tpu.memory_space<vmem>>, vector<1x256xf32>
    tpu.vector_store %arg6[%c46, %c0_25], %66 {strides = array<i32>} : memref<72x256xf32, #tpu.memory_space<vmem>>, vector<1x256xf32>,
    %68 = vector.extract_strided_slice %1 {offsets = [3, 0, 2], sizes = [1, 16, 16], strides = [1, 1, 1]} : vector<4x18x18xf32> to vector<1x16x16xf32>
    %69 = vector.shape_cast %68 : vector<1x16x16xf32> to vector<16x16xf32>
    %70 = vector.shape_cast %69 : vector<16x16xf32> to vector<1x256xf32>
    %c11 = arith.constant 11 : index
    %c0_26 = arith.constant 0 : index
    %71 = vector.load %arg6[%c11, %c0_26] : memref<72x256xf32, #tpu.memory_space<vmem>>, vector<1x256xf32>
    tpu.vector_store %arg6[%c11, %c0_26], %70 {strides = array<i32>} : memref<72x256xf32, #tpu.memory_space<vmem>>, vector<1x256xf32>,
    %72 = arith.mulf %70, %70 : vector<1x256xf32>
    %c47 = arith.constant 47 : index
    %c0_27 = arith.constant 0 : index
    %73 = vector.load %arg6[%c47, %c0_27] : memref<72x256xf32, #tpu.memory_space<vmem>>, vector<1x256xf32>
    tpu.vector_store %arg6[%c47, %c0_27], %72 {strides = array<i32>} : memref<72x256xf32, #tpu.memory_space<vmem>>, vector<1x256xf32>,
    %74 = vector.extract_strided_slice %1 {offsets = [0, 1, 0], sizes = [1, 16, 16], strides = [1, 1, 1]} : vector<4x18x18xf32> to vector<1x16x16xf32>
    %75 = vector.shape_cast %74 : vector<1x16x16xf32> to vector<16x16xf32>
    %76 = vector.shape_cast %75 : vector<16x16xf32> to vector<1x256xf32>
    %c12 = arith.constant 12 : index
    %c0_28 = arith.constant 0 : index
    %77 = vector.load %arg6[%c12, %c0_28] : memref<72x256xf32, #tpu.memory_space<vmem>>, vector<1x256xf32>
    tpu.vector_store %arg6[%c12, %c0_28], %76 {strides = array<i32>} : memref<72x256xf32, #tpu.memory_space<vmem>>, vector<1x256xf32>,
    %78 = arith.mulf %76, %76 : vector<1x256xf32>
    %c48 = arith.constant 48 : index
    %c0_29 = arith.constant 0 : index
    %79 = vector.load %arg6[%c48, %c0_29] : memref<72x256xf32, #tpu.memory_space<vmem>>, vector<1x256xf32>
    tpu.vector_store %arg6[%c48, %c0_29], %78 {strides = array<i32>} : memref<72x256xf32, #tpu.memory_space<vmem>>, vector<1x256xf32>,
    %80 = vector.extract_strided_slice %1 {offsets = [1, 1, 0], sizes = [1, 16, 16], strides = [1, 1, 1]} : vector<4x18x18xf32> to vector<1x16x16xf32>
    %81 = vector.shape_cast %80 : vector<1x16x16xf32> to vector<16x16xf32>
    %82 = vector.shape_cast %81 : vector<16x16xf32> to vector<1x256xf32>
    %c13 = arith.constant 13 : index
    %c0_30 = arith.constant 0 : index
    %83 = vector.load %arg6[%c13, %c0_30] : memref<72x256xf32, #tpu.memory_space<vmem>>, vector<1x256xf32>
    tpu.vector_store %arg6[%c13, %c0_30], %82 {strides = array<i32>} : memref<72x256xf32, #tpu.memory_space<vmem>>, vector<1x256xf32>,
    %84 = arith.mulf %82, %82 : vector<1x256xf32>
    %c49 = arith.constant 49 : index
    %c0_31 = arith.constant 0 : index
    %85 = vector.load %arg6[%c49, %c0_31] : memref<72x256xf32, #tpu.memory_space<vmem>>, vector<1x256xf32>
    tpu.vector_store %arg6[%c49, %c0_31], %84 {strides = array<i32>} : memref<72x256xf32, #tpu.memory_space<vmem>>, vector<1x256xf32>,
    %86 = vector.extract_strided_slice %1 {offsets = [2, 1, 0], sizes = [1, 16, 16], strides = [1, 1, 1]} : vector<4x18x18xf32> to vector<1x16x16xf32>
    %87 = vector.shape_cast %86 : vector<1x16x16xf32> to vector<16x16xf32>
    %88 = vector.shape_cast %87 : vector<16x16xf32> to vector<1x256xf32>
    %c14 = arith.constant 14 : index
    %c0_32 = arith.constant 0 : index
    %89 = vector.load %arg6[%c14, %c0_32] : memref<72x256xf32, #tpu.memory_space<vmem>>, vector<1x256xf32>
    tpu.vector_store %arg6[%c14, %c0_32], %88 {strides = array<i32>} : memref<72x256xf32, #tpu.memory_space<vmem>>, vector<1x256xf32>,
    %90 = arith.mulf %88, %88 : vector<1x256xf32>
    %c50 = arith.constant 50 : index
    %c0_33 = arith.constant 0 : index
    %91 = vector.load %arg6[%c50, %c0_33] : memref<72x256xf32, #tpu.memory_space<vmem>>, vector<1x256xf32>
    tpu.vector_store %arg6[%c50, %c0_33], %90 {strides = array<i32>} : memref<72x256xf32, #tpu.memory_space<vmem>>, vector<1x256xf32>,
    %92 = vector.extract_strided_slice %1 {offsets = [3, 1, 0], sizes = [1, 16, 16], strides = [1, 1, 1]} : vector<4x18x18xf32> to vector<1x16x16xf32>
    %93 = vector.shape_cast %92 : vector<1x16x16xf32> to vector<16x16xf32>
    %94 = vector.shape_cast %93 : vector<16x16xf32> to vector<1x256xf32>
    %c15 = arith.constant 15 : index
    %c0_34 = arith.constant 0 : index
    %95 = vector.load %arg6[%c15, %c0_34] : memref<72x256xf32, #tpu.memory_space<vmem>>, vector<1x256xf32>
    tpu.vector_store %arg6[%c15, %c0_34], %94 {strides = array<i32>} : memref<72x256xf32, #tpu.memory_space<vmem>>, vector<1x256xf32>,
    %96 = arith.mulf %94, %94 : vector<1x256xf32>
    %c51 = arith.constant 51 : index
    %c0_35 = arith.constant 0 : index
    %97 = vector.load %arg6[%c51, %c0_35] : memref<72x256xf32, #tpu.memory_space<vmem>>, vector<1x256xf32>
    tpu.vector_store %arg6[%c51, %c0_35], %96 {strides = array<i32>} : memref<72x256xf32, #tpu.memory_space<vmem>>, vector<1x256xf32>,
    %98 = vector.extract_strided_slice %1 {offsets = [0, 1, 1], sizes = [1, 16, 16], strides = [1, 1, 1]} : vector<4x18x18xf32> to vector<1x16x16xf32>
    %99 = vector.shape_cast %98 : vector<1x16x16xf32> to vector<16x16xf32>
    %100 = vector.shape_cast %99 : vector<16x16xf32> to vector<1x256xf32>
    %c16 = arith.constant 16 : index
    %c0_36 = arith.constant 0 : index
    %101 = vector.load %arg6[%c16, %c0_36] : memref<72x256xf32, #tpu.memory_space<vmem>>, vector<1x256xf32>
    tpu.vector_store %arg6[%c16, %c0_36], %100 {strides = array<i32>} : memref<72x256xf32, #tpu.memory_space<vmem>>, vector<1x256xf32>,
    %102 = arith.mulf %100, %100 : vector<1x256xf32>
    %c52 = arith.constant 52 : index
    %c0_37 = arith.constant 0 : index
    %103 = vector.load %arg6[%c52, %c0_37] : memref<72x256xf32, #tpu.memory_space<vmem>>, vector<1x256xf32>
    tpu.vector_store %arg6[%c52, %c0_37], %102 {strides = array<i32>} : memref<72x256xf32, #tpu.memory_space<vmem>>, vector<1x256xf32>,
    %104 = vector.extract_strided_slice %1 {offsets = [1, 1, 1], sizes = [1, 16, 16], strides = [1, 1, 1]} : vector<4x18x18xf32> to vector<1x16x16xf32>
    %105 = vector.shape_cast %104 : vector<1x16x16xf32> to vector<16x16xf32>
    %106 = vector.shape_cast %105 : vector<16x16xf32> to vector<1x256xf32>
    %c17 = arith.constant 17 : index
    %c0_38 = arith.constant 0 : index
    %107 = vector.load %arg6[%c17, %c0_38] : memref<72x256xf32, #tpu.memory_space<vmem>>, vector<1x256xf32>
    tpu.vector_store %arg6[%c17, %c0_38], %106 {strides = array<i32>} : memref<72x256xf32, #tpu.memory_space<vmem>>, vector<1x256xf32>,
    %108 = arith.mulf %106, %106 : vector<1x256xf32>
    %c53 = arith.constant 53 : index
    %c0_39 = arith.constant 0 : index
    %109 = vector.load %arg6[%c53, %c0_39] : memref<72x256xf32, #tpu.memory_space<vmem>>, vector<1x256xf32>
    tpu.vector_store %arg6[%c53, %c0_39], %108 {strides = array<i32>} : memref<72x256xf32, #tpu.memory_space<vmem>>, vector<1x256xf32>,
    %110 = vector.extract_strided_slice %1 {offsets = [2, 1, 1], sizes = [1, 16, 16], strides = [1, 1, 1]} : vector<4x18x18xf32> to vector<1x16x16xf32>
    %111 = vector.shape_cast %110 : vector<1x16x16xf32> to vector<16x16xf32>
    %112 = vector.shape_cast %111 : vector<16x16xf32> to vector<1x256xf32>
    %c18 = arith.constant 18 : index
    %c0_40 = arith.constant 0 : index
    %113 = vector.load %arg6[%c18, %c0_40] : memref<72x256xf32, #tpu.memory_space<vmem>>, vector<1x256xf32>
    tpu.vector_store %arg6[%c18, %c0_40], %112 {strides = array<i32>} : memref<72x256xf32, #tpu.memory_space<vmem>>, vector<1x256xf32>,
    %114 = arith.mulf %112, %112 : vector<1x256xf32>
    %c54 = arith.constant 54 : index
    %c0_41 = arith.constant 0 : index
    %115 = vector.load %arg6[%c54, %c0_41] : memref<72x256xf32, #tpu.memory_space<vmem>>, vector<1x256xf32>
    tpu.vector_store %arg6[%c54, %c0_41], %114 {strides = array<i32>} : memref<72x256xf32, #tpu.memory_space<vmem>>, vector<1x256xf32>,
    %116 = vector.extract_strided_slice %1 {offsets = [3, 1, 1], sizes = [1, 16, 16], strides = [1, 1, 1]} : vector<4x18x18xf32> to vector<1x16x16xf32>
    %117 = vector.shape_cast %116 : vector<1x16x16xf32> to vector<16x16xf32>
    %118 = vector.shape_cast %117 : vector<16x16xf32> to vector<1x256xf32>
    %c19 = arith.constant 19 : index
    %c0_42 = arith.constant 0 : index
    %119 = vector.load %arg6[%c19, %c0_42] : memref<72x256xf32, #tpu.memory_space<vmem>>, vector<1x256xf32>
    tpu.vector_store %arg6[%c19, %c0_42], %118 {strides = array<i32>} : memref<72x256xf32, #tpu.memory_space<vmem>>, vector<1x256xf32>,
    %120 = arith.mulf %118, %118 : vector<1x256xf32>
    %c55 = arith.constant 55 : index
    %c0_43 = arith.constant 0 : index
    %121 = vector.load %arg6[%c55, %c0_43] : memref<72x256xf32, #tpu.memory_space<vmem>>, vector<1x256xf32>
    tpu.vector_store %arg6[%c55, %c0_43], %120 {strides = array<i32>} : memref<72x256xf32, #tpu.memory_space<vmem>>, vector<1x256xf32>,
    %122 = vector.extract_strided_slice %1 {offsets = [0, 1, 2], sizes = [1, 16, 16], strides = [1, 1, 1]} : vector<4x18x18xf32> to vector<1x16x16xf32>
    %123 = vector.shape_cast %122 : vector<1x16x16xf32> to vector<16x16xf32>
    %124 = vector.shape_cast %123 : vector<16x16xf32> to vector<1x256xf32>
    %c20 = arith.constant 20 : index
    %c0_44 = arith.constant 0 : index
    %125 = vector.load %arg6[%c20, %c0_44] : memref<72x256xf32, #tpu.memory_space<vmem>>, vector<1x256xf32>
    tpu.vector_store %arg6[%c20, %c0_44], %124 {strides = array<i32>} : memref<72x256xf32, #tpu.memory_space<vmem>>, vector<1x256xf32>,
    %126 = arith.mulf %124, %124 : vector<1x256xf32>
    %c56 = arith.constant 56 : index
    %c0_45 = arith.constant 0 : index
    %127 = vector.load %arg6[%c56, %c0_45] : memref<72x256xf32, #tpu.memory_space<vmem>>, vector<1x256xf32>
    tpu.vector_store %arg6[%c56, %c0_45], %126 {strides = array<i32>} : memref<72x256xf32, #tpu.memory_space<vmem>>, vector<1x256xf32>,
    %128 = vector.extract_strided_slice %1 {offsets = [1, 1, 2], sizes = [1, 16, 16], strides = [1, 1, 1]} : vector<4x18x18xf32> to vector<1x16x16xf32>
    %129 = vector.shape_cast %128 : vector<1x16x16xf32> to vector<16x16xf32>
    %130 = vector.shape_cast %129 : vector<16x16xf32> to vector<1x256xf32>
    %c21 = arith.constant 21 : index
    %c0_46 = arith.constant 0 : index
    %131 = vector.load %arg6[%c21, %c0_46] : memref<72x256xf32, #tpu.memory_space<vmem>>, vector<1x256xf32>
    tpu.vector_store %arg6[%c21, %c0_46], %130 {strides = array<i32>} : memref<72x256xf32, #tpu.memory_space<vmem>>, vector<1x256xf32>,
    %132 = arith.mulf %130, %130 : vector<1x256xf32>
    %c57 = arith.constant 57 : index
    %c0_47 = arith.constant 0 : index
    %133 = vector.load %arg6[%c57, %c0_47] : memref<72x256xf32, #tpu.memory_space<vmem>>, vector<1x256xf32>
    tpu.vector_store %arg6[%c57, %c0_47], %132 {strides = array<i32>} : memref<72x256xf32, #tpu.memory_space<vmem>>, vector<1x256xf32>,
    %134 = vector.extract_strided_slice %1 {offsets = [2, 1, 2], sizes = [1, 16, 16], strides = [1, 1, 1]} : vector<4x18x18xf32> to vector<1x16x16xf32>
    %135 = vector.shape_cast %134 : vector<1x16x16xf32> to vector<16x16xf32>
    %136 = vector.shape_cast %135 : vector<16x16xf32> to vector<1x256xf32>
    %c22 = arith.constant 22 : index
    %c0_48 = arith.constant 0 : index
    %137 = vector.load %arg6[%c22, %c0_48] : memref<72x256xf32, #tpu.memory_space<vmem>>, vector<1x256xf32>
    tpu.vector_store %arg6[%c22, %c0_48], %136 {strides = array<i32>} : memref<72x256xf32, #tpu.memory_space<vmem>>, vector<1x256xf32>,
    %138 = arith.mulf %136, %136 : vector<1x256xf32>
    %c58 = arith.constant 58 : index
    %c0_49 = arith.constant 0 : index
    %139 = vector.load %arg6[%c58, %c0_49] : memref<72x256xf32, #tpu.memory_space<vmem>>, vector<1x256xf32>
    tpu.vector_store %arg6[%c58, %c0_49], %138 {strides = array<i32>} : memref<72x256xf32, #tpu.memory_space<vmem>>, vector<1x256xf32>,
    %140 = vector.extract_strided_slice %1 {offsets = [3, 1, 2], sizes = [1, 16, 16], strides = [1, 1, 1]} : vector<4x18x18xf32> to vector<1x16x16xf32>
    %141 = vector.shape_cast %140 : vector<1x16x16xf32> to vector<16x16xf32>
    %142 = vector.shape_cast %141 : vector<16x16xf32> to vector<1x256xf32>
    %c23 = arith.constant 23 : index
    %c0_50 = arith.constant 0 : index
    %143 = vector.load %arg6[%c23, %c0_50] : memref<72x256xf32, #tpu.memory_space<vmem>>, vector<1x256xf32>
    tpu.vector_store %arg6[%c23, %c0_50], %142 {strides = array<i32>} : memref<72x256xf32, #tpu.memory_space<vmem>>, vector<1x256xf32>,
    %144 = arith.mulf %142, %142 : vector<1x256xf32>
    %c59 = arith.constant 59 : index
    %c0_51 = arith.constant 0 : index
    %145 = vector.load %arg6[%c59, %c0_51] : memref<72x256xf32, #tpu.memory_space<vmem>>, vector<1x256xf32>
    tpu.vector_store %arg6[%c59, %c0_51], %144 {strides = array<i32>} : memref<72x256xf32, #tpu.memory_space<vmem>>, vector<1x256xf32>,
    %146 = vector.extract_strided_slice %1 {offsets = [0, 2, 0], sizes = [1, 16, 16], strides = [1, 1, 1]} : vector<4x18x18xf32> to vector<1x16x16xf32>
    %147 = vector.shape_cast %146 : vector<1x16x16xf32> to vector<16x16xf32>
    %148 = vector.shape_cast %147 : vector<16x16xf32> to vector<1x256xf32>
    %c24 = arith.constant 24 : index
    %c0_52 = arith.constant 0 : index
    %149 = vector.load %arg6[%c24, %c0_52] : memref<72x256xf32, #tpu.memory_space<vmem>>, vector<1x256xf32>
    tpu.vector_store %arg6[%c24, %c0_52], %148 {strides = array<i32>} : memref<72x256xf32, #tpu.memory_space<vmem>>, vector<1x256xf32>,
    %150 = arith.mulf %148, %148 : vector<1x256xf32>
    %c60 = arith.constant 60 : index
    %c0_53 = arith.constant 0 : index
    %151 = vector.load %arg6[%c60, %c0_53] : memref<72x256xf32, #tpu.memory_space<vmem>>, vector<1x256xf32>
    tpu.vector_store %arg6[%c60, %c0_53], %150 {strides = array<i32>} : memref<72x256xf32, #tpu.memory_space<vmem>>, vector<1x256xf32>,
    %152 = vector.extract_strided_slice %1 {offsets = [1, 2, 0], sizes = [1, 16, 16], strides = [1, 1, 1]} : vector<4x18x18xf32> to vector<1x16x16xf32>
    %153 = vector.shape_cast %152 : vector<1x16x16xf32> to vector<16x16xf32>
    %154 = vector.shape_cast %153 : vector<16x16xf32> to vector<1x256xf32>
    %c25 = arith.constant 25 : index
    %c0_54 = arith.constant 0 : index
    %155 = vector.load %arg6[%c25, %c0_54] : memref<72x256xf32, #tpu.memory_space<vmem>>, vector<1x256xf32>
    tpu.vector_store %arg6[%c25, %c0_54], %154 {strides = array<i32>} : memref<72x256xf32, #tpu.memory_space<vmem>>, vector<1x256xf32>,
    %156 = arith.mulf %154, %154 : vector<1x256xf32>
    %c61 = arith.constant 61 : index
    %c0_55 = arith.constant 0 : index
    %157 = vector.load %arg6[%c61, %c0_55] : memref<72x256xf32, #tpu.memory_space<vmem>>, vector<1x256xf32>
    tpu.vector_store %arg6[%c61, %c0_55], %156 {strides = array<i32>} : memref<72x256xf32, #tpu.memory_space<vmem>>, vector<1x256xf32>,
    %158 = vector.extract_strided_slice %1 {offsets = [2, 2, 0], sizes = [1, 16, 16], strides = [1, 1, 1]} : vector<4x18x18xf32> to vector<1x16x16xf32>
    %159 = vector.shape_cast %158 : vector<1x16x16xf32> to vector<16x16xf32>
    %160 = vector.shape_cast %159 : vector<16x16xf32> to vector<1x256xf32>
    %c26 = arith.constant 26 : index
    %c0_56 = arith.constant 0 : index
    %161 = vector.load %arg6[%c26, %c0_56] : memref<72x256xf32, #tpu.memory_space<vmem>>, vector<1x256xf32>
    tpu.vector_store %arg6[%c26, %c0_56], %160 {strides = array<i32>} : memref<72x256xf32, #tpu.memory_space<vmem>>, vector<1x256xf32>,
    %162 = arith.mulf %160, %160 : vector<1x256xf32>
    %c62 = arith.constant 62 : index
    %c0_57 = arith.constant 0 : index
    %163 = vector.load %arg6[%c62, %c0_57] : memref<72x256xf32, #tpu.memory_space<vmem>>, vector<1x256xf32>
    tpu.vector_store %arg6[%c62, %c0_57], %162 {strides = array<i32>} : memref<72x256xf32, #tpu.memory_space<vmem>>, vector<1x256xf32>,
    %164 = vector.extract_strided_slice %1 {offsets = [3, 2, 0], sizes = [1, 16, 16], strides = [1, 1, 1]} : vector<4x18x18xf32> to vector<1x16x16xf32>
    %165 = vector.shape_cast %164 : vector<1x16x16xf32> to vector<16x16xf32>
    %166 = vector.shape_cast %165 : vector<16x16xf32> to vector<1x256xf32>
    %c27 = arith.constant 27 : index
    %c0_58 = arith.constant 0 : index
    %167 = vector.load %arg6[%c27, %c0_58] : memref<72x256xf32, #tpu.memory_space<vmem>>, vector<1x256xf32>
    tpu.vector_store %arg6[%c27, %c0_58], %166 {strides = array<i32>} : memref<72x256xf32, #tpu.memory_space<vmem>>, vector<1x256xf32>,
    %168 = arith.mulf %166, %166 : vector<1x256xf32>
    %c63 = arith.constant 63 : index
    %c0_59 = arith.constant 0 : index
    %169 = vector.load %arg6[%c63, %c0_59] : memref<72x256xf32, #tpu.memory_space<vmem>>, vector<1x256xf32>
    tpu.vector_store %arg6[%c63, %c0_59], %168 {strides = array<i32>} : memref<72x256xf32, #tpu.memory_space<vmem>>, vector<1x256xf32>,
    %170 = vector.extract_strided_slice %1 {offsets = [0, 2, 1], sizes = [1, 16, 16], strides = [1, 1, 1]} : vector<4x18x18xf32> to vector<1x16x16xf32>
    %171 = vector.shape_cast %170 : vector<1x16x16xf32> to vector<16x16xf32>
    %172 = vector.shape_cast %171 : vector<16x16xf32> to vector<1x256xf32>
    %c28 = arith.constant 28 : index
    %c0_60 = arith.constant 0 : index
    %173 = vector.load %arg6[%c28, %c0_60] : memref<72x256xf32, #tpu.memory_space<vmem>>, vector<1x256xf32>
    tpu.vector_store %arg6[%c28, %c0_60], %172 {strides = array<i32>} : memref<72x256xf32, #tpu.memory_space<vmem>>, vector<1x256xf32>,
    %174 = arith.mulf %172, %172 : vector<1x256xf32>
    %c64 = arith.constant 64 : index
    %c0_61 = arith.constant 0 : index
    %175 = vector.load %arg6[%c64, %c0_61] : memref<72x256xf32, #tpu.memory_space<vmem>>, vector<1x256xf32>
    tpu.vector_store %arg6[%c64, %c0_61], %174 {strides = array<i32>} : memref<72x256xf32, #tpu.memory_space<vmem>>, vector<1x256xf32>,
    %176 = vector.extract_strided_slice %1 {offsets = [1, 2, 1], sizes = [1, 16, 16], strides = [1, 1, 1]} : vector<4x18x18xf32> to vector<1x16x16xf32>
    %177 = vector.shape_cast %176 : vector<1x16x16xf32> to vector<16x16xf32>
    %178 = vector.shape_cast %177 : vector<16x16xf32> to vector<1x256xf32>
    %c29 = arith.constant 29 : index
    %c0_62 = arith.constant 0 : index
    %179 = vector.load %arg6[%c29, %c0_62] : memref<72x256xf32, #tpu.memory_space<vmem>>, vector<1x256xf32>
    tpu.vector_store %arg6[%c29, %c0_62], %178 {strides = array<i32>} : memref<72x256xf32, #tpu.memory_space<vmem>>, vector<1x256xf32>,
    %180 = arith.mulf %178, %178 : vector<1x256xf32>
    %c65 = arith.constant 65 : index
    %c0_63 = arith.constant 0 : index
    %181 = vector.load %arg6[%c65, %c0_63] : memref<72x256xf32, #tpu.memory_space<vmem>>, vector<1x256xf32>
    tpu.vector_store %arg6[%c65, %c0_63], %180 {strides = array<i32>} : memref<72x256xf32, #tpu.memory_space<vmem>>, vector<1x256xf32>,
    %182 = vector.extract_strided_slice %1 {offsets = [2, 2, 1], sizes = [1, 16, 16], strides = [1, 1, 1]} : vector<4x18x18xf32> to vector<1x16x16xf32>
    %183 = vector.shape_cast %182 : vector<1x16x16xf32> to vector<16x16xf32>
    %184 = vector.shape_cast %183 : vector<16x16xf32> to vector<1x256xf32>
    %c30 = arith.constant 30 : index
    %c0_64 = arith.constant 0 : index
    %185 = vector.load %arg6[%c30, %c0_64] : memref<72x256xf32, #tpu.memory_space<vmem>>, vector<1x256xf32>
    tpu.vector_store %arg6[%c30, %c0_64], %184 {strides = array<i32>} : memref<72x256xf32, #tpu.memory_space<vmem>>, vector<1x256xf32>,
    %186 = arith.mulf %184, %184 : vector<1x256xf32>
    %c66 = arith.constant 66 : index
    %c0_65 = arith.constant 0 : index
    %187 = vector.load %arg6[%c66, %c0_65] : memref<72x256xf32, #tpu.memory_space<vmem>>, vector<1x256xf32>
    tpu.vector_store %arg6[%c66, %c0_65], %186 {strides = array<i32>} : memref<72x256xf32, #tpu.memory_space<vmem>>, vector<1x256xf32>,
    %188 = vector.extract_strided_slice %1 {offsets = [3, 2, 1], sizes = [1, 16, 16], strides = [1, 1, 1]} : vector<4x18x18xf32> to vector<1x16x16xf32>
    %189 = vector.shape_cast %188 : vector<1x16x16xf32> to vector<16x16xf32>
    %190 = vector.shape_cast %189 : vector<16x16xf32> to vector<1x256xf32>
    %c31 = arith.constant 31 : index
    %c0_66 = arith.constant 0 : index
    %191 = vector.load %arg6[%c31, %c0_66] : memref<72x256xf32, #tpu.memory_space<vmem>>, vector<1x256xf32>
    tpu.vector_store %arg6[%c31, %c0_66], %190 {strides = array<i32>} : memref<72x256xf32, #tpu.memory_space<vmem>>, vector<1x256xf32>,
    %192 = arith.mulf %190, %190 : vector<1x256xf32>
    %c67 = arith.constant 67 : index
    %c0_67 = arith.constant 0 : index
    %193 = vector.load %arg6[%c67, %c0_67] : memref<72x256xf32, #tpu.memory_space<vmem>>, vector<1x256xf32>
    tpu.vector_store %arg6[%c67, %c0_67], %192 {strides = array<i32>} : memref<72x256xf32, #tpu.memory_space<vmem>>, vector<1x256xf32>,
    %194 = vector.extract_strided_slice %1 {offsets = [0, 2, 2], sizes = [1, 16, 16], strides = [1, 1, 1]} : vector<4x18x18xf32> to vector<1x16x16xf32>
    %195 = vector.shape_cast %194 : vector<1x16x16xf32> to vector<16x16xf32>
    %196 = vector.shape_cast %195 : vector<16x16xf32> to vector<1x256xf32>
    %c32 = arith.constant 32 : index
    %c0_68 = arith.constant 0 : index
    %197 = vector.load %arg6[%c32, %c0_68] : memref<72x256xf32, #tpu.memory_space<vmem>>, vector<1x256xf32>
    tpu.vector_store %arg6[%c32, %c0_68], %196 {strides = array<i32>} : memref<72x256xf32, #tpu.memory_space<vmem>>, vector<1x256xf32>,
    %198 = arith.mulf %196, %196 : vector<1x256xf32>
    %c68 = arith.constant 68 : index
    %c0_69 = arith.constant 0 : index
    %199 = vector.load %arg6[%c68, %c0_69] : memref<72x256xf32, #tpu.memory_space<vmem>>, vector<1x256xf32>
    tpu.vector_store %arg6[%c68, %c0_69], %198 {strides = array<i32>} : memref<72x256xf32, #tpu.memory_space<vmem>>, vector<1x256xf32>,
    %200 = vector.extract_strided_slice %1 {offsets = [1, 2, 2], sizes = [1, 16, 16], strides = [1, 1, 1]} : vector<4x18x18xf32> to vector<1x16x16xf32>
    %201 = vector.shape_cast %200 : vector<1x16x16xf32> to vector<16x16xf32>
    %202 = vector.shape_cast %201 : vector<16x16xf32> to vector<1x256xf32>
    %c33 = arith.constant 33 : index
    %c0_70 = arith.constant 0 : index
    %203 = vector.load %arg6[%c33, %c0_70] : memref<72x256xf32, #tpu.memory_space<vmem>>, vector<1x256xf32>
    tpu.vector_store %arg6[%c33, %c0_70], %202 {strides = array<i32>} : memref<72x256xf32, #tpu.memory_space<vmem>>, vector<1x256xf32>,
    %204 = arith.mulf %202, %202 : vector<1x256xf32>
    %c69 = arith.constant 69 : index
    %c0_71 = arith.constant 0 : index
    %205 = vector.load %arg6[%c69, %c0_71] : memref<72x256xf32, #tpu.memory_space<vmem>>, vector<1x256xf32>
    tpu.vector_store %arg6[%c69, %c0_71], %204 {strides = array<i32>} : memref<72x256xf32, #tpu.memory_space<vmem>>, vector<1x256xf32>,
    %206 = vector.extract_strided_slice %1 {offsets = [2, 2, 2], sizes = [1, 16, 16], strides = [1, 1, 1]} : vector<4x18x18xf32> to vector<1x16x16xf32>
    %207 = vector.shape_cast %206 : vector<1x16x16xf32> to vector<16x16xf32>
    %208 = vector.shape_cast %207 : vector<16x16xf32> to vector<1x256xf32>
    %c34 = arith.constant 34 : index
    %c0_72 = arith.constant 0 : index
    %209 = vector.load %arg6[%c34, %c0_72] : memref<72x256xf32, #tpu.memory_space<vmem>>, vector<1x256xf32>
    tpu.vector_store %arg6[%c34, %c0_72], %208 {strides = array<i32>} : memref<72x256xf32, #tpu.memory_space<vmem>>, vector<1x256xf32>,
    %210 = arith.mulf %208, %208 : vector<1x256xf32>
    %c70 = arith.constant 70 : index
    %c0_73 = arith.constant 0 : index
    %211 = vector.load %arg6[%c70, %c0_73] : memref<72x256xf32, #tpu.memory_space<vmem>>, vector<1x256xf32>
    tpu.vector_store %arg6[%c70, %c0_73], %210 {strides = array<i32>} : memref<72x256xf32, #tpu.memory_space<vmem>>, vector<1x256xf32>,
    %212 = vector.extract_strided_slice %1 {offsets = [3, 2, 2], sizes = [1, 16, 16], strides = [1, 1, 1]} : vector<4x18x18xf32> to vector<1x16x16xf32>
    %213 = vector.shape_cast %212 : vector<1x16x16xf32> to vector<16x16xf32>
    %214 = vector.shape_cast %213 : vector<16x16xf32> to vector<1x256xf32>
    %c35 = arith.constant 35 : index
    %c0_74 = arith.constant 0 : index
    %215 = vector.load %arg6[%c35, %c0_74] : memref<72x256xf32, #tpu.memory_space<vmem>>, vector<1x256xf32>
    tpu.vector_store %arg6[%c35, %c0_74], %214 {strides = array<i32>} : memref<72x256xf32, #tpu.memory_space<vmem>>, vector<1x256xf32>,
    %216 = arith.mulf %214, %214 : vector<1x256xf32>
    %c71 = arith.constant 71 : index
    %c0_75 = arith.constant 0 : index
    %217 = vector.load %arg6[%c71, %c0_75] : memref<72x256xf32, #tpu.memory_space<vmem>>, vector<1x256xf32>
    tpu.vector_store %arg6[%c71, %c0_75], %216 {strides = array<i32>} : memref<72x256xf32, #tpu.memory_space<vmem>>, vector<1x256xf32>,
    %c0_76 = arith.constant 0 : index
    %c0_77 = arith.constant 0 : index
    %218 = vector.load %arg6[%c0_76, %c0_77] : memref<72x256xf32, #tpu.memory_space<vmem>>, vector<72x256xf32>
    %c0_78 = arith.constant 0 : index
    %c0_79 = arith.constant 0 : index
    %219 = vector.load %arg2[%c0_78, %c0_79] : memref<12x72xf32, #tpu.memory_space<vmem>>, vector<12x72xf32>
    %cst = arith.constant dense<0.000000e+00> : vector<12x256xf32>
    %220 = tpu.matmul %219, %218, %cst {dimension_numbers = #tpu.dot_dimension_numbers<[1], [0], [0], [1], [0, 0, 1, 1], [], []>} : vector<12x72xf32>, vector<72x256xf32>, vector<12x256xf32> -> vector<12x256xf32>
    %c0_80 = arith.constant 0 : index
    %c0_81 = arith.constant 0 : index
    %221 = vector.load %arg3[%c0_80, %c0_81] : memref<12x1xf32, #tpu.memory_space<vmem>>, vector<12x1xf32>
    %222 = vector.broadcast %221 : vector<12x1xf32> to vector<12x256xf32>
    %223 = arith.addf %220, %222 : vector<12x256xf32>
    %224 = vector.extract_strided_slice %223 {offsets = [0, 0], sizes = [4, 256], strides = [1, 1]} : vector<12x256xf32> to vector<4x256xf32>
    %225 = vector.extract_strided_slice %223 {offsets = [4, 0], sizes = [4, 256], strides = [1, 1]} : vector<12x256xf32> to vector<4x256xf32>
    %226 = vector.extract_strided_slice %223 {offsets = [8, 0], sizes = [4, 256], strides = [1, 1]} : vector<12x256xf32> to vector<4x256xf32>
    %227 = arith.mulf %225, %225 : vector<4x256xf32>
    %228 = arith.subf %227, %226 : vector<4x256xf32>
    %229 = tpu.concatenate %224, %228 in 0 : vector<4x256xf32>, vector<4x256xf32> -> vector<8x256xf32>
    %cst_82 = arith.constant 1.000000e+00 : f32
    %230 = vector.broadcast %cst_82 : f32 to vector<256x1xf32>
    %231 = arith.mulf %229, %229 : vector<8x256xf32>
    %232 = tpu.concatenate %229, %231 in 0 : vector<8x256xf32>, vector<8x256xf32> -> vector<16x256xf32>
    %cst_83 = arith.constant dense<0.000000e+00> : vector<16x1xf32>
    %233 = tpu.matmul %232, %230, %cst_83 {dimension_numbers = #tpu.dot_dimension_numbers<[1], [0], [0], [1], [0, 0, 1, 1], [], []>} : vector<16x256xf32>, vector<256x1xf32>, vector<16x1xf32> -> vector<16x1xf32>
    %c0_84 = arith.constant 0 : index
    %c0_85 = arith.constant 0 : index
    %c0_86 = arith.constant 0 : index
    %234 = vector.load %arg5[%c0_84, %c0_85, %c0_86] : memref<1x16x1xf32, #tpu.memory_space<vmem>>, vector<1x16x1xf32>
    %235 = vector.shape_cast %234 : vector<1x16x1xf32> to vector<16x1xf32>
    %236 = vector.shape_cast %233 : vector<16x1xf32> to vector<1x16x1xf32>
    tpu.vector_store %arg5[%c0_84, %c0_85, %c0_86], %236 {strides = array<i32>} : memref<1x16x1xf32, #tpu.memory_space<vmem>>, vector<1x16x1xf32>,
    %c0_87 = arith.constant 0 : index
    %c0_88 = arith.constant 0 : index
    %c0_89 = arith.constant 0 : index
    %237 = vector.load %arg4[%c0_87, %c0_88, %c0_89] : memref<1x8x256xf32, #tpu.memory_space<vmem>>, vector<1x8x256xf32>
    %238 = vector.shape_cast %237 : vector<1x8x256xf32> to vector<8x256xf32>
    %239 = vector.shape_cast %229 : vector<8x256xf32> to vector<1x8x256xf32>
    tpu.vector_store %arg4[%c0_87, %c0_88, %c0_89], %239 {strides = array<i32>} : memref<1x8x256xf32, #tpu.memory_space<vmem>>, vector<1x8x256xf32>,
    return
  }
  func.func @transform_0(%arg0: i32) -> (i32, i32, i32, i32) {
    %c0_i32 = arith.constant 0 : i32
    %c0_i32_0 = arith.constant 0 : i32
    %c0_i32_1 = arith.constant 0 : i32
    %c0_i32_2 = arith.constant 0 : i32
    return %arg0, %c0_i32, %c0_i32_0, %c0_i32_1 : i32, i32, i32, i32
  }
  func.func @transform_1(%arg0: i32) -> (i32, i32) {
    %c0_i32 = arith.constant 0 : i32
    %c0_i32_0 = arith.constant 0 : i32
    %c0_i32_1 = arith.constant 0 : i32
    return %c0_i32, %c0_i32_0 : i32, i32
  }
  func.func @transform_2(%arg0: i32) -> (i32, i32) {
    %c0_i32 = arith.constant 0 : i32
    %c0_i32_0 = arith.constant 0 : i32
    %c0_i32_1 = arith.constant 0 : i32
    return %c0_i32, %c0_i32_0 : i32, i32
  }
  func.func @transform_3(%arg0: i32) -> (i32, i32, i32) {
    %c0_i32 = arith.constant 0 : i32
    %c0_i32_0 = arith.constant 0 : i32
    %c0_i32_1 = arith.constant 0 : i32
    return %arg0, %c0_i32, %c0_i32_0 : i32, i32, i32
  }
  func.func @transform_4(%arg0: i32) -> (i32, i32, i32) {
    %c0_i32 = arith.constant 0 : i32
    %c0_i32_0 = arith.constant 0 : i32
    %c0_i32_1 = arith.constant 0 : i32
    return %arg0, %c0_i32, %c0_i32_0 : i32, i32, i32
  }
}

module attributes {stable_mosaic.version = 11 : i64} {
  func.func @_apply_kernel(%arg0: i32, %arg1: memref<2x8x256xf32, #tpu.memory_space<vmem>>, %arg2: memref<8x2xf32, #tpu.memory_space<vmem>>, %arg3: memref<2x8x256xf32, #tpu.memory_space<vmem>>) attributes {dimension_semantics = [#tpu.dimension_semantics<parallel>], iteration_bounds = array<i64: 1>, scalar_prefetch = 0 : i64, scratch_operands = 0 : i64, tpu.core_type = #tpu.core_type<tc>, window_params = [{transform_indices = @transform_0, window_bounds = array<i64: 2, 8, 256>}, {pipeline_mode = #tpu.pipeline_mode<synchronous>, transform_indices = @transform_1, window_bounds = array<i64: 8, 2>}, {transform_indices = @transform_2, window_bounds = array<i64: 2, 8, 256>}]} {
    %c0 = arith.constant 0 : index
    %c0_0 = arith.constant 0 : index
    %c0_1 = arith.constant 0 : index
    %0 = vector.load %arg1[%c0, %c0_0, %c0_1] : memref<2x8x256xf32, #tpu.memory_space<vmem>>, vector<2x8x256xf32>
    %c0_2 = arith.constant 0 : index
    %c0_3 = arith.constant 0 : index
    %1 = vector.load %arg2[%c0_2, %c0_3] : memref<8x2xf32, #tpu.memory_space<vmem>>, vector<8x1xf32>
    %2 = vector.shape_cast %1 : vector<8x1xf32> to vector<1x8x1xf32>
    %c0_4 = arith.constant 0 : index
    %c1 = arith.constant 1 : index
    %3 = vector.load %arg2[%c0_4, %c1] : memref<8x2xf32, #tpu.memory_space<vmem>>, vector<8x1xf32>
    %4 = vector.shape_cast %3 : vector<8x1xf32> to vector<1x8x1xf32>
    %5 = vector.broadcast %2 : vector<1x8x1xf32> to vector<2x8x256xf32>
    %6 = arith.subf %0, %5 : vector<2x8x256xf32>
    %7 = vector.broadcast %4 : vector<1x8x1xf32> to vector<2x8x256xf32>
    %8 = arith.mulf %6, %7 : vector<2x8x256xf32>
    %9 = vector.extract_strided_slice %8 {offsets = [0, 0, 0], sizes = [2, 4, 256], strides = [1, 1, 1]} : vector<2x8x256xf32> to vector<2x4x256xf32>
    %10 = vector.extract_strided_slice %8 {offsets = [0, 4, 0], sizes = [2, 4, 256], strides = [1, 1, 1]} : vector<2x8x256xf32> to vector<2x4x256xf32>
    %11 = math.absf %10 : vector<2x4x256xf32>
    %cst = arith.constant dense<0xFF800000> : vector<4x256xf32>
    %12 = vector.multi_reduction <maximumf>, %11, %cst [0] : vector<2x4x256xf32> to vector<4x256xf32>
    %13 = vector.shape_cast %12 : vector<4x256xf32> to vector<1x4x256xf32>
    %14 = tpu.reciprocal %13 {approx = true} : vector<1x4x256xf32> -> vector<1x4x256xf32>
    %15 = vector.broadcast %14 : vector<1x4x256xf32> to vector<2x4x256xf32>
    %16 = arith.mulf %10, %15 : vector<2x4x256xf32>
    %17 = tpu.concatenate %9, %16 in 1 : vector<2x4x256xf32>, vector<2x4x256xf32> -> vector<2x8x256xf32>
    %cst_5 = arith.constant 0.000000e+00 : f32
    %18 = vector.broadcast %cst_5 : f32 to vector<2x8x256xf32>
    %19 = arith.maximumf %17, %18 : vector<2x8x256xf32>
    %c0_6 = arith.constant 0 : index
    %c0_7 = arith.constant 0 : index
    %c0_8 = arith.constant 0 : index
    %20 = vector.load %arg3[%c0_6, %c0_7, %c0_8] : memref<2x8x256xf32, #tpu.memory_space<vmem>>, vector<2x8x256xf32>
    tpu.vector_store %arg3[%c0_6, %c0_7, %c0_8], %19 {strides = array<i32>} : memref<2x8x256xf32, #tpu.memory_space<vmem>>, vector<2x8x256xf32>,
    return
  }
  func.func @transform_0(%arg0: i32) -> (i32, i32, i32) {
    %c0_i32 = arith.constant 0 : i32
    %c0_i32_0 = arith.constant 0 : i32
    %c0_i32_1 = arith.constant 0 : i32
    return %c0_i32, %c0_i32_0, %arg0 : i32, i32, i32
  }
  func.func @transform_1(%arg0: i32) -> (i32, i32) {
    %c0_i32 = arith.constant 0 : i32
    %c0_i32_0 = arith.constant 0 : i32
    %c0_i32_1 = arith.constant 0 : i32
    return %c0_i32, %c0_i32_0 : i32, i32
  }
  func.func @transform_2(%arg0: i32) -> (i32, i32, i32) {
    %c0_i32 = arith.constant 0 : i32
    %c0_i32_0 = arith.constant 0 : i32
    %c0_i32_1 = arith.constant 0 : i32
    return %c0_i32, %c0_i32_0, %arg0 : i32, i32, i32
  }
}

</mosaic_0001>

<bundles_post_ra>
// kernel: mul.4
= control target key start
LH: loop header
LB: loop body
LE: loop exit
PB: predicated region body
PF: predicated region fallthrough
CT: control target
= control target key end

     0   :  { %s34_s0 = inlined_call_operand.vmem [shape: f32[4], index: 0, kind: input, shape index: {}, may-alias: {0,1}]   ;;  %s35_s1 = inlined_call_operand.vmem [shape: f32[4], index: 1, kind: input, shape index: {}, may-alias: {0,1}]   ;;  %s36_s2 = inlined_call_operand.vmem [shape: f32[4], index: 2, kind: output, shape index: {}]  }
   0x1   :  { %v3_v0 = vld [vmem:[%s34_s0] sm:$0x1] }
   0x2   :  { %v4_v1 = vld [vmem:[%s35_s1] sm:$0x1] }
   0x3   :  { %v7_v2 = vmul.f32 %v4_v1, %v3_v0 }
   0x5   :  { %9 = vst [vmem:[%s36_s2] sm:$0x1] %v7_v2 }

// kernel: split_resqu_conv.3
= control target key start
LH: loop header
LB: loop body
LE: loop exit
PB: predicated region body
PF: predicated region fallthrough
CT: control target
= control target key end

     0   :  { %v75_v0 = vmov 0   ;;  %v76_v2 = vmov 1   ;;  %vm37_vm0 = vcmask 1047556   ;;  %vm50_vm1 = vcmask 1043456   ;;  %s119_s1 = inlined_call_operand.vmem [shape: f32[8,2], index: 1, kind: input, shape index: {}]   ;;  %s120_s0 = inlined_call_operand.vmem [shape: f32[2,8,256], index: 0, kind: input, shape index: {}]   ;;  %s121_s2 = inlined_call_operand.vmem [shape: f32[2,8,256], index: 2, kind: output, shape index: {}]  }
   0x1   :  { %69 = vset.pattern.permute.xlu0 %v75_v0  ;;  %v15_v1 = vld [vmem:[%s119_s1] sm:$0xff]  ;;  %v12_v5 = vld [vmem:[%s120_s0 + $0x8] sm:$0xff]  ;;  %v13_v6 = vld [vmem:[%s120_s0 + $0x10] sm:$0xff] }
   0x2   :  { %18 = vperm.xlu0 %69, %v15_v1   ;;  %v11_v4 = vld [vmem:[%s120_s0] sm:$0xff]  ;;  %v14_v7 = vld [vmem:[%s120_s0 + $0x18] sm:$0xff] }
   0xa   :  { %70 = vset.pattern.permute.xlu0 %v76_v2 }
   0xb   :  { %26 = vperm.xlu0 %70, %v15_v1  }
  0x74   :  { %v19_v3 = vpop.permute.xlu0 %18 }
  0x75   :  { %v21_v8 = vsub.f32 %v11_v4, %v19_v3  ;;  %v22_v9 = vsub.f32 %v12_v5, %v19_v3  ;;  %v23_v10 = vsub.f32 %v13_v6, %v19_v3  ;;  %v24_v11 = vsub.f32 %v14_v7, %v19_v3 }
  0x7d   :  { %v27_v12 = vpop.permute.xlu0 %26 }
  0x7e   :  { %v29_v13 = vmul.f32 %v27_v12, %v21_v8  ;;  %v30_v14 = vmul.f32 %v27_v12, %v22_v9  ;;  %v31_v15 = vmul.f32 %v27_v12, %v23_v10  ;;  %v32_v16 = vmul.f32 %v27_v12, %v24_v11 }
  0x80   :  { %v33_v17 = vand.u32 2147483647, %v29_v13  ;;  %v34_v18 = vand.u32 2147483647, %v30_v14  ;;  %v35_v19 = vand.u32 2147483647, %v31_v15 }
  0x81   :  { %v36_v20 = vand.u32 2147483647, %v32_v16 }
  0x82   :  { %v38_v21 = vsel %vm37_vm0, %v33_v17, -inf  ;;  %v39_v22 = vsel %vm37_vm0, %v35_v19, -inf  ;;  %v41_v23 = vsel %vm37_vm0, %v34_v18, -inf }
  0x83   :  { %v40_v24 = vmax.f32 %v38_v21, %v39_v22  ;;  %v42_v25 = vsel %vm37_vm0, %v36_v20, -inf }
  0x84   :  { %v43_v26 = vmax.f32 %v41_v23, %v42_v25 }
  0x85   :  { %71 = vrcp.f32 %v40_v24 }
  0x86   :  { %73 = vrcp.f32 %v43_v26 }
  0x8b   :  { %v72_v27 = vpop.eup %71 }
  0x8c   :  { %v74_v28 = vpop.eup %73  ;;  %v46_v29 = vmul.f32 %v72_v27, %v29_v13  ;;  %v48_v30 = vmul.f32 %v72_v27, %v31_v15 }
  0x8d   :  { %v47_v31 = vmul.f32 %v74_v28, %v30_v14  ;;  %v49_v32 = vmul.f32 %v74_v28, %v32_v16 }
  0x8e   :  { %v51_v33 = vsel %vm50_vm1, %v29_v13, %v46_v29  ;;  %v53_v34 = vsel %vm50_vm1, %v31_v15, %v48_v30 }
  0x8f   :  { %v52_v35 = vsel %vm50_vm1, %v30_v14, %v47_v31  ;;  %v54_v36 = vsel %vm50_vm1, %v32_v16, %v49_v32  ;;  %v55_v37 = vmax.f32 %v51_v33, 0.0  ;;  %v57_v38 = vmax.f32 %v53_v34, 0.0 }
  0x90   :  { %v56_v39 = vmax.f32 %v52_v35, 0.0  ;;  %v58_v40 = vmax.f32 %v54_v36, 0.0 }
  0x91   :  { %59 = vst [vmem:[%s121_s2] sm:$0xff] %v55_v37 }
  0x92   :  { %60 = vst [vmem:[%s121_s2 + $0x8] sm:$0xff] %v56_v39 }
  0x93   :  { %61 = vst [vmem:[%s121_s2 + $0x10] sm:$0xff] %v57_v38 }
  0x94   :  { %62 = vst [vmem:[%s121_s2 + $0x18] sm:$0xff] %v58_v40 }

// kernel: split_resqu_conv.2
= control target key start
LH: loop header
LB: loop body
LE: loop exit
PB: predicated region body
PF: predicated region fallthrough
CT: control target
= control target key end

     0   :  { %s6712_s15 = smov 0   ;;  %s9985_s0 = inlined_call_operand.vmem [shape: f32[2,4,18,18], index: 0, kind: input, shape index: {}]   ;;  %s9986_s1 = inlined_call_operand.vmem [shape: f32[12,72], index: 1, kind: input, shape index: {}]   ;;  %s9987_s2 = inlined_call_operand.vmem [shape: f32[12,1], index: 2, kind: input, shape index: {}]   ;;  %s9988_s3 = inlined_call_operand.vmem [shape: f32[2,8,256], index: 3, kind: output, shape index: {0}]   ;;  %s9989_s4 = inlined_call_operand.vmem [shape: f32[2,16,1], index: 4, kind: output, shape index: {1}]  }
   0x1 LB: > { %s6598_s16 = sadd.s32 4294967295, %s6672_s15   ;;  %p6602_p0 = scmp.ge.s32.totalorder %s6672_s15, 1  ;;  %s6672_s15 = sphi %s6712_s15, %s15_s15  }
   0x2   : > { %p165_p1 = scmp.lt.s32.totalorder %s6672_s15, 3 }
   0x4   : > { %p166_p2 = pnand %p6602_p0, %p165_p1 }
   0x6   : > { %169 = sbr.rel (%p166_p2) target bundleno = 3758 (0xeae), region = 32 }
   0xb   : > { %p196_p3 = scmp.lt.s32.totalorder %s6598_s16, 1  ;;  %v6674_v0 = vmov 1983009808   ;;  %v6675_v2 = vmov 1934713408   ;;  %vm224_vm0 = vcmask 1047556  }
   0xc   : > { %v227_v1 = vunpack.c.l.s4 %v6674_v0  ;;  %v237_v3 = vunpack.c.l.s4 %v6675_v2  ;;  %s6676_s21 = smov 32   ;;  %s6677_s22 = smov 16   ;;  %vm356_vm1 = vcmask 130048   ;;  %vm358_vm2 = vcmask 261120  }
   0xd   : > { %s10005_s16 = smov (!%p196_p3, %s6598_s16), 1  ;;  %s6678_s23 = smov 64   ;;  %vm360_vm3 = vcmask 392192   ;;  %vm362_vm4 = vcmask 523264   ;;  %vm364_vm5 = vcmask 654336   ;;  %vm366_vm6 = vcmask 785408  }
   0xe   : > { %s6622_s17 = smul.u32 96, %s10005_s16  ;;  %v6723_v4 = vunpack.c.0.s8 %v227_v1  ;;  %v6730_v5 = vunpack.c.0.s8 %v237_v3  ;;  %s6679_s24 = smov 80   ;;  %vm368_vm7 = vcmask 916480   ;;  %vm380_vm8 = vcmask 1040384  }
   0xf   : > { %s6680_s25 = smov 96   ;;  %s6681_s26 = smov 112   ;;  %vm2266_vm10 = vcmask 1046528   ;;  %vm4314_vm11 = vcmask 1045504   ;;  %vm6391_vm12 = vcmask 588800   ;;  %vm6454_vm13 = vcmask 1043456  }
  0x10   : > { %s6728_s20 = scalar_lea.vmem %s9985_s0, %s6622_s17  ;;  %s6682_s27 = smov 48   ;;  %vm6505_vm14 = vcmask 7168  }
  0x11   : > { %v6733_v6 = vld [vmem:[%s6728_s20 + $0x8] sm:$0xff]  ;;  %v6736_v7 = vld [vmem:[%s6728_s20] sm:$0xff]  ;;  %v6608_v42 = vld.sshfl [vmem:[%s6728_s20 + $0x18] sm:$0xff pattern:$0x76325410]  ;;  %s6683_s28 = smov 127  }
  0x12   : > { %v267_v8 = vperm.slane %v6733_v6, %v6723_v4  ;;  %v229_v9 = vperm.slane %v6736_v7, %v6723_v4  ;;  %v223_v10 = vrot.slane %v6736_v7, 4  ;;  %v262_v27 = vrot.slane %v6733_v6, 4  ;;  %v6780_v43 = vld [vmem:[%s6728_s20 + $0x18] sm:$0xff]  ;;  %v6609_v62 = vld.sshfl [vmem:[%s6728_s20 + $0x20] sm:$0xff pattern:$0x76325410] }
  0x13   : > { %v6786_v47 = vperm.slane %v6608_v42, %v6730_v5  ;;  %v400_v48 = vrot.slane %v6780_v43, 4  ;;  %v410_v50 = vrot.slane %v6608_v42, 4  ;;  %v449_v2 = vrot.slane %v6609_v62, 4  ;;  %v6809_v3 = vld [vmem:[%s6728_s20 + $0x20] sm:$0xff]  ;;  %s6684_s29 = smov 126   ;;  %s6620_s12 = sshll.u32 %s10005_s16, 4 }
  0x14   : > { %v272_v11 = vrot.slane %v267_v8, 4  ;;  %v6744_v12 = vperm.slane %v229_v9, %v6730_v5  ;;  %v225_v13 = vsel %vm224_vm0, 0.0, %v223_v10  ;;  %v234_v17 = vrot.slane %v229_v9, 4  ;;  %s205_s17 = scalar_lea.vmem %s9988_s3, %s6620_s12  ;;  %s210_s19 = scalar_lea.vmem %s9989_s4, %s6620_s12 }
  0x15   : > { %v233_v14 = vperm.slane %v225_v13, %v6723_v4  ;;  %v6753_v21 = vperm.slane %v267_v8, %v6730_v5  ;;  %v263_v32 = vsel %vm224_vm0, 0.0, %v262_v27  ;;  %v430_v51 = vrot.slane %v6786_v47, 4 }
  0x16   : > { %v273_v15 = vsel %vm224_vm0, 0.0, %v272_v11  ;;  %v254_v16 = vrot.slane %v6744_v12, 4  ;;  %v235_v24 = vsel %vm224_vm0, 0.0, %v234_v17  ;;  %v271_v34 = vperm.slane %v263_v32, %v6723_v4 }
  0x17   : > { %v281_v18 = vperm.slane %v273_v15, %v6730_v5  ;;  %v249_v19 = vperm.slane %v233_v14, %v6730_v5  ;;  %v244_v20 = vrot.slane %v233_v14, 4  ;;  %v292_v25 = vrot.slane %v6753_v21, 4 }
  0x18   : > { %v255_v22 = vsel %vm224_vm0, 0.0, %v254_v16  ;;  %v243_v28 = vperm.slane %v235_v24, %v6730_v5  ;;  %v287_v37 = vperm.slane %v271_v34, %v6730_v5  ;;  %v282_v39 = vrot.slane %v271_v34, 4 }
  0x19   : > { %333 = vrot.lane.b32.xlu2 %v281_v18, %s6676_s21  ;;  %301 = vrot.lane.b32.xlu0 %v255_v22, %s6677_s22  ;;  %v258_v23 = vrot.slane %v249_v19, 4  ;;  %v245_v26 = vsel %vm224_vm0, 0.0, %v244_v20  ;;  %v293_v31 = vsel %vm224_vm0, 0.0, %v292_v25  ;;  %v294_v40 = vrot.slane %v281_v18, 4 }
  0x1a   : > { %313 = vrot.lane.b32.xlu1 %v249_v19, %s6678_s23  ;;  %v253_v30 = vperm.slane %v245_v26, %v6730_v5  ;;  %v256_v35 = vrot.slane %v243_v28, 4  ;;  %v296_v41 = vrot.slane %v287_v37, 4  ;;  %v283_v44 = vsel %vm224_vm0, 0.0, %v282_v39  ;;  %v6832_v26 = vld [vmem:[%s6728_s20 + $0x30] sm:$0xff] }
  0x1b   : > { %v259_v29 = vsel %vm224_vm0, 0.0, %v258_v23  ;;  %v295_v46 = vsel %vm224_vm0, 0.0, %v294_v40  ;;  %v291_v49 = vperm.slane %v283_v44, %v6730_v5  ;;  %v401_v52 = vsel %vm224_vm0, 0.0, %v400_v48 }
  0x1c   : > { %v260_v33 = vrot.slane %v253_v30, 4  ;;  %v257_v38 = vsel %vm224_vm0, 0.0, %v256_v35  ;;  %v297_v45 = vsel %vm224_vm0, 0.0, %v296_v41  ;;  %v411_v54 = vsel %vm224_vm0, 0.0, %v410_v50  ;;  %v6861_v50 = vld [vmem:[%s6728_s20 + $0x38] sm:$0xff] }
  0x1d   : > { %v298_v53 = vrot.slane %v291_v49, 4  ;;  %v409_v55 = vperm.slane %v401_v52, %v6723_v4  ;;  %v431_v56 = vsel %vm224_vm0, 0.0, %v430_v51  ;;  %v419_v58 = vperm.slane %v411_v54, %v6730_v5 }
  0x1e   : > { %v261_v36 = vsel %vm224_vm0, 0.0, %v260_v33  ;;  %v450_v10 = vsel %vm224_vm0, 0.0, %v449_v2  ;;  %v439_v11 = vrot.slane %v6809_v3, 4  ;;  %v6820_v16 = vperm.slane %v6609_v62, %v6730_v5 }
  0x1f   : > { %v299_v57 = vsel %vm224_vm0, 0.0, %v298_v53  ;;  %v420_v59 = vrot.slane %v409_v55, 4  ;;  %v432_v60 = vrot.slane %v419_v58, 4  ;;  %v425_v63 = vperm.slane %v409_v55, %v6730_v5 }
  0x20   : > { %v458_v15 = vperm.slane %v450_v10, %v6730_v5  ;;  %v440_v17 = vsel %vm224_vm0, 0.0, %v439_v11  ;;  %v469_v19 = vrot.slane %v6820_v16, 4  ;;  %v605_v55 = vrot.slane %v6861_v50, 4  ;;  %v6612_v11 = vld.sshfl [vmem:[%s6728_s20 + $0x48] sm:$0xff pattern:$0x76325410] }
  0x21   : > { %305 = vrot.lane.b32.xlu0 %v243_v28, %s6676_s21  ;;  %317 = vrot.lane.b32.xlu2 %v259_v29, %s6679_s24  ;;  %v421_v61 = vsel %vm224_vm0, 0.0, %v420_v59  ;;  %v433_v1 = vsel %vm224_vm0, 0.0, %v432_v60  ;;  %v434_v9 = vrot.slane %v425_v63, 4  ;;  %v448_v20 = vperm.slane %v440_v17, %v6723_v4  ;;  %v6610_v29 = vld.sshfl [vmem:[%s6728_s20 + $0x30] sm:$0xff pattern:$0x76325410] }
  0x22   : > { %329 = vrot.lane.b32.xlu1 %v293_v31, %s6677_s22  ;;  %v429_v0 = vperm.slane %v421_v61, %v6730_v5  ;;  %v471_v18 = vrot.slane %v458_v15, 4  ;;  %v470_v23 = vsel %vm224_vm0, 0.0, %v469_v19  ;;  %v576_v32 = vrot.slane %v6610_v29, 4 }
  0x23   : > { %v435_v14 = vsel %vm224_vm0, 0.0, %v434_v9  ;;  %v459_v24 = vrot.slane %v448_v20, 4  ;;  %v464_v25 = vperm.slane %v448_v20, %v6730_v5  ;;  %v6843_v34 = vperm.slane %v6610_v29, %v6730_v5 }
  0x24   : > { %v436_v8 = vrot.slane %v429_v0, 4  ;;  %v472_v22 = vsel %vm224_vm0, 0.0, %v471_v18  ;;  %v606_v59 = vsel %vm224_vm0, 0.0, %v605_v55  ;;  %v742_v17 = vrot.slane %v6612_v11, 4  ;;  %v6892_v18 = vld [vmem:[%s6728_s20 + $0x48] sm:$0xff] }
  0x25   : > { %v460_v27 = vsel %vm224_vm0, 0.0, %v459_v24  ;;  %v473_v28 = vrot.slane %v464_v25, 4  ;;  %v596_v39 = vrot.slane %v6843_v34, 4  ;;  %v614_v62 = vperm.slane %v606_v59, %v6723_v4 }
  0x26   : > { %v437_v13 = vsel %vm224_vm0, 0.0, %v436_v8  ;;  %v468_v31 = vperm.slane %v460_v27, %v6730_v5  ;;  %v732_v24 = vrot.slane %v6892_v18, 4  ;;  %v6905_v29 = vperm.slane %v6612_v11, %v6730_v5 }
  0x27   : > { %v474_v33 = vsel %vm224_vm0, 0.0, %v473_v28  ;;  %v597_v44 = vsel %vm224_vm0, 0.0, %v596_v39  ;;  %v625_v2 = vrot.slane %v614_v62, 4 }
  0x29   : > { %321 = vrot.lane.b32.xlu2 %v253_v30, %s6680_s25  ;;  %325 = vrot.lane.b32.xlu0 %v261_v36, %s6681_s26  ;;  %v566_v30 = vrot.slane %v6832_v26, 4  ;;  %v577_v36 = vsel %vm224_vm0, 0.0, %v576_v32  ;;  %v626_v10 = vsel %vm224_vm0, 0.0, %v625_v2  ;;  %v762_v32 = vrot.slane %v6905_v29, 4 }
  0x2a   : > { %309 = vrot.lane.b32.xlu1 %v257_v38, %s6682_s27  ;;  %v585_v40 = vperm.slane %v577_v36, %v6730_v5 }
  0x2b   : > { %v567_v35 = vsel %vm224_vm0, 0.0, %v566_v30  ;;  %v733_v30 = vsel %vm224_vm0, 0.0, %v732_v24 }
  0x2c   : > { %v575_v38 = vperm.slane %v567_v35, %v6723_v4  ;;  %v598_v48 = vrot.slane %v585_v40, 4 }
  0x2e   : > { %v591_v42 = vperm.slane %v575_v38, %v6730_v5  ;;  %v599_v53 = vsel %vm224_vm0, 0.0, %v598_v48 }
  0x31   : > { %345 = vrot.lane.b32.xlu2 %v297_v45, %s6679_s24  ;;  %337 = vrot.lane.b32.xlu0 %v295_v46, %s6682_s27  ;;  %v586_v45 = vrot.slane %v575_v38, 4  ;;  %v600_v46 = vrot.slane %v591_v42, 4 }
  0x32   : > { %341 = vrot.lane.b32.xlu1 %v287_v37, %s6678_s23  ;;  %v475_v37 = vrot.slane %v468_v31, 4 }
  0x33   : > { %v587_v51 = vsel %vm224_vm0, 0.0, %v586_v45  ;;  %v601_v52 = vsel %vm224_vm0, 0.0, %v600_v46  ;;  %v6613_v46 = vld.sshfl [vmem:[%s6728_s20 + $0x50] sm:$0xff pattern:$0x76325410] }
  0x34   : > { %v476_v41 = vsel %vm224_vm0, 0.0, %v475_v37  ;;  %v763_v37 = vsel %vm224_vm0, 0.0, %v762_v32  ;;  %v6932_v55 = vperm.slane %v6613_v46, %v6730_v5 }
  0x39   : > { %478 = vrot.lane.b32.xlu2 %v431_v56, %s6677_s22  ;;  %349 = vrot.lane.b32.xlu0 %v291_v49, %s6680_s25  ;;  %v6611_v49 = vld.sshfl [vmem:[%s6728_s20 + $0x38] sm:$0xff pattern:$0x76325410]  ;;  %v595_v56 = vperm.slane %v587_v51, %v6730_v5 }
  0x3a   : > { %353 = vrot.lane.b32.xlu1 %v299_v57, %s6681_s26  ;;  %v6867_v54 = vperm.slane %v6611_v49, %v6730_v5  ;;  %v615_v57 = vrot.slane %v6611_v49, 4 }
  0x3b   : > { %v602_v60 = vrot.slane %v595_v56, 4 }
  0x3c   : > { %v616_v61 = vsel %vm224_vm0, 0.0, %v615_v57 }
  0x41   : > { %490 = vrot.lane.b32.xlu2 %v425_v63, %s6678_s23  ;;  %482 = vrot.lane.b32.xlu0 %v419_v58, %s6676_s21  ;;  %v635_v58 = vrot.slane %v6867_v54, 4 }
  0x42   : > { %486 = vrot.lane.b32.xlu1 %v433_v1, %s6682_s27  ;;  %v624_v1 = vperm.slane %v616_v61, %v6730_v5 }
  0x43   : > { %v636_v63 = vsel %vm224_vm0, 0.0, %v635_v58 }
  0x44   : > { %v637_v9 = vrot.slane %v624_v1, 4 }
  0x49   : > { %502 = vrot.lane.b32.xlu2 %v437_v13, %s6681_s26  ;;  %494 = vrot.lane.b32.xlu0 %v435_v14, %s6679_s24  ;;  %v630_v13 = vperm.slane %v614_v62, %v6730_v5  ;;  %v634_v14 = vperm.slane %v626_v10, %v6730_v5  ;;  %v801_v62 = vrot.slane %v6932_v55, 4 }
  0x4a   : > { %498 = vrot.lane.b32.xlu1 %v429_v0, %s6680_s25  ;;  %v603_v0 = vsel %vm224_vm0, 0.0, %v602_v60 }
  0x4b   : > { %v641_v19 = vrot.slane %v634_v14, 4  ;;  %v639_v20 = vrot.slane %v630_v13, 4 }
  0x4d   : > { %v640_v27 = vsel %vm224_vm0, 0.0, %v639_v20 }
  0x51   : > { %514 = vrot.lane.b32.xlu2 %v472_v22, %s6682_s27  ;;  %506 = vrot.lane.b32.xlu0 %v470_v23, %s6677_s22  ;;  %v743_v23 = vsel %vm224_vm0, 0.0, %v742_v17 }
  0x52   : > { %510 = vrot.lane.b32.xlu1 %v458_v15, %s6676_s21  ;;  %v638_v15 = vsel %vm224_vm0, 0.0, %v637_v9  ;;  %v751_v28 = vperm.slane %v743_v23, %v6730_v5  ;;  %v802_v9 = vsel %vm224_vm0, 0.0, %v801_v62 }
  0x59   : > { %526 = vrot.lane.b32.xlu2 %v468_v31, %s6680_s25  ;;  %518 = vrot.lane.b32.xlu0 %v464_v25, %s6678_s23  ;;  %v642_v25 = vsel %vm224_vm0, 0.0, %v641_v19  ;;  %v764_v31 = vrot.slane %v751_v28, 4 }
  0x5a   : > { %522 = vrot.lane.b32.xlu1 %v474_v33, %s6679_s24  ;;  %v741_v33 = vperm.slane %v733_v30, %v6723_v4 }
  0x5b   : > { %v765_v36 = vsel %vm224_vm0, 0.0, %v764_v31 }
  0x5c   : > { %v752_v38 = vrot.slane %v741_v33, 4  ;;  %v757_v39 = vperm.slane %v741_v33, %v6730_v5 }
  0x5e   : > { %v766_v45 = vrot.slane %v757_v39, 4 }
  0x61   : > { %648 = vrot.lane.b32.xlu2 %v585_v40, %s6676_s21  ;;  %530 = vrot.lane.b32.xlu0 %v476_v41, %s6681_s26  ;;  %v6919_v40 = vld [vmem:[%s6728_s20 + $0x50] sm:$0xff]  ;;  %v753_v41 = vsel %vm224_vm0, 0.0, %v752_v38 }
  0x62   : > { %644 = vrot.lane.b32.xlu1 %v597_v44, %s6677_s22  ;;  %v771_v48 = vrot.slane %v6919_v40, 4  ;;  %v761_v51 = vperm.slane %v753_v41, %v6730_v5 }
  0x64   : > { %v768_v58 = vrot.slane %v761_v51, 4 }
  0x69   : > { %660 = vrot.lane.b32.xlu2 %v601_v52, %s6679_s24  ;;  %652 = vrot.lane.b32.xlu0 %v599_v53, %s6682_s27  ;;  %v781_v52 = vrot.slane %v6613_v46, 4  ;;  %v767_v53 = vsel %vm224_vm0, 0.0, %v766_v45 }
  0x6a   : > { %656 = vrot.lane.b32.xlu1 %v591_v42, %s6678_s23 }
  0x6b   : > { %v782_v57 = vsel %vm224_vm0, 0.0, %v781_v52  ;;  %v9994_v52 = vmov 0 }
  0x71   : > { %672 = vrot.lane.b32.xlu2 %v636_v63, %s6677_s22  ;;  %664 = vrot.lane.b32.xlu0 %v595_v56, %s6680_s25  ;;  %v772_v56 = vsel %vm224_vm0, 0.0, %v771_v48 }
  0x72   : > { %668 = vrot.lane.b32.xlu1 %v603_v0, %s6681_s26  ;;  %v780_v59 = vperm.slane %v772_v56, %v6723_v4  ;;  %v790_v0 = vperm.slane %v782_v57, %v6730_v5 }
  0x73   : > { %v6884_v8 = vpop.permute.xlu2 %333 }
  0x74   : > { %v796_v2 = vperm.slane %v780_v59, %v6730_v5  ;;  %v791_v10 = vrot.slane %v780_v59, 4 }
  0x76   : > { %v805_v11 = vrot.slane %v796_v2, 4  ;;  %v792_v19 = vsel %vm224_vm0, 0.0, %v791_v10 }
  0x78   : > { %v806_v20 = vsel %vm224_vm0, 0.0, %v805_v11 }
  0x79   : > { %684 = vrot.lane.b32.xlu2 %v630_v13, %s6678_s23  ;;  %676 = vrot.lane.b32.xlu0 %v624_v1, %s6676_s21  ;;  %v769_v1 = vsel %vm224_vm0, 0.0, %v768_v58  ;;  %v803_v13 = vrot.slane %v790_v0, 4 }
  0x7a   : > { %680 = vrot.lane.b32.xlu1 %v638_v15, %s6682_s27 }
  0x7b   : > { %v6897_v22 = vpop.permute.xlu2 %317  ;;  %v804_v23 = vsel %vm224_vm0, 0.0, %v803_v13 }
  0x81   : > { %696 = vrot.lane.b32.xlu2 %v642_v25, %s6681_s26  ;;  %688 = vrot.lane.b32.xlu0 %v640_v27, %s6679_s24  ;;  %v800_v25 = vperm.slane %v792_v19, %v6730_v5 }
  0x82   : > { %692 = vrot.lane.b32.xlu1 %v634_v14, %s6680_s25 }
  0x83   : > { %v6913_v35 = vpop.permute.xlu2 %321 }
  0x89   : > { %818 = vrot.lane.b32.xlu2 %v765_v36, %s6682_s27  ;;  %810 = vrot.lane.b32.xlu0 %v763_v37, %s6677_s22 }
  0x8a   : > { %814 = vrot.lane.b32.xlu1 %v751_v28, %s6676_s21 }
  0x8b   : > { %v302_v42 = vpop.permute.xlu0 %301  ;;  %v6925_v44 = vpop.permute.xlu2 %345 }
  0x8c   : > { %v314_v49 = vpop.permute.xlu1 %313  ;;  %v357_v24 = vsel %vm356_vm1, %v6744_v12, %v302_v42  ;;  %v807_v12 = vrot.slane %v800_v25, 4 }
  0x91   : > { %830 = vrot.lane.b32.xlu2 %v761_v51, %s6680_s25  ;;  %822 = vrot.lane.b32.xlu0 %v757_v39, %s6678_s23  ;;  %v808_v39 = vsel %vm224_vm0, 0.0, %v807_v12 }
  0x92   : > { %826 = vrot.lane.b32.xlu1 %v767_v53, %s6679_s24 }
  0x93   : > { %v306_v60 = vpop.permute.xlu0 %305  ;;  %v6940_v61 = vpop.permute.xlu2 %478 }
  0x94   : > { %v330_v63 = vpop.permute.xlu1 %329  ;;  %v359_v27 = vsel %vm358_vm2, %v357_v24, %v306_v60  ;;  %v533_v11 = vsel %vm356_vm1, %v6786_v47, %v6940_v61 }
  0x95   : > { %v370_v28 = vsel %vm356_vm1, %v6753_v21, %v330_v63 }
  0x96   : > { %v371_v21 = vsel %vm358_vm2, %v370_v28, %v6884_v8  ;;  %v383_v8 = vlaneseq }
  0x98   : > { %vm6986_vm9 = vcmp.lt.s32.totalorder %v383_v8, 256 }
  0x99   : > { %842 = vrot.lane.b32.xlu2 %v790_v0, %s6676_s21  ;;  %834 = vrot.lane.b32.xlu0 %v769_v1, %s6681_s26  ;;  %v9995_v52 = vsel %vm6986_vm9, 4294967295, %v9994_v52 }
  0x9a   : > { %838 = vrot.lane.b32.xlu1 %v802_v9, %s6677_s22  ;;  %9996 = vst [vmem:[#allocation3_spill] sm:$0xff] %v9995_v52 }
  0x9b   : > { %v6950_v14 = vpop.permute.xlu2 %490  ;;  %v326_v15 = vpop.permute.xlu0 %325 }
  0x9c   : > { %v310_v17 = vpop.permute.xlu1 %309 }
  0x9d   : > { %v361_v30 = vsel %vm360_vm3, %v359_v27, %v310_v17 }
  0x9e   : > { %v363_v33 = vsel %vm362_vm4, %v361_v30, %v314_v49 }
  0x9f   : > { %v365_v38 = vsel %vm364_vm5, %v363_v33, %v6897_v22 }
  0xa0   : > { %v367_v42 = vsel %vm366_vm6, %v365_v38, %v6913_v35 }
  0xa1   : > { %854 = vrot.lane.b32.xlu2 %v806_v20, %s6679_s24  ;;  %846 = vrot.lane.b32.xlu0 %v804_v23, %s6682_s27  ;;  %v369_v51 = vsel %vm368_vm7, %v367_v42, %v326_v15 }
  0xa2   : > { %850 = vrot.lane.b32.xlu1 %v796_v2, %s6678_s23  ;;  %v389_v56 = vmul.f32 %v369_v51, %v369_v51 }
  0xa3   : > { %v6965_v31 = vpop.permute.xlu2 %502  ;;  %v338_v32 = vpop.permute.xlu0 %337 }
  0xa4   : > { %v342_v36 = vpop.permute.xlu1 %341  ;;  %v372_v37 = vsel %vm360_vm3, %v371_v21, %v338_v32 }
  0xa5   : > { %v373_v41 = vsel %vm362_vm4, %v372_v37, %v342_v36 }
  0xa6   : > { %v374_v22 = vsel %vm364_vm5, %v373_v41, %v6925_v44 }
  0xa9   : > { %899 = vrot.lane.b32.xlu2 %v6736_v7, %s6683_s28  ;;  %858 = vrot.lane.b32.xlu0 %v800_v25, %s6680_s25 }
  0xaa   : > { %862 = vrot.lane.b32.xlu1 %v808_v39, %s6681_s26 }
  0xab   : > { %v515_v45 = vpop.permute.xlu2 %514  ;;  %v350_v46 = vpop.permute.xlu0 %349 }
  0xac   : > { %v354_v48 = vpop.permute.xlu1 %353  ;;  %v375_v49 = vsel %vm366_vm6, %v374_v22, %v350_v46 }
  0xad   : > { %v376_v7 = vsel %vm368_vm7, %v375_v49, %v354_v48 }
  0xae   : > { %v379_v35 = vrot.slane %v376_v7, 7  ;;  %v390_v53 = vmul.f32 %v376_v7, %v376_v7 }
  0xb0   : > { %v381_v57 = vsel %vm380_vm8, %v369_v51, %v379_v35  ;;  %v393_v58 = vrot.slane %v390_v53, 7 }
  0xb1   : > { %387 = vst.msk [vmem:[#allocation2] ss:$8 sm:$0x3] %vm6986_vm9, %v381_v57  ;;  %901 = vrot.lane.b32.xlu0 %v6733_v6, %s6683_s28 }
  0xb2   : > { %v394_v44 = vsel %vm380_vm8, %v389_v56, %v393_v58 }
  0xb3   : > { %397 = vst.msk [vmem:[#allocation2 + $0x44] ss:$8 sm:$0x3] %vm6986_vm9, %v394_v44  ;;  %v527_v59 = vpop.permute.xlu2 %526  ;;  %v483_v60 = vpop.permute.xlu0 %482 }
  0xb4   : > { %v487_v62 = vpop.permute.xlu1 %486  ;;  %v534_v13 = vsel %vm358_vm2, %v533_v11, %v483_v60 }
  0xb5   : > { %v535_v17 = vsel %vm360_vm3, %v534_v13, %v487_v62 }
  0xb6   : > { %v536_v25 = vsel %vm362_vm4, %v535_v17, %v6950_v14 }
  0xbb   : > { %v649_v63 = vpop.permute.xlu2 %648  ;;  %v495_v0 = vpop.permute.xlu0 %494 }
  0xbc   : > { %v499_v1 = vpop.permute.xlu1 %498  ;;  %v537_v47 = vsel %vm364_vm5, %v536_v25, %v495_v0 }
  0xbd   : > { %v538_v61 = vsel %vm366_vm6, %v537_v47, %v499_v1 }
  0xbe   : > { %v539_v12 = vsel %vm368_vm7, %v538_v61, %v6965_v31 }
  0xbf   : > { %v555_v37 = vmul.f32 %v539_v12, %v539_v12 }
  0xc3   : > { %v661_v2 = vpop.permute.xlu2 %660  ;;  %v507_v9 = vpop.permute.xlu0 %506 }
  0xc4   : > { %v511_v10 = vpop.permute.xlu1 %510  ;;  %v540_v6 = vsel %vm356_vm1, %v6820_v16, %v507_v9 }
  0xc5   : > { %v541_v15 = vsel %vm358_vm2, %v540_v6, %v511_v10 }
  0xc6   : > { %v542_v24 = vsel %vm360_vm3, %v541_v15, %v515_v45 }
  0xcb   : > { %v673_v19 = vpop.permute.xlu2 %672  ;;  %v519_v20 = vpop.permute.xlu0 %518 }
  0xcc   : > { %v523_v23 = vpop.permute.xlu1 %522  ;;  %v543_v27 = vsel %vm362_vm4, %v542_v24, %v519_v20  ;;  %v706_v35 = vsel %vm356_vm1, %v6867_v54, %v673_v19 }
  0xcd   : > { %v544_v16 = vsel %vm364_vm5, %v543_v27, %v523_v23 }
  0xce   : > { %v545_v30 = vsel %vm366_vm6, %v544_v16, %v527_v59 }
  0xd3   : > { %v685_v28 = vpop.permute.xlu2 %684  ;;  %v531_v32 = vpop.permute.xlu0 %530 }
  0xd4   : > { %v645_v33 = vpop.permute.xlu1 %644  ;;  %v546_v36 = vsel %vm368_vm7, %v545_v30, %v531_v32 }
  0xd5   : > { %v549_v21 = vrot.slane %v546_v36, 7  ;;  %v556_v14 = vmul.f32 %v546_v36, %v546_v36  ;;  %v699_v48 = vsel %vm356_vm1, %v6843_v34, %v645_v33 }
  0xd6   : > { %v700_v49 = vsel %vm358_vm2, %v699_v48, %v649_v63 }
  0xd7   : > { %v550_v38 = vsel %vm380_vm8, %v539_v12, %v549_v21  ;;  %v559_v39 = vrot.slane %v556_v14, 7 }
  0xd8   : > { %553 = vst.msk [vmem:[#allocation2 + $0x1] ss:$8 sm:$0x3] %vm6986_vm9, %v550_v38 }
  0xd9   : > { %v560_v41 = vsel %vm380_vm8, %v555_v37, %v559_v39 }
  0xda   : > { %563 = vst.msk [vmem:[#allocation2 + $0x45] ss:$8 sm:$0x3] %vm6986_vm9, %v560_v41 }
  0xdb   : > { %v697_v42 = vpop.permute.xlu2 %696  ;;  %v653_v8 = vpop.permute.xlu0 %652 }
  0xdc   : > { %v657_v31 = vpop.permute.xlu1 %656  ;;  %v701_v53 = vsel %vm360_vm3, %v700_v49, %v653_v8 }
  0xdd   : > { %v702_v58 = vsel %vm362_vm4, %v701_v53, %v657_v31 }
  0xde   : > { %v703_v59 = vsel %vm364_vm5, %v702_v58, %v661_v2 }
  0xe3   : > { %v7023_v45 = vpop.permute.xlu2 %818  ;;  %v665_v22 = vpop.permute.xlu0 %664 }
  0xe4   : > { %v669_v46 = vpop.permute.xlu1 %668  ;;  %v704_v34 = vsel %vm366_vm6, %v703_v59, %v665_v22 }
  0xe5   : > { %v705_v9 = vsel %vm368_vm7, %v704_v34, %v669_v46 }
  0xe6   : > { %v721_v13 = vmul.f32 %v705_v9, %v705_v9 }
  0xeb   : > { %v7028_v51 = vpop.permute.xlu2 %830  ;;  %v677_v7 = vpop.permute.xlu0 %676 }
  0xec   : > { %v681_v56 = vpop.permute.xlu1 %680  ;;  %v707_v57 = vsel %vm358_vm2, %v706_v35, %v677_v7 }
  0xed   : > { %v708_v44 = vsel %vm360_vm3, %v707_v57, %v681_v56 }
  0xee   : > { %v709_v62 = vsel %vm362_vm4, %v708_v44, %v685_v28 }
  0xf3   : > { %v843_v60 = vpop.permute.xlu2 %842  ;;  %v689_v63 = vpop.permute.xlu0 %688 }
  0xf4   : > { %v693_v0 = vpop.permute.xlu1 %692  ;;  %v710_v54 = vsel %vm364_vm5, %v709_v62, %v689_v63 }
  0xf5   : > { %v711_v1 = vsel %vm366_vm6, %v710_v54, %v693_v0 }
  0xf6   : > { %v712_v10 = vsel %vm368_vm7, %v711_v1, %v697_v42 }
  0xf7   : > { %v715_v11 = vrot.slane %v712_v10, 7  ;;  %v722_v6 = vmul.f32 %v712_v10, %v712_v10 }
  0xf9   : > { %v716_v2 = vsel %vm380_vm8, %v705_v9, %v715_v11  ;;  %v725_v15 = vrot.slane %v722_v6, 7 }
  0xfa   : > { %719 = vst.msk [vmem:[#allocation2 + $0x2] ss:$8 sm:$0x3] %vm6986_vm9, %v716_v2 }
  0xfb   : > { %v726_v17 = vsel %vm380_vm8, %v721_v13, %v725_v15  ;;  %v855_v19 = vpop.permute.xlu2 %854  ;;  %v811_v20 = vpop.permute.xlu0 %810 }
  0xfc   : > { %729 = vst.msk [vmem:[#allocation2 + $0x46] ss:$8 sm:$0x3] %vm6986_vm9, %v726_v17  ;;  %v815_v23 = vpop.permute.xlu1 %814  ;;  %v865_v31 = vsel %vm356_vm1, %v6905_v29, %v811_v20 }
  0xfd   : > { %v866_v49 = vsel %vm358_vm2, %v865_v31, %v815_v23 }
  0xfe   : > { %v867_v57 = vsel %vm360_vm3, %v866_v49, %v7023_v45 }
 0x103   : > { %v900_v24 = vpop.permute.xlu2 %899  ;;  %v823_v25 = vpop.permute.xlu0 %822 }
 0x104   : > { %v827_v27 = vpop.permute.xlu1 %826  ;;  %v905_v47 = vrot.slane %v900_v24, 4  ;;  %v910_v16 = vperm.slane %v900_v24, %v6723_v4 }
 0x106   : > { %v906_v61 = vsel %vm224_vm0, 0.0, %v905_v47  ;;  %v915_v28 = vrot.slane %v910_v16, 4  ;;  %v7052_v30 = vperm.slane %v910_v16, %v6730_v5 }
 0x107   : > { %v914_v32 = vperm.slane %v906_v61, %v6723_v4 }
 0x108   : > { %v935_v12 = vrot.slane %v7052_v30, 4  ;;  %v916_v33 = vsel %vm224_vm0, 0.0, %v915_v28 }
 0x109   : > { %v924_v36 = vperm.slane %v916_v33, %v6730_v5  ;;  %v930_v14 = vperm.slane %v914_v32, %v6730_v5  ;;  %v925_v39 = vrot.slane %v914_v32, 4 }
 0x10a   : > { %v936_v21 = vsel %vm224_vm0, 0.0, %v935_v12 }
 0x10b   : > { %982 = vrot.lane.b32.xlu1 %v936_v21, %s6677_s22  ;;  %v835_v37 = vpop.permute.xlu0 %834  ;;  %v937_v38 = vrot.slane %v924_v36, 4  ;;  %986 = vrot.lane.b32.xlu2 %v924_v36, %s6676_s21  ;;  %v939_v42 = vrot.slane %v930_v14, 4  ;;  %v926_v22 = vsel %vm224_vm0, 0.0, %v925_v39 }
 0x10c   : > { %v839_v41 = vpop.permute.xlu1 %838  ;;  %v934_v7 = vperm.slane %v926_v22, %v6730_v5 }
 0x10d   : > { %v938_v8 = vsel %vm224_vm0, 0.0, %v937_v38  ;;  %v940_v46 = vsel %vm224_vm0, 0.0, %v939_v42  ;;  %v872_v48 = vsel %vm356_vm1, %v6932_v55, %v839_v41  ;;  %v868_v55 = vsel %vm362_vm4, %v867_v57, %v823_v25 }
 0x10e   : > { %990 = vrot.lane.b32.xlu0 %v938_v8, %s6682_s27  ;;  %v873_v53 = vsel %vm358_vm2, %v872_v48, %v843_v60  ;;  %v941_v29 = vrot.slane %v934_v7, 4  ;;  %v869_v34 = vsel %vm364_vm5, %v868_v55, %v827_v27 }
 0x10f   : > { %v870_v45 = vsel %vm366_vm6, %v869_v34, %v7028_v51 }
 0x110   : > { %v942_v59 = vsel %vm224_vm0, 0.0, %v941_v29  ;;  %v871_v54 = vsel %vm368_vm7, %v870_v45, %v835_v37 }
 0x111   : > { %v887_v11 = vmul.f32 %v871_v54, %v871_v54 }
 0x113   : > { %994 = vrot.lane.b32.xlu1 %v930_v14, %s6678_s23  ;;  %v847_v35 = vpop.permute.xlu0 %846  ;;  %998 = vrot.lane.b32.xlu2 %v940_v46, %s6679_s24 }
 0x114   : > { %v851_v56 = vpop.permute.xlu1 %850  ;;  %v874_v58 = vsel %vm360_vm3, %v873_v53, %v847_v35 }
 0x115   : > { %v875_v44 = vsel %vm362_vm4, %v874_v58, %v851_v56 }
 0x116   : > { %1002 = vrot.lane.b32.xlu0 %v934_v7, %s6680_s25  ;;  %v876_v60 = vsel %vm364_vm5, %v875_v44, %v855_v19 }
 0x11b   : > { %1006 = vrot.lane.b32.xlu1 %v942_v59, %s6681_s26  ;;  %v859_v62 = vpop.permute.xlu0 %858 }
 0x11c   : > { %v877_v63 = vsel %vm366_vm6, %v876_v60, %v859_v62  ;;  %v863_v0 = vpop.permute.xlu1 %862 }
 0x11d   : > { %v878_v1 = vsel %vm368_vm7, %v877_v63, %v863_v0 }
 0x11e   : > { %v881_v9 = vrot.slane %v878_v1, 7  ;;  %v888_v10 = vmul.f32 %v878_v1, %v878_v1 }
 0x120   : > { %v882_v6 = vsel %vm380_vm8, %v871_v54, %v881_v9  ;;  %v891_v13 = vrot.slane %v888_v10, 7 }
 0x121   : > { %885 = vst.msk [vmem:[#allocation2 + $0x3] ss:$8 sm:$0x3] %vm6986_vm9, %v882_v6 }
 0x122   : > { %v892_v2 = vsel %vm380_vm8, %v887_v11, %v891_v13 }
 0x123   : > { %895 = vst.msk [vmem:[#allocation2 + $0x47] ss:$8 sm:$0x3] %vm6986_vm9, %v892_v2  ;;  %v902_v51 = vpop.permute.xlu0 %901 }
 0x124   : > { %v943_v15 = vrot.slane %v902_v51, 4  ;;  %v948_v17 = vperm.slane %v902_v51, %v6723_v4 }
 0x126   : > { %v944_v19 = vsel %vm224_vm0, 0.0, %v943_v15  ;;  %v953_v20 = vrot.slane %v948_v17, 4  ;;  %v958_v23 = vperm.slane %v948_v17, %v6730_v5 }
 0x127   : > { %v952_v24 = vperm.slane %v944_v19, %v6723_v4 }
 0x128   : > { %v973_v25 = vrot.slane %v958_v23, 4  ;;  %v954_v27 = vsel %vm224_vm0, 0.0, %v953_v20 }
 0x129   : > { %v962_v47 = vperm.slane %v954_v27, %v6730_v5  ;;  %v968_v61 = vperm.slane %v952_v24, %v6730_v5  ;;  %v963_v32 = vrot.slane %v952_v24, 4 }
 0x12a   : > { %v974_v16 = vsel %vm224_vm0, 0.0, %v973_v25 }
 0x12b   : > { %1010 = vrot.lane.b32.xlu2 %v974_v16, %s6677_s22  ;;  %1014 = vrot.lane.b32.xlu0 %v962_v47, %s6676_s21  ;;  %v975_v28 = vrot.slane %v962_v47, 4  ;;  %v977_v33 = vrot.slane %v968_v61, 4  ;;  %v964_v36 = vsel %vm224_vm0, 0.0, %v963_v32 }
 0x12c   : > { %v972_v14 = vperm.slane %v964_v36, %v6730_v5 }
 0x12d   : > { %v976_v12 = vsel %vm224_vm0, 0.0, %v975_v28  ;;  %v978_v21 = vsel %vm224_vm0, 0.0, %v977_v33 }
 0x12e   : > { %1018 = vrot.lane.b32.xlu1 %v976_v12, %s6682_s27  ;;  %v979_v37 = vrot.slane %v972_v14, 4 }
 0x130   : > { %v980_v38 = vsel %vm224_vm0, 0.0, %v979_v37 }
 0x133   : > { %1022 = vrot.lane.b32.xlu2 %v968_v61, %s6678_s23  ;;  %1026 = vrot.lane.b32.xlu0 %v978_v21, %s6679_s24 }
 0x136   : > { %1030 = vrot.lane.b32.xlu1 %v972_v14, %s6680_s25 }
 0x13b   : > { %1071 = vrot.lane.b32.xlu0 %v6780_v43, %s6683_s28  ;;  %1034 = vrot.lane.b32.xlu2 %v980_v38, %s6681_s26 }
 0x13e   : > { %1073 = vrot.lane.b32.xlu1 %v6809_v3, %s6683_s28 }
 0x165   : > { %v987_v39 = vpop.permute.xlu2 %986 }
 0x16d   : > { %v999_v8 = vpop.permute.xlu2 %998 }
 0x17d   : > { %v983_v41 = vpop.permute.xlu1 %982 }
 0x17e   : > { %v1037_v49 = vsel %vm356_vm1, %v7052_v30, %v983_v41 }
 0x17f   : > { %v1038_v35 = vsel %vm358_vm2, %v1037_v49, %v987_v39 }
 0x180   : > { %v991_v42 = vpop.permute.xlu0 %990 }
 0x181   : > { %v1039_v56 = vsel %vm360_vm3, %v1038_v35, %v991_v42 }
 0x185   : > { %v995_v31 = vpop.permute.xlu1 %994  ;;  %v1011_v22 = vpop.permute.xlu2 %1010 }
 0x186   : > { %v1044_v3 = vsel %vm356_vm1, %v958_v23, %v1011_v22  ;;  %v1040_v29 = vsel %vm362_vm4, %v1039_v56, %v995_v31 }
 0x187   : > { %v1041_v44 = vsel %vm364_vm5, %v1040_v29, %v999_v8 }
 0x188   : > { %v1003_v46 = vpop.permute.xlu0 %1002 }
 0x189   : > { %v1042_v60 = vsel %vm366_vm6, %v1041_v44, %v1003_v46 }
 0x18d   : > { %v1007_v48 = vpop.permute.xlu1 %1006  ;;  %v1023_v43 = vpop.permute.xlu2 %1022 }
 0x18e   : > { %v1043_v63 = vsel %vm368_vm7, %v1042_v60, %v1007_v48 }
 0x18f   : > { %v1059_v9 = vmul.f32 %v1043_v63, %v1043_v63 }
 0x195   : > { %v1035_v62 = vpop.permute.xlu2 %1034 }
 0x19d   : > { %v1015_v7 = vpop.permute.xlu0 %1014 }
 0x19e   : > { %v1045_v57 = vsel %vm358_vm2, %v1044_v3, %v1015_v7 }
 0x1a0   : > { %v1019_v53 = vpop.permute.xlu1 %1018 }
 0x1a1   : > { %v1046_v58 = vsel %vm360_vm3, %v1045_v57, %v1019_v53 }
 0x1a2   : > { %v1047_v30 = vsel %vm362_vm4, %v1046_v58, %v1023_v43 }
 0x1a5   : > { %v1027_v55 = vpop.permute.xlu0 %1026 }
 0x1a6   : > { %v1048_v59 = vsel %vm364_vm5, %v1047_v30, %v1027_v55 }
 0x1a8   : > { %v1031_v34 = vpop.permute.xlu1 %1030 }
 0x1a9   : > { %v1049_v45 = vsel %vm366_vm6, %v1048_v59, %v1031_v34 }
 0x1aa   : > { %v1050_v0 = vsel %vm368_vm7, %v1049_v45, %v1035_v62 }
 0x1ab   : > { %v1053_v54 = vrot.slane %v1050_v0, 7  ;;  %v1060_v1 = vmul.f32 %v1050_v0, %v1050_v0 }
 0x1ad   : > { %v1054_v10 = vsel %vm380_vm8, %v1043_v63, %v1053_v54  ;;  %v1063_v11 = vrot.slane %v1060_v1, 7  ;;  %v1072_v6 = vpop.permute.xlu0 %1071 }
 0x1ae   : > { %1057 = vst.msk [vmem:[#allocation2 + $0x4] ss:$8 sm:$0x3] %vm6986_vm9, %v1054_v10  ;;  %v1077_v13 = vrot.slane %v1072_v6, 4  ;;  %v1082_v2 = vperm.slane %v1072_v6, %v6723_v4 }
 0x1af   : > { %v1064_v51 = vsel %vm380_vm8, %v1059_v9, %v1063_v11 }
 0x1b0   : > { %1067 = vst.msk [vmem:[#allocation2 + $0x50] ss:$8 sm:$0x3] %vm6986_vm9, %v1064_v51  ;;  %v1078_v15 = vsel %vm224_vm0, 0.0, %v1077_v13  ;;  %v1087_v17 = vrot.slane %v1082_v2, 4  ;;  %v7144_v19 = vperm.slane %v1082_v2, %v6730_v5  ;;  %v1074_v27 = vpop.permute.xlu1 %1073 }
 0x1b1   : > { %v1086_v20 = vperm.slane %v1078_v15, %v6723_v4  ;;  %v1120_v32 = vperm.slane %v1074_v27, %v6723_v4  ;;  %v1115_v21 = vrot.slane %v1074_v27, 4 }
 0x1b2   : > { %v1107_v23 = vrot.slane %v7144_v19, 4  ;;  %v1088_v24 = vsel %vm224_vm0, 0.0, %v1087_v17 }
 0x1b3   : > { %v1096_v25 = vperm.slane %v1088_v24, %v6730_v5  ;;  %v1102_v16 = vperm.slane %v1086_v20, %v6730_v5  ;;  %v1097_v28 = vrot.slane %v1086_v20, 4  ;;  %v1130_v14 = vperm.slane %v1120_v32, %v6730_v5 }
 0x1b4   : > { %v1108_v47 = vsel %vm224_vm0, 0.0, %v1107_v23  ;;  %v1125_v39 = vrot.slane %v1120_v32, 4  ;;  %v1116_v41 = vsel %vm224_vm0, 0.0, %v1115_v21 }
 0x1b5   : > { %1154 = vrot.lane.b32.xlu2 %v1108_v47, %s6677_s22  ;;  %1158 = vrot.lane.b32.xlu0 %v1096_v25, %s6676_s21  ;;  %v1109_v61 = vrot.slane %v1096_v25, 4  ;;  %v1111_v33 = vrot.slane %v1102_v16, 4  ;;  %v1098_v36 = vsel %vm224_vm0, 0.0, %v1097_v28  ;;  %v1145_v42 = vrot.slane %v1130_v14, 4 }
 0x1b6   : > { %v1106_v38 = vperm.slane %v1098_v36, %v6730_v5  ;;  %v1126_v31 = vsel %vm224_vm0, 0.0, %v1125_v39  ;;  %v1124_v22 = vperm.slane %v1116_v41, %v6723_v4 }
 0x1b7   : > { %v1110_v12 = vsel %vm224_vm0, 0.0, %v1109_v61  ;;  %v1112_v37 = vsel %vm224_vm0, 0.0, %v1111_v33  ;;  %v1146_v46 = vsel %vm224_vm0, 0.0, %v1145_v42  ;;  %v1134_v49 = vperm.slane %v1126_v31, %v6730_v5 }
 0x1b8   : > { %1162 = vrot.lane.b32.xlu1 %v1110_v12, %s6682_s27  ;;  %v1113_v8 = vrot.slane %v1106_v38, 4  ;;  %v1135_v7 = vrot.slane %v1124_v22, 4  ;;  %v1140_v35 = vperm.slane %v1124_v22, %v6730_v5 }
 0x1b9   : > { %v1147_v43 = vrot.slane %v1134_v49, 4 }
 0x1ba   : > { %v1114_v48 = vsel %vm224_vm0, 0.0, %v1113_v8  ;;  %v1136_v53 = vsel %vm224_vm0, 0.0, %v1135_v7  ;;  %v1149_v56 = vrot.slane %v1140_v35, 4 }
 0x1bb   : > { %v1148_v3 = vsel %vm224_vm0, 0.0, %v1147_v43  ;;  %v1144_v29 = vperm.slane %v1136_v53, %v6730_v5 }
 0x1bc   : > { %v1150_v57 = vsel %vm224_vm0, 0.0, %v1149_v56 }
 0x1bd   : > { %1166 = vrot.lane.b32.xlu2 %v1102_v16, %s6678_s23  ;;  %1170 = vrot.lane.b32.xlu0 %v1112_v37, %s6679_s24  ;;  %v1151_v58 = vrot.slane %v1144_v29, 4 }
 0x1bf   : > { %v1152_v55 = vsel %vm224_vm0, 0.0, %v1151_v58 }
 0x1c0   : > { %1174 = vrot.lane.b32.xlu1 %v1106_v38, %s6680_s25 }
 0x1c5   : > { %1182 = vrot.lane.b32.xlu0 %v1146_v46, %s6677_s22  ;;  %1178 = vrot.lane.b32.xlu2 %v1114_v48, %s6681_s26 }
 0x1c8   : > { %1186 = vrot.lane.b32.xlu1 %v1134_v49, %s6676_s21 }
 0x1cd   : > { %1194 = vrot.lane.b32.xlu0 %v1140_v35, %s6678_s23  ;;  %1190 = vrot.lane.b32.xlu2 %v1148_v3, %s6682_s27 }
 0x1d0   : > { %1198 = vrot.lane.b32.xlu1 %v1150_v57, %s6679_s24 }
 0x1d5   : > { %1206 = vrot.lane.b32.xlu0 %v1152_v55, %s6681_s26  ;;  %1202 = vrot.lane.b32.xlu2 %v1144_v29, %s6680_s25 }
 0x1d8   : > { %1243 = vrot.lane.b32.xlu1 %v6832_v26, %s6683_s28 }
 0x1dd   : > { %1245 = vrot.lane.b32.xlu2 %v6861_v50, %s6683_s28 }
 0x20f   : > { %v1155_v44 = vpop.permute.xlu2 %1154 }
 0x210   : > { %v1209_v1 = vsel %vm356_vm1, %v7144_v19, %v1155_v44 }
 0x217   : > { %v1167_v59 = vpop.permute.xlu2 %1166 }
 0x21f   : > { %v1179_v62 = vpop.permute.xlu2 %1178 }
 0x227   : > { %v1159_v30 = vpop.permute.xlu0 %1158  ;;  %v1191_v54 = vpop.permute.xlu2 %1190 }
 0x228   : > { %v1210_v9 = vsel %vm358_vm2, %v1209_v1, %v1159_v30 }
 0x22a   : > { %v1163_v34 = vpop.permute.xlu1 %1162 }
 0x22b   : > { %v1211_v10 = vsel %vm360_vm3, %v1210_v9, %v1163_v34 }
 0x22c   : > { %v1212_v6 = vsel %vm362_vm4, %v1211_v10, %v1167_v59 }
 0x22f   : > { %v1171_v60 = vpop.permute.xlu0 %1170  ;;  %v1203_v20 = vpop.permute.xlu2 %1202 }
 0x230   : > { %v1213_v51 = vsel %vm364_vm5, %v1212_v6, %v1171_v60 }
 0x232   : > { %v1175_v45 = vpop.permute.xlu1 %1174 }
 0x233   : > { %v1214_v17 = vsel %vm366_vm6, %v1213_v51, %v1175_v45 }
 0x234   : > { %v1215_v23 = vsel %vm368_vm7, %v1214_v17, %v1179_v62 }
 0x235   : > { %v1231_v61 = vmul.f32 %v1215_v23, %v1215_v23 }
 0x237   : > { %v1183_v63 = vpop.permute.xlu0 %1182  ;;  %v1246_v31 = vpop.permute.xlu2 %1245 }
 0x238   : > { %v1216_v26 = vsel %vm356_vm1, %v1130_v14, %v1183_v63  ;;  %v1292_v7 = vperm.slane %v1246_v31, %v6723_v4  ;;  %v1287_v56 = vrot.slane %v1246_v31, 4 }
 0x23a   : > { %v1187_v0 = vpop.permute.xlu1 %1186  ;;  %v7227_v3 = vperm.slane %v1292_v7, %v6730_v5  ;;  %v1297_v58 = vrot.slane %v1292_v7, 4  ;;  %v1288_v55 = vsel %vm224_vm0, 0.0, %v1287_v56 }
 0x23b   : > { %v1217_v50 = vsel %vm358_vm2, %v1216_v26, %v1187_v0  ;;  %v1296_v34 = vperm.slane %v1288_v55, %v6723_v4 }
 0x23c   : > { %v1218_v13 = vsel %vm360_vm3, %v1217_v50, %v1191_v54  ;;  %v1317_v44 = vrot.slane %v7227_v3, 4  ;;  %v1298_v59 = vsel %vm224_vm0, 0.0, %v1297_v58 }
 0x23d   : > { %v1306_v45 = vperm.slane %v1298_v59, %v6730_v5  ;;  %v1307_v63 = vrot.slane %v1296_v34, 4  ;;  %v1312_v54 = vperm.slane %v1296_v34, %v6730_v5 }
 0x23e   : > { %v1318_v60 = vsel %vm224_vm0, 0.0, %v1317_v44 }
 0x23f   : > { %v1195_v11 = vpop.permute.xlu0 %1194  ;;  %v1319_v0 = vrot.slane %v1306_v45, 4  ;;  %v1308_v1 = vsel %vm224_vm0, 0.0, %v1307_v63  ;;  %v1321_v26 = vrot.slane %v1312_v54, 4 }
 0x240   : > { %v1219_v15 = vsel %vm362_vm4, %v1218_v13, %v1195_v11  ;;  %v1316_v10 = vperm.slane %v1308_v1, %v6730_v5 }
 0x241   : > { %v1320_v9 = vsel %vm224_vm0, 0.0, %v1319_v0  ;;  %v1322_v50 = vsel %vm224_vm0, 0.0, %v1321_v26 }
 0x242   : > { %v1199_v2 = vpop.permute.xlu1 %1198  ;;  %v1323_v11 = vrot.slane %v1316_v10, 4 }
 0x243   : > { %v1220_v19 = vsel %vm364_vm5, %v1219_v15, %v1199_v2 }
 0x244   : > { %v1221_v25 = vsel %vm366_vm6, %v1220_v19, %v1203_v20  ;;  %v1324_v6 = vsel %vm224_vm0, 0.0, %v1323_v11 }
 0x247   : > { %v1207_v24 = vpop.permute.xlu0 %1206 }
 0x248   : > { %v1222_v27 = vsel %vm368_vm7, %v1221_v25, %v1207_v24 }
 0x249   : > { %v1225_v47 = vrot.slane %v1222_v27, 7  ;;  %v1232_v16 = vmul.f32 %v1222_v27, %v1222_v27 }
 0x24a   : > { %v1244_v28 = vpop.permute.xlu1 %1243 }
 0x24b   : > { %v1226_v32 = vsel %vm380_vm8, %v1215_v23, %v1225_v47  ;;  %v1235_v12 = vrot.slane %v1232_v16, 7  ;;  %v1249_v33 = vrot.slane %v1244_v28, 4  ;;  %v1254_v36 = vperm.slane %v1244_v28, %v6723_v4 }
 0x24c   : > { %1229 = vst.msk [vmem:[#allocation2 + $0x5] ss:$8 sm:$0x3] %vm6986_vm9, %v1226_v32 }
 0x24d   : > { %v1236_v21 = vsel %vm380_vm8, %v1231_v61, %v1235_v12  ;;  %v1250_v14 = vsel %vm224_vm0, 0.0, %v1249_v33  ;;  %v1259_v37 = vrot.slane %v1254_v36, 4  ;;  %v7210_v38 = vperm.slane %v1254_v36, %v6730_v5 }
 0x24e   : > { %1239 = vst.msk [vmem:[#allocation2 + $0x51] ss:$8 sm:$0x3] %vm6986_vm9, %v1236_v21  ;;  %v1258_v39 = vperm.slane %v1250_v14, %v6723_v4 }
 0x24f   : > { %v1279_v41 = vrot.slane %v7210_v38, 4  ;;  %v1260_v42 = vsel %vm224_vm0, 0.0, %v1259_v37 }
 0x250   : > { %v1268_v8 = vperm.slane %v1260_v42, %v6730_v5  ;;  %v1274_v46 = vperm.slane %v1258_v39, %v6730_v5  ;;  %v1269_v49 = vrot.slane %v1258_v39, 4 }
 0x251   : > { %v1280_v22 = vsel %vm224_vm0, 0.0, %v1279_v41 }
 0x252   : > { %1326 = vrot.lane.b32.xlu0 %v1280_v22, %s6677_s22  ;;  %1330 = vrot.lane.b32.xlu1 %v1268_v8, %s6676_s21  ;;  %v1281_v48 = vrot.slane %v1268_v8, 4  ;;  %v1283_v43 = vrot.slane %v1274_v46, 4  ;;  %v1270_v53 = vsel %vm224_vm0, 0.0, %v1269_v49 }
 0x253   : > { %v1278_v57 = vperm.slane %v1270_v53, %v6730_v5 }
 0x254   : > { %v1282_v35 = vsel %vm224_vm0, 0.0, %v1281_v48  ;;  %v1284_v29 = vsel %vm224_vm0, 0.0, %v1283_v43 }
 0x255   : > { %1334 = vrot.lane.b32.xlu2 %v1282_v35, %s6682_s27  ;;  %v1285_v30 = vrot.slane %v1278_v57, 4 }
 0x257   : > { %v1286_v62 = vsel %vm224_vm0, 0.0, %v1285_v30 }
 0x25a   : > { %1338 = vrot.lane.b32.xlu0 %v1274_v46, %s6678_s23  ;;  %1342 = vrot.lane.b32.xlu1 %v1284_v29, %s6679_s24 }
 0x25d   : > { %1346 = vrot.lane.b32.xlu2 %v1278_v57, %s6680_s25 }
 0x262   : > { %1350 = vrot.lane.b32.xlu0 %v1286_v62, %s6681_s26  ;;  %1354 = vrot.lane.b32.xlu1 %v1318_v60, %s6677_s22 }
 0x265   : > { %1358 = vrot.lane.b32.xlu2 %v1306_v45, %s6676_s21 }
 0x26a   : > { %1362 = vrot.lane.b32.xlu0 %v1320_v9, %s6682_s27  ;;  %1366 = vrot.lane.b32.xlu1 %v1312_v54, %s6678_s23 }
 0x26d   : > { %1370 = vrot.lane.b32.xlu2 %v1322_v50, %s6679_s24 }
 0x272   : > { %1374 = vrot.lane.b32.xlu0 %v1316_v10, %s6680_s25  ;;  %1378 = vrot.lane.b32.xlu1 %v1324_v6, %s6681_s26 }
 0x275   : > { %1415 = vrot.lane.b32.xlu2 %v6892_v18, %s6683_s28 }
 0x27a   : > { %1417 = vrot.lane.b32.xlu0 %v6919_v40, %s6683_s28 }
 0x2af   : > { %v1335_v13 = vpop.permute.xlu2 %1334 }
 0x2b7   : > { %v1347_v2 = vpop.permute.xlu2 %1346 }
 0x2bf   : > { %v1359_v51 = vpop.permute.xlu2 %1358 }
 0x2c4   : > { %v1327_v15 = vpop.permute.xlu0 %1326  ;;  %v1331_v17 = vpop.permute.xlu1 %1330 }
 0x2c5   : > { %v1381_v39 = vsel %vm356_vm1, %v7210_v38, %v1327_v15 }
 0x2c6   : > { %v1382_v31 = vsel %vm358_vm2, %v1381_v39, %v1331_v17 }
 0x2c7   : > { %v1371_v19 = vpop.permute.xlu2 %1370  ;;  %v1383_v38 = vsel %vm360_vm3, %v1382_v31, %v1335_v13 }
 0x2cc   : > { %v1339_v20 = vpop.permute.xlu0 %1338  ;;  %v1343_v23 = vpop.permute.xlu1 %1342 }
 0x2cd   : > { %v1384_v53 = vsel %vm362_vm4, %v1383_v38, %v1339_v20 }
 0x2ce   : > { %v1385_v29 = vsel %vm364_vm5, %v1384_v53, %v1343_v23 }
 0x2cf   : > { %v1416_v24 = vpop.permute.xlu2 %1415  ;;  %v1386_v30 = vsel %vm366_vm6, %v1385_v29, %v1347_v2 }
 0x2d0   : > { %v1421_v25 = vrot.slane %v1416_v24, 4  ;;  %v1426_v27 = vperm.slane %v1416_v24, %v6723_v4 }
 0x2d2   : > { %v1422_v47 = vsel %vm224_vm0, 0.0, %v1421_v25  ;;  %v1431_v16 = vrot.slane %v1426_v27, 4  ;;  %v7262_v18 = vperm.slane %v1426_v27, %v6730_v5 }
 0x2d3   : > { %v1430_v40 = vperm.slane %v1422_v47, %v6723_v4 }
 0x2d4   : > { %v1351_v61 = vpop.permute.xlu0 %1350  ;;  %v1355_v28 = vpop.permute.xlu1 %1354  ;;  %v1451_v32 = vrot.slane %v7262_v18, 4  ;;  %v1432_v12 = vsel %vm224_vm0, 0.0, %v1431_v16 }
 0x2d5   : > { %v1440_v33 = vperm.slane %v1432_v12, %v6730_v5  ;;  %v1446_v21 = vperm.slane %v1430_v40, %v6730_v5  ;;  %v1441_v37 = vrot.slane %v1430_v40, 4  ;;  %v1388_v8 = vsel %vm356_vm1, %v7227_v3, %v1355_v28  ;;  %v7325_v28 = vld [vmem:[%s6728_s20] sm:$0xff] }
 0x2d6   : > { %v1452_v36 = vsel %vm224_vm0, 0.0, %v1451_v32  ;;  %v1389_v7 = vsel %vm358_vm2, %v1388_v8, %v1359_v51  ;;  %v1387_v34 = vsel %vm368_vm7, %v1386_v30, %v1351_v61  ;;  %v7330_v32 = vld [vmem:[%s6728_s20 + $0x8] sm:$0xff] }
 0x2d7   : > { %1498 = vrot.lane.b32.xlu1 %v1452_v36, %s6677_s22  ;;  %v1453_v14 = vrot.slane %v1440_v33, 4  ;;  %1502 = vrot.lane.b32.xlu2 %v1440_v33, %s6676_s21  ;;  %v1455_v41 = vrot.slane %v1446_v21, 4  ;;  %v1442_v22 = vsel %vm224_vm0, 0.0, %v1441_v37  ;;  %v1403_v63 = vmul.f32 %v1387_v34, %v1387_v34 }
 0x2d8   : > { %v1450_v43 = vperm.slane %v1442_v22, %v6730_v5 }
 0x2d9   : > { %v1454_v42 = vsel %vm224_vm0, 0.0, %v1453_v14  ;;  %v1456_v49 = vsel %vm224_vm0, 0.0, %v1455_v41 }
 0x2da   : > { %1506 = vrot.lane.b32.xlu0 %v1454_v42, %s6682_s27  ;;  %v1457_v56 = vrot.slane %v1450_v43, 4 }
 0x2dc   : > { %v1363_v46 = vpop.permute.xlu0 %1362  ;;  %v1367_v48 = vpop.permute.xlu1 %1366  ;;  %v1458_v44 = vsel %vm224_vm0, 0.0, %v1457_v56 }
 0x2dd   : > { %v1390_v35 = vsel %vm360_vm3, %v1389_v7, %v1363_v46 }
 0x2de   : > { %v1391_v3 = vsel %vm362_vm4, %v1390_v35, %v1367_v48 }
 0x2df   : > { %1510 = vrot.lane.b32.xlu1 %v1446_v21, %s6678_s23  ;;  %1514 = vrot.lane.b32.xlu2 %v1456_v49, %s6679_s24  ;;  %v1392_v58 = vsel %vm364_vm5, %v1391_v3, %v1371_v19 }
 0x2e2   : > { %1518 = vrot.lane.b32.xlu0 %v1450_v43, %s6680_s25 }
 0x2e4   : > { %v1375_v57 = vpop.permute.xlu0 %1374  ;;  %v1379_v55 = vpop.permute.xlu1 %1378 }
 0x2e5   : > { %v1393_v59 = vsel %vm366_vm6, %v1392_v58, %v1375_v57 }
 0x2e6   : > { %v1394_v60 = vsel %vm368_vm7, %v1393_v59, %v1379_v55 }
 0x2e7   : > { %v1397_v62 = vrot.slane %v1394_v60, 7  ;;  %v1404_v45 = vmul.f32 %v1394_v60, %v1394_v60  ;;  %1522 = vrot.lane.b32.xlu1 %v1458_v44, %s6681_s26 }
 0x2e9   : > { %v1398_v0 = vsel %vm380_vm8, %v1387_v34, %v1397_v62  ;;  %v1407_v54 = vrot.slane %v1404_v45, 7 }
 0x2ea   : > { %1401 = vst.msk [vmem:[#allocation2 + $0x6] ss:$8 sm:$0x3] %vm6986_vm9, %v1398_v0 }
 0x2eb   : > { %v1408_v1 = vsel %vm380_vm8, %v1403_v63, %v1407_v54 }
 0x2ec   : > { %1411 = vst.msk [vmem:[#allocation2 + $0x52] ss:$8 sm:$0x3] %vm6986_vm9, %v1408_v1  ;;  %v1418_v9 = vpop.permute.xlu0 %1417 }
 0x2ed   : > { %v1459_v26 = vrot.slane %v1418_v9, 4  ;;  %v1464_v10 = vperm.slane %v1418_v9, %v6723_v4 }
 0x2ef   : > { %v1460_v50 = vsel %vm224_vm0, 0.0, %v1459_v26  ;;  %v1469_v11 = vrot.slane %v1464_v10, 4  ;;  %v1474_v6 = vperm.slane %v1464_v10, %v6730_v5 }
 0x2f0   : > { %v1468_v13 = vperm.slane %v1460_v50, %v6723_v4 }
 0x2f1   : > { %v1489_v2 = vrot.slane %v1474_v6, 4  ;;  %v1470_v51 = vsel %vm224_vm0, 0.0, %v1469_v11 }
 0x2f2   : > { %v1478_v15 = vperm.slane %v1470_v51, %v6730_v5  ;;  %v1484_v19 = vperm.slane %v1468_v13, %v6730_v5  ;;  %v1479_v23 = vrot.slane %v1468_v13, 4 }
 0x2f3   : > { %v1490_v17 = vsel %vm224_vm0, 0.0, %v1489_v2 }
 0x2f4   : > { %1526 = vrot.lane.b32.xlu2 %v1490_v17, %s6677_s22  ;;  %1530 = vrot.lane.b32.xlu0 %v1478_v15, %s6676_s21  ;;  %v1491_v20 = vrot.slane %v1478_v15, 4  ;;  %v1493_v25 = vrot.slane %v1484_v19, 4  ;;  %v1480_v27 = vsel %vm224_vm0, 0.0, %v1479_v23 }
 0x2f5   : > { %v1488_v16 = vperm.slane %v1480_v27, %v6730_v5 }
 0x2f6   : > { %v1492_v24 = vsel %vm224_vm0, 0.0, %v1491_v20  ;;  %v1494_v47 = vsel %vm224_vm0, 0.0, %v1493_v25 }
 0x2f7   : > { %1534 = vrot.lane.b32.xlu1 %v1492_v24, %s6682_s27  ;;  %v1495_v40 = vrot.slane %v1488_v16, 4 }
 0x2f9   : > { %v1496_v61 = vsel %vm224_vm0, 0.0, %v1495_v40 }
 0x2fc   : > { %1538 = vrot.lane.b32.xlu2 %v1484_v19, %s6678_s23  ;;  %1542 = vrot.lane.b32.xlu0 %v1494_v47, %s6679_s24 }
 0x2ff   : > { %1546 = vrot.lane.b32.xlu1 %v1488_v16, %s6680_s25 }
 0x304   : > { %1550 = vrot.lane.b32.xlu2 %v1496_v61, %s6681_s26  ;;  %1585 = vrot.lane.b32.xlu0 %v7325_v28, %s6684_s29 }
 0x307   : > { %1587 = vrot.lane.b32.xlu1 %v7330_v32, %s6684_s29 }
 0x331   : > { %v1503_v12 = vpop.permute.xlu2 %1502 }
 0x339   : > { %v1515_v21 = vpop.permute.xlu2 %1514 }
 0x349   : > { %v1499_v33 = vpop.permute.xlu1 %1498 }
 0x34a   : > { %v1553_v42 = vsel %vm356_vm1, %v7262_v18, %v1499_v33 }
 0x34b   : > { %v1554_v31 = vsel %vm358_vm2, %v1553_v42, %v1503_v12 }
 0x34c   : > { %v1507_v36 = vpop.permute.xlu0 %1506 }
 0x34d   : > { %v1555_v48 = vsel %vm360_vm3, %v1554_v31, %v1507_v36 }
 0x34e   : > { %v1527_v37 = vpop.permute.xlu2 %1526 }
 0x34f   : > { %v1560_v49 = vsel %vm356_vm1, %v1474_v6, %v1527_v37 }
 0x351   : > { %v1511_v14 = vpop.permute.xlu1 %1510 }
 0x352   : > { %v1556_v7 = vsel %vm362_vm4, %v1555_v48, %v1511_v14 }
 0x353   : > { %v1557_v53 = vsel %vm364_vm5, %v1556_v7, %v1515_v21 }
 0x354   : > { %v1519_v39 = vpop.permute.xlu0 %1518 }
 0x355   : > { %v1558_v29 = vsel %vm366_vm6, %v1557_v53, %v1519_v39 }
 0x356   : > { %v1539_v22 = vpop.permute.xlu2 %1538 }
 0x359   : > { %v1523_v41 = vpop.permute.xlu1 %1522 }
 0x35a   : > { %v1559_v55 = vsel %vm368_vm7, %v1558_v29, %v1523_v41 }
 0x35b   : > { %v1575_v34 = vmul.f32 %v1559_v55, %v1559_v55 }
 0x35e   : > { %v1551_v57 = vpop.permute.xlu2 %1550 }
 0x366   : > { %v1531_v8 = vpop.permute.xlu0 %1530 }
 0x367   : > { %v1561_v38 = vsel %vm358_vm2, %v1560_v49, %v1531_v8 }
 0x369   : > { %v1535_v46 = vpop.permute.xlu1 %1534 }
 0x36a   : > { %v1562_v35 = vsel %vm360_vm3, %v1561_v38, %v1535_v46 }
 0x36b   : > { %v1563_v18 = vsel %vm362_vm4, %v1562_v35, %v1539_v22  ;;  %v7399_v35 = vld [vmem:[%s6728_s20 + $0x18] sm:$0xff] }
 0x36e   : > { %v1543_v43 = vpop.permute.xlu0 %1542 }
 0x36f   : > { %v1564_v56 = vsel %vm364_vm5, %v1563_v18, %v1543_v43  ;;  %v7404_v43 = vld [vmem:[%s6728_s20 + $0x20] sm:$0xff] }
 0x371   : > { %v1547_v3 = vpop.permute.xlu1 %1546 }
 0x372   : > { %v1565_v58 = vsel %vm366_vm6, %v1564_v56, %v1547_v3 }
 0x373   : > { %v1566_v44 = vsel %vm368_vm7, %v1565_v58, %v1551_v57 }
 0x374   : > { %v1569_v30 = vrot.slane %v1566_v44, 7  ;;  %v1576_v59 = vmul.f32 %v1566_v44, %v1566_v44 }
 0x376   : > { %v1570_v60 = vsel %vm380_vm8, %v1559_v55, %v1569_v30  ;;  %v1579_v62 = vrot.slane %v1576_v59, 7  ;;  %v1586_v45 = vpop.permute.xlu0 %1585 }
 0x377   : > { %1573 = vst.msk [vmem:[#allocation2 + $0x7] ss:$8 sm:$0x3] %vm6986_vm9, %v1570_v60  ;;  %v1591_v63 = vrot.slane %v1586_v45, 4  ;;  %v1596_v0 = vperm.slane %v1586_v45, %v6723_v4 }
 0x378   : > { %v1580_v54 = vsel %vm380_vm8, %v1575_v34, %v1579_v62 }
 0x379   : > { %1583 = vst.msk [vmem:[#allocation2 + $0x53] ss:$8 sm:$0x3] %vm6986_vm9, %v1580_v54  ;;  %v1592_v1 = vsel %vm224_vm0, 0.0, %v1591_v63  ;;  %v1601_v9 = vrot.slane %v1596_v0, 4  ;;  %v7358_v26 = vperm.slane %v1596_v0, %v6730_v5  ;;  %v1588_v13 = vpop.permute.xlu1 %1587 }
 0x37a   : > { %v1600_v10 = vperm.slane %v1592_v1, %v6723_v4  ;;  %v1634_v19 = vperm.slane %v1588_v13, %v6723_v4  ;;  %v1629_v25 = vrot.slane %v1588_v13, 4 }
 0x37b   : > { %v1621_v50 = vrot.slane %v7358_v26, 4  ;;  %v1602_v11 = vsel %vm224_vm0, 0.0, %v1601_v9 }
 0x37c   : > { %v1610_v6 = vperm.slane %v1602_v11, %v6730_v5  ;;  %v1616_v51 = vperm.slane %v1600_v10, %v6730_v5  ;;  %v1611_v17 = vrot.slane %v1600_v10, 4  ;;  %v1644_v27 = vperm.slane %v1634_v19, %v6730_v5 }
 0x37d   : > { %v1622_v2 = vsel %vm224_vm0, 0.0, %v1621_v50  ;;  %v1639_v40 = vrot.slane %v1634_v19, 4  ;;  %v1630_v61 = vsel %vm224_vm0, 0.0, %v1629_v25 }
 0x37e   : > { %1668 = vrot.lane.b32.xlu2 %v1622_v2, %s6677_s22  ;;  %1672 = vrot.lane.b32.xlu0 %v1610_v6, %s6676_s21  ;;  %v1623_v15 = vrot.slane %v1610_v6, 4  ;;  %v1625_v23 = vrot.slane %v1616_v51, 4  ;;  %v1612_v24 = vsel %vm224_vm0, 0.0, %v1611_v17  ;;  %v1659_v12 = vrot.slane %v1644_v27, 4 }
 0x37f   : > { %v1620_v16 = vperm.slane %v1612_v24, %v6730_v5  ;;  %v1640_v36 = vsel %vm224_vm0, 0.0, %v1639_v40  ;;  %v1638_v21 = vperm.slane %v1630_v61, %v6723_v4 }
 0x380   : > { %v1624_v20 = vsel %vm224_vm0, 0.0, %v1623_v15  ;;  %v1626_v47 = vsel %vm224_vm0, 0.0, %v1625_v23  ;;  %v1660_v14 = vsel %vm224_vm0, 0.0, %v1659_v12  ;;  %v1648_v39 = vperm.slane %v1640_v36, %v6730_v5 }
 0x381   : > { %1676 = vrot.lane.b32.xlu1 %v1624_v20, %s6682_s27  ;;  %v1627_v33 = vrot.slane %v1620_v16, 4  ;;  %v1649_v41 = vrot.slane %v1638_v21, 4  ;;  %v1654_v42 = vperm.slane %v1638_v21, %v6730_v5 }
 0x382   : > { %v1661_v8 = vrot.slane %v1648_v39, 4 }
 0x383   : > { %v1628_v37 = vsel %vm224_vm0, 0.0, %v1627_v33  ;;  %v1650_v31 = vsel %vm224_vm0, 0.0, %v1649_v41  ;;  %v1663_v22 = vrot.slane %v1654_v42, 4 }
 0x384   : > { %v1662_v46 = vsel %vm224_vm0, 0.0, %v1661_v8  ;;  %v1658_v48 = vperm.slane %v1650_v31, %v6730_v5 }
 0x385   : > { %v1664_v49 = vsel %vm224_vm0, 0.0, %v1663_v22 }
 0x386   : > { %1680 = vrot.lane.b32.xlu2 %v1616_v51, %s6678_s23  ;;  %1684 = vrot.lane.b32.xlu0 %v1626_v47, %s6679_s24  ;;  %v1665_v7 = vrot.slane %v1658_v48, 4 }
 0x388   : > { %v1666_v38 = vsel %vm224_vm0, 0.0, %v1665_v7 }
 0x389   : > { %1688 = vrot.lane.b32.xlu1 %v1620_v16, %s6680_s25 }
 0x38e   : > { %1692 = vrot.lane.b32.xlu2 %v1628_v37, %s6681_s26  ;;  %1696 = vrot.lane.b32.xlu0 %v1660_v14, %s6677_s22 }
 0x391   : > { %1700 = vrot.lane.b32.xlu1 %v1648_v39, %s6676_s21 }
 0x396   : > { %1704 = vrot.lane.b32.xlu2 %v1662_v46, %s6682_s27  ;;  %1708 = vrot.lane.b32.xlu0 %v1654_v42, %s6678_s23 }
 0x399   : > { %1712 = vrot.lane.b32.xlu1 %v1664_v49, %s6679_s24 }
 0x39e   : > { %1716 = vrot.lane.b32.xlu2 %v1658_v48, %s6680_s25  ;;  %1720 = vrot.lane.b32.xlu0 %v1666_v38, %s6681_s26 }
 0x3a1   : > { %1755 = vrot.lane.b32.xlu1 %v7399_v35, %s6684_s29 }
 0x3a6   : > { %1757 = vrot.lane.b32.xlu2 %v7404_v43, %s6684_s29 }
 0x3d8   : > { %v1669_v53 = vpop.permute.xlu2 %1668 }
 0x3d9   : > { %v1723_v59 = vsel %vm356_vm1, %v7358_v26, %v1669_v53 }
 0x3e0   : > { %v1681_v56 = vpop.permute.xlu2 %1680 }
 0x3e8   : > { %v1693_v57 = vpop.permute.xlu2 %1692 }
 0x3f0   : > { %v1673_v18 = vpop.permute.xlu0 %1672  ;;  %v1705_v30 = vpop.permute.xlu2 %1704 }
 0x3f1   : > { %v1724_v34 = vsel %vm358_vm2, %v1723_v59, %v1673_v18 }
 0x3f3   : > { %v1677_v3 = vpop.permute.xlu1 %1676 }
 0x3f4   : > { %v1725_v62 = vsel %vm360_vm3, %v1724_v34, %v1677_v3 }
 0x3f5   : > { %v1726_v0 = vsel %vm362_vm4, %v1725_v62, %v1681_v56 }
 0x3f8   : > { %v1685_v29 = vpop.permute.xlu0 %1684  ;;  %v1717_v11 = vpop.permute.xlu2 %1716 }
 0x3f9   : > { %v1727_v9 = vsel %vm364_vm5, %v1726_v0, %v1685_v29 }
 0x3fb   : > { %v1689_v58 = vpop.permute.xlu1 %1688 }
 0x3fc   : > { %v1728_v26 = vsel %vm366_vm6, %v1727_v9, %v1689_v58  ;;  %v7476_v9 = vld [vmem:[%s6728_s20 + $0x30] sm:$0xff] }
 0x3fd   : > { %v1729_v6 = vsel %vm368_vm7, %v1728_v26, %v1693_v57 }
 0x3fe   : > { %v1745_v19 = vmul.f32 %v1729_v6, %v1729_v6 }
 0x400   : > { %v1697_v55 = vpop.permute.xlu0 %1696  ;;  %v1758_v14 = vpop.permute.xlu2 %1757 }
 0x401   : > { %v1730_v60 = vsel %vm356_vm1, %v1644_v27, %v1697_v55  ;;  %v1804_v8 = vperm.slane %v1758_v14, %v6723_v4  ;;  %v1799_v48 = vrot.slane %v1758_v14, 4 }
 0x403   : > { %v1701_v44 = vpop.permute.xlu1 %1700  ;;  %v7447_v49 = vperm.slane %v1804_v8, %v6730_v5  ;;  %v1809_v53 = vrot.slane %v1804_v8, 4  ;;  %v1800_v18 = vsel %vm224_vm0, 0.0, %v1799_v48 }
 0x404   : > { %v1731_v45 = vsel %vm358_vm2, %v1730_v60, %v1701_v44  ;;  %v1808_v29 = vperm.slane %v1800_v18, %v6723_v4 }
 0x405   : > { %v1732_v54 = vsel %vm360_vm3, %v1731_v45, %v1705_v30  ;;  %v1829_v56 = vrot.slane %v7447_v49, 4  ;;  %v1810_v57 = vsel %vm224_vm0, 0.0, %v1809_v53 }
 0x406   : > { %v1818_v44 = vperm.slane %v1810_v57, %v6730_v5  ;;  %v1819_v30 = vrot.slane %v1808_v29, 4  ;;  %v1824_v34 = vperm.slane %v1808_v29, %v6730_v5 }
 0x407   : > { %v1830_v58 = vsel %vm224_vm0, 0.0, %v1829_v56 }
 0x408   : > { %v1709_v63 = vpop.permute.xlu0 %1708  ;;  %v1831_v59 = vrot.slane %v1818_v44, 4  ;;  %v1820_v60 = vsel %vm224_vm0, 0.0, %v1819_v30  ;;  %v1833_v45 = vrot.slane %v1824_v34, 4 }
 0x409   : > { %v1733_v10 = vsel %vm362_vm4, %v1732_v54, %v1709_v63  ;;  %v1828_v63 = vperm.slane %v1820_v60, %v6730_v5 }
 0x40a   : > { %v1832_v62 = vsel %vm224_vm0, 0.0, %v1831_v59  ;;  %v1834_v0 = vsel %vm224_vm0, 0.0, %v1833_v45 }
 0x40b   : > { %v1713_v1 = vpop.permute.xlu1 %1712  ;;  %v1835_v54 = vrot.slane %v1828_v63, 4 }
 0x40c   : > { %v1734_v50 = vsel %vm364_vm5, %v1733_v10, %v1713_v1  ;;  %v7481_v10 = vld [vmem:[%s6728_s20 + $0x38] sm:$0xff] }
 0x40d   : > { %v1735_v2 = vsel %vm366_vm6, %v1734_v50, %v1717_v11  ;;  %v1836_v1 = vsel %vm224_vm0, 0.0, %v1835_v54 }
 0x410   : > { %v1721_v13 = vpop.permute.xlu0 %1720 }
 0x411   : > { %v1736_v51 = vsel %vm368_vm7, %v1735_v2, %v1721_v13 }
 0x412   : > { %v1739_v15 = vrot.slane %v1736_v51, 7  ;;  %v1746_v17 = vmul.f32 %v1736_v51, %v1736_v51 }
 0x413   : > { %v1756_v20 = vpop.permute.xlu1 %1755 }
 0x414   : > { %v1740_v23 = vsel %vm380_vm8, %v1729_v6, %v1739_v15  ;;  %v1749_v24 = vrot.slane %v1746_v17, 7  ;;  %v1761_v25 = vrot.slane %v1756_v20, 4  ;;  %v1766_v27 = vperm.slane %v1756_v20, %v6723_v4 }
 0x415   : > { %1743 = vst.msk [vmem:[#allocation2 + $0x10] ss:$8 sm:$0x3] %vm6986_vm9, %v1740_v23 }
 0x416   : > { %v1750_v47 = vsel %vm380_vm8, %v1745_v19, %v1749_v24  ;;  %v1762_v16 = vsel %vm224_vm0, 0.0, %v1761_v25  ;;  %v1771_v40 = vrot.slane %v1766_v27, 4  ;;  %v7430_v61 = vperm.slane %v1766_v27, %v6730_v5 }
 0x417   : > { %1753 = vst.msk [vmem:[#allocation2 + $0x54] ss:$8 sm:$0x3] %vm6986_vm9, %v1750_v47  ;;  %v1770_v12 = vperm.slane %v1762_v16, %v6723_v4 }
 0x418   : > { %v1791_v33 = vrot.slane %v7430_v61, 4  ;;  %v1772_v36 = vsel %vm224_vm0, 0.0, %v1771_v40 }
 0x419   : > { %v1780_v21 = vperm.slane %v1772_v36, %v6730_v5  ;;  %v1786_v39 = vperm.slane %v1770_v12, %v6730_v5  ;;  %v1781_v42 = vrot.slane %v1770_v12, 4 }
 0x41a   : > { %v1792_v37 = vsel %vm224_vm0, 0.0, %v1791_v33 }
 0x41b   : > { %1838 = vrot.lane.b32.xlu0 %v1792_v37, %s6677_s22  ;;  %1842 = vrot.lane.b32.xlu1 %v1780_v21, %s6676_s21  ;;  %v1793_v41 = vrot.slane %v1780_v21, 4  ;;  %v1795_v22 = vrot.slane %v1786_v39, 4  ;;  %v1782_v46 = vsel %vm224_vm0, 0.0, %v1781_v42 }
 0x41c   : > { %v1790_v38 = vperm.slane %v1782_v46, %v6730_v5 }
 0x41d   : > { %v1794_v31 = vsel %vm224_vm0, 0.0, %v1793_v41  ;;  %v1796_v7 = vsel %vm224_vm0, 0.0, %v1795_v22 }
 0x41e   : > { %1846 = vrot.lane.b32.xlu2 %v1794_v31, %s6682_s27  ;;  %v1797_v3 = vrot.slane %v1790_v38, 4 }
 0x420   : > { %v1798_v55 = vsel %vm224_vm0, 0.0, %v1797_v3 }
 0x423   : > { %1850 = vrot.lane.b32.xlu0 %v1786_v39, %s6678_s23  ;;  %1854 = vrot.lane.b32.xlu1 %v1796_v7, %s6679_s24 }
 0x426   : > { %1858 = vrot.lane.b32.xlu2 %v1790_v38, %s6680_s25 }
 0x42b   : > { %1866 = vrot.lane.b32.xlu1 %v1830_v58, %s6677_s22  ;;  %1862 = vrot.lane.b32.xlu0 %v1798_v55, %s6681_s26 }
 0x42e   : > { %1870 = vrot.lane.b32.xlu2 %v1818_v44, %s6676_s21 }
 0x433   : > { %1878 = vrot.lane.b32.xlu1 %v1824_v34, %s6678_s23  ;;  %1874 = vrot.lane.b32.xlu0 %v1832_v62, %s6682_s27 }
 0x436   : > { %1882 = vrot.lane.b32.xlu2 %v1834_v0, %s6679_s24 }
 0x43b   : > { %1890 = vrot.lane.b32.xlu1 %v1836_v1, %s6681_s26  ;;  %1886 = vrot.lane.b32.xlu0 %v1828_v63, %s6680_s25 }
 0x43e   : > { %1925 = vrot.lane.b32.xlu2 %v7476_v9, %s6684_s29 }
 0x443   : > { %1927 = vrot.lane.b32.xlu0 %v7481_v10, %s6684_s29 }
 0x478   : > { %v1847_v26 = vpop.permute.xlu2 %1846 }
 0x480   : > { %v1859_v50 = vpop.permute.xlu2 %1858 }
 0x488   : > { %v1871_v11 = vpop.permute.xlu2 %1870 }
 0x48d   : > { %v1839_v6 = vpop.permute.xlu0 %1838  ;;  %v1843_v13 = vpop.permute.xlu1 %1842 }
 0x48e   : > { %v1893_v39 = vsel %vm356_vm1, %v7430_v61, %v1839_v6 }
 0x48f   : > { %v1894_v31 = vsel %vm358_vm2, %v1893_v39, %v1843_v13 }
 0x490   : > { %v1883_v2 = vpop.permute.xlu2 %1882  ;;  %v1895_v61 = vsel %vm360_vm3, %v1894_v31, %v1847_v26 }
 0x495   : > { %v1851_v51 = vpop.permute.xlu0 %1850  ;;  %v1855_v15 = vpop.permute.xlu1 %1854 }
 0x498   : > { %v1926_v17 = vpop.permute.xlu2 %1925 }
 0x499   : > { %v1931_v19 = vrot.slane %v1926_v17, 4  ;;  %v1936_v20 = vperm.slane %v1926_v17, %v6723_v4 }
 0x49b   : > { %v1932_v23 = vsel %vm224_vm0, 0.0, %v1931_v19  ;;  %v1941_v24 = vrot.slane %v1936_v20, 4  ;;  %v7488_v25 = vperm.slane %v1936_v20, %v6730_v5 }
 0x49c   : > { %v1940_v27 = vperm.slane %v1932_v23, %v6723_v4 }
 0x49d   : > { %v1942_v47 = vsel %vm224_vm0, 0.0, %v1941_v24  ;;  %v1867_v16 = vpop.permute.xlu1 %1866  ;;  %v1863_v40 = vpop.permute.xlu0 %1862  ;;  %v1961_v12 = vrot.slane %v7488_v25, 4 }
 0x49e   : > { %v1950_v33 = vperm.slane %v1942_v47, %v6730_v5  ;;  %v1956_v21 = vperm.slane %v1940_v27, %v6730_v5  ;;  %v1951_v14 = vrot.slane %v1940_v27, 4  ;;  %v1900_v8 = vsel %vm356_vm1, %v7447_v49, %v1867_v16 }
 0x49f   : > { %v1962_v36 = vsel %vm224_vm0, 0.0, %v1961_v12  ;;  %v1901_v38 = vsel %vm358_vm2, %v1900_v8, %v1871_v11  ;;  %v1896_v49 = vsel %vm362_vm4, %v1895_v61, %v1851_v51 }
 0x4a0   : > { %2008 = vrot.lane.b32.xlu1 %v1962_v36, %s6677_s22  ;;  %v1963_v37 = vrot.slane %v1950_v33, 4  ;;  %2012 = vrot.lane.b32.xlu2 %v1950_v33, %s6676_s21  ;;  %v1965_v41 = vrot.slane %v1956_v21, 4  ;;  %v1952_v22 = vsel %vm224_vm0, 0.0, %v1951_v14  ;;  %v1897_v29 = vsel %vm364_vm5, %v1896_v49, %v1855_v15  ;;  %v7550_v14 = vld [vmem:[%s6728_s20 + $0x48] sm:$0xff] }
 0x4a1   : > { %v1960_v18 = vperm.slane %v1952_v22, %v6730_v5  ;;  %v1898_v30 = vsel %vm366_vm6, %v1897_v29, %v1859_v50 }
 0x4a2   : > { %v1964_v42 = vsel %vm224_vm0, 0.0, %v1963_v37  ;;  %v1966_v7 = vsel %vm224_vm0, 0.0, %v1965_v41  ;;  %v1899_v34 = vsel %vm368_vm7, %v1898_v30, %v1863_v40  ;;  %v7556_v37 = vld [vmem:[%s6728_s20 + $0x50] sm:$0xff] }
 0x4a3   : > { %2016 = vrot.lane.b32.xlu0 %v1964_v42, %s6682_s27  ;;  %v1967_v56 = vrot.slane %v1960_v18, 4  ;;  %v1915_v63 = vmul.f32 %v1899_v34, %v1899_v34 }
 0x4a5   : > { %v1879_v46 = vpop.permute.xlu1 %1878  ;;  %v1875_v48 = vpop.permute.xlu0 %1874  ;;  %v1968_v44 = vsel %vm224_vm0, 0.0, %v1967_v56 }
 0x4a6   : > { %v1902_v53 = vsel %vm360_vm3, %v1901_v38, %v1875_v48 }
 0x4a7   : > { %v1903_v3 = vsel %vm362_vm4, %v1902_v53, %v1879_v46 }
 0x4a8   : > { %2020 = vrot.lane.b32.xlu1 %v1956_v21, %s6678_s23  ;;  %2024 = vrot.lane.b32.xlu2 %v1966_v7, %s6679_s24  ;;  %v1904_v58 = vsel %vm364_vm5, %v1903_v3, %v1883_v2 }
 0x4ab   : > { %2028 = vrot.lane.b32.xlu0 %v1960_v18, %s6680_s25 }
 0x4ad   : > { %v1891_v57 = vpop.permute.xlu1 %1890  ;;  %v1887_v55 = vpop.permute.xlu0 %1886 }
 0x4ae   : > { %v1905_v59 = vsel %vm366_vm6, %v1904_v58, %v1887_v55 }
 0x4af   : > { %v1906_v60 = vsel %vm368_vm7, %v1905_v59, %v1891_v57 }
 0x4b0   : > { %v1909_v62 = vrot.slane %v1906_v60, 7  ;;  %v1916_v45 = vmul.f32 %v1906_v60, %v1906_v60  ;;  %2032 = vrot.lane.b32.xlu1 %v1968_v44, %s6681_s26 }
 0x4b2   : > { %v1910_v0 = vsel %vm380_vm8, %v1899_v34, %v1909_v62  ;;  %v1919_v54 = vrot.slane %v1916_v45, 7 }
 0x4b3   : > { %1913 = vst.msk [vmem:[#allocation2 + $0x11] ss:$8 sm:$0x3] %vm6986_vm9, %v1910_v0 }
 0x4b4   : > { %v1920_v1 = vsel %vm380_vm8, %v1915_v63, %v1919_v54 }
 0x4b5   : > { %1923 = vst.msk [vmem:[#allocation2 + $0x55] ss:$8 sm:$0x3] %vm6986_vm9, %v1920_v1  ;;  %v1928_v26 = vpop.permute.xlu0 %1927 }
 0x4b6   : > { %v1969_v50 = vrot.slane %v1928_v26, 4  ;;  %v1974_v11 = vperm.slane %v1928_v26, %v6723_v4 }
 0x4b8   : > { %v1970_v6 = vsel %vm224_vm0, 0.0, %v1969_v50  ;;  %v1979_v13 = vrot.slane %v1974_v11, 4  ;;  %v1984_v2 = vperm.slane %v1974_v11, %v6730_v5 }
 0x4b9   : > { %v1978_v51 = vperm.slane %v1970_v6, %v6723_v4 }
 0x4ba   : > { %v1980_v15 = vsel %vm224_vm0, 0.0, %v1979_v13  ;;  %v1999_v17 = vrot.slane %v1984_v2, 4 }
 0x4bb   : > { %v1988_v19 = vperm.slane %v1980_v15, %v6730_v5  ;;  %v1994_v23 = vperm.slane %v1978_v51, %v6730_v5  ;;  %v1989_v24 = vrot.slane %v1978_v51, 4 }
 0x4bc   : > { %v2000_v20 = vsel %vm224_vm0, 0.0, %v1999_v17 }
 0x4bd   : > { %2036 = vrot.lane.b32.xlu2 %v2000_v20, %s6677_s22  ;;  %2040 = vrot.lane.b32.xlu0 %v1988_v19, %s6676_s21  ;;  %v2001_v27 = vrot.slane %v1988_v19, 4  ;;  %v2003_v16 = vrot.slane %v1994_v23, 4  ;;  %v1990_v40 = vsel %vm224_vm0, 0.0, %v1989_v24 }
 0x4be   : > { %v1998_v33 = vperm.slane %v1990_v40, %v6730_v5 }
 0x4bf   : > { %v2002_v47 = vsel %vm224_vm0, 0.0, %v2001_v27  ;;  %v2004_v12 = vsel %vm224_vm0, 0.0, %v2003_v16 }
 0x4c0   : > { %2044 = vrot.lane.b32.xlu1 %v2002_v47, %s6682_s27  ;;  %v2005_v36 = vrot.slane %v1998_v33, 4 }
 0x4c2   : > { %v2006_v21 = vsel %vm224_vm0, 0.0, %v2005_v36 }
 0x4c5   : > { %2048 = vrot.lane.b32.xlu2 %v1994_v23, %s6678_s23  ;;  %2052 = vrot.lane.b32.xlu0 %v2004_v12, %s6679_s24 }
 0x4c8   : > { %2056 = vrot.lane.b32.xlu1 %v1998_v33, %s6680_s25 }
 0x4cd   : > { %2095 = vrot.lane.b32.xlu0 %v7550_v14, %s6684_s29  ;;  %2060 = vrot.lane.b32.xlu2 %v2006_v21, %s6681_s26 }
 0x4d0   : > { %2097 = vrot.lane.b32.xlu1 %v7556_v37, %s6684_s29 }
 0x4fa   : > { %v2013_v39 = vpop.permute.xlu2 %2012 }
 0x502   : > { %v2025_v8 = vpop.permute.xlu2 %2024 }
 0x512   : > { %v2009_v41 = vpop.permute.xlu1 %2008 }
 0x513   : > { %v2063_v7 = vsel %vm356_vm1, %v7488_v25, %v2009_v41 }
 0x514   : > { %v2064_v61 = vsel %vm358_vm2, %v2063_v7, %v2013_v39 }
 0x515   : > { %v2017_v42 = vpop.permute.xlu0 %2016 }
 0x516   : > { %v2065_v49 = vsel %vm360_vm3, %v2064_v61, %v2017_v42 }
 0x517   : > { %v2037_v22 = vpop.permute.xlu2 %2036 }
 0x518   : > { %v2070_v56 = vsel %vm356_vm1, %v1984_v2, %v2037_v22 }
 0x51a   : > { %v2021_v31 = vpop.permute.xlu1 %2020 }
 0x51b   : > { %v2066_v3 = vsel %vm362_vm4, %v2065_v49, %v2021_v31 }
 0x51c   : > { %v2067_v55 = vsel %vm364_vm5, %v2066_v3, %v2025_v8 }
 0x51d   : > { %v2029_v46 = vpop.permute.xlu0 %2028 }
 0x51e   : > { %v2068_v59 = vsel %vm366_vm6, %v2067_v55, %v2029_v46 }
 0x51f   : > { %v2049_v53 = vpop.permute.xlu2 %2048 }
 0x522   : > { %v2033_v48 = vpop.permute.xlu1 %2032 }
 0x523   : > { %v2069_v62 = vsel %vm368_vm7, %v2068_v59, %v2033_v48 }
 0x524   : > { %v2085_v54 = vmul.f32 %v2069_v62, %v2069_v62 }
 0x527   : > { %v2061_v34 = vpop.permute.xlu2 %2060 }
 0x52f   : > { %v2041_v38 = vpop.permute.xlu0 %2040 }
 0x530   : > { %v2071_v29 = vsel %vm358_vm2, %v2070_v56, %v2041_v38 }
 0x532   : > { %v2045_v18 = vpop.permute.xlu1 %2044 }
 0x533   : > { %v2072_v57 = vsel %vm360_vm3, %v2071_v29, %v2045_v18  ;;  %v2268_v18 = vrot.slane %v7330_v32, 1 }
 0x534   : > { %v2073_v25 = vsel %vm362_vm4, %v2072_v57, %v2049_v53  ;;  %v2267_v53 = vrot.slane %v7325_v28, 1 }
 0x536   : > { %v7618_v29 = vsel %vm2266_vm10, %v2267_v53, %v2268_v18 }
 0x537   : > { %v2053_v58 = vpop.permute.xlu0 %2052 }
 0x538   : > { %v2074_v44 = vsel %vm364_vm5, %v2073_v25, %v2053_v58  ;;  %v2279_v58 = vperm.slane %v7618_v29, %v6723_v4 }
 0x53a   : > { %v2057_v30 = vpop.permute.xlu1 %2056  ;;  %v2284_v25 = vrot.slane %v2279_v58, 4  ;;  %v7630_v59 = vperm.slane %v2279_v58, %v6730_v5 }
 0x53b   : > { %v2075_v60 = vsel %vm366_vm6, %v2074_v44, %v2057_v30 }
 0x53c   : > { %v2076_v45 = vsel %vm368_vm7, %v2075_v60, %v2061_v34  ;;  %v2274_v34 = vrot.slane %v7618_v29, 4 }
 0x53d   : > { %v2079_v63 = vrot.slane %v2076_v45, 7  ;;  %v2086_v0 = vmul.f32 %v2076_v45, %v2076_v45 }
 0x53f   : > { %v2080_v1 = vsel %vm380_vm8, %v2069_v62, %v2079_v63  ;;  %v2089_v26 = vrot.slane %v2086_v0, 7  ;;  %v2096_v50 = vpop.permute.xlu0 %2095  ;;  %v2285_v62 = vsel %vm224_vm0, 0.0, %v2284_v25  ;;  %v213_v63 = vld [vmem:[%s6728_s20 + $0x10] sm:$0x3]  ;;  %v2304_v0 = vrot.slane %v7630_v59, 4 }
 0x540   : > { %2083 = vst.msk [vmem:[#allocation2 + $0x12] ss:$8 sm:$0x3] %vm6986_vm9, %v2080_v1  ;;  %v2101_v11 = vrot.slane %v2096_v50, 4  ;;  %v2106_v6 = vperm.slane %v2096_v50, %v6723_v4  ;;  %v2293_v1 = vperm.slane %v2285_v62, %v6730_v5 }
 0x541   : > { %v2090_v13 = vsel %vm380_vm8, %v2085_v54, %v2089_v26  ;;  %v2275_v54 = vsel %vm224_vm0, 0.0, %v2274_v34  ;;  %v2270_v26 = vrot.slane %v213_v63, 1 }
 0x542   : > { %2093 = vst.msk [vmem:[#allocation2 + $0x56] ss:$8 sm:$0x3] %vm6986_vm9, %v2090_v13  ;;  %v2102_v2 = vsel %vm224_vm0, 0.0, %v2101_v11  ;;  %v2111_v51 = vrot.slane %v2106_v6, 4  ;;  %v7584_v15 = vperm.slane %v2106_v6, %v6730_v5  ;;  %v2098_v24 = vpop.permute.xlu1 %2097  ;;  %v2283_v11 = vperm.slane %v2275_v54, %v6723_v4 }
 0x543   : > { %v2110_v17 = vperm.slane %v2102_v2, %v6723_v4  ;;  %v2144_v12 = vperm.slane %v2098_v24, %v6723_v4  ;;  %v2139_v39 = vrot.slane %v2098_v24, 4  ;;  %v2305_v6 = vsel %vm224_vm0, 0.0, %v2304_v0 }
 0x544   : > { %v2112_v19 = vsel %vm224_vm0, 0.0, %v2111_v51  ;;  %v2131_v20 = vrot.slane %v7584_v15, 4  ;;  %v2306_v13 = vrot.slane %v2293_v1, 4  ;;  %v2294_v2 = vrot.slane %v2283_v11, 4 }
 0x545   : > { %v2120_v23 = vperm.slane %v2112_v19, %v6730_v5  ;;  %v2126_v47 = vperm.slane %v2110_v17, %v6730_v5  ;;  %v2121_v16 = vrot.slane %v2110_v17, 4  ;;  %v7599_v41 = vperm.slane %v2144_v12, %v6730_v5 }
 0x546   : > { %v2132_v27 = vsel %vm224_vm0, 0.0, %v2131_v20  ;;  %v2149_v31 = vrot.slane %v2144_v12, 4  ;;  %v2140_v22 = vsel %vm224_vm0, 0.0, %v2139_v39  ;;  %v7646_v51 = vsel %vm2266_vm10, %v2268_v18, %v2270_v26 }
 0x547   : > { %2178 = vrot.lane.b32.xlu2 %v2132_v27, %s6677_s22  ;;  %2182 = vrot.lane.b32.xlu0 %v2120_v23, %s6676_s21  ;;  %v2133_v40 = vrot.slane %v2120_v23, 4  ;;  %v2135_v36 = vrot.slane %v2126_v47, 4  ;;  %v2122_v21 = vsel %vm224_vm0, 0.0, %v2121_v16  ;;  %v2169_v46 = vrot.slane %v7599_v41, 4 }
 0x548   : > { %v2130_v8 = vperm.slane %v2122_v21, %v6730_v5  ;;  %v2148_v7 = vperm.slane %v2140_v22, %v6723_v4  ;;  %v2150_v38 = vsel %vm224_vm0, 0.0, %v2149_v31  ;;  %v2307_v17 = vsel %vm224_vm0, 0.0, %v2306_v13 }
 0x549   : > { %v2134_v33 = vsel %vm224_vm0, 0.0, %v2133_v40  ;;  %v2136_v42 = vsel %vm224_vm0, 0.0, %v2135_v36  ;;  %v2170_v61 = vsel %vm224_vm0, 0.0, %v2169_v46  ;;  %v2158_v56 = vperm.slane %v2150_v38, %v6730_v5 }
 0x54a   : > { %2186 = vrot.lane.b32.xlu1 %v2134_v33, %s6682_s27  ;;  %v2137_v48 = vrot.slane %v2130_v8, 4  ;;  %v2159_v3 = vrot.slane %v2148_v7, 4  ;;  %v2164_v57 = vperm.slane %v2148_v7, %v6730_v5  ;;  %v2295_v19 = vsel %vm224_vm0, 0.0, %v2294_v2 }
 0x54b   : > { %v2171_v28 = vrot.slane %v2158_v56, 4  ;;  %v2317_v20 = vperm.slane %v7646_v51, %v6723_v4  ;;  %v2299_v23 = vperm.slane %v2283_v11, %v6730_v5  ;;  %v2303_v24 = vperm.slane %v2295_v19, %v6730_v5 }
 0x54c   : > { %v2138_v49 = vsel %vm224_vm0, 0.0, %v2137_v48  ;;  %v2160_v32 = vsel %vm224_vm0, 0.0, %v2159_v3  ;;  %v2173_v55 = vrot.slane %v2164_v57, 4  ;;  %v2312_v16 = vrot.slane %v7646_v51, 4 }
 0x54d   : > { %v2172_v44 = vsel %vm224_vm0, 0.0, %v2171_v28  ;;  %v2168_v30 = vperm.slane %v2160_v32, %v6730_v5  ;;  %v2322_v27 = vrot.slane %v2317_v20, 4  ;;  %v2310_v40 = vrot.slane %v2303_v24, 4 }
 0x54e   : > { %v2174_v60 = vsel %vm224_vm0, 0.0, %v2173_v55  ;;  %v7662_v36 = vperm.slane %v2317_v20, %v6730_v5  ;;  %v2313_v21 = vsel %vm224_vm0, 0.0, %v2312_v16  ;;  %v2439_v22 = vrot.slane %v7399_v35, 1 }
 0x54f   : > { %2190 = vrot.lane.b32.xlu2 %v2126_v47, %s6678_s23  ;;  %2194 = vrot.lane.b32.xlu0 %v2136_v42, %s6679_s24  ;;  %v2175_v45 = vrot.slane %v2168_v30, 4  ;;  %v2308_v47 = vrot.slane %v2299_v23, 4  ;;  %v2323_v12 = vsel %vm224_vm0, 0.0, %v2322_v27  ;;  %v2311_v39 = vsel %vm224_vm0, 0.0, %v2310_v40 }
 0x550   : > { %v2331_v42 = vperm.slane %v2323_v12, %v6730_v5  ;;  %v2342_v31 = vrot.slane %v7662_v36, 4  ;;  %v2440_v46 = vrot.slane %v7404_v43, 1 }
 0x551   : > { %v2176_v50 = vsel %vm224_vm0, 0.0, %v2175_v45  ;;  %v2309_v33 = vsel %vm224_vm0, 0.0, %v2308_v47 }
 0x552   : > { %2198 = vrot.lane.b32.xlu1 %v2130_v8, %s6680_s25  ;;  %v2321_v8 = vperm.slane %v2313_v21, %v6723_v4  ;;  %v2344_v48 = vrot.slane %v2331_v42, 4  ;;  %v2343_v38 = vsel %vm224_vm0, 0.0, %v2342_v31  ;;  %v2612_v21 = vrot.slane %v7481_v10, 1 }
 0x554   : > { %v2337_v7 = vperm.slane %v2321_v8, %v6730_v5  ;;  %v2345_v53 = vsel %vm224_vm0, 0.0, %v2344_v48  ;;  %v2332_v18 = vrot.slane %v2321_v8, 4 }
 0x556   : > { %v2346_v35 = vrot.slane %v2337_v7, 4 }
 0x557   : > { %2206 = vrot.lane.b32.xlu0 %v2170_v61, %s6677_s22  ;;  %2202 = vrot.lane.b32.xlu2 %v2138_v49, %s6681_s26  ;;  %v7677_v61 = vsel %vm2266_vm10, %v2439_v22, %v2440_v46  ;;  %v2333_v49 = vsel %vm224_vm0, 0.0, %v2332_v18 }
 0x558   : > { %v2451_v43 = vperm.slane %v7677_v61, %v6723_v4  ;;  %v2341_v28 = vperm.slane %v2333_v49, %v6730_v5 }
 0x55a   : > { %2210 = vrot.lane.b32.xlu1 %v2158_v56, %s6676_s21  ;;  %v2347_v56 = vsel %vm224_vm0, 0.0, %v2346_v35  ;;  %v7688_v3 = vperm.slane %v2451_v43, %v6730_v5  ;;  %v2456_v32 = vrot.slane %v2451_v43, 4  ;;  %v2348_v25 = vrot.slane %v2341_v28, 4 }
 0x55c   : > { %v2476_v58 = vrot.slane %v7688_v3, 4  ;;  %v2349_v45 = vsel %vm224_vm0, 0.0, %v2348_v25 }
 0x55f   : > { %2218 = vrot.lane.b32.xlu0 %v2164_v57, %s6678_s23  ;;  %2214 = vrot.lane.b32.xlu2 %v2172_v44, %s6682_s27  ;;  %v2446_v57 = vrot.slane %v7677_v61, 4  ;;  %v216_v44 = vld [vmem:[%s6728_s20 + $0x28] sm:$0x3] }
 0x560   : > { %v2442_v62 = vrot.slane %v216_v44, 1 }
 0x561   : > { %v2447_v55 = vsel %vm224_vm0, 0.0, %v2446_v57 }
 0x562   : > { %2222 = vrot.lane.b32.xlu1 %v2174_v60, %s6679_s24  ;;  %v2455_v34 = vperm.slane %v2447_v55, %v6723_v4  ;;  %v2477_v60 = vsel %vm224_vm0, 0.0, %v2476_v58  ;;  %v219_v58 = vld [vmem:[%s6728_s20 + $0x40] sm:$0x3] }
 0x564   : > { %v2466_v63 = vrot.slane %v2455_v34, 4  ;;  %v2471_v54 = vperm.slane %v2455_v34, %v6730_v5 }
 0x566   : > { %v2480_v11 = vrot.slane %v2471_v54, 4 }
 0x567   : > { %2230 = vrot.lane.b32.xlu0 %v2176_v50, %s6681_s26  ;;  %2226 = vrot.lane.b32.xlu2 %v2168_v30, %s6680_s25  ;;  %v2457_v30 = vsel %vm224_vm0, 0.0, %v2456_v32  ;;  %v2467_v50 = vsel %vm224_vm0, 0.0, %v2466_v63 }
 0x568   : > { %v2465_v0 = vperm.slane %v2457_v30, %v6730_v5  ;;  %v2475_v13 = vperm.slane %v2467_v50, %v6730_v5  ;;  %v2481_v19 = vsel %vm224_vm0, 0.0, %v2480_v11 }
 0x56a   : > { %2351 = vrot.lane.b32.xlu1 %v2305_v6, %s6677_s22  ;;  %v2478_v26 = vrot.slane %v2465_v0, 4 }
 0x56c   : > { %v2479_v2 = vsel %vm224_vm0, 0.0, %v2478_v26 }
 0x56f   : > { %2359 = vrot.lane.b32.xlu0 %v2307_v17, %s6682_s27  ;;  %2355 = vrot.lane.b32.xlu2 %v2293_v1, %s6676_s21  ;;  %v7707_v1 = vsel %vm2266_vm10, %v2440_v46, %v2442_v62 }
 0x570   : > { %v2489_v6 = vperm.slane %v7707_v1, %v6723_v4 }
 0x572   : > { %2363 = vrot.lane.b32.xlu1 %v2299_v23, %s6678_s23  ;;  %v2494_v17 = vrot.slane %v2489_v6, 4  ;;  %v7718_v20 = vperm.slane %v2489_v6, %v6730_v5  ;;  %v2484_v23 = vrot.slane %v7707_v1, 4 }
 0x574   : > { %v2495_v27 = vsel %vm224_vm0, 0.0, %v2494_v17  ;;  %v2514_v47 = vrot.slane %v7718_v20, 4  ;;  %v2485_v16 = vsel %vm224_vm0, 0.0, %v2484_v23 }
 0x575   : > { %v2503_v12 = vperm.slane %v2495_v27, %v6730_v5 }
 0x577   : > { %2371 = vrot.lane.b32.xlu0 %v2303_v24, %s6680_s25  ;;  %2367 = vrot.lane.b32.xlu2 %v2309_v33, %s6679_s24  ;;  %v2482_v24 = vrot.slane %v2475_v13, 4  ;;  %v2611_v33 = vrot.slane %v7476_v9, 1  ;;  %v2516_v8 = vrot.slane %v2503_v12, 4 }
 0x579   : > { %v2483_v40 = vsel %vm224_vm0, 0.0, %v2482_v24  ;;  %v7737_v46 = vsel %vm2266_vm10, %v2611_v33, %v2612_v21  ;;  %v2517_v9 = vsel %vm224_vm0, 0.0, %v2516_v8 }
 0x57a   : > { %2375 = vrot.lane.b32.xlu1 %v2311_v39, %s6681_s26  ;;  %v2493_v39 = vperm.slane %v2485_v16, %v6723_v4  ;;  %v2623_v48 = vperm.slane %v7737_v46, %v6723_v4  ;;  %v2618_v43 = vrot.slane %v7737_v46, 4 }
 0x57c   : > { %v2504_v31 = vrot.slane %v2493_v39, 4  ;;  %v2619_v32 = vsel %vm224_vm0, 0.0, %v2618_v43 }
 0x57d   : > { %v2627_v44 = vperm.slane %v2619_v32, %v6723_v4 }
 0x57e   : > { %v2505_v10 = vsel %vm224_vm0, 0.0, %v2504_v31 }
 0x57f   : > { %2383 = vrot.lane.b32.xlu0 %v2331_v42, %s6676_s21  ;;  %2379 = vrot.lane.b32.xlu2 %v2343_v38, %s6677_s22  ;;  %v2515_v42 = vsel %vm224_vm0, 0.0, %v2514_v47  ;;  %v2513_v38 = vperm.slane %v2505_v10, %v6730_v5  ;;  %v2638_v26 = vrot.slane %v2627_v44, 4  ;;  %v2784_v10 = vrot.slane %v7556_v37, 1 }
 0x581   : > { %v2520_v49 = vrot.slane %v2513_v38, 4 }
 0x582   : > { %2387 = vrot.lane.b32.xlu1 %v2345_v53, %s6682_s27  ;;  %v2628_v53 = vrot.slane %v2623_v48, 4 }
 0x583   : > { %v2521_v55 = vsel %vm224_vm0, 0.0, %v2520_v49 }
 0x587   : > { %2395 = vrot.lane.b32.xlu0 %v2347_v56, %s6679_s24  ;;  %2391 = vrot.lane.b32.xlu2 %v2337_v7, %s6678_s23  ;;  %v2509_v7 = vperm.slane %v2493_v39, %v6730_v5  ;;  %v2629_v56 = vsel %vm224_vm0, 0.0, %v2628_v53 }
 0x588   : > { %v2637_v25 = vperm.slane %v2629_v56, %v6730_v5 }
 0x589   : > { %v2518_v18 = vrot.slane %v2509_v7, 4 }
 0x58a   : > { %2399 = vrot.lane.b32.xlu1 %v2341_v28, %s6680_s25  ;;  %v7755_v28 = vperm.slane %v2623_v48, %v6730_v5  ;;  %v2650_v62 = vrot.slane %v2637_v25, 4 }
 0x58b   : > { %v2519_v57 = vsel %vm224_vm0, 0.0, %v2518_v18 }
 0x58c   : > { %v2648_v30 = vrot.slane %v7755_v28, 4 }
 0x58e   : > { %v2649_v63 = vsel %vm224_vm0, 0.0, %v2648_v30 }
 0x58f   : > { %2523 = vrot.lane.b32.xlu0 %v2477_v60, %s6677_s22  ;;  %2403 = vrot.lane.b32.xlu2 %v2349_v45, %s6681_s26  ;;  %v2614_v60 = vrot.slane %v219_v58, 1  ;;  %v2643_v45 = vperm.slane %v2627_v44, %v6730_v5 }
 0x591   : > { %v2652_v50 = vrot.slane %v2643_v45, 4 }
 0x592   : > { %2527 = vrot.lane.b32.xlu1 %v2465_v0, %s6676_s21  ;;  %v7771_v0 = vsel %vm2266_vm10, %v2612_v21, %v2614_v60 }
 0x593   : > { %v2661_v11 = vperm.slane %v7771_v0, %v6723_v4  ;;  %v2656_v24 = vrot.slane %v7771_v0, 4 }
 0x595   : > { %v7782_v23 = vperm.slane %v2661_v11, %v6730_v5  ;;  %v2666_v47 = vrot.slane %v2661_v11, 4 }
 0x597   : > { %2535 = vrot.lane.b32.xlu0 %v2471_v54, %s6678_s23  ;;  %2531 = vrot.lane.b32.xlu2 %v2479_v2, %s6682_s27  ;;  %v2651_v54 = vsel %vm224_vm0, 0.0, %v2650_v62  ;;  %v2639_v2 = vsel %vm224_vm0, 0.0, %v2638_v26  ;;  %v2686_v16 = vrot.slane %v7782_v23, 4  ;;  %v2667_v39 = vsel %vm224_vm0, 0.0, %v2666_v47 }
 0x598   : > { %v2647_v27 = vperm.slane %v2639_v2, %v6730_v5 }
 0x599   : > { %v2687_v31 = vsel %vm224_vm0, 0.0, %v2686_v16 }
 0x59a   : > { %2539 = vrot.lane.b32.xlu1 %v2481_v19, %s6679_s24  ;;  %v2653_v19 = vsel %vm224_vm0, 0.0, %v2652_v50 }
 0x59f   : > { %2547 = vrot.lane.b32.xlu0 %v2483_v40, %s6681_s26  ;;  %2543 = vrot.lane.b32.xlu2 %v2475_v13, %s6680_s25  ;;  %v2657_v40 = vsel %vm224_vm0, 0.0, %v2656_v24  ;;  %v222_v24 = vld [vmem:[%s6728_s20 + $0x58] sm:$0x3] }
 0x5a1   : > { %v7734_v22 = vpop.permute.xlu2 %2178 }
 0x5a2   : > { %2551 = vrot.lane.b32.xlu1 %v2515_v42, %s6677_s22  ;;  %v2665_v42 = vperm.slane %v2657_v40, %v6723_v4  ;;  %v2233_v62 = vsel %vm356_vm1, %v7584_v15, %v7734_v22 }
 0x5a4   : > { %v2681_v53 = vperm.slane %v2665_v42, %v6730_v5 }
 0x5a6   : > { %v2690_v37 = vrot.slane %v2681_v53, 4 }
 0x5a7   : > { %2559 = vrot.lane.b32.xlu0 %v2517_v9, %s6682_s27  ;;  %2555 = vrot.lane.b32.xlu2 %v2503_v12, %s6676_s21  ;;  %v2654_v12 = vrot.slane %v2647_v27, 4  ;;  %v2783_v9 = vrot.slane %v7550_v14, 1 }
 0x5a8   : > { %v2691_v44 = vsel %vm224_vm0, 0.0, %v2690_v37 }
 0x5a9   : > { %v7748_v35 = vpop.permute.xlu2 %2190  ;;  %v2655_v48 = vsel %vm224_vm0, 0.0, %v2654_v12  ;;  %v7802_v18 = vsel %vm2266_vm10, %v2783_v9, %v2784_v10 }
 0x5aa   : > { %2563 = vrot.lane.b32.xlu1 %v2509_v7, %s6678_s23  ;;  %v2676_v7 = vrot.slane %v2665_v42, 4  ;;  %v2790_v60 = vrot.slane %v7802_v18, 4 }
 0x5ac   : > { %v2677_v14 = vsel %vm224_vm0, 0.0, %v2676_v7  ;;  %v2791_v22 = vsel %vm224_vm0, 0.0, %v2790_v60 }
 0x5ad   : > { %v2685_v58 = vperm.slane %v2677_v14, %v6730_v5  ;;  %v2799_v42 = vperm.slane %v2791_v22, %v6723_v4 }
 0x5af   : > { %2571 = vrot.lane.b32.xlu0 %v2513_v38, %s6680_s25  ;;  %2567 = vrot.lane.b32.xlu2 %v2519_v57, %s6679_s24  ;;  %v2675_v38 = vperm.slane %v2667_v39, %v6730_v5  ;;  %v2795_v57 = vperm.slane %v7802_v18, %v6723_v4 }
 0x5b1   : > { %v7765_v34 = vpop.permute.xlu2 %2202  ;;  %v2688_v43 = vrot.slane %v2675_v38, 4  ;;  %v7815_v30 = vperm.slane %v2795_v57, %v6730_v5 }
 0x5b2   : > { %2575 = vrot.lane.b32.xlu1 %v2521_v55, %s6681_s26 }
 0x5b3   : > { %v2689_v55 = vsel %vm224_vm0, 0.0, %v2688_v43  ;;  %v2820_v15 = vrot.slane %v7815_v30, 4 }
 0x5b7   : > { %2699 = vrot.lane.b32.xlu0 %v2637_v25, %s6676_s21  ;;  %2695 = vrot.lane.b32.xlu2 %v2649_v63, %s6677_s22  ;;  %v2800_v25 = vrot.slane %v2795_v57, 4  ;;  %v2692_v63 = vrot.slane %v2685_v58, 4 }
 0x5b9   : > { %v2183_v6 = vpop.permute.xlu0 %2182  ;;  %v2215_v13 = vpop.permute.xlu2 %2214  ;;  %v2801_v11 = vsel %vm224_vm0, 0.0, %v2800_v25 }
 0x5ba   : > { %2703 = vrot.lane.b32.xlu1 %v2651_v54, %s6682_s27  ;;  %v2234_v54 = vsel %vm358_vm2, %v2233_v62, %v2183_v6  ;;  %v2693_v6 = vsel %vm224_vm0, 0.0, %v2692_v63  ;;  %v2809_v47 = vperm.slane %v2801_v11, %v6730_v5 }
 0x5bc   : > { %v2187_v17 = vpop.permute.xlu1 %2186  ;;  %v2822_v9 = vrot.slane %v2809_v47, 4 }
 0x5be   : > { %v2823_v37 = vsel %vm224_vm0, 0.0, %v2822_v9 }
 0x5bf   : > { %2711 = vrot.lane.b32.xlu0 %v2653_v19, %s6679_s24  ;;  %2707 = vrot.lane.b32.xlu2 %v2643_v45, %s6678_s23  ;;  %v2235_v19 = vsel %vm360_vm3, %v2234_v54, %v2187_v17  ;;  %v2786_v17 = vrot.slane %v222_v24, 1 }
 0x5c0   : > { %v2236_v16 = vsel %vm362_vm4, %v2235_v19, %v7748_v35 }
 0x5c1   : > { %v2195_v33 = vpop.permute.xlu0 %2194  ;;  %v2227_v21 = vpop.permute.xlu2 %2226 }
 0x5c2   : > { %2715 = vrot.lane.b32.xlu1 %v2647_v27, %s6680_s25  ;;  %v2237_v12 = vsel %vm364_vm5, %v2236_v16, %v2195_v33  ;;  %v7849_v33 = vsel %vm2266_vm10, %v2784_v10, %v2786_v17 }
 0x5c3   : > { %v2828_v63 = vrot.slane %v7849_v33, 4 }
 0x5c4   : > { %v2199_v8 = vpop.permute.xlu1 %2198 }
 0x5c5   : > { %v2829_v24 = vsel %vm224_vm0, 0.0, %v2828_v63 }
 0x5c7   : > { %2723 = vrot.lane.b32.xlu0 %v2687_v31, %s6677_s22  ;;  %2719 = vrot.lane.b32.xlu2 %v2655_v48, %s6681_s26  ;;  %v2238_v31 = vsel %vm366_vm6, %v2237_v12, %v2199_v8  ;;  %v2810_v48 = vrot.slane %v2799_v42, 4 }
 0x5c9   : > { %v2207_v49 = vpop.permute.xlu0 %2206  ;;  %v7805_v56 = vpop.permute.xlu2 %2355  ;;  %v2811_v57 = vsel %vm224_vm0, 0.0, %v2810_v48 }
 0x5ca   : > { %2727 = vrot.lane.b32.xlu1 %v2675_v38, %s6676_s21  ;;  %v2240_v45 = vsel %vm356_vm1, %v7599_v41, %v2207_v49  ;;  %v2819_v25 = vperm.slane %v2811_v57, %v6730_v5 }
 0x5cc   : > { %v2211_v32 = vpop.permute.xlu1 %2210  ;;  %v2826_v54 = vrot.slane %v2819_v25, 4 }
 0x5cd   : > { %v2241_v26 = vsel %vm358_vm2, %v2240_v45, %v2211_v32 }
 0x5ce   : > { %v2242_v41 = vsel %vm360_vm3, %v2241_v26, %v2215_v13  ;;  %v2821_v13 = vsel %vm224_vm0, 0.0, %v2820_v15  ;;  %v2827_v15 = vsel %vm224_vm0, 0.0, %v2826_v54 }
 0x5cf   : > { %2735 = vrot.lane.b32.xlu0 %v2681_v53, %s6678_s23  ;;  %2731 = vrot.lane.b32.xlu2 %v2689_v55, %s6682_s27  ;;  %v2239_v53 = vsel %vm368_vm7, %v2238_v31, %v7765_v34  ;;  %v2815_v34 = vperm.slane %v2799_v42, %v6730_v5 }
 0x5d0   : > { %v2255_v32 = vmul.f32 %v2239_v53, %v2239_v53 }
 0x5d1   : > { %v2219_v50 = vpop.permute.xlu0 %2218  ;;  %v7827_v2 = vpop.permute.xlu2 %2367  ;;  %v2824_v60 = vrot.slane %v2815_v34, 4 }
 0x5d2   : > { %2739 = vrot.lane.b32.xlu1 %v2691_v44, %s6679_s24  ;;  %v2243_v40 = vsel %vm362_vm4, %v2242_v41, %v2219_v50  ;;  %v2837_v41 = vperm.slane %v2829_v24, %v6723_v4 }
 0x5d3   : > { %v2825_v11 = vsel %vm224_vm0, 0.0, %v2824_v60 }
 0x5d4   : > { %v2223_v27 = vpop.permute.xlu1 %2222  ;;  %v2853_v17 = vperm.slane %v2837_v41, %v6730_v5  ;;  %v2848_v42 = vrot.slane %v2837_v41, 4 }
 0x5d5   : > { %v2244_v39 = vsel %vm364_vm5, %v2243_v40, %v2223_v27 }
 0x5d6   : > { %v2245_v7 = vsel %vm366_vm6, %v2244_v39, %v2227_v21  ;;  %v2833_v21 = vperm.slane %v7849_v33, %v6723_v4  ;;  %v2862_v31 = vrot.slane %v2853_v17, 4 }
 0x5d7   : > { %2747 = vrot.lane.b32.xlu0 %v2693_v6, %s6681_s26  ;;  %2743 = vrot.lane.b32.xlu2 %v2685_v58, %s6680_s25 }
 0x5d8   : > { %v2838_v44 = vrot.slane %v2833_v21, 4  ;;  %v7874_v19 = vperm.slane %v2833_v21, %v6730_v5 }
 0x5d9   : > { %v2231_v35 = vpop.permute.xlu0 %2230  ;;  %v2380_v38 = vpop.permute.xlu2 %2379 }
 0x5da   : > { %v2246_v8 = vsel %vm368_vm7, %v2245_v7, %v2231_v35  ;;  %2867 = vrot.lane.b32.xlu1 %v2821_v13, %s6677_s22  ;;  %v2839_v50 = vsel %vm224_vm0, 0.0, %v2838_v44  ;;  %v2858_v27 = vrot.slane %v7874_v19, 4  ;;  %v2849_v35 = vsel %vm224_vm0, 0.0, %v2848_v42 }
 0x5db   : > { %v2249_v43 = vrot.slane %v2246_v8, 7  ;;  %v2256_v49 = vmul.f32 %v2246_v8, %v2246_v8  ;;  %v2847_v22 = vperm.slane %v2839_v50, %v6730_v5  ;;  %v2413_v7 = vsel %vm356_vm1, %v7662_v36, %v2380_v38 }
 0x5dc   : > { %v2352_v14 = vpop.permute.xlu1 %2351  ;;  %v2859_v12 = vsel %vm224_vm0, 0.0, %v2858_v27  ;;  %v2863_v8 = vsel %vm224_vm0, 0.0, %v2862_v31 }
 0x5dd   : > { %v2250_v10 = vsel %vm380_vm8, %v2239_v53, %v2249_v43  ;;  %v2259_v58 = vrot.slane %v2256_v49, 7  ;;  %v2860_v16 = vrot.slane %v2847_v22, 4  ;;  %v2406_v48 = vsel %vm356_vm1, %v7630_v59, %v2352_v14 }
 0x5de   : > { %2253 = vst.msk [vmem:[#allocation2 + $0x13] ss:$8 sm:$0x3] %vm6986_vm9, %v2250_v10  ;;  %v2407_v43 = vsel %vm358_vm2, %v2406_v48, %v7805_v56  ;;  %v2857_v49 = vperm.slane %v2849_v35, %v6730_v5 }
 0x5df   : > { %v2260_v55 = vsel %vm380_vm8, %v2255_v32, %v2259_v58  ;;  %2875 = vrot.lane.b32.xlu0 %v2823_v37, %s6682_s27  ;;  %2871 = vrot.lane.b32.xlu2 %v2809_v47, %s6676_s21  ;;  %v2861_v39 = vsel %vm224_vm0, 0.0, %v2860_v16 }
 0x5e0   : > { %2263 = vst.msk [vmem:[#allocation2 + $0x57] ss:$8 sm:$0x3] %vm6986_vm9, %v2260_v55  ;;  %v2864_v57 = vrot.slane %v2857_v49, 4 }
 0x5e1   : > { %v2360_v62 = vpop.permute.xlu0 %2359  ;;  %v2392_v45 = vpop.permute.xlu2 %2391 }
 0x5e2   : > { %2879 = vrot.lane.b32.xlu1 %v2815_v34, %s6678_s23  ;;  %v2408_v59 = vsel %vm360_vm3, %v2407_v43, %v2360_v62  ;;  %v2865_v34 = vsel %vm224_vm0, 0.0, %v2864_v57 }
 0x5e4   : > { %v2364_v26 = vpop.permute.xlu1 %2363 }
 0x5e5   : > { %v2409_v36 = vsel %vm362_vm4, %v2408_v59, %v2364_v26 }
 0x5e6   : > { %v2410_v32 = vsel %vm364_vm5, %v2409_v36, %v7827_v2 }
 0x5e7   : > { %2887 = vrot.lane.b32.xlu0 %v2819_v25, %s6680_s25  ;;  %2883 = vrot.lane.b32.xlu2 %v2825_v11, %s6679_s24 }
 0x5e9   : > { %v2372_v6 = vpop.permute.xlu0 %2371  ;;  %v2404_v47 = vpop.permute.xlu2 %2403 }
 0x5ea   : > { %2891 = vrot.lane.b32.xlu1 %v2827_v15, %s6681_s26  ;;  %v2411_v55 = vsel %vm366_vm6, %v2410_v32, %v2372_v6 }
 0x5ec   : > { %v2376_v40 = vpop.permute.xlu1 %2375 }
 0x5ed   : > { %v2412_v44 = vsel %vm368_vm7, %v2411_v55, %v2376_v40 }
 0x5ee   : > { %v2428_v2 = vmul.f32 %v2412_v44, %v2412_v44 }
 0x5ef   : > { %2899 = vrot.lane.b32.xlu0 %v2847_v22, %s6676_s21  ;;  %2895 = vrot.lane.b32.xlu2 %v2859_v12, %s6677_s22 }
 0x5f1   : > { %v2384_v13 = vpop.permute.xlu0 %2383  ;;  %v2532_v9 = vpop.permute.xlu2 %2531 }
 0x5f2   : > { %2903 = vrot.lane.b32.xlu1 %v2861_v39, %s6682_s27  ;;  %v2414_v37 = vsel %vm358_vm2, %v2413_v7, %v2384_v13 }
 0x5f4   : > { %v2388_v53 = vpop.permute.xlu1 %2387 }
 0x5f5   : > { %v2415_v14 = vsel %vm360_vm3, %v2414_v37, %v2388_v53 }
 0x5f6   : > { %v2416_v56 = vsel %vm362_vm4, %v2415_v14, %v2392_v45 }
 0x5f7   : > { %2911 = vrot.lane.b32.xlu0 %v2863_v8, %s6679_s24  ;;  %2907 = vrot.lane.b32.xlu2 %v2853_v17, %s6678_s23 }
 0x5f9   : > { %v2396_v38 = vpop.permute.xlu0 %2395  ;;  %v2544_v21 = vpop.permute.xlu2 %2543 }
 0x5fa   : > { %2915 = vrot.lane.b32.xlu1 %v2857_v49, %s6680_s25  ;;  %v2417_v10 = vsel %vm364_vm5, %v2416_v56, %v2396_v38 }
 0x5fc   : > { %v2400_v58 = vpop.permute.xlu1 %2399 }
 0x5fd   : > { %v2418_v25 = vsel %vm366_vm6, %v2417_v10, %v2400_v58 }
 0x5fe   : > { %v2419_v60 = vsel %vm368_vm7, %v2418_v25, %v2404_v47 }
 0x5ff   : > { %v2422_v62 = vrot.slane %v2419_v60, 7  ;;  %v2429_v63 = vmul.f32 %v2419_v60, %v2419_v60  ;;  %2954 = vrot.lane.b32.xlu0 %v7618_v29, %s6683_s28  ;;  %2919 = vrot.lane.b32.xlu2 %v2865_v34, %s6681_s26 }
 0x601   : > { %v2423_v45 = vsel %vm380_vm8, %v2412_v44, %v2422_v62  ;;  %v2432_v54 = vrot.slane %v2429_v63, 7  ;;  %v2524_v26 = vpop.permute.xlu0 %2523  ;;  %v2556_v50 = vpop.permute.xlu2 %2555 }
 0x602   : > { %2426 = vst.msk [vmem:[#allocation2 + $0x14] ss:$8 sm:$0x3] %vm6986_vm9, %v2423_v45  ;;  %2956 = vrot.lane.b32.xlu1 %v7646_v51, %s6683_s28  ;;  %v2578_v17 = vsel %vm356_vm1, %v7688_v3, %v2524_v26 }
 0x603   : > { %v2433_v11 = vsel %vm380_vm8, %v2428_v2, %v2432_v54 }
 0x604   : > { %2436 = vst.msk [vmem:[#allocation2 + $0x60] ss:$8 sm:$0x3] %vm6986_vm9, %v2433_v11  ;;  %v2528_v24 = vpop.permute.xlu1 %2527 }
 0x605   : > { %v2579_v39 = vsel %vm358_vm2, %v2578_v17, %v2528_v24 }
 0x606   : > { %v2580_v13 = vsel %vm360_vm3, %v2579_v39, %v2532_v9 }
 0x609   : > { %v2536_v15 = vpop.permute.xlu0 %2535  ;;  %v2568_v22 = vpop.permute.xlu2 %2567 }
 0x60a   : > { %v2581_v35 = vsel %vm362_vm4, %v2580_v13, %v2536_v15 }
 0x60c   : > { %v2540_v41 = vpop.permute.xlu1 %2539 }
 0x611   : > { %v2548_v27 = vpop.permute.xlu0 %2547  ;;  %v2696_v6 = vpop.permute.xlu2 %2695 }
 0x612   : > { %v2750_v62 = vsel %vm356_vm1, %v7755_v28, %v2696_v6 }
 0x614   : > { %v2552_v47 = vpop.permute.xlu1 %2551 }
 0x615   : > { %v2585_v16 = vsel %vm356_vm1, %v7718_v20, %v2552_v47  ;;  %v2582_v20 = vsel %vm364_vm5, %v2581_v35, %v2540_v41 }
 0x616   : > { %v2586_v42 = vsel %vm358_vm2, %v2585_v16, %v2556_v50  ;;  %v2583_v3 = vsel %vm366_vm6, %v2582_v20, %v2544_v21 }
 0x617   : > { %v2584_v37 = vsel %vm368_vm7, %v2583_v3, %v2548_v27 }
 0x618   : > { %v2600_v36 = vmul.f32 %v2584_v37, %v2584_v37 }
 0x619   : > { %v2560_v40 = vpop.permute.xlu0 %2559  ;;  %v2708_v12 = vpop.permute.xlu2 %2707 }
 0x61a   : > { %v2587_v48 = vsel %vm360_vm3, %v2586_v42, %v2560_v40 }
 0x61c   : > { %v2564_v31 = vpop.permute.xlu1 %2563 }
 0x61d   : > { %v2588_v7 = vsel %vm362_vm4, %v2587_v48, %v2564_v31 }
 0x61e   : > { %v2589_v8 = vsel %vm364_vm5, %v2588_v7, %v2568_v22 }
 0x621   : > { %v2572_v53 = vpop.permute.xlu0 %2571  ;;  %v2720_v59 = vpop.permute.xlu2 %2719 }
 0x622   : > { %v2590_v43 = vsel %vm366_vm6, %v2589_v8, %v2572_v53 }
 0x624   : > { %v2576_v49 = vpop.permute.xlu1 %2575 }
 0x625   : > { %v2591_v9 = vsel %vm368_vm7, %v2590_v43, %v2576_v49 }
 0x626   : > { %v2594_v14 = vrot.slane %v2591_v9, 7  ;;  %v2601_v57 = vmul.f32 %v2591_v9, %v2591_v9 }
 0x628   : > { %v2595_v38 = vsel %vm380_vm8, %v2584_v37, %v2594_v14  ;;  %v2604_v56 = vrot.slane %v2601_v57, 7 }
 0x629   : > { %2598 = vst.msk [vmem:[#allocation2 + $0x15] ss:$8 sm:$0x3] %vm6986_vm9, %v2595_v38  ;;  %v2700_v32 = vpop.permute.xlu0 %2699  ;;  %v2732_v58 = vpop.permute.xlu2 %2731 }
 0x62a   : > { %v2605_v21 = vsel %vm380_vm8, %v2600_v36, %v2604_v56  ;;  %v2751_v2 = vsel %vm358_vm2, %v2750_v62, %v2700_v32 }
 0x62b   : > { %2608 = vst.msk [vmem:[#allocation2 + $0x61] ss:$8 sm:$0x3] %vm6986_vm9, %v2605_v21 }
 0x62c   : > { %v2704_v10 = vpop.permute.xlu1 %2703 }
 0x62d   : > { %v2752_v26 = vsel %vm360_vm3, %v2751_v2, %v2704_v10 }
 0x62e   : > { %v2753_v15 = vsel %vm362_vm4, %v2752_v26, %v2708_v12 }
 0x631   : > { %v2712_v34 = vpop.permute.xlu0 %2711  ;;  %v2744_v44 = vpop.permute.xlu2 %2743 }
 0x632   : > { %v2754_v28 = vsel %vm364_vm5, %v2753_v15, %v2712_v34 }
 0x634   : > { %v2716_v55 = vpop.permute.xlu1 %2715 }
 0x639   : > { %v2724_v25 = vpop.permute.xlu0 %2723  ;;  %v2872_v50 = vpop.permute.xlu2 %2871 }
 0x63a   : > { %v2757_v63 = vsel %vm356_vm1, %v7782_v23, %v2724_v25  ;;  %v2755_v23 = vsel %vm366_vm6, %v2754_v28, %v2716_v55 }
 0x63b   : > { %v2756_v47 = vsel %vm368_vm7, %v2755_v23, %v2720_v59 }
 0x63c   : > { %v2728_v60 = vpop.permute.xlu1 %2727  ;;  %v2772_v42 = vmul.f32 %v2756_v47, %v2756_v47 }
 0x63d   : > { %v2758_v45 = vsel %vm358_vm2, %v2757_v63, %v2728_v60 }
 0x63e   : > { %v2759_v11 = vsel %vm360_vm3, %v2758_v45, %v2732_v58 }
 0x641   : > { %v2736_v54 = vpop.permute.xlu0 %2735  ;;  %v2884_v13 = vpop.permute.xlu2 %2883 }
 0x642   : > { %v2760_v22 = vsel %vm362_vm4, %v2759_v11, %v2736_v54 }
 0x644   : > { %v2740_v24 = vpop.permute.xlu1 %2739 }
 0x645   : > { %v2761_v41 = vsel %vm364_vm5, %v2760_v22, %v2740_v24 }
 0x646   : > { %v2762_v27 = vsel %vm366_vm6, %v2761_v41, %v2744_v44 }
 0x649   : > { %v2748_v6 = vpop.permute.xlu0 %2747  ;;  %v2896_v20 = vpop.permute.xlu2 %2895 }
 0x64a   : > { %v2763_v16 = vsel %vm368_vm7, %v2762_v27, %v2748_v6  ;;  %v2929_v37 = vsel %vm356_vm1, %v7874_v19, %v2896_v20 }
 0x64b   : > { %v2766_v40 = vrot.slane %v2763_v16, 7  ;;  %v2773_v17 = vmul.f32 %v2763_v16, %v2763_v16 }
 0x64c   : > { %v2868_v39 = vpop.permute.xlu1 %2867 }
 0x64d   : > { %v2767_v12 = vsel %vm380_vm8, %v2756_v47, %v2766_v40  ;;  %v2776_v31 = vrot.slane %v2773_v17, 7  ;;  %v2922_v49 = vsel %vm356_vm1, %v7815_v30, %v2868_v39 }
 0x64e   : > { %2770 = vst.msk [vmem:[#allocation2 + $0x16] ss:$8 sm:$0x3] %vm6986_vm9, %v2767_v12  ;;  %v2923_v59 = vsel %vm358_vm2, %v2922_v49, %v2872_v50 }
 0x64f   : > { %v2777_v48 = vsel %vm380_vm8, %v2772_v42, %v2776_v31 }
 0x650   : > { %2780 = vst.msk [vmem:[#allocation2 + $0x62] ss:$8 sm:$0x3] %vm6986_vm9, %v2777_v48 }
 0x651   : > { %v2876_v35 = vpop.permute.xlu0 %2875  ;;  %v2908_v43 = vpop.permute.xlu2 %2907 }
 0x652   : > { %v2924_v57 = vsel %vm360_vm3, %v2923_v59, %v2876_v35 }
 0x654   : > { %v2880_v7 = vpop.permute.xlu1 %2879 }
 0x655   : > { %v2925_v38 = vsel %vm362_vm4, %v2924_v57, %v2880_v7 }
 0x656   : > { %v2926_v30 = vsel %vm364_vm5, %v2925_v38, %v2884_v13 }
 0x659   : > { %v2888_v53 = vpop.permute.xlu0 %2887  ;;  %v2920_v21 = vpop.permute.xlu2 %2919 }
 0x65a   : > { %v2927_v58 = vsel %vm366_vm6, %v2926_v30, %v2888_v53 }
 0x65c   : > { %v2892_v8 = vpop.permute.xlu1 %2891 }
 0x65d   : > { %v2928_v55 = vsel %vm368_vm7, %v2927_v58, %v2892_v8 }
 0x65e   : > { %v2944_v62 = vmul.f32 %v2928_v55, %v2928_v55 }
 0x661   : > { %v2900_v3 = vpop.permute.xlu0 %2899 }
 0x662   : > { %v2930_v14 = vsel %vm358_vm2, %v2929_v37, %v2900_v3 }
 0x664   : > { %v2904_v9 = vpop.permute.xlu1 %2903 }
 0x665   : > { %v2931_v36 = vsel %vm360_vm3, %v2930_v14, %v2904_v9 }
 0x666   : > { %v2932_v32 = vsel %vm362_vm4, %v2931_v36, %v2908_v43 }
 0x669   : > { %v2912_v56 = vpop.permute.xlu0 %2911 }
 0x66a   : > { %v2933_v10 = vsel %vm364_vm5, %v2932_v32, %v2912_v56 }
 0x66c   : > { %v2916_v19 = vpop.permute.xlu1 %2915 }
 0x66d   : > { %v2934_v34 = vsel %vm366_vm6, %v2933_v10, %v2916_v19 }
 0x66e   : > { %v2935_v25 = vsel %vm368_vm7, %v2934_v34, %v2920_v21 }
 0x66f   : > { %v2938_v44 = vrot.slane %v2935_v25, 7  ;;  %v2945_v60 = vmul.f32 %v2935_v25, %v2935_v25 }
 0x671   : > { %v2939_v63 = vsel %vm380_vm8, %v2928_v55, %v2938_v44  ;;  %v2948_v2 = vrot.slane %v2945_v60, 7  ;;  %v2955_v45 = vpop.permute.xlu0 %2954 }
 0x672   : > { %2942 = vst.msk [vmem:[#allocation2 + $0x17] ss:$8 sm:$0x3] %vm6986_vm9, %v2939_v63  ;;  %v2960_v54 = vrot.slane %v2955_v45, 4  ;;  %v2965_v26 = vperm.slane %v2955_v45, %v6723_v4 }
 0x673   : > { %v2949_v50 = vsel %vm380_vm8, %v2944_v62, %v2948_v2 }
 0x674   : > { %2952 = vst.msk [vmem:[#allocation2 + $0x63] ss:$8 sm:$0x3] %vm6986_vm9, %v2949_v50  ;;  %v2961_v11 = vsel %vm224_vm0, 0.0, %v2960_v54  ;;  %v2970_v24 = vrot.slane %v2965_v26, 4  ;;  %v7995_v15 = vperm.slane %v2965_v26, %v6730_v5  ;;  %v2957_v27 = vpop.permute.xlu1 %2956 }
 0x675   : > { %v2969_v22 = vperm.slane %v2961_v11, %v6723_v4  ;;  %v3003_v17 = vperm.slane %v2957_v27, %v6723_v4  ;;  %v2998_v31 = vrot.slane %v2957_v27, 4 }
 0x676   : > { %v2971_v28 = vsel %vm224_vm0, 0.0, %v2970_v24  ;;  %v2990_v41 = vrot.slane %v7995_v15, 4 }
 0x677   : > { %v2979_v23 = vperm.slane %v2971_v28, %v6730_v5  ;;  %v2985_v47 = vperm.slane %v2969_v22, %v6730_v5  ;;  %v2980_v16 = vrot.slane %v2969_v22, 4  ;;  %v3013_v13 = vperm.slane %v3003_v17, %v6730_v5 }
 0x678   : > { %v2991_v6 = vsel %vm224_vm0, 0.0, %v2990_v41  ;;  %v3008_v7 = vrot.slane %v3003_v17, 4  ;;  %v2999_v20 = vsel %vm224_vm0, 0.0, %v2998_v31 }
 0x679   : > { %3041 = vrot.lane.b32.xlu0 %v2979_v23, %s6676_s21  ;;  %3037 = vrot.lane.b32.xlu2 %v2991_v6, %s6677_s22  ;;  %v2992_v40 = vrot.slane %v2979_v23, 4  ;;  %v2994_v42 = vrot.slane %v2985_v47, 4  ;;  %v2981_v12 = vsel %vm224_vm0, 0.0, %v2980_v16  ;;  %v3028_v53 = vrot.slane %v3013_v13, 4 }
 0x67a   : > { %v2989_v35 = vperm.slane %v2981_v12, %v6730_v5  ;;  %v3007_v3 = vperm.slane %v2999_v20, %v6723_v4  ;;  %v3009_v43 = vsel %vm224_vm0, 0.0, %v3008_v7 }
 0x67b   : > { %v2993_v39 = vsel %vm224_vm0, 0.0, %v2992_v40  ;;  %v2995_v48 = vsel %vm224_vm0, 0.0, %v2994_v42  ;;  %v3029_v49 = vsel %vm224_vm0, 0.0, %v3028_v53  ;;  %v3017_v9 = vperm.slane %v3009_v43, %v6730_v5 }
 0x67c   : > { %3045 = vrot.lane.b32.xlu1 %v2993_v39, %s6682_s27  ;;  %v2996_v8 = vrot.slane %v2989_v35, 4  ;;  %v3018_v59 = vrot.slane %v3007_v3, 4  ;;  %v3023_v14 = vperm.slane %v3007_v3, %v6730_v5 }
 0x67d   : > { %v3030_v57 = vrot.slane %v3017_v9, 4 }
 0x67e   : > { %v2997_v37 = vsel %vm224_vm0, 0.0, %v2996_v8  ;;  %v3019_v36 = vsel %vm224_vm0, 0.0, %v3018_v59  ;;  %v3032_v38 = vrot.slane %v3023_v14, 4 }
 0x67f   : > { %v3031_v56 = vsel %vm224_vm0, 0.0, %v3030_v57  ;;  %v3027_v32 = vperm.slane %v3019_v36, %v6730_v5 }
 0x680   : > { %v3033_v21 = vsel %vm224_vm0, 0.0, %v3032_v38 }
 0x681   : > { %3053 = vrot.lane.b32.xlu0 %v2995_v48, %s6679_s24  ;;  %3049 = vrot.lane.b32.xlu2 %v2985_v47, %s6678_s23  ;;  %v3034_v30 = vrot.slane %v3027_v32, 4 }
 0x683   : > { %v3035_v10 = vsel %vm224_vm0, 0.0, %v3034_v30 }
 0x684   : > { %3057 = vrot.lane.b32.xlu1 %v2989_v35, %s6680_s25 }
 0x689   : > { %3065 = vrot.lane.b32.xlu0 %v3029_v49, %s6677_s22  ;;  %3061 = vrot.lane.b32.xlu2 %v2997_v37, %s6681_s26 }
 0x68c   : > { %3069 = vrot.lane.b32.xlu1 %v3017_v9, %s6676_s21 }
 0x691   : > { %3077 = vrot.lane.b32.xlu0 %v3023_v14, %s6678_s23  ;;  %3073 = vrot.lane.b32.xlu2 %v3031_v56, %s6682_s27 }
 0x694   : > { %3081 = vrot.lane.b32.xlu1 %v3033_v21, %s6679_s24 }
 0x699   : > { %3089 = vrot.lane.b32.xlu0 %v3035_v10, %s6681_s26  ;;  %3085 = vrot.lane.b32.xlu2 %v3027_v32, %s6680_s25 }
 0x69c   : > { %3124 = vrot.lane.b32.xlu1 %v7677_v61, %s6683_s28 }
 0x6a1   : > { %3126 = vrot.lane.b32.xlu2 %v7707_v1, %s6683_s28 }
 0x6d3   : > { %v3038_v19 = vpop.permute.xlu2 %3037 }
 0x6d4   : > { %v3092_v45 = vsel %vm356_vm1, %v7995_v15, %v3038_v19 }
 0x6db   : > { %v3050_v34 = vpop.permute.xlu2 %3049 }
 0x6e3   : > { %v3062_v44 = vpop.permute.xlu2 %3061 }
 0x6eb   : > { %v3042_v58 = vpop.permute.xlu0 %3041  ;;  %v3074_v2 = vpop.permute.xlu2 %3073 }
 0x6ec   : > { %v3093_v54 = vsel %vm358_vm2, %v3092_v45, %v3042_v58 }
 0x6ee   : > { %v3046_v55 = vpop.permute.xlu1 %3045 }
 0x6ef   : > { %v3094_v50 = vsel %vm360_vm3, %v3093_v54, %v3046_v55 }
 0x6f0   : > { %v3095_v22 = vsel %vm362_vm4, %v3094_v50, %v3050_v34 }
 0x6f3   : > { %v3054_v25 = vpop.permute.xlu0 %3053  ;;  %v3086_v47 = vpop.permute.xlu2 %3085 }
 0x6f4   : > { %v3096_v23 = vsel %vm364_vm5, %v3095_v22, %v3054_v25 }
 0x6f6   : > { %v3058_v60 = vpop.permute.xlu1 %3057 }
 0x6f7   : > { %v3097_v15 = vsel %vm366_vm6, %v3096_v23, %v3058_v60 }
 0x6f8   : > { %v3098_v16 = vsel %vm368_vm7, %v3097_v15, %v3062_v44 }
 0x6f9   : > { %v3114_v31 = vmul.f32 %v3098_v16, %v3098_v16 }
 0x6fb   : > { %v3066_v62 = vpop.permute.xlu0 %3065  ;;  %v3127_v14 = vpop.permute.xlu2 %3126 }
 0x6fc   : > { %v3099_v26 = vsel %vm356_vm1, %v3013_v13, %v3066_v62  ;;  %v3173_v32 = vperm.slane %v3127_v14, %v6723_v4  ;;  %v3168_v19 = vrot.slane %v3127_v14, 4 }
 0x6fe   : > { %v3070_v63 = vpop.permute.xlu1 %3069  ;;  %v8078_v58 = vperm.slane %v3173_v32, %v6730_v5  ;;  %v3178_v25 = vrot.slane %v3173_v32, 4  ;;  %v3169_v44 = vsel %vm224_vm0, 0.0, %v3168_v19 }
 0x6ff   : > { %v3100_v11 = vsel %vm358_vm2, %v3099_v26, %v3070_v63  ;;  %v3177_v63 = vperm.slane %v3169_v44, %v6723_v4 }
 0x700   : > { %v3101_v28 = vsel %vm360_vm3, %v3100_v11, %v3074_v2  ;;  %v3198_v60 = vrot.slane %v8078_v58, 4  ;;  %v3179_v2 = vsel %vm224_vm0, 0.0, %v3178_v25 }
 0x701   : > { %v3187_v26 = vperm.slane %v3179_v2, %v6730_v5  ;;  %v3188_v50 = vrot.slane %v3177_v63, 4 }
 0x702   : > { %v3199_v45 = vsel %vm224_vm0, 0.0, %v3198_v60 }
 0x703   : > { %v3078_v24 = vpop.permute.xlu0 %3077  ;;  %v3200_v11 = vrot.slane %v3187_v26, 4  ;;  %v3189_v22 = vsel %vm224_vm0, 0.0, %v3188_v50 }
 0x704   : > { %v3102_v27 = vsel %vm362_vm4, %v3101_v28, %v3078_v24  ;;  %v3193_v24 = vperm.slane %v3177_v63, %v6730_v5  ;;  %v3197_v23 = vperm.slane %v3189_v22, %v6730_v5 }
 0x705   : > { %v3201_v28 = vsel %vm224_vm0, 0.0, %v3200_v11 }
 0x706   : > { %v3082_v41 = vpop.permute.xlu1 %3081  ;;  %v3204_v15 = vrot.slane %v3197_v23, 4 }
 0x707   : > { %v3103_v6 = vsel %vm364_vm5, %v3102_v27, %v3082_v41  ;;  %v3202_v41 = vrot.slane %v3193_v24, 4 }
 0x708   : > { %v3104_v17 = vsel %vm366_vm6, %v3103_v6, %v3086_v47  ;;  %v3205_v6 = vsel %vm224_vm0, 0.0, %v3204_v15 }
 0x709   : > { %v3203_v27 = vsel %vm224_vm0, 0.0, %v3202_v41 }
 0x70b   : > { %v3090_v40 = vpop.permute.xlu0 %3089 }
 0x70c   : > { %v3105_v39 = vsel %vm368_vm7, %v3104_v17, %v3090_v40 }
 0x70d   : > { %v3108_v42 = vrot.slane %v3105_v39, 7  ;;  %v3115_v12 = vmul.f32 %v3105_v39, %v3105_v39 }
 0x70e   : > { %v3125_v13 = vpop.permute.xlu1 %3124 }
 0x70f   : > { %v3109_v48 = vsel %vm380_vm8, %v3098_v16, %v3108_v42  ;;  %v3118_v35 = vrot.slane %v3115_v12, 7  ;;  %v3130_v7 = vrot.slane %v3125_v13, 4  ;;  %v3135_v20 = vperm.slane %v3125_v13, %v6723_v4 }
 0x710   : > { %3112 = vst.msk [vmem:[#allocation2 + $0x20] ss:$8 sm:$0x3] %vm6986_vm9, %v3109_v48 }
 0x711   : > { %v3119_v53 = vsel %vm380_vm8, %v3114_v31, %v3118_v35  ;;  %v3131_v8 = vsel %vm224_vm0, 0.0, %v3130_v7  ;;  %v3140_v3 = vrot.slane %v3135_v20, 4  ;;  %v8061_v43 = vperm.slane %v3135_v20, %v6730_v5 }
 0x712   : > { %3122 = vst.msk [vmem:[#allocation2 + $0x64] ss:$8 sm:$0x3] %vm6986_vm9, %v3119_v53  ;;  %v3139_v49 = vperm.slane %v3131_v8, %v6723_v4 }
 0x713   : > { %v3141_v37 = vsel %vm224_vm0, 0.0, %v3140_v3  ;;  %v3160_v9 = vrot.slane %v8061_v43, 4 }
 0x714   : > { %v3149_v59 = vperm.slane %v3141_v37, %v6730_v5  ;;  %v3155_v36 = vperm.slane %v3139_v49, %v6730_v5  ;;  %v3150_v38 = vrot.slane %v3139_v49, 4 }
 0x715   : > { %v3161_v57 = vsel %vm224_vm0, 0.0, %v3160_v9 }
 0x716   : > { %3207 = vrot.lane.b32.xlu0 %v3161_v57, %s6677_s22  ;;  %3211 = vrot.lane.b32.xlu1 %v3149_v59, %s6676_s21  ;;  %v3162_v56 = vrot.slane %v3149_v59, 4  ;;  %v3164_v30 = vrot.slane %v3155_v36, 4  ;;  %v3151_v10 = vsel %vm224_vm0, 0.0, %v3150_v38 }
 0x717   : > { %v3159_v55 = vperm.slane %v3151_v10, %v6730_v5 }
 0x718   : > { %v3163_v21 = vsel %vm224_vm0, 0.0, %v3162_v56  ;;  %v3165_v34 = vsel %vm224_vm0, 0.0, %v3164_v30 }
 0x719   : > { %3215 = vrot.lane.b32.xlu2 %v3163_v21, %s6682_s27  ;;  %v3166_v62 = vrot.slane %v3159_v55, 4 }
 0x71b   : > { %v3167_v54 = vsel %vm224_vm0, 0.0, %v3166_v62 }
 0x71e   : > { %3219 = vrot.lane.b32.xlu0 %v3155_v36, %s6678_s23  ;;  %3223 = vrot.lane.b32.xlu1 %v3165_v34, %s6679_s24 }
 0x721   : > { %3227 = vrot.lane.b32.xlu2 %v3159_v55, %s6680_s25 }
 0x726   : > { %3231 = vrot.lane.b32.xlu0 %v3167_v54, %s6681_s26  ;;  %3235 = vrot.lane.b32.xlu1 %v3199_v45, %s6677_s22 }
 0x729   : > { %3239 = vrot.lane.b32.xlu2 %v3187_v26, %s6676_s21 }
 0x72e   : > { %3243 = vrot.lane.b32.xlu0 %v3201_v28, %s6682_s27  ;;  %3247 = vrot.lane.b32.xlu1 %v3193_v24, %s6678_s23 }
 0x731   : > { %3251 = vrot.lane.b32.xlu2 %v3203_v27, %s6679_s24 }
 0x736   : > { %3255 = vrot.lane.b32.xlu0 %v3197_v23, %s6680_s25  ;;  %3259 = vrot.lane.b32.xlu1 %v3205_v6, %s6681_s26 }
 0x739   : > { %3294 = vrot.lane.b32.xlu2 %v7737_v46, %s6683_s28 }
 0x73e   : > { %3296 = vrot.lane.b32.xlu0 %v7771_v0, %s6683_s28 }
 0x773   : > { %v3216_v47 = vpop.permute.xlu2 %3215 }
 0x77b   : > { %v3228_v16 = vpop.permute.xlu2 %3227 }
 0x783   : > { %v3240_v40 = vpop.permute.xlu2 %3239 }
 0x788   : > { %v3208_v17 = vpop.permute.xlu0 %3207  ;;  %v3212_v39 = vpop.permute.xlu1 %3211 }
 0x789   : > { %v3262_v56 = vsel %vm356_vm1, %v8061_v43, %v3208_v17 }
 0x78a   : > { %v3263_v10 = vsel %vm358_vm2, %v3262_v56, %v3212_v39 }
 0x78b   : > { %v3252_v42 = vpop.permute.xlu2 %3251  ;;  %v3264_v43 = vsel %vm360_vm3, %v3263_v10, %v3216_v47 }
 0x790   : > { %v3220_v12 = vpop.permute.xlu0 %3219  ;;  %v3224_v31 = vpop.permute.xlu1 %3223 }
 0x793   : > { %v3295_v13 = vpop.permute.xlu2 %3294 }
 0x794   : > { %v3300_v48 = vrot.slane %v3295_v13, 4  ;;  %v3305_v35 = vperm.slane %v3295_v13, %v6723_v4 }
 0x796   : > { %v3301_v7 = vsel %vm224_vm0, 0.0, %v3300_v48  ;;  %v3310_v20 = vrot.slane %v3305_v35, 4  ;;  %v8113_v53 = vperm.slane %v3305_v35, %v6730_v5 }
 0x797   : > { %v3309_v8 = vperm.slane %v3301_v7, %v6723_v4 }
 0x798   : > { %v3311_v3 = vsel %vm224_vm0, 0.0, %v3310_v20  ;;  %v3232_v49 = vpop.permute.xlu0 %3231  ;;  %v3236_v37 = vpop.permute.xlu1 %3235  ;;  %v3330_v9 = vrot.slane %v8113_v53, 4 }
 0x799   : > { %v3319_v59 = vperm.slane %v3311_v3, %v6730_v5  ;;  %v3325_v57 = vperm.slane %v3309_v8, %v6730_v5  ;;  %v3320_v36 = vrot.slane %v3309_v8, 4  ;;  %v3269_v30 = vsel %vm356_vm1, %v8078_v58, %v3236_v37 }
 0x79a   : > { %v3331_v14 = vsel %vm224_vm0, 0.0, %v3330_v9  ;;  %v3270_v44 = vsel %vm358_vm2, %v3269_v30, %v3240_v40  ;;  %v3265_v58 = vsel %vm362_vm4, %v3264_v43, %v3220_v12 }
 0x79b   : > { %3377 = vrot.lane.b32.xlu1 %v3331_v14, %s6677_s22  ;;  %v3332_v38 = vrot.slane %v3319_v59, 4  ;;  %3381 = vrot.lane.b32.xlu2 %v3319_v59, %s6676_s21  ;;  %v3334_v32 = vrot.slane %v3325_v57, 4  ;;  %v3321_v19 = vsel %vm224_vm0, 0.0, %v3320_v36  ;;  %v3266_v45 = vsel %vm364_vm5, %v3265_v58, %v3224_v31 }
 0x79c   : > { %v3329_v62 = vperm.slane %v3321_v19, %v6730_v5  ;;  %v3267_v24 = vsel %vm366_vm6, %v3266_v45, %v3228_v16 }
 0x79d   : > { %v3333_v21 = vsel %vm224_vm0, 0.0, %v3332_v38  ;;  %v3335_v25 = vsel %vm224_vm0, 0.0, %v3334_v32  ;;  %v3268_v28 = vsel %vm368_vm7, %v3267_v24, %v3232_v49 }
 0x79e   : > { %3385 = vrot.lane.b32.xlu0 %v3333_v21, %s6682_s27  ;;  %v3336_v63 = vrot.slane %v3329_v62, 4  ;;  %v3284_v15 = vmul.f32 %v3268_v28, %v3268_v28 }
 0x7a0   : > { %v3244_v34 = vpop.permute.xlu0 %3243  ;;  %v3248_v55 = vpop.permute.xlu1 %3247  ;;  %v3337_v11 = vsel %vm224_vm0, 0.0, %v3336_v63 }
 0x7a1   : > { %v3271_v60 = vsel %vm360_vm3, %v3270_v44, %v3244_v34 }
 0x7a2   : > { %v3272_v2 = vsel %vm362_vm4, %v3271_v60, %v3248_v55 }
 0x7a3   : > { %3389 = vrot.lane.b32.xlu1 %v3325_v57, %s6678_s23  ;;  %3393 = vrot.lane.b32.xlu2 %v3335_v25, %s6679_s24  ;;  %v3273_v26 = vsel %vm364_vm5, %v3272_v2, %v3252_v42 }
 0x7a6   : > { %3397 = vrot.lane.b32.xlu0 %v3329_v62, %s6680_s25 }
 0x7a8   : > { %v3256_v54 = vpop.permute.xlu0 %3255  ;;  %v3260_v50 = vpop.permute.xlu1 %3259 }
 0x7a9   : > { %v3274_v22 = vsel %vm366_vm6, %v3273_v26, %v3256_v54 }
 0x7aa   : > { %v3275_v41 = vsel %vm368_vm7, %v3274_v22, %v3260_v50 }
 0x7ab   : > { %v3278_v23 = vrot.slane %v3275_v41, 7  ;;  %v3285_v27 = vmul.f32 %v3275_v41, %v3275_v41  ;;  %3401 = vrot.lane.b32.xlu1 %v3337_v11, %s6681_s26 }
 0x7ad   : > { %v3279_v6 = vsel %vm380_vm8, %v3268_v28, %v3278_v23  ;;  %v3288_v47 = vrot.slane %v3285_v27, 7 }
 0x7ae   : > { %3282 = vst.msk [vmem:[#allocation2 + $0x21] ss:$8 sm:$0x3] %vm6986_vm9, %v3279_v6 }
 0x7af   : > { %v3289_v40 = vsel %vm380_vm8, %v3284_v15, %v3288_v47 }
 0x7b0   : > { %3292 = vst.msk [vmem:[#allocation2 + $0x65] ss:$8 sm:$0x3] %vm6986_vm9, %v3289_v40  ;;  %v3297_v16 = vpop.permute.xlu0 %3296 }
 0x7b1   : > { %v3338_v17 = vrot.slane %v3297_v16, 4  ;;  %v3343_v39 = vperm.slane %v3297_v16, %v6723_v4 }
 0x7b3   : > { %v3339_v42 = vsel %vm224_vm0, 0.0, %v3338_v17  ;;  %v3348_v12 = vrot.slane %v3343_v39, 4  ;;  %v3353_v31 = vperm.slane %v3343_v39, %v6730_v5 }
 0x7b4   : > { %v3347_v13 = vperm.slane %v3339_v42, %v6723_v4 }
 0x7b5   : > { %v3349_v48 = vsel %vm224_vm0, 0.0, %v3348_v12  ;;  %v3368_v35 = vrot.slane %v3353_v31, 4 }
 0x7b6   : > { %v3357_v7 = vperm.slane %v3349_v48, %v6730_v5  ;;  %v3363_v8 = vperm.slane %v3347_v13, %v6730_v5  ;;  %v3358_v3 = vrot.slane %v3347_v13, 4 }
 0x7b7   : > { %v3369_v20 = vsel %vm224_vm0, 0.0, %v3368_v35 }
 0x7b8   : > { %3405 = vrot.lane.b32.xlu2 %v3369_v20, %s6677_s22  ;;  %3409 = vrot.lane.b32.xlu0 %v3357_v7, %s6676_s21  ;;  %v3370_v49 = vrot.slane %v3357_v7, 4  ;;  %v3372_v9 = vrot.slane %v3363_v8, 4  ;;  %v3359_v59 = vsel %vm224_vm0, 0.0, %v3358_v3 }
 0x7b9   : > { %v3367_v57 = vperm.slane %v3359_v59, %v6730_v5 }
 0x7ba   : > { %v3371_v37 = vsel %vm224_vm0, 0.0, %v3370_v49  ;;  %v3373_v14 = vsel %vm224_vm0, 0.0, %v3372_v9 }
 0x7bb   : > { %3413 = vrot.lane.b32.xlu1 %v3371_v37, %s6682_s27  ;;  %v3374_v36 = vrot.slane %v3367_v57, 4 }
 0x7bd   : > { %v3375_v38 = vsel %vm224_vm0, 0.0, %v3374_v36 }
 0x7c0   : > { %3417 = vrot.lane.b32.xlu2 %v3363_v8, %s6678_s23  ;;  %3421 = vrot.lane.b32.xlu0 %v3373_v14, %s6679_s24 }
 0x7c3   : > { %3425 = vrot.lane.b32.xlu1 %v3367_v57, %s6680_s25 }
 0x7c8   : > { %3429 = vrot.lane.b32.xlu2 %v3375_v38, %s6681_s26  ;;  %3464 = vrot.lane.b32.xlu0 %v7802_v18, %s6683_s28 }
 0x7cb   : > { %3466 = vrot.lane.b32.xlu1 %v7849_v33, %s6683_s28 }
 0x7f5   : > { %v3382_v56 = vpop.permute.xlu2 %3381 }
 0x7fd   : > { %v3394_v30 = vpop.permute.xlu2 %3393 }
 0x80d   : > { %v3378_v32 = vpop.permute.xlu1 %3377 }
 0x80e   : > { %v3432_v25 = vsel %vm356_vm1, %v8113_v53, %v3378_v32 }
 0x80f   : > { %v3433_v43 = vsel %vm358_vm2, %v3432_v25, %v3382_v56 }
 0x810   : > { %v3386_v21 = vpop.permute.xlu0 %3385 }
 0x811   : > { %v3434_v58 = vsel %vm360_vm3, %v3433_v43, %v3386_v21 }
 0x812   : > { %v3406_v19 = vpop.permute.xlu2 %3405 }
 0x813   : > { %v3439_v63 = vsel %vm356_vm1, %v3353_v31, %v3406_v19 }
 0x815   : > { %v3390_v10 = vpop.permute.xlu1 %3389 }
 0x816   : > { %v3435_v2 = vsel %vm362_vm4, %v3434_v58, %v3390_v10 }
 0x817   : > { %v3436_v50 = vsel %vm364_vm5, %v3435_v2, %v3394_v30 }
 0x818   : > { %v3398_v34 = vpop.permute.xlu0 %3397 }
 0x819   : > { %v3437_v22 = vsel %vm366_vm6, %v3436_v50, %v3398_v34 }
 0x81a   : > { %v3418_v60 = vpop.permute.xlu2 %3417 }
 0x81d   : > { %v3402_v55 = vpop.permute.xlu1 %3401 }
 0x81e   : > { %v3438_v23 = vsel %vm368_vm7, %v3437_v22, %v3402_v55 }
 0x81f   : > { %v3454_v47 = vmul.f32 %v3438_v23, %v3438_v23 }
 0x822   : > { %v3430_v28 = vpop.permute.xlu2 %3429 }
 0x82a   : > { %v3410_v44 = vpop.permute.xlu0 %3409 }
 0x82b   : > { %v3440_v45 = vsel %vm358_vm2, %v3439_v63, %v3410_v44 }
 0x82d   : > { %v3414_v62 = vpop.permute.xlu1 %3413 }
 0x82e   : > { %v3441_v54 = vsel %vm360_vm3, %v3440_v45, %v3414_v62 }
 0x82f   : > { %v3442_v53 = vsel %vm362_vm4, %v3441_v54, %v3418_v60 }
 0x832   : > { %v3422_v26 = vpop.permute.xlu0 %3421 }
 0x833   : > { %v3443_v11 = vsel %vm364_vm5, %v3442_v53, %v3422_v26 }
 0x835   : > { %v3426_v24 = vpop.permute.xlu1 %3425 }
 0x836   : > { %v3444_v41 = vsel %vm366_vm6, %v3443_v11, %v3426_v24 }
 0x837   : > { %v3445_v27 = vsel %vm368_vm7, %v3444_v41, %v3430_v28 }
 0x838   : > { %v3448_v15 = vrot.slane %v3445_v27, 7  ;;  %v3455_v6 = vmul.f32 %v3445_v27, %v3445_v27 }
 0x83a   : > { %v3449_v40 = vsel %vm380_vm8, %v3438_v23, %v3448_v15  ;;  %v3458_v16 = vrot.slane %v3455_v6, 7  ;;  %v3465_v17 = vpop.permute.xlu0 %3464 }
 0x83b   : > { %3452 = vst.msk [vmem:[#allocation2 + $0x22] ss:$8 sm:$0x3] %vm6986_vm9, %v3449_v40  ;;  %v3470_v39 = vrot.slane %v3465_v17, 4  ;;  %v3475_v42 = vperm.slane %v3465_v17, %v6723_v4 }
 0x83c   : > { %v3459_v12 = vsel %vm380_vm8, %v3454_v47, %v3458_v16 }
 0x83d   : > { %3462 = vst.msk [vmem:[#allocation2 + $0x66] ss:$8 sm:$0x3] %vm6986_vm9, %v3459_v12  ;;  %v3471_v31 = vsel %vm224_vm0, 0.0, %v3470_v39  ;;  %v3480_v13 = vrot.slane %v3475_v42, 4  ;;  %v8203_v48 = vperm.slane %v3475_v42, %v6730_v5  ;;  %v3467_v3 = vpop.permute.xlu1 %3466 }
 0x83e   : > { %v3479_v35 = vperm.slane %v3471_v31, %v6723_v4  ;;  %v3513_v14 = vperm.slane %v3467_v3, %v6723_v4  ;;  %v3508_v56 = vrot.slane %v3467_v3, 4 }
 0x83f   : > { %v3481_v7 = vsel %vm224_vm0, 0.0, %v3480_v13  ;;  %v3500_v20 = vrot.slane %v8203_v48, 4 }
 0x840   : > { %v3489_v8 = vperm.slane %v3481_v7, %v6730_v5  ;;  %v3495_v37 = vperm.slane %v3479_v35, %v6730_v5  ;;  %v3490_v9 = vrot.slane %v3479_v35, 4  ;;  %v3523_v32 = vperm.slane %v3513_v14, %v6730_v5 }
 0x841   : > { %v3501_v49 = vsel %vm224_vm0, 0.0, %v3500_v20  ;;  %v3518_v10 = vrot.slane %v3513_v14, 4  ;;  %v3509_v19 = vsel %vm224_vm0, 0.0, %v3508_v56 }
 0x842   : > { %3547 = vrot.lane.b32.xlu2 %v3501_v49, %s6677_s22  ;;  %3551 = vrot.lane.b32.xlu0 %v3489_v8, %s6676_s21  ;;  %v3502_v59 = vrot.slane %v3489_v8, 4  ;;  %v3504_v36 = vrot.slane %v3495_v37, 4  ;;  %v3491_v38 = vsel %vm224_vm0, 0.0, %v3490_v9  ;;  %v3538_v34 = vrot.slane %v3523_v32, 4 }
 0x843   : > { %v3499_v30 = vperm.slane %v3491_v38, %v6730_v5  ;;  %v3517_v25 = vperm.slane %v3509_v19, %v6723_v4  ;;  %v3519_v44 = vsel %vm224_vm0, 0.0, %v3518_v10 }
 0x844   : > { %v3503_v57 = vsel %vm224_vm0, 0.0, %v3502_v59  ;;  %v3505_v21 = vsel %vm224_vm0, 0.0, %v3504_v36  ;;  %v3539_v43 = vsel %vm224_vm0, 0.0, %v3538_v34  ;;  %v3527_v62 = vperm.slane %v3519_v44, %v6730_v5 }
 0x845   : > { %3555 = vrot.lane.b32.xlu1 %v3503_v57, %s6682_s27  ;;  %v3506_v55 = vrot.slane %v3499_v30, 4  ;;  %v3528_v58 = vrot.slane %v3517_v25, 4  ;;  %v3533_v63 = vperm.slane %v3517_v25, %v6730_v5 }
 0x846   : > { %v3540_v2 = vrot.slane %v3527_v62, 4 }
 0x847   : > { %v3507_v60 = vsel %vm224_vm0, 0.0, %v3506_v55  ;;  %v3529_v45 = vsel %vm224_vm0, 0.0, %v3528_v58  ;;  %v3542_v54 = vrot.slane %v3533_v63, 4 }
 0x848   : > { %v3541_v26 = vsel %vm224_vm0, 0.0, %v3540_v2  ;;  %v3537_v50 = vperm.slane %v3529_v45, %v6730_v5 }
 0x849   : > { %v3543_v53 = vsel %vm224_vm0, 0.0, %v3542_v54 }
 0x84a   : > { %3559 = vrot.lane.b32.xlu2 %v3495_v37, %s6678_s23  ;;  %3563 = vrot.lane.b32.xlu0 %v3505_v21, %s6679_s24  ;;  %v3544_v11 = vrot.slane %v3537_v50, 4 }
 0x84c   : > { %v3545_v24 = vsel %vm224_vm0, 0.0, %v3544_v11 }
 0x84d   : > { %3567 = vrot.lane.b32.xlu1 %v3499_v30, %s6680_s25 }
 0x852   : > { %3571 = vrot.lane.b32.xlu2 %v3507_v60, %s6681_s26  ;;  %3575 = vrot.lane.b32.xlu0 %v3539_v43, %s6677_s22 }
 0x855   : > { %3579 = vrot.lane.b32.xlu1 %v3527_v62, %s6676_s21 }
 0x85a   : > { %3583 = vrot.lane.b32.xlu2 %v3541_v26, %s6682_s27  ;;  %3587 = vrot.lane.b32.xlu0 %v3533_v63, %s6678_s23 }
 0x85d   : > { %3591 = vrot.lane.b32.xlu1 %v3543_v53, %s6679_s24 }
 0x862   : > { %3595 = vrot.lane.b32.xlu2 %v3537_v50, %s6680_s25  ;;  %3599 = vrot.lane.b32.xlu0 %v3545_v24, %s6681_s26 }
 0x865   : > { %3634 = vrot.lane.b32.xlu1 %v7618_v29, %s6684_s29 }
 0x86a   : > { %3636 = vrot.lane.b32.xlu2 %v7646_v51, %s6684_s29 }
 0x89c   : > { %v3548_v22 = vpop.permute.xlu2 %3547 }
 0x89d   : > { %v3602_v17 = vsel %vm356_vm1, %v8203_v48, %v3548_v22 }
 0x8a4   : > { %v3560_v41 = vpop.permute.xlu2 %3559 }
 0x8ac   : > { %v3572_v15 = vpop.permute.xlu2 %3571 }
 0x8b4   : > { %v3552_v28 = vpop.permute.xlu0 %3551  ;;  %v3584_v16 = vpop.permute.xlu2 %3583 }
 0x8b5   : > { %v3603_v39 = vsel %vm358_vm2, %v3602_v17, %v3552_v28 }
 0x8b7   : > { %v3556_v23 = vpop.permute.xlu1 %3555 }
 0x8b8   : > { %v3604_v42 = vsel %vm360_vm3, %v3603_v39, %v3556_v23 }
 0x8b9   : > { %v3605_v31 = vsel %vm362_vm4, %v3604_v42, %v3560_v41 }
 0x8bc   : > { %v3564_v27 = vpop.permute.xlu0 %3563  ;;  %v3596_v3 = vpop.permute.xlu2 %3595 }
 0x8bd   : > { %v3606_v7 = vsel %vm364_vm5, %v3605_v31, %v3564_v27 }
 0x8bf   : > { %v3568_v6 = vpop.permute.xlu1 %3567 }
 0x8c0   : > { %v3607_v48 = vsel %vm366_vm6, %v3606_v7, %v3568_v6 }
 0x8c1   : > { %v3608_v49 = vsel %vm368_vm7, %v3607_v48, %v3572_v15 }
 0x8c2   : > { %v3624_v36 = vmul.f32 %v3608_v49, %v3608_v49 }
 0x8c4   : > { %v3576_v47 = vpop.permute.xlu0 %3575  ;;  %v3637_v62 = vpop.permute.xlu2 %3636 }
 0x8c5   : > { %v3609_v29 = vsel %vm356_vm1, %v3523_v32, %v3576_v47  ;;  %v3683_v54 = vperm.slane %v3637_v62, %v6723_v4  ;;  %v3678_v11 = vrot.slane %v3637_v62, 4 }
 0x8c7   : > { %v3580_v40 = vpop.permute.xlu1 %3579  ;;  %v8286_v24 = vperm.slane %v3683_v54, %v6730_v5  ;;  %v3688_v41 = vrot.slane %v3683_v54, 4  ;;  %v3679_v23 = vsel %vm224_vm0, 0.0, %v3678_v11 }
 0x8c8   : > { %v3610_v51 = vsel %vm358_vm2, %v3609_v29, %v3580_v40  ;;  %v3687_v6 = vperm.slane %v3679_v23, %v6723_v4 }
 0x8c9   : > { %v3611_v13 = vsel %vm360_vm3, %v3610_v51, %v3584_v16  ;;  %v3708_v27 = vrot.slane %v8286_v24, 4  ;;  %v3689_v47 = vsel %vm224_vm0, 0.0, %v3688_v41 }
 0x8ca   : > { %v3697_v17 = vperm.slane %v3689_v47, %v6730_v5  ;;  %v3698_v39 = vrot.slane %v3687_v6, 4  ;;  %v3703_v42 = vperm.slane %v3687_v6, %v6730_v5 }
 0x8cb   : > { %v3709_v40 = vsel %vm224_vm0, 0.0, %v3708_v27 }
 0x8cc   : > { %v3588_v12 = vpop.permute.xlu0 %3587  ;;  %v3710_v29 = vrot.slane %v3697_v17, 4  ;;  %v3699_v51 = vsel %vm224_vm0, 0.0, %v3698_v39  ;;  %v3712_v31 = vrot.slane %v3703_v42, 4 }
 0x8cd   : > { %v3612_v20 = vsel %vm362_vm4, %v3611_v13, %v3588_v12  ;;  %v3707_v13 = vperm.slane %v3699_v51, %v6730_v5 }
 0x8ce   : > { %v3711_v12 = vsel %vm224_vm0, 0.0, %v3710_v29 }
 0x8cf   : > { %v3592_v35 = vpop.permute.xlu1 %3591  ;;  %v3714_v7 = vrot.slane %v3707_v13, 4 }
 0x8d0   : > { %v3613_v8 = vsel %vm364_vm5, %v3612_v20, %v3592_v35  ;;  %v3713_v35 = vsel %vm224_vm0, 0.0, %v3712_v31 }
 0x8d1   : > { %v3614_v9 = vsel %vm366_vm6, %v3613_v8, %v3596_v3  ;;  %v3715_v20 = vsel %vm224_vm0, 0.0, %v3714_v7 }
 0x8d4   : > { %v3600_v37 = vpop.permute.xlu0 %3599 }
 0x8d5   : > { %v3615_v59 = vsel %vm368_vm7, %v3614_v9, %v3600_v37 }
 0x8d6   : > { %v3618_v14 = vrot.slane %v3615_v59, 7  ;;  %v3625_v57 = vmul.f32 %v3615_v59, %v3615_v59 }
 0x8d7   : > { %v3635_v38 = vpop.permute.xlu1 %3634 }
 0x8d8   : > { %v3619_v56 = vsel %vm380_vm8, %v3608_v49, %v3618_v14  ;;  %v3628_v32 = vrot.slane %v3625_v57, 7  ;;  %v3640_v21 = vrot.slane %v3635_v38, 4  ;;  %v3645_v30 = vperm.slane %v3635_v38, %v6723_v4 }
 0x8d9   : > { %3622 = vst.msk [vmem:[#allocation2 + $0x23] ss:$8 sm:$0x3] %vm6986_vm9, %v3619_v56 }
 0x8da   : > { %v3629_v10 = vsel %vm380_vm8, %v3624_v36, %v3628_v32  ;;  %v3641_v19 = vsel %vm224_vm0, 0.0, %v3640_v21  ;;  %v3650_v34 = vrot.slane %v3645_v30, 4  ;;  %v8269_v55 = vperm.slane %v3645_v30, %v6730_v5 }
 0x8db   : > { %3632 = vst.msk [vmem:[#allocation2 + $0x67] ss:$8 sm:$0x3] %vm6986_vm9, %v3629_v10  ;;  %v3649_v25 = vperm.slane %v3641_v19, %v6723_v4 }
 0x8dc   : > { %v3651_v44 = vsel %vm224_vm0, 0.0, %v3650_v34  ;;  %v3670_v43 = vrot.slane %v8269_v55, 4 }
 0x8dd   : > { %v3659_v60 = vperm.slane %v3651_v44, %v6730_v5  ;;  %v3665_v63 = vperm.slane %v3649_v25, %v6730_v5  ;;  %v3660_v2 = vrot.slane %v3649_v25, 4 }
 0x8de   : > { %v3671_v58 = vsel %vm224_vm0, 0.0, %v3670_v43 }
 0x8df   : > { %3717 = vrot.lane.b32.xlu0 %v3671_v58, %s6677_s22  ;;  %3721 = vrot.lane.b32.xlu1 %v3659_v60, %s6676_s21  ;;  %v3672_v45 = vrot.slane %v3659_v60, 4  ;;  %v3674_v50 = vrot.slane %v3665_v63, 4  ;;  %v3661_v53 = vsel %vm224_vm0, 0.0, %v3660_v2 }
 0x8e0   : > { %v3669_v28 = vperm.slane %v3661_v53, %v6730_v5 }
 0x8e1   : > { %v3673_v26 = vsel %vm224_vm0, 0.0, %v3672_v45  ;;  %v3675_v22 = vsel %vm224_vm0, 0.0, %v3674_v50 }
 0x8e2   : > { %3725 = vrot.lane.b32.xlu2 %v3673_v26, %s6682_s27  ;;  %v3676_v15 = vrot.slane %v3669_v28, 4 }
 0x8e4   : > { %v3677_v16 = vsel %vm224_vm0, 0.0, %v3676_v15 }
 0x8e7   : > { %3729 = vrot.lane.b32.xlu0 %v3665_v63, %s6678_s23  ;;  %3733 = vrot.lane.b32.xlu1 %v3675_v22, %s6679_s24 }
 0x8ea   : > { %3737 = vrot.lane.b32.xlu2 %v3669_v28, %s6680_s25 }
 0x8ef   : > { %3745 = vrot.lane.b32.xlu1 %v3709_v40, %s6677_s22  ;;  %3741 = vrot.lane.b32.xlu0 %v3677_v16, %s6681_s26 }
 0x8f2   : > { %3749 = vrot.lane.b32.xlu2 %v3697_v17, %s6676_s21 }
 0x8f7   : > { %3757 = vrot.lane.b32.xlu1 %v3703_v42, %s6678_s23  ;;  %3753 = vrot.lane.b32.xlu0 %v3711_v12, %s6682_s27 }
 0x8fa   : > { %3761 = vrot.lane.b32.xlu2 %v3713_v35, %s6679_s24 }
 0x8ff   : > { %3769 = vrot.lane.b32.xlu1 %v3715_v20, %s6681_s26  ;;  %3765 = vrot.lane.b32.xlu0 %v3707_v13, %s6680_s25 }
 0x902   : > { %3804 = vrot.lane.b32.xlu2 %v7677_v61, %s6684_s29 }
 0x907   : > { %3806 = vrot.lane.b32.xlu0 %v7707_v1, %s6684_s29 }
 0x93c   : > { %v3726_v48 = vpop.permute.xlu2 %3725 }
 0x944   : > { %v3738_v8 = vpop.permute.xlu2 %3737 }
 0x94c   : > { %v3750_v3 = vpop.permute.xlu2 %3749 }
 0x951   : > { %v3718_v49 = vpop.permute.xlu0 %3717  ;;  %v3722_v37 = vpop.permute.xlu1 %3721 }
 0x952   : > { %v3772_v62 = vsel %vm356_vm1, %v8269_v55, %v3718_v49 }
 0x953   : > { %v3773_v45 = vsel %vm358_vm2, %v3772_v62, %v3722_v37 }
 0x954   : > { %v3762_v9 = vpop.permute.xlu2 %3761  ;;  %v3774_v55 = vsel %vm360_vm3, %v3773_v45, %v3726_v48 }
 0x959   : > { %v3730_v59 = vpop.permute.xlu0 %3729  ;;  %v3734_v14 = vpop.permute.xlu1 %3733 }
 0x95c   : > { %v3805_v57 = vpop.permute.xlu2 %3804 }
 0x95d   : > { %v3810_v36 = vrot.slane %v3805_v57, 4  ;;  %v3815_v38 = vperm.slane %v3805_v57, %v6723_v4 }
 0x95f   : > { %v3811_v56 = vsel %vm224_vm0, 0.0, %v3810_v36  ;;  %v3820_v32 = vrot.slane %v3815_v38, 4  ;;  %v8321_v61 = vperm.slane %v3815_v38, %v6730_v5 }
 0x960   : > { %v3819_v1 = vperm.slane %v3811_v56, %v6723_v4 }
 0x961   : > { %v3821_v21 = vsel %vm224_vm0, 0.0, %v3820_v32  ;;  %v3746_v30 = vpop.permute.xlu1 %3745  ;;  %v3742_v10 = vpop.permute.xlu0 %3741  ;;  %v3840_v19 = vrot.slane %v8321_v61, 4 }
 0x962   : > { %v3829_v34 = vperm.slane %v3821_v21, %v6730_v5  ;;  %v3835_v44 = vperm.slane %v3819_v1, %v6730_v5  ;;  %v3830_v43 = vrot.slane %v3819_v1, 4  ;;  %v3779_v2 = vsel %vm356_vm1, %v8286_v24, %v3746_v30 }
 0x963   : > { %v3841_v25 = vsel %vm224_vm0, 0.0, %v3840_v19  ;;  %v3780_v11 = vsel %vm358_vm2, %v3779_v2, %v3750_v3  ;;  %v3775_v24 = vsel %vm362_vm4, %v3774_v55, %v3730_v59 }
 0x964   : > { %3887 = vrot.lane.b32.xlu1 %v3841_v25, %s6677_s22  ;;  %v3842_v60 = vrot.slane %v3829_v34, 4  ;;  %3891 = vrot.lane.b32.xlu2 %v3829_v34, %s6676_s21  ;;  %v3844_v58 = vrot.slane %v3835_v44, 4  ;;  %v3831_v54 = vsel %vm224_vm0, 0.0, %v3830_v43  ;;  %v3776_v27 = vsel %vm364_vm5, %v3775_v24, %v3734_v14 }
 0x965   : > { %v3839_v28 = vperm.slane %v3831_v54, %v6730_v5  ;;  %v3777_v16 = vsel %vm366_vm6, %v3776_v27, %v3738_v8 }
 0x966   : > { %v3843_v63 = vsel %vm224_vm0, 0.0, %v3842_v60  ;;  %v3845_v53 = vsel %vm224_vm0, 0.0, %v3844_v58  ;;  %v3778_v39 = vsel %vm368_vm7, %v3777_v16, %v3742_v10 }
 0x967   : > { %3895 = vrot.lane.b32.xlu0 %v3843_v63, %s6682_s27  ;;  %v3846_v41 = vrot.slane %v3839_v28, 4  ;;  %v3794_v12 = vmul.f32 %v3778_v39, %v3778_v39 }
 0x969   : > { %v3758_v26 = vpop.permute.xlu1 %3757  ;;  %v3754_v50 = vpop.permute.xlu0 %3753  ;;  %v3847_v40 = vsel %vm224_vm0, 0.0, %v3846_v41 }
 0x96a   : > { %v3781_v22 = vsel %vm360_vm3, %v3780_v11, %v3754_v50 }
 0x96b   : > { %v3782_v23 = vsel %vm362_vm4, %v3781_v22, %v3758_v26 }
 0x96c   : > { %3899 = vrot.lane.b32.xlu1 %v3835_v44, %s6678_s23  ;;  %3903 = vrot.lane.b32.xlu2 %v3845_v53, %s6679_s24  ;;  %v3783_v6 = vsel %vm364_vm5, %v3782_v23, %v3762_v9 }
 0x96f   : > { %3907 = vrot.lane.b32.xlu0 %v3839_v28, %s6680_s25 }
 0x971   : > { %v3770_v15 = vpop.permute.xlu1 %3769  ;;  %v3766_v47 = vpop.permute.xlu0 %3765 }
 0x972   : > { %v3784_v17 = vsel %vm366_vm6, %v3783_v6, %v3766_v47 }
 0x973   : > { %v3785_v29 = vsel %vm368_vm7, %v3784_v17, %v3770_v15 }
 0x974   : > { %v3788_v42 = vrot.slane %v3785_v29, 7  ;;  %v3795_v51 = vmul.f32 %v3785_v29, %v3785_v29  ;;  %3911 = vrot.lane.b32.xlu1 %v3847_v40, %s6681_s26 }
 0x976   : > { %v3789_v31 = vsel %vm380_vm8, %v3778_v39, %v3788_v42  ;;  %v3798_v13 = vrot.slane %v3795_v51, 7 }
 0x977   : > { %3792 = vst.msk [vmem:[#allocation2 + $0x24] ss:$8 sm:$0x3] %vm6986_vm9, %v3789_v31 }
 0x978   : > { %v3799_v35 = vsel %vm380_vm8, %v3794_v12, %v3798_v13 }
 0x979   : > { %3802 = vst.msk [vmem:[#allocation2 + $0x70] ss:$8 sm:$0x3] %vm6986_vm9, %v3799_v35  ;;  %v3807_v7 = vpop.permute.xlu0 %3806 }
 0x97a   : > { %v3848_v20 = vrot.slane %v3807_v7, 4  ;;  %v3853_v48 = vperm.slane %v3807_v7, %v6723_v4 }
 0x97c   : > { %v3849_v8 = vsel %vm224_vm0, 0.0, %v3848_v20  ;;  %v3858_v3 = vrot.slane %v3853_v48, 4  ;;  %v3863_v49 = vperm.slane %v3853_v48, %v6730_v5 }
 0x97d   : > { %v3857_v37 = vperm.slane %v3849_v8, %v6723_v4 }
 0x97e   : > { %v3859_v9 = vsel %vm224_vm0, 0.0, %v3858_v3  ;;  %v3878_v59 = vrot.slane %v3863_v49, 4 }
 0x97f   : > { %v3867_v14 = vperm.slane %v3859_v9, %v6730_v5  ;;  %v3873_v36 = vperm.slane %v3857_v37, %v6730_v5  ;;  %v3868_v38 = vrot.slane %v3857_v37, 4 }
 0x980   : > { %v3879_v57 = vsel %vm224_vm0, 0.0, %v3878_v59 }
 0x981   : > { %3915 = vrot.lane.b32.xlu2 %v3879_v57, %s6677_s22  ;;  %3919 = vrot.lane.b32.xlu0 %v3867_v14, %s6676_s21  ;;  %v3880_v56 = vrot.slane %v3867_v14, 4  ;;  %v3882_v1 = vrot.slane %v3873_v36, 4  ;;  %v3869_v21 = vsel %vm224_vm0, 0.0, %v3868_v38 }
 0x982   : > { %v3877_v10 = vperm.slane %v3869_v21, %v6730_v5 }
 0x983   : > { %v3881_v32 = vsel %vm224_vm0, 0.0, %v3880_v56  ;;  %v3883_v30 = vsel %vm224_vm0, 0.0, %v3882_v1 }
 0x984   : > { %3923 = vrot.lane.b32.xlu1 %v3881_v32, %s6682_s27  ;;  %v3884_v19 = vrot.slane %v3877_v10, 4 }
 0x986   : > { %v3885_v34 = vsel %vm224_vm0, 0.0, %v3884_v19 }
 0x989   : > { %3927 = vrot.lane.b32.xlu2 %v3873_v36, %s6678_s23  ;;  %3931 = vrot.lane.b32.xlu0 %v3883_v30, %s6679_s24 }
 0x98c   : > { %3935 = vrot.lane.b32.xlu1 %v3877_v10, %s6680_s25 }
 0x991   : > { %3974 = vrot.lane.b32.xlu0 %v7737_v46, %s6684_s29  ;;  %3939 = vrot.lane.b32.xlu2 %v3885_v34, %s6681_s26 }
 0x994   : > { %3976 = vrot.lane.b32.xlu1 %v7771_v0, %s6684_s29 }
 0x9be   : > { %v3892_v25 = vpop.permute.xlu2 %3891 }
 0x9c6   : > { %v3904_v60 = vpop.permute.xlu2 %3903 }
 0x9d6   : > { %v3888_v44 = vpop.permute.xlu1 %3887 }
 0x9d7   : > { %v3942_v45 = vsel %vm356_vm1, %v8321_v61, %v3888_v44 }
 0x9d8   : > { %v3943_v26 = vsel %vm358_vm2, %v3942_v45, %v3892_v25 }
 0x9d9   : > { %v3896_v43 = vpop.permute.xlu0 %3895 }
 0x9da   : > { %v3944_v53 = vsel %vm360_vm3, %v3943_v26, %v3896_v43 }
 0x9db   : > { %v3916_v58 = vpop.permute.xlu2 %3915 }
 0x9dc   : > { %v3949_v0 = vsel %vm356_vm1, %v3863_v49, %v3916_v58 }
 0x9de   : > { %v3900_v62 = vpop.permute.xlu1 %3899 }
 0x9df   : > { %v3945_v11 = vsel %vm362_vm4, %v3944_v53, %v3900_v62 }
 0x9e0   : > { %v3946_v24 = vsel %vm364_vm5, %v3945_v11, %v3904_v60 }
 0x9e1   : > { %v3908_v63 = vpop.permute.xlu0 %3907 }
 0x9e2   : > { %v3947_v27 = vsel %vm366_vm6, %v3946_v24, %v3908_v63 }
 0x9e3   : > { %v3928_v46 = vpop.permute.xlu2 %3927 }
 0x9e6   : > { %v3912_v2 = vpop.permute.xlu1 %3911 }
 0x9e7   : > { %v3948_v47 = vsel %vm368_vm7, %v3947_v27, %v3912_v2 }
 0x9e8   : > { %v3964_v39 = vmul.f32 %v3948_v47, %v3948_v47 }
 0x9eb   : > { %v3940_v15 = vpop.permute.xlu2 %3939 }
 0x9f3   : > { %v3920_v54 = vpop.permute.xlu0 %3919 }
 0x9f4   : > { %v3950_v55 = vsel %vm358_vm2, %v3949_v0, %v3920_v54 }
 0x9f6   : > { %v3924_v50 = vpop.permute.xlu1 %3923 }
 0x9f7   : > { %v3951_v22 = vsel %vm360_vm3, %v3950_v55, %v3924_v50 }
 0x9f8   : > { %v3952_v61 = vsel %vm362_vm4, %v3951_v22, %v3928_v46 }
 0x9fb   : > { %v3932_v28 = vpop.permute.xlu0 %3931 }
 0x9fc   : > { %v3953_v41 = vsel %vm364_vm5, %v3952_v61, %v3932_v28 }
 0x9fe   : > { %v3936_v23 = vpop.permute.xlu1 %3935 }
 0x9ff   : > { %v3954_v6 = vsel %vm366_vm6, %v3953_v41, %v3936_v23 }
 0xa00   : > { %v3955_v40 = vsel %vm368_vm7, %v3954_v6, %v3940_v15 }
 0xa01   : > { %v3958_v16 = vrot.slane %v3955_v40, 7  ;;  %v3965_v17 = vmul.f32 %v3955_v40, %v3955_v40 }
 0xa03   : > { %v3959_v29 = vsel %vm380_vm8, %v3948_v47, %v3958_v16  ;;  %v3968_v42 = vrot.slane %v3965_v17, 7  ;;  %v3975_v51 = vpop.permute.xlu0 %3974 }
 0xa04   : > { %3962 = vst.msk [vmem:[#allocation2 + $0x25] ss:$8 sm:$0x3] %vm6986_vm9, %v3959_v29  ;;  %v3980_v12 = vrot.slane %v3975_v51, 4  ;;  %v3985_v31 = vperm.slane %v3975_v51, %v6723_v4 }
 0xa05   : > { %v3969_v13 = vsel %vm380_vm8, %v3964_v39, %v3968_v42 }
 0xa06   : > { %3972 = vst.msk [vmem:[#allocation2 + $0x71] ss:$8 sm:$0x3] %vm6986_vm9, %v3969_v13  ;;  %v3981_v35 = vsel %vm224_vm0, 0.0, %v3980_v12  ;;  %v3990_v7 = vrot.slane %v3985_v31, 4  ;;  %v8411_v20 = vperm.slane %v3985_v31, %v6730_v5  ;;  %v3977_v37 = vpop.permute.xlu1 %3976 }
 0xa07   : > { %v3989_v48 = vperm.slane %v3981_v35, %v6723_v4  ;;  %v4023_v36 = vperm.slane %v3977_v37, %v6723_v4  ;;  %v4018_v1 = vrot.slane %v3977_v37, 4 }
 0xa08   : > { %v3991_v8 = vsel %vm224_vm0, 0.0, %v3990_v7  ;;  %v4010_v3 = vrot.slane %v8411_v20, 4 }
 0xa09   : > { %v3999_v49 = vperm.slane %v3991_v8, %v6730_v5  ;;  %v4005_v59 = vperm.slane %v3989_v48, %v6730_v5  ;;  %v4000_v14 = vrot.slane %v3989_v48, 4  ;;  %v4033_v21 = vperm.slane %v4023_v36, %v6730_v5 }
 0xa0a   : > { %v4011_v9 = vsel %vm224_vm0, 0.0, %v4010_v3  ;;  %v4028_v19 = vrot.slane %v4023_v36, 4  ;;  %v4019_v34 = vsel %vm224_vm0, 0.0, %v4018_v1 }
 0xa0b   : > { %4057 = vrot.lane.b32.xlu2 %v4011_v9, %s6677_s22  ;;  %4061 = vrot.lane.b32.xlu0 %v3999_v49, %s6676_s21  ;;  %v4012_v57 = vrot.slane %v3999_v49, 4  ;;  %v4014_v56 = vrot.slane %v4005_v59, 4  ;;  %v4001_v32 = vsel %vm224_vm0, 0.0, %v4000_v14  ;;  %v4048_v25 = vrot.slane %v4033_v21, 4 }
 0xa0c   : > { %v4009_v10 = vperm.slane %v4001_v32, %v6730_v5  ;;  %v4027_v43 = vperm.slane %v4019_v34, %v6723_v4  ;;  %v4029_v60 = vsel %vm224_vm0, 0.0, %v4028_v19 }
 0xa0d   : > { %v4013_v38 = vsel %vm224_vm0, 0.0, %v4012_v57  ;;  %v4015_v30 = vsel %vm224_vm0, 0.0, %v4014_v56  ;;  %v4049_v62 = vsel %vm224_vm0, 0.0, %v4048_v25  ;;  %v4037_v63 = vperm.slane %v4029_v60, %v6730_v5 }
 0xa0e   : > { %4065 = vrot.lane.b32.xlu1 %v4013_v38, %s6682_s27  ;;  %v4016_v44 = vrot.slane %v4009_v10, 4  ;;  %v4038_v2 = vrot.slane %v4027_v43, 4  ;;  %v4043_v45 = vperm.slane %v4027_v43, %v6730_v5 }
 0xa0f   : > { %v4050_v54 = vrot.slane %v4037_v63, 4 }
 0xa10   : > { %v4017_v58 = vsel %vm224_vm0, 0.0, %v4016_v44  ;;  %v4039_v26 = vsel %vm224_vm0, 0.0, %v4038_v2  ;;  %v4052_v46 = vrot.slane %v4043_v45, 4 }
 0xa11   : > { %v4051_v50 = vsel %vm224_vm0, 0.0, %v4050_v54  ;;  %v4047_v53 = vperm.slane %v4039_v26, %v6730_v5 }
 0xa12   : > { %v4053_v0 = vsel %vm224_vm0, 0.0, %v4052_v46 }
 0xa13   : > { %4069 = vrot.lane.b32.xlu2 %v4005_v59, %s6678_s23  ;;  %4073 = vrot.lane.b32.xlu0 %v4015_v30, %s6679_s24  ;;  %v4054_v11 = vrot.slane %v4047_v53, 4 }
 0xa15   : > { %v4055_v55 = vsel %vm224_vm0, 0.0, %v4054_v11 }
 0xa16   : > { %4077 = vrot.lane.b32.xlu1 %v4009_v10, %s6680_s25 }
 0xa1b   : > { %4085 = vrot.lane.b32.xlu0 %v4049_v62, %s6677_s22  ;;  %4081 = vrot.lane.b32.xlu2 %v4017_v58, %s6681_s26 }
 0xa1e   : > { %4089 = vrot.lane.b32.xlu1 %v4037_v63, %s6676_s21 }
 0xa23   : > { %4097 = vrot.lane.b32.xlu0 %v4043_v45, %s6678_s23  ;;  %4093 = vrot.lane.b32.xlu2 %v4051_v50, %s6682_s27 }
 0xa26   : > { %4101 = vrot.lane.b32.xlu1 %v4053_v0, %s6679_s24 }
 0xa2b   : > { %4109 = vrot.lane.b32.xlu0 %v4055_v55, %s6681_s26  ;;  %4105 = vrot.lane.b32.xlu2 %v4047_v53, %s6680_s25 }
 0xa2e   : > { %4144 = vrot.lane.b32.xlu1 %v7802_v18, %s6684_s29 }
 0xa33   : > { %4146 = vrot.lane.b32.xlu2 %v7849_v33, %s6684_s29 }
 0xa65   : > { %v4058_v22 = vpop.permute.xlu2 %4057 }
 0xa66   : > { %v4112_v40 = vsel %vm356_vm1, %v8411_v20, %v4058_v22 }
 0xa6d   : > { %v4070_v24 = vpop.permute.xlu2 %4069 }
 0xa75   : > { %v4082_v23 = vpop.permute.xlu2 %4081 }
 0xa7d   : > { %v4062_v28 = vpop.permute.xlu0 %4061  ;;  %v4094_v47 = vpop.permute.xlu2 %4093 }
 0xa7e   : > { %v4113_v16 = vsel %vm358_vm2, %v4112_v40, %v4062_v28 }
 0xa80   : > { %v4066_v61 = vpop.permute.xlu1 %4065 }
 0xa81   : > { %v4114_v17 = vsel %vm360_vm3, %v4113_v16, %v4066_v61  ;;  %v6654_v61 = vld [vmem:[%s6728_s20] sm:$0xff] }
 0xa82   : > { %v4115_v29 = vsel %vm362_vm4, %v4114_v17, %v4070_v24 }
 0xa85   : > { %v4074_v41 = vpop.permute.xlu0 %4073  ;;  %v4106_v7 = vpop.permute.xlu2 %4105 }
 0xa86   : > { %v4116_v12 = vsel %vm364_vm5, %v4115_v29, %v4074_v41  ;;  %v4315_v41 = vrot.slane %v6654_v61, 2 }
 0xa88   : > { %v4078_v27 = vpop.permute.xlu1 %4077 }
 0xa89   : > { %v4117_v13 = vsel %vm366_vm6, %v4116_v12, %v4078_v27 }
 0xa8a   : > { %v4118_v20 = vsel %vm368_vm7, %v4117_v13, %v4082_v23  ;;  %v6655_v23 = vld [vmem:[%s6728_s20 + $0x8] sm:$0xff] }
 0xa8b   : > { %v4134_v9 = vmul.f32 %v4118_v20, %v4118_v20  ;;  %v4316_v27 = vrot.slane %v6655_v23, 2 }
 0xa8d   : > { %v4086_v15 = vpop.permute.xlu0 %4085  ;;  %v4147_v25 = vpop.permute.xlu2 %4146  ;;  %v8513_v16 = vsel %vm4314_vm11, %v4315_v41, %v4316_v27 }
 0xa8e   : > { %v4119_v18 = vsel %vm356_vm1, %v4033_v21, %v4086_v15  ;;  %v4193_v58 = vperm.slane %v4147_v25, %v6723_v4  ;;  %v4188_v54 = vrot.slane %v4147_v25, 4 }
 0xa90   : > { %v4090_v6 = vpop.permute.xlu1 %4089  ;;  %v8494_v26 = vperm.slane %v4193_v58, %v6730_v5  ;;  %v4198_v53 = vrot.slane %v4193_v58, 4  ;;  %v4189_v0 = vsel %vm224_vm0, 0.0, %v4188_v54  ;;  %v6657_v54 = vld [vmem:[%s6728_s20 + $0x18] sm:$0xff] }
 0xa91   : > { %v4120_v33 = vsel %vm358_vm2, %v4119_v18, %v4090_v6  ;;  %v4197_v22 = vperm.slane %v4189_v0, %v6723_v4 }
 0xa92   : > { %v4121_v42 = vsel %vm360_vm3, %v4120_v33, %v4094_v47  ;;  %v4218_v11 = vrot.slane %v8494_v26, 4  ;;  %v4199_v28 = vsel %vm224_vm0, 0.0, %v4198_v53  ;;  %v4327_v33 = vperm.slane %v8513_v16, %v6723_v4 }
 0xa93   : > { %v4207_v6 = vperm.slane %v4199_v28, %v6730_v5  ;;  %v4208_v47 = vrot.slane %v4197_v22, 4  ;;  %v4213_v18 = vperm.slane %v4197_v22, %v6730_v5 }
 0xa94   : > { %v4219_v24 = vsel %vm224_vm0, 0.0, %v4218_v11  ;;  %v8525_v12 = vperm.slane %v4327_v33, %v6730_v5 }
 0xa95   : > { %v4098_v39 = vpop.permute.xlu0 %4097  ;;  %v4220_v40 = vrot.slane %v4207_v6, 4  ;;  %v4209_v17 = vsel %vm224_vm0, 0.0, %v4208_v47  ;;  %v4222_v29 = vrot.slane %v4213_v18, 4 }
 0xa96   : > { %v4122_v31 = vsel %vm362_vm4, %v4121_v42, %v4098_v39  ;;  %v4332_v42 = vrot.slane %v4327_v33, 4 }
 0xa97   : > { %v4221_v39 = vsel %vm224_vm0, 0.0, %v4220_v40  ;;  %v4223_v13 = vsel %vm224_vm0, 0.0, %v4222_v29 }
 0xa98   : > { %v4102_v51 = vpop.permute.xlu1 %4101 }
 0xa99   : > { %v4123_v35 = vsel %vm364_vm5, %v4122_v31, %v4102_v51  ;;  %v4217_v51 = vperm.slane %v4209_v17, %v6730_v5  ;;  %v4322_v31 = vrot.slane %v8513_v16, 4 }
 0xa9a   : > { %v4124_v8 = vsel %vm366_vm6, %v4123_v35, %v4106_v7  ;;  %v4333_v35 = vsel %vm224_vm0, 0.0, %v4332_v42 }
 0xa9b   : > { %v4224_v7 = vrot.slane %v4217_v51, 4 }
 0xa9d   : > { %v4110_v48 = vpop.permute.xlu0 %4109 }
 0xa9e   : > { %v4125_v3 = vsel %vm368_vm7, %v4124_v8, %v4110_v48  ;;  %v4323_v48 = vsel %vm224_vm0, 0.0, %v4322_v31  ;;  %v4341_v8 = vperm.slane %v4333_v35, %v6730_v5  ;;  %v6659_v31 = vld [vmem:[%s6728_s20 + $0x28] sm:$0x3] }
 0xa9f   : > { %v4128_v49 = vrot.slane %v4125_v3, 7  ;;  %v4135_v37 = vmul.f32 %v4125_v3, %v4125_v3  ;;  %v6656_v3 = vld [vmem:[%s6728_s20 + $0x10] sm:$0x3] }
 0xaa0   : > { %v4145_v59 = vpop.permute.xlu1 %4144 }
 0xaa1   : > { %v4129_v14 = vsel %vm380_vm8, %v4118_v20, %v4128_v49  ;;  %v4138_v57 = vrot.slane %v4135_v37, 7  ;;  %v4150_v36 = vrot.slane %v4145_v59, 4  ;;  %v4155_v38 = vperm.slane %v4145_v59, %v6723_v4 }
 0xaa2   : > { %4132 = vst.msk [vmem:[#allocation2 + $0x26] ss:$8 sm:$0x3] %vm6986_vm9, %v4129_v14  ;;  %v4352_v20 = vrot.slane %v8525_v12, 4  ;;  %v4318_v49 = vrot.slane %v6656_v3, 2  ;;  %v4225_v37 = vsel %vm224_vm0, 0.0, %v4224_v7 }
 0xaa3   : > { %v4139_v56 = vsel %vm380_vm8, %v4134_v9, %v4138_v57  ;;  %v4151_v32 = vsel %vm224_vm0, 0.0, %v4150_v36  ;;  %v4160_v1 = vrot.slane %v4155_v38, 4  ;;  %v8477_v21 = vperm.slane %v4155_v38, %v6730_v5 }
 0xaa4   : > { %4142 = vst.msk [vmem:[#allocation2 + $0x72] ss:$8 sm:$0x3] %vm6986_vm9, %v4139_v56  ;;  %v4159_v30 = vperm.slane %v4151_v32, %v6723_v4  ;;  %v4331_v9 = vperm.slane %v4323_v48, %v6723_v4  ;;  %v4353_v59 = vsel %vm224_vm0, 0.0, %v4352_v20  ;;  %v4354_v14 = vrot.slane %v4341_v8, 4 }
 0xaa5   : > { %v4161_v10 = vsel %vm224_vm0, 0.0, %v4160_v1  ;;  %v4180_v19 = vrot.slane %v8477_v21, 4  ;;  %v8541_v36 = vsel %vm4314_vm11, %v4316_v27, %v4318_v49 }
 0xaa6   : > { %v4169_v34 = vperm.slane %v4161_v10, %v6730_v5  ;;  %v4175_v43 = vperm.slane %v4159_v30, %v6730_v5  ;;  %v4170_v60 = vrot.slane %v4159_v30, 4  ;;  %v4342_v57 = vrot.slane %v4331_v9, 4 }
 0xaa7   : > { %v4181_v44 = vsel %vm224_vm0, 0.0, %v4180_v19  ;;  %v4355_v38 = vsel %vm224_vm0, 0.0, %v4354_v14  ;;  %v4365_v32 = vperm.slane %v8541_v36, %v6723_v4  ;;  %v4347_v1 = vperm.slane %v4331_v9, %v6730_v5 }
 0xaa8   : > { %4227 = vrot.lane.b32.xlu0 %v4181_v44, %s6677_s22  ;;  %4231 = vrot.lane.b32.xlu1 %v4169_v34, %s6676_s21  ;;  %v4182_v62 = vrot.slane %v4169_v34, 4  ;;  %v4184_v2 = vrot.slane %v4175_v43, 4  ;;  %v4171_v45 = vsel %vm224_vm0, 0.0, %v4170_v60  ;;  %v4343_v56 = vsel %vm224_vm0, 0.0, %v4342_v57 }
 0xaa9   : > { %v4179_v50 = vperm.slane %v4171_v45, %v6730_v5  ;;  %v4351_v30 = vperm.slane %v4343_v56, %v6730_v5  ;;  %v4356_v10 = vrot.slane %v4347_v1, 4  ;;  %v4370_v19 = vrot.slane %v4365_v32, 4 }
 0xaaa   : > { %v4183_v63 = vsel %vm224_vm0, 0.0, %v4182_v62  ;;  %v4185_v46 = vsel %vm224_vm0, 0.0, %v4184_v2  ;;  %v4360_v34 = vrot.slane %v8541_v36, 4 }
 0xaab   : > { %4235 = vrot.lane.b32.xlu2 %v4183_v63, %s6682_s27  ;;  %v4186_v55 = vrot.slane %v4179_v50, 4  ;;  %v4358_v25 = vrot.slane %v4351_v30, 4  ;;  %v4357_v44 = vsel %vm224_vm0, 0.0, %v4356_v10  ;;  %v4371_v60 = vsel %vm224_vm0, 0.0, %v4370_v19 }
 0xaac   : > { %v4361_v62 = vsel %vm224_vm0, 0.0, %v4360_v34  ;;  %v4379_v63 = vperm.slane %v4371_v60, %v6730_v5  ;;  %v6661_v60 = vld [vmem:[%s6728_s20 + $0x38] sm:$0xff] }
 0xaad   : > { %v4187_v15 = vsel %vm224_vm0, 0.0, %v4186_v55  ;;  %v4359_v58 = vsel %vm224_vm0, 0.0, %v4358_v25  ;;  %v4369_v45 = vperm.slane %v4361_v62, %v6723_v4  ;;  %v6660_v25 = vld [vmem:[%s6728_s20 + $0x30] sm:$0xff]  ;;  %v4658_v62 = vrot.slane %v6661_v60, 2 }
 0xaae   : > { %v4392_v0 = vrot.slane %v4379_v63, 4 }
 0xaaf   : > { %v4385_v55 = vperm.slane %v4369_v45, %v6730_v5 }
 0xab0   : > { %4239 = vrot.lane.b32.xlu0 %v4175_v43, %s6678_s23  ;;  %4243 = vrot.lane.b32.xlu1 %v4185_v46, %s6679_s24  ;;  %v8556_v43 = vperm.slane %v4365_v32, %v6730_v5  ;;  %v4486_v46 = vrot.slane %v6657_v54, 2  ;;  %v4393_v28 = vsel %vm224_vm0, 0.0, %v4392_v0 }
 0xab1   : > { %v4394_v61 = vrot.slane %v4385_v55, 4 }
 0xab2   : > { %v4390_v2 = vrot.slane %v8556_v43, 4 }
 0xab3   : > { %4247 = vrot.lane.b32.xlu2 %v4179_v50, %s6680_s25  ;;  %v6658_v50 = vld [vmem:[%s6728_s20 + $0x20] sm:$0xff]  ;;  %v4395_v27 = vsel %vm224_vm0, 0.0, %v4394_v61 }
 0xab4   : > { %v4487_v53 = vrot.slane %v6658_v50, 2  ;;  %v4391_v11 = vsel %vm224_vm0, 0.0, %v4390_v2 }
 0xab6   : > { %v8572_v22 = vsel %vm4314_vm11, %v4486_v46, %v4487_v53 }
 0xab7   : > { %v4498_v41 = vperm.slane %v8572_v22, %v6723_v4 }
 0xab8   : > { %4251 = vrot.lane.b32.xlu0 %v4187_v15, %s6681_s26  ;;  %4255 = vrot.lane.b32.xlu1 %v4219_v24, %s6677_s22  ;;  %v4380_v24 = vrot.slane %v4369_v45, 4 }
 0xab9   : > { %v8583_v15 = vperm.slane %v4498_v41, %v6730_v5  ;;  %v4503_v40 = vrot.slane %v4498_v41, 4 }
 0xaba   : > { %v4381_v23 = vsel %vm224_vm0, 0.0, %v4380_v24 }
 0xabb   : > { %4259 = vrot.lane.b32.xlu2 %v4207_v6, %s6676_s21  ;;  %v4493_v6 = vrot.slane %v8572_v22, 4  ;;  %v4389_v47 = vperm.slane %v4381_v23, %v6730_v5  ;;  %v4523_v17 = vrot.slane %v8583_v15, 4 }
 0xabd   : > { %v4494_v33 = vsel %vm224_vm0, 0.0, %v4493_v6 }
 0xabe   : > { %v4502_v29 = vperm.slane %v4494_v33, %v6723_v4 }
 0xac0   : > { %4263 = vrot.lane.b32.xlu0 %v4221_v39, %s6682_s27  ;;  %4267 = vrot.lane.b32.xlu1 %v4213_v18, %s6678_s23  ;;  %v4396_v18 = vrot.slane %v4389_v47, 4  ;;  %v4504_v39 = vsel %vm224_vm0, 0.0, %v4503_v40  ;;  %v4513_v35 = vrot.slane %v4502_v29, 4  ;;  %v4518_v20 = vperm.slane %v4502_v29, %v6730_v5  ;;  %v6662_v29 = vld [vmem:[%s6728_s20 + $0x40] sm:$0x3] }
 0xac1   : > { %v4512_v7 = vperm.slane %v4504_v39, %v6730_v5 }
 0xac2   : > { %v4397_v42 = vsel %vm224_vm0, 0.0, %v4396_v18  ;;  %v4514_v3 = vsel %vm224_vm0, 0.0, %v4513_v35  ;;  %v4527_v49 = vrot.slane %v4518_v20, 4 }
 0xac3   : > { %4271 = vrot.lane.b32.xlu2 %v4223_v13, %s6679_s24  ;;  %v4489_v13 = vrot.slane %v6659_v31, 2  ;;  %v4525_v48 = vrot.slane %v4512_v7, 4 }
 0xac4   : > { %v4528_v57 = vsel %vm224_vm0, 0.0, %v4527_v49 }
 0xac5   : > { %v4526_v9 = vsel %vm224_vm0, 0.0, %v4525_v48 }
 0xac8   : > { %4275 = vrot.lane.b32.xlu0 %v4217_v51, %s6680_s25  ;;  %4279 = vrot.lane.b32.xlu1 %v4225_v37, %s6681_s26  ;;  %v4524_v51 = vsel %vm224_vm0, 0.0, %v4523_v17 }
 0xacb   : > { %4399 = vrot.lane.b32.xlu2 %v4353_v59, %s6677_s22  ;;  %v4522_v59 = vperm.slane %v4514_v3, %v6730_v5 }
 0xacd   : > { %v4529_v32 = vrot.slane %v4522_v59, 4 }
 0xacf   : > { %v4530_v19 = vsel %vm224_vm0, 0.0, %v4529_v32 }
 0xad0   : > { %4403 = vrot.lane.b32.xlu0 %v4341_v8, %s6676_s21  ;;  %4407 = vrot.lane.b32.xlu1 %v4355_v38, %s6682_s27  ;;  %v8602_v8 = vsel %vm4314_vm11, %v4487_v53, %v4489_v13 }
 0xad1   : > { %v4536_v37 = vperm.slane %v8602_v8, %v6723_v4  ;;  %v4531_v56 = vrot.slane %v8602_v8, 4 }
 0xad3   : > { %4411 = vrot.lane.b32.xlu2 %v4347_v1, %s6678_s23  ;;  %v4541_v14 = vrot.slane %v4536_v37, 4  ;;  %v8614_v38 = vperm.slane %v4536_v37, %v6730_v5  ;;  %v4532_v10 = vsel %vm224_vm0, 0.0, %v4531_v56 }
 0xad5   : > { %v4542_v1 = vsel %vm224_vm0, 0.0, %v4541_v14 }
 0xad6   : > { %v4550_v34 = vperm.slane %v4542_v1, %v6730_v5 }
 0xad8   : > { %4415 = vrot.lane.b32.xlu0 %v4357_v44, %s6679_s24  ;;  %4419 = vrot.lane.b32.xlu1 %v4351_v30, %s6680_s25  ;;  %v4561_v30 = vrot.slane %v8614_v38, 4  ;;  %v4657_v44 = vrot.slane %v6660_v25, 2  ;;  %v4563_v2 = vrot.slane %v4550_v34, 4 }
 0xada   : > { %v8630_v54 = vsel %vm4314_vm11, %v4657_v44, %v4658_v62  ;;  %v4564_v50 = vsel %vm224_vm0, 0.0, %v4563_v2  ;;  %v6664_v2 = vld [vmem:[%s6728_s20 + $0x50] sm:$0xff] }
 0xadb   : > { %4423 = vrot.lane.b32.xlu2 %v4359_v58, %s6681_s26  ;;  %v4540_v58 = vperm.slane %v4532_v10, %v6723_v4  ;;  %v4669_v0 = vperm.slane %v8630_v54, %v6723_v4  ;;  %v4664_v61 = vrot.slane %v8630_v54, 4 }
 0xadd   : > { %v4551_v45 = vrot.slane %v4540_v58, 4  ;;  %v4674_v24 = vrot.slane %v4669_v0, 4  ;;  %v8649_v6 = vperm.slane %v4669_v0, %v6730_v5  ;;  %v4665_v40 = vsel %vm224_vm0, 0.0, %v4664_v61 }
 0xade   : > { %v4673_v39 = vperm.slane %v4665_v40, %v6723_v4 }
 0xadf   : > { %v4552_v53 = vsel %vm224_vm0, 0.0, %v4551_v45  ;;  %v4694_v33 = vrot.slane %v8649_v6, 4  ;;  %v4829_v45 = vrot.slane %v6664_v2, 2 }
 0xae0   : > { %4427 = vrot.lane.b32.xlu0 %v4391_v11, %s6677_s22  ;;  %4431 = vrot.lane.b32.xlu1 %v4379_v63, %s6676_s21  ;;  %v4562_v63 = vsel %vm224_vm0, 0.0, %v4561_v30  ;;  %v4556_v11 = vperm.slane %v4540_v58, %v6730_v5  ;;  %v4689_v35 = vperm.slane %v4673_v39, %v6730_v5  ;;  %v4684_v48 = vrot.slane %v4673_v39, 4  ;;  %v6663_v58 = vld [vmem:[%s6728_s20 + $0x48] sm:$0xff] }
 0xae1   : > { %v4695_v13 = vsel %vm224_vm0, 0.0, %v4694_v33 }
 0xae2   : > { %v4698_v3 = vrot.slane %v4689_v35, 4 }
 0xae3   : > { %4435 = vrot.lane.b32.xlu2 %v4393_v28, %s6682_s27  ;;  %v4565_v28 = vrot.slane %v4556_v11, 4 }
 0xae8   : > { %4439 = vrot.lane.b32.xlu0 %v4385_v55, %s6678_s23  ;;  %4443 = vrot.lane.b32.xlu1 %v4395_v27, %s6679_s24  ;;  %v4560_v55 = vperm.slane %v4552_v53, %v6730_v5  ;;  %v4566_v27 = vsel %vm224_vm0, 0.0, %v4565_v28 }
 0xaea   : > { %v4567_v41 = vrot.slane %v4560_v55, 4 }
 0xaeb   : > { %4447 = vrot.lane.b32.xlu2 %v4389_v47, %s6680_s25  ;;  %v4675_v47 = vsel %vm224_vm0, 0.0, %v4674_v24 }
 0xaec   : > { %v4568_v18 = vsel %vm224_vm0, 0.0, %v4567_v41  ;;  %v4683_v17 = vperm.slane %v4675_v47, %v6730_v5 }
 0xaf0   : > { %4451 = vrot.lane.b32.xlu0 %v4397_v42, %s6681_s26  ;;  %4570 = vrot.lane.b32.xlu1 %v4524_v51, %s6677_s22  ;;  %v4660_v42 = vrot.slane %v6662_v29, 2  ;;  %v4696_v51 = vrot.slane %v4683_v17, 4 }
 0xaf3   : > { %4574 = vrot.lane.b32.xlu2 %v4512_v7, %s6676_s21  ;;  %v8666_v7 = vsel %vm4314_vm11, %v4658_v62, %v4660_v42 }
 0xaf4   : > { %v4707_v49 = vperm.slane %v8666_v7, %v6723_v4  ;;  %v4702_v32 = vrot.slane %v8666_v7, 4 }
 0xaf6   : > { %v8679_v56 = vperm.slane %v4707_v49, %v6730_v5  ;;  %v4712_v30 = vrot.slane %v4707_v49, 4 }
 0xaf8   : > { %4578 = vrot.lane.b32.xlu0 %v4526_v9, %s6682_s27  ;;  %4582 = vrot.lane.b32.xlu1 %v4518_v20, %s6678_s23  ;;  %v4697_v20 = vsel %vm224_vm0, 0.0, %v4696_v51  ;;  %v4713_v60 = vsel %vm224_vm0, 0.0, %v4712_v30 }
 0xafb   : > { %4586 = vrot.lane.b32.xlu2 %v4528_v57, %s6679_s24  ;;  %v4699_v57 = vsel %vm224_vm0, 0.0, %v4698_v3 }
 0xb00   : > { %4590 = vrot.lane.b32.xlu0 %v4522_v59, %s6680_s25  ;;  %4594 = vrot.lane.b32.xlu1 %v4530_v19, %s6681_s26  ;;  %v4685_v59 = vsel %vm224_vm0, 0.0, %v4684_v48  ;;  %v4732_v19 = vrot.slane %v8679_v56, 4 }
 0xb01   : > { %v4693_v1 = vperm.slane %v4685_v59, %v6730_v5 }
 0xb02   : > { %v4733_v0 = vsel %vm224_vm0, 0.0, %v4732_v19 }
 0xb03   : > { %4598 = vrot.lane.b32.xlu2 %v4562_v63, %s6677_s22  ;;  %v4700_v10 = vrot.slane %v4693_v1, 4  ;;  %v4828_v63 = vrot.slane %v6663_v58, 2 }
 0xb05   : > { %v8633_v46 = vpop.permute.xlu2 %4235  ;;  %v4701_v53 = vsel %vm224_vm0, 0.0, %v4700_v10  ;;  %v8701_v24 = vsel %vm4314_vm11, %v4828_v63, %v4829_v45 }
 0xb06   : > { %v4840_v40 = vperm.slane %v8701_v24, %v6723_v4 }
 0xb08   : > { %4602 = vrot.lane.b32.xlu0 %v4550_v34, %s6676_s21  ;;  %4606 = vrot.lane.b32.xlu1 %v4564_v50, %s6682_s27  ;;  %v4703_v34 = vsel %vm224_vm0, 0.0, %v4702_v32  ;;  %v4845_v29 = vrot.slane %v4840_v40, 4  ;;  %v8714_v51 = vperm.slane %v4840_v40, %v6730_v5 }
 0xb09   : > { %v4711_v62 = vperm.slane %v4703_v34, %v6723_v4 }
 0xb0b   : > { %4610 = vrot.lane.b32.xlu2 %v4556_v11, %s6678_s23  ;;  %v4722_v11 = vrot.slane %v4711_v62, 4  ;;  %v4727_v28 = vperm.slane %v4711_v62, %v6730_v5 }
 0xb0d   : > { %v8645_v23 = vpop.permute.xlu2 %4247  ;;  %v4723_v47 = vsel %vm224_vm0, 0.0, %v4722_v11 }
 0xb0e   : > { %v4731_v39 = vperm.slane %v4723_v47, %v6730_v5 }
 0xb10   : > { %4614 = vrot.lane.b32.xlu0 %v4566_v27, %s6679_s24  ;;  %4618 = vrot.lane.b32.xlu1 %v4560_v55, %s6680_s25  ;;  %v4721_v55 = vperm.slane %v4713_v60, %v6730_v5  ;;  %v4738_v3 = vrot.slane %v4731_v39, 4 }
 0xb12   : > { %v4734_v61 = vrot.slane %v4721_v55, 4  ;;  %v4739_v19 = vsel %vm224_vm0, 0.0, %v4738_v3 }
 0xb13   : > { %4622 = vrot.lane.b32.xlu2 %v4568_v18, %s6681_s26  ;;  %v4736_v18 = vrot.slane %v4727_v28, 4 }
 0xb14   : > { %v4735_v33 = vsel %vm224_vm0, 0.0, %v4734_v61 }
 0xb15   : > { %v8661_v31 = vpop.permute.xlu2 %4259 }
 0xb18   : > { %4741 = vrot.lane.b32.xlu0 %v4695_v13, %s6677_s22  ;;  %4745 = vrot.lane.b32.xlu1 %v4683_v17, %s6676_s21 }
 0xb1a   : > { %v4228_v37 = vpop.permute.xlu0 %4227  ;;  %v4232_v9 = vpop.permute.xlu1 %4231 }
 0xb1b   : > { %4749 = vrot.lane.b32.xlu2 %v4697_v20, %s6682_s27  ;;  %v4282_v42 = vsel %vm356_vm1, %v8477_v21, %v4228_v37  ;;  %v4835_v20 = vrot.slane %v8701_v24, 4  ;;  %v4846_v21 = vsel %vm224_vm0, 0.0, %v4845_v29 }
 0xb1c   : > { %v4283_v48 = vsel %vm358_vm2, %v4282_v42, %v4232_v9 }
 0xb1d   : > { %v8675_v14 = vpop.permute.xlu2 %4271  ;;  %v4836_v9 = vsel %vm224_vm0, 0.0, %v4835_v20 }
 0xb1e   : > { %v4844_v62 = vperm.slane %v4836_v9, %v6723_v4 }
 0xb20   : > { %4753 = vrot.lane.b32.xlu0 %v4689_v35, %s6678_s23  ;;  %4757 = vrot.lane.b32.xlu1 %v4699_v57, %s6679_s24  ;;  %v4737_v35 = vsel %vm224_vm0, 0.0, %v4736_v18  ;;  %v4284_v57 = vsel %vm360_vm3, %v4283_v48, %v8633_v46  ;;  %v4860_v29 = vperm.slane %v4844_v62, %v6730_v5 }
 0xb22   : > { %v4240_v25 = vpop.permute.xlu0 %4239  ;;  %v4244_v44 = vpop.permute.xlu1 %4243 }
 0xb23   : > { %4761 = vrot.lane.b32.xlu2 %v4693_v1, %s6680_s25  ;;  %v4854_v1 = vperm.slane %v4846_v21, %v6730_v5  ;;  %v4285_v30 = vsel %vm362_vm4, %v4284_v57, %v4240_v25  ;;  %v4855_v25 = vrot.slane %v4844_v62, 4 }
 0xb24   : > { %v4286_v46 = vsel %vm364_vm5, %v4285_v30, %v4244_v44 }
 0xb25   : > { %v8692_v50 = vpop.permute.xlu2 %4399  ;;  %v4867_v63 = vrot.slane %v4854_v1, 4  ;;  %v4856_v18 = vsel %vm224_vm0, 0.0, %v4855_v25 }
 0xb26   : > { %v4454_v25 = vsel %vm356_vm1, %v8525_v12, %v8692_v50 }
 0xb28   : > { %4765 = vrot.lane.b32.xlu0 %v4701_v53, %s6681_s26  ;;  %4769 = vrot.lane.b32.xlu1 %v4733_v0, %s6677_s22 }
 0xb2a   : > { %v4252_v41 = vpop.permute.xlu0 %4251  ;;  %v4256_v27 = vpop.permute.xlu1 %4255 }
 0xb2b   : > { %4773 = vrot.lane.b32.xlu2 %v4721_v55, %s6676_s21  ;;  %v4289_v13 = vsel %vm356_vm1, %v8494_v26, %v4256_v27  ;;  %v4865_v26 = vrot.slane %v8714_v51, 4  ;;  %v4287_v55 = vsel %vm366_vm6, %v4286_v46, %v8645_v23  ;;  %v4868_v27 = vsel %vm224_vm0, 0.0, %v4867_v63 }
 0xb2c   : > { %v4290_v59 = vsel %vm358_vm2, %v4289_v13, %v8661_v31  ;;  %v6665_v31 = vld [vmem:[%s6728_s20 + $0x58] sm:$0x3]  ;;  %v4869_v13 = vrot.slane %v4860_v29, 4 }
 0xb2d   : > { %v8707_v17 = vpop.permute.xlu2 %4411  ;;  %v4831_v34 = vrot.slane %v6665_v31, 2  ;;  %v4866_v58 = vsel %vm224_vm0, 0.0, %v4865_v26 }
 0xb2f   : > { %v8747_v11 = vsel %vm4314_vm11, %v4829_v45, %v4831_v34 }
 0xb30   : > { %4777 = vrot.lane.b32.xlu0 %v4735_v33, %s6682_s27  ;;  %4781 = vrot.lane.b32.xlu1 %v4727_v28, %s6678_s23  ;;  %v4288_v28 = vsel %vm368_vm7, %v4287_v55, %v4252_v41  ;;  %v4878_v45 = vperm.slane %v8747_v11, %v6723_v4  ;;  %v4864_v41 = vperm.slane %v4856_v18, %v6730_v5 }
 0xb31   : > { %v4304_v33 = vmul.f32 %v4288_v28, %v4288_v28 }
 0xb32   : > { %v4264_v49 = vpop.permute.xlu0 %4263  ;;  %v4268_v37 = vpop.permute.xlu1 %4267  ;;  %v4871_v3 = vrot.slane %v4864_v41, 4 }
 0xb33   : > { %4785 = vrot.lane.b32.xlu2 %v4737_v35, %s6679_s24  ;;  %v4291_v32 = vsel %vm360_vm3, %v4290_v59, %v4264_v49  ;;  %v4883_v35 = vrot.slane %v4878_v45, 4  ;;  %v4870_v49 = vsel %vm224_vm0, 0.0, %v4869_v13 }
 0xb34   : > { %v4292_v60 = vsel %vm362_vm4, %v4291_v32, %v4268_v37  ;;  %v8772_v37 = vperm.slane %v4878_v45, %v6730_v5  ;;  %v4872_v26 = vsel %vm224_vm0, 0.0, %v4871_v3 }
 0xb35   : > { %v8734_v10 = vpop.permute.xlu2 %4423  ;;  %v4293_v53 = vsel %vm364_vm5, %v4292_v60, %v8675_v14  ;;  %v4884_v59 = vsel %vm224_vm0, 0.0, %v4883_v35 }
 0xb36   : > { %v4892_v57 = vperm.slane %v4884_v59, %v6730_v5  ;;  %v4903_v32 = vrot.slane %v8772_v37, 4 }
 0xb38   : > { %4789 = vrot.lane.b32.xlu0 %v4731_v39, %s6680_s25  ;;  %4793 = vrot.lane.b32.xlu1 %v4739_v19, %s6681_s26  ;;  %v4905_v19 = vrot.slane %v4892_v57, 4  ;;  %v4904_v34 = vsel %vm224_vm0, 0.0, %v4903_v32 }
 0xb3a   : > { %v4276_v2 = vpop.permute.xlu0 %4275  ;;  %v4280_v0 = vpop.permute.xlu1 %4279  ;;  %v4906_v62 = vsel %vm224_vm0, 0.0, %v4905_v19 }
 0xb3b   : > { %v4294_v44 = vsel %vm366_vm6, %v4293_v53, %v4276_v2  ;;  %4912 = vrot.lane.b32.xlu2 %v4866_v58, %s6677_s22 }
 0xb3c   : > { %v4295_v61 = vsel %vm368_vm7, %v4294_v44, %v4280_v0 }
 0xb3d   : > { %v4298_v47 = vrot.slane %v4295_v61, 7  ;;  %v4305_v40 = vmul.f32 %v4295_v61, %v4295_v61  ;;  %v4436_v14 = vpop.permute.xlu2 %4435 }
 0xb3f   : > { %v4299_v23 = vsel %vm380_vm8, %v4288_v28, %v4298_v47  ;;  %v4308_v39 = vrot.slane %v4305_v40, 7 }
 0xb40   : > { %4302 = vst.msk [vmem:[#allocation2 + $0x27] ss:$8 sm:$0x3] %vm6986_vm9, %v4299_v23  ;;  %4916 = vrot.lane.b32.xlu0 %v4854_v1, %s6676_s21  ;;  %4920 = vrot.lane.b32.xlu1 %v4868_v27, %s6682_s27  ;;  %v4873_v1 = vrot.slane %v8747_v11, 4 }
 0xb41   : > { %v4309_v42 = vsel %vm380_vm8, %v4304_v33, %v4308_v39 }
 0xb42   : > { %4312 = vst.msk [vmem:[#allocation2 + $0x73] ss:$8 sm:$0x3] %vm6986_vm9, %v4309_v42  ;;  %v4404_v20 = vpop.permute.xlu0 %4403  ;;  %v4408_v48 = vpop.permute.xlu1 %4407  ;;  %v4874_v60 = vsel %vm224_vm0, 0.0, %v4873_v1 }
 0xb43   : > { %4924 = vrot.lane.b32.xlu2 %v4860_v29, %s6678_s23  ;;  %v8788_v46 = vperm.slane %v4874_v60, %v6723_v4  ;;  %v4455_v55 = vsel %vm358_vm2, %v4454_v25, %v4404_v20 }
 0xb44   : > { %v4456_v12 = vsel %vm360_vm3, %v4455_v55, %v4408_v48 }
 0xb45   : > { %v4448_v21 = vpop.permute.xlu2 %4447  ;;  %v8796_v2 = vperm.slane %v8788_v46, %v6730_v5 }
 0xb48   : > { %4928 = vrot.lane.b32.xlu0 %v4870_v49, %s6679_s24  ;;  %4932 = vrot.lane.b32.xlu1 %v4864_v41, %s6680_s25 }
 0xb4a   : > { %v4416_v9 = vpop.permute.xlu0 %4415  ;;  %v4420_v30 = vpop.permute.xlu1 %4419 }
 0xb4b   : > { %4936 = vrot.lane.b32.xlu2 %v4872_v26, %s6681_s26 }
 0xb4d   : > { %v4575_v31 = vpop.permute.xlu2 %4574 }
 0xb50   : > { %4940 = vrot.lane.b32.xlu0 %v4904_v34, %s6677_s22  ;;  %4944 = vrot.lane.b32.xlu1 %v4892_v57, %s6676_s21 }
 0xb52   : > { %v4428_v58 = vpop.permute.xlu0 %4427  ;;  %v4432_v63 = vpop.permute.xlu1 %4431 }
 0xb53   : > { %4948 = vrot.lane.b32.xlu2 %v4906_v62, %s6682_s27  ;;  %v4461_v53 = vsel %vm356_vm1, %v8556_v43, %v4428_v58  ;;  %v4457_v43 = vsel %vm362_vm4, %v4456_v12, %v8707_v17 }
 0xb54   : > { %v4462_v44 = vsel %vm358_vm2, %v4461_v53, %v4432_v63  ;;  %v4458_v47 = vsel %vm364_vm5, %v4457_v43, %v4416_v9 }
 0xb55   : > { %v4587_v0 = vpop.permute.xlu2 %4586  ;;  %v4463_v61 = vsel %vm360_vm3, %v4462_v44, %v4436_v14  ;;  %v4459_v45 = vsel %vm366_vm6, %v4458_v47, %v4420_v30 }
 0xb56   : > { %v4460_v17 = vsel %vm368_vm7, %v4459_v45, %v8734_v10 }
 0xb57   : > { %v4476_v13 = vmul.f32 %v4460_v17, %v4460_v17 }
 0xb58   : > { %4952 = vrot.lane.b32.xlu0 %v8796_v2, %s6678_s23  ;;  %5001 = vrot.lane.b32.xlu1 %v8541_v36, %s6683_s28 }
 0xb5a   : > { %v4440_v50 = vpop.permute.xlu0 %4439  ;;  %v4444_v28 = vpop.permute.xlu1 %4443 }
 0xb5b   : > { %5171 = vrot.lane.b32.xlu2 %v8602_v8, %s6683_s28  ;;  %v4464_v27 = vsel %vm362_vm4, %v4463_v61, %v4440_v50 }
 0xb5c   : > { %v4465_v18 = vsel %vm364_vm5, %v4464_v27, %v4444_v28 }
 0xb5d   : > { %v4599_v40 = vpop.permute.xlu2 %4598  ;;  %v4466_v33 = vsel %vm366_vm6, %v4465_v18, %v4448_v21 }
 0xb60   : > { %5341 = vrot.lane.b32.xlu0 %v8666_v7, %s6683_s28  ;;  %5511 = vrot.lane.b32.xlu1 %v8747_v11, %s6683_s28 }
 0xb62   : > { %v4452_v14 = vpop.permute.xlu0 %4451  ;;  %v4571_v23 = vpop.permute.xlu1 %4570 }
 0xb63   : > { %v4467_v39 = vsel %vm368_vm7, %v4466_v33, %v4452_v14  ;;  %5681 = vrot.lane.b32.xlu2 %v8541_v36, %s6684_s29 }
 0xb64   : > { %v4470_v29 = vrot.slane %v4467_v39, 7  ;;  %v4477_v41 = vmul.f32 %v4467_v39, %v4467_v39 }
 0xb65   : > { %v4611_v42 = vpop.permute.xlu2 %4610 }
 0xb66   : > { %v4471_v35 = vsel %vm380_vm8, %v4460_v17, %v4470_v29  ;;  %v4480_v20 = vrot.slane %v4477_v41, 7 }
 0xb67   : > { %4474 = vst.msk [vmem:[#allocation2 + $0x30] ss:$8 sm:$0x3] %vm6986_vm9, %v4471_v35 }
 0xb68   : > { %v4481_v48 = vsel %vm380_vm8, %v4476_v13, %v4480_v20  ;;  %5851 = vrot.lane.b32.xlu0 %v8602_v8, %s6684_s29  ;;  %6021 = vrot.lane.b32.xlu1 %v8666_v7, %s6684_s29  ;;  %v4625_v7 = vsel %vm356_vm1, %v8583_v15, %v4571_v23 }
 0xb69   : > { %4484 = vst.msk [vmem:[#allocation2 + $0x74] ss:$8 sm:$0x3] %vm6986_vm9, %v4481_v48  ;;  %v4626_v59 = vsel %vm358_vm2, %v4625_v7, %v4575_v31 }
 0xb6a   : > { %v4579_v36 = vpop.permute.xlu0 %4578  ;;  %v4583_v10 = vpop.permute.xlu1 %4582 }
 0xb6b   : > { %6191 = vrot.lane.b32.xlu2 %v8747_v11, %s6684_s29  ;;  %v4632_v11 = vsel %vm356_vm1, %v8614_v38, %v4599_v40  ;;  %v4627_v32 = vsel %vm360_vm3, %v4626_v59, %v4579_v36 }
 0xb6c   : > { %v4628_v9 = vsel %vm362_vm4, %v4627_v32, %v4583_v10 }
 0xb6d   : > { %v4623_v3 = vpop.permute.xlu2 %4622 }
 0xb70   : > { %4999 = vrot.lane.b32.xlu0 %v8513_v16, %s6683_s28  ;;  %5169 = vrot.lane.b32.xlu1 %v8572_v22, %s6683_s28 }
 0xb72   : > { %v4591_v21 = vpop.permute.xlu0 %4590  ;;  %v4595_v8 = vpop.permute.xlu1 %4594 }
 0xb73   : > { %5339 = vrot.lane.b32.xlu2 %v8630_v54, %s6683_s28 }
 0xb75   : > { %v4750_v49 = vpop.permute.xlu2 %4749 }
 0xb78   : > { %5509 = vrot.lane.b32.xlu0 %v8701_v24, %s6683_s28  ;;  %5679 = vrot.lane.b32.xlu1 %v8513_v16, %s6684_s29  ;;  %v4629_v16 = vsel %vm364_vm5, %v4628_v9, %v4587_v0 }
 0xb79   : > { %v4630_v38 = vsel %vm366_vm6, %v4629_v16, %v4591_v21 }
 0xb7a   : > { %v4603_v26 = vpop.permute.xlu0 %4602  ;;  %v4607_v57 = vpop.permute.xlu1 %4606  ;;  %v4631_v62 = vsel %vm368_vm7, %v4630_v38, %v4595_v8 }
 0xb7b   : > { %5849 = vrot.lane.b32.xlu2 %v8572_v22, %s6684_s29  ;;  %v4633_v15 = vsel %vm358_vm2, %v4632_v11, %v4603_v26 }
 0xb7c   : > { %v4634_v30 = vsel %vm360_vm3, %v4633_v15, %v4607_v57 }
 0xb7d   : > { %v4762_v1 = vpop.permute.xlu2 %4761  ;;  %v4635_v22 = vsel %vm362_vm4, %v4634_v30, %v4611_v42 }
 0xb80   : > { %6019 = vrot.lane.b32.xlu0 %v8630_v54, %s6684_s29  ;;  %6189 = vrot.lane.b32.xlu1 %v8701_v24, %s6684_s29  ;;  %v4647_v24 = vmul.f32 %v4631_v62, %v4631_v62 }
 0xb82   : > { %v4615_v19 = vpop.permute.xlu0 %4614  ;;  %v4619_v31 = vpop.permute.xlu1 %4618 }
 0xb83   : > { %v4636_v34 = vsel %vm364_vm5, %v4635_v22, %v4615_v19 }
 0xb84   : > { %v4637_v60 = vsel %vm366_vm6, %v4636_v34, %v4619_v31 }
 0xb85   : > { %v4638_v58 = vsel %vm368_vm7, %v4637_v60, %v4623_v3  ;;  %v4774_v54 = vpop.permute.xlu2 %4773 }
 0xb86   : > { %v4641_v63 = vrot.slane %v4638_v58, 7  ;;  %v4648_v25 = vmul.f32 %v4638_v58, %v4638_v58 }
 0xb88   : > { %v4642_v53 = vsel %vm380_vm8, %v4631_v62, %v4641_v63  ;;  %v4651_v0 = vrot.slane %v4648_v25, 7 }
 0xb89   : > { %4645 = vst.msk [vmem:[#allocation2 + $0x31] ss:$8 sm:$0x3] %vm6986_vm9, %v4642_v53 }
 0xb8a   : > { %v4652_v55 = vsel %vm380_vm8, %v4647_v24, %v4651_v0  ;;  %v4742_v44 = vpop.permute.xlu0 %4741  ;;  %v4746_v12 = vpop.permute.xlu1 %4745 }
 0xb8b   : > { %4655 = vst.msk [vmem:[#allocation2 + $0x75] ss:$8 sm:$0x3] %vm6986_vm9, %v4652_v55  ;;  %v4796_v18 = vsel %vm356_vm1, %v8649_v6, %v4742_v44 }
 0xb8c   : > { %v4797_v14 = vsel %vm358_vm2, %v4796_v18, %v4746_v12 }
 0xb8d   : > { %v4786_v50 = vpop.permute.xlu2 %4785  ;;  %v4798_v39 = vsel %vm360_vm3, %v4797_v14, %v4750_v49 }
 0xb92   : > { %v4754_v28 = vpop.permute.xlu0 %4753  ;;  %v4758_v61 = vpop.permute.xlu1 %4757 }
 0xb93   : > { %v4799_v41 = vsel %vm362_vm4, %v4798_v39, %v4754_v28 }
 0xb94   : > { %v4800_v6 = vsel %vm364_vm5, %v4799_v41, %v4758_v61 }
 0xb95   : > { %v4913_v43 = vpop.permute.xlu2 %4912  ;;  %v4801_v48 = vsel %vm366_vm6, %v4800_v6, %v4762_v1 }
 0xb96   : > { %v4967_v26 = vsel %vm356_vm1, %v8714_v51, %v4913_v43 }
 0xb9a   : > { %v4766_v27 = vpop.permute.xlu0 %4765  ;;  %v4770_v47 = vpop.permute.xlu1 %4769 }
 0xb9b   : > { %v4803_v45 = vsel %vm356_vm1, %v8679_v56, %v4770_v47  ;;  %v4802_v10 = vsel %vm368_vm7, %v4801_v48, %v4766_v27 }
 0xb9c   : > { %v4804_v33 = vsel %vm358_vm2, %v4803_v45, %v4774_v54  ;;  %v4818_v49 = vmul.f32 %v4802_v10, %v4802_v10 }
 0xb9d   : > { %v4925_v40 = vpop.permute.xlu2 %4924 }
 0xba2   : > { %v4778_v23 = vpop.permute.xlu0 %4777  ;;  %v4782_v17 = vpop.permute.xlu1 %4781 }
 0xba3   : > { %v4805_v29 = vsel %vm360_vm3, %v4804_v33, %v4778_v23 }
 0xba4   : > { %v4806_v13 = vsel %vm362_vm4, %v4805_v29, %v4782_v17 }
 0xba5   : > { %v4937_v42 = vpop.permute.xlu2 %4936  ;;  %v4807_v56 = vsel %vm364_vm5, %v4806_v13, %v4786_v50 }
 0xbaa   : > { %v4790_v35 = vpop.permute.xlu0 %4789  ;;  %v4794_v20 = vpop.permute.xlu1 %4793 }
 0xbab   : > { %v4808_v36 = vsel %vm366_vm6, %v4807_v56, %v4790_v35 }
 0xbac   : > { %v4809_v3 = vsel %vm368_vm7, %v4808_v36, %v4794_v20 }
 0xbad   : > { %v4812_v21 = vrot.slane %v4809_v3, 7  ;;  %v4819_v8 = vmul.f32 %v4809_v3, %v4809_v3  ;;  %v4949_v7 = vpop.permute.xlu2 %4948 }
 0xbaf   : > { %v4813_v59 = vsel %vm380_vm8, %v4802_v10, %v4812_v21  ;;  %v4822_v11 = vrot.slane %v4819_v8, 7 }
 0xbb0   : > { %4816 = vst.msk [vmem:[#allocation2 + $0x32] ss:$8 sm:$0x3] %vm6986_vm9, %v4813_v59 }
 0xbb1   : > { %v4823_v57 = vsel %vm380_vm8, %v4818_v49, %v4822_v11 }
 0xbb2   : > { %4826 = vst.msk [vmem:[#allocation2 + $0x76] ss:$8 sm:$0x3] %vm6986_vm9, %v4823_v57  ;;  %v4917_v32 = vpop.permute.xlu0 %4916  ;;  %v4921_v15 = vpop.permute.xlu1 %4920 }
 0xbb3   : > { %v4968_v1 = vsel %vm358_vm2, %v4967_v26, %v4917_v32 }
 0xbb4   : > { %v4969_v9 = vsel %vm360_vm3, %v4968_v1, %v4921_v15 }
 0xbb5   : > { %v8902_v30 = vpop.permute.xlu2 %5171  ;;  %v4970_v16 = vsel %vm362_vm4, %v4969_v9, %v4925_v40 }
 0xbb6   : > { %v8907_v51 = vperm.slane %v8902_v30, %v6723_v4 }
 0xbb8   : > { %v8911_v38 = vperm.slane %v8907_v51, %v6730_v5  ;;  %v5223_v9 = vrot.slane %v8907_v51, 4 }
 0xbba   : > { %v4929_v19 = vpop.permute.xlu0 %4928  ;;  %v4933_v22 = vpop.permute.xlu1 %4932  ;;  %v5243_v31 = vrot.slane %v8911_v38, 4 }
 0xbbb   : > { %v4971_v34 = vsel %vm364_vm5, %v4970_v16, %v4929_v19 }
 0xbbc   : > { %v4972_v60 = vsel %vm366_vm6, %v4971_v34, %v4933_v22  ;;  %v5244_v62 = vsel %vm224_vm0, 0.0, %v5243_v31 }
 0xbbd   : > { %v8918_v58 = vsel %vm368_vm7, %v4972_v60, %v4937_v42  ;;  %5280 = vrot.lane.b32.xlu0 %v5244_v62, %s6677_s22  ;;  %v8921_v54 = vpop.permute.xlu2 %5681  ;;  %v5224_v60 = vsel %vm224_vm0, 0.0, %v5223_v9 }
 0xbbe   : > { %9997 = vst [vmem:[#allocation4_spill] sm:$0xff] %v8918_v58  ;;  %v8925_v63 = vperm.slane %v8921_v54, %v6723_v4 }
 0xbc0   : > { %v8929_v25 = vperm.slane %v8925_v63, %v6730_v5 }
 0xbc2   : > { %v4941_v24 = vpop.permute.xlu0 %4940  ;;  %v4945_v53 = vpop.permute.xlu1 %4944  ;;  %v5753_v0 = vrot.slane %v8929_v25, 4 }
 0xbc3   : > { %v4974_v55 = vsel %vm356_vm1, %v8772_v37, %v4941_v24 }
 0xbc4   : > { %v4975_v44 = vsel %vm358_vm2, %v4974_v55, %v4945_v53  ;;  %v5754_v12 = vsel %vm224_vm0, 0.0, %v5753_v0  ;;  %v5232_v0 = vperm.slane %v5224_v60, %v6730_v5 }
 0xbc5   : > { %5790 = vrot.lane.b32.xlu0 %v5754_v12, %s6677_s22  ;;  %v8937_v50 = vpop.permute.xlu2 %6191  ;;  %v4976_v28 = vsel %vm360_vm3, %v4975_v44, %v4949_v7 }
 0xbc6   : > { %v8942_v61 = vperm.slane %v8937_v50, %v6723_v4  ;;  %v6233_v58 = vrot.slane %v8937_v50, 4 }
 0xbc8   : > { %v8946_v43 = vperm.slane %v8942_v61, %v6730_v5 }
 0xbca   : > { %v4953_v27 = vpop.permute.xlu0 %4952  ;;  %v8948_v37 = vpop.permute.xlu1 %5001  ;;  %v6263_v47 = vrot.slane %v8946_v43, 4 }
 0xbcb   : > { %v8952_v40 = vsel %vm362_vm4, %v4976_v28, %v4953_v27  ;;  %v5048_v18 = vperm.slane %v8948_v37, %v6723_v4  ;;  %v5733_v27 = vrot.slane %v8925_v63, 4 }
 0xbcc   : > { %9998 = vst [vmem:[#allocation5_spill] sm:$0xff] %v8952_v40  ;;  %v6264_v45 = vsel %vm224_vm0, 0.0, %v6263_v47  ;;  %v5245_v47 = vrot.slane %v5232_v0, 4 }
 0xbcd   : > { %6300 = vrot.lane.b32.xlu0 %v6264_v45, %s6677_s22  ;;  %v8959_v14 = vperm.slane %v5048_v18, %v6730_v5  ;;  %v5053_v26 = vrot.slane %v5048_v18, 4 }
 0xbcf   : > { %v5073_v33 = vrot.slane %v8959_v14, 4  ;;  %v5054_v22 = vsel %vm224_vm0, 0.0, %v5053_v26 }
 0xbd0   : > { %v5062_v62 = vperm.slane %v5054_v22, %v6730_v5 }
 0xbd1   : > { %v5074_v17 = vsel %vm224_vm0, 0.0, %v5073_v33 }
 0xbd2   : > { %v8962_v23 = vpop.permute.xlu0 %5341  ;;  %v8965_v39 = vpop.permute.xlu1 %5511  ;;  %5110 = vrot.lane.b32.xlu2 %v5074_v17, %s6677_s22  ;;  %v5734_v17 = vsel %vm224_vm0, 0.0, %v5733_v27 }
 0xbd3   : > { %v5388_v29 = vperm.slane %v8962_v23, %v6723_v4  ;;  %v5558_v41 = vperm.slane %v8965_v39, %v6723_v4  ;;  %v5742_v63 = vperm.slane %v5734_v17, %v6730_v5 }
 0xbd5   : > { %v5393_v42 = vrot.slane %v5388_v29, 4  ;;  %v8973_v13 = vperm.slane %v5388_v29, %v6730_v5  ;;  %v8976_v6 = vperm.slane %v5558_v41, %v6730_v5  ;;  %v5563_v24 = vrot.slane %v5558_v41, 4 }
 0xbd6   : > { %v5246_v29 = vsel %vm224_vm0, 0.0, %v5245_v47  ;;  %v5755_v9 = vrot.slane %v5742_v63, 4 }
 0xbd7   : > { %v5394_v35 = vsel %vm224_vm0, 0.0, %v5393_v42  ;;  %v5413_v56 = vrot.slane %v8973_v13, 4  ;;  %v5583_v10 = vrot.slane %v8976_v6, 4  ;;  %v5564_v12 = vsel %vm224_vm0, 0.0, %v5563_v24 }
 0xbd8   : > { %v8981_v20 = vperm.slane %v5394_v35, %v6730_v5  ;;  %v5572_v18 = vperm.slane %v5564_v12, %v6730_v5  ;;  %v5756_v24 = vsel %vm224_vm0, 0.0, %v5755_v9 }
 0xbd9   : > { %v5414_v48 = vsel %vm224_vm0, 0.0, %v5413_v56  ;;  %v5584_v7 = vsel %vm224_vm0, 0.0, %v5583_v10  ;;  %v6243_v56 = vrot.slane %v8942_v61, 4 }
 0xbda   : > { %v8984_v36 = vpop.permute.xlu0 %5851  ;;  %5450 = vrot.lane.b32.xlu1 %v5414_v48, %s6677_s22  ;;  %v8988_v3 = vpop.permute.xlu1 %6021  ;;  %5454 = vrot.lane.b32.xlu0 %v8981_v20, %s6676_s21 }
 0xbdb   : > { %v5898_v21 = vperm.slane %v8984_v36, %v6723_v4  ;;  %v6068_v8 = vperm.slane %v8988_v3, %v6723_v4  ;;  %5620 = vrot.lane.b32.xlu2 %v5584_v7, %s6677_s22 }
 0xbdd   : > { %v5903_v49 = vrot.slane %v5898_v21, 4  ;;  %v8998_v59 = vperm.slane %v5898_v21, %v6730_v5  ;;  %v9002_v11 = vperm.slane %v6068_v8, %v6730_v5  ;;  %v6073_v45 = vrot.slane %v6068_v8, 4 }
 0xbde   : > { %v6244_v8 = vsel %vm224_vm0, 0.0, %v6243_v56  ;;  %v5585_v56 = vrot.slane %v5572_v18, 4 }
 0xbdf   : > { %v5904_v57 = vsel %vm224_vm0, 0.0, %v5903_v49  ;;  %v5923_v32 = vrot.slane %v8998_v59, 4  ;;  %v6093_v19 = vrot.slane %v9002_v11, 4  ;;  %v6074_v41 = vsel %vm224_vm0, 0.0, %v6073_v45  ;;  %v9069_v49 = vpop.permute.xlu2 %5339 }
 0xbe0   : > { %v9007_v15 = vperm.slane %v5904_v57, %v6730_v5  ;;  %v9061_v48 = vperm.slane %v6074_v41, %v6730_v5  ;;  %v6252_v26 = vperm.slane %v6244_v8, %v6730_v5  ;;  %v5415_v45 = vrot.slane %v8981_v20, 4 }
 0xbe1   : > { %v5924_v1 = vsel %vm224_vm0, 0.0, %v5923_v32  ;;  %v6094_v34 = vsel %vm224_vm0, 0.0, %v6093_v19  ;;  %v9084_v32 = vperm.slane %v9069_v49, %v6723_v4  ;;  %v5586_v9 = vsel %vm224_vm0, 0.0, %v5585_v56 }
 0xbe2   : > { %v9011_v16 = vpop.permute.xlu0 %4999  ;;  %5960 = vrot.lane.b32.xlu1 %v5924_v1, %s6677_s22  ;;  %5964 = vrot.lane.b32.xlu0 %v9007_v15, %s6676_s21  ;;  %v9055_v42 = vpop.permute.xlu1 %5169  ;;  %v5075_v1 = vrot.slane %v5062_v62, 4  ;;  %v5416_v41 = vsel %vm224_vm0, 0.0, %v5415_v45  ;;  %v5043_v56 = vrot.slane %v8948_v37, 4  ;;  %v5213_v37 = vrot.slane %v8902_v30, 4 }
 0xbe3   : > { %v9020_v31 = vperm.slane %v9011_v16, %v6723_v4  ;;  %6130 = vrot.lane.b32.xlu2 %v6094_v34, %s6677_s22  ;;  %v5180_v10 = vperm.slane %v9055_v42, %v6723_v4  ;;  %v9094_v34 = vperm.slane %v9084_v32, %v6730_v5 }
 0xbe4   : > { %v5076_v60 = vsel %vm224_vm0, 0.0, %v5075_v1 }
 0xbe5   : > { %v9025_v51 = vperm.slane %v9020_v31, %v6730_v5  ;;  %v9074_v61 = vperm.slane %v5180_v10, %v6730_v5 }
 0xbe7   : > { %v5035_v53 = vrot.slane %v9025_v51, 4  ;;  %v5205_v19 = vrot.slane %v9074_v61, 4  ;;  %v9111_v17 = vpop.permute.xlu2 %5849 }
 0xbe9   : > { %v5036_v55 = vsel %vm224_vm0, 0.0, %v5035_v53 }
 0xbea   : > { %5114 = vrot.lane.b32.xlu1 %v5062_v62, %s6676_s21  ;;  %5082 = vrot.lane.b32.xlu0 %v5036_v55, %s6677_s22  ;;  %v9035_v44 = vpop.permute.xlu0 %5509  ;;  %v5206_v62 = vsel %vm224_vm0, 0.0, %v5205_v19  ;;  %v9101_v53 = vpop.permute.xlu1 %5679  ;;  %v5375_v55 = vrot.slane %v9094_v34, 4 }
 0xbeb   : > { %v9040_v28 = vperm.slane %v9035_v44, %v6723_v4  ;;  %5284 = vrot.lane.b32.xlu2 %v5232_v0, %s6676_s21  ;;  %v5690_v12 = vperm.slane %v9101_v53, %v6723_v4 }
 0xbec   : > { %v5376_v47 = vsel %vm224_vm0, 0.0, %v5375_v55  ;;  %v5925_v55 = vrot.slane %v9007_v15, 4 }
 0xbed   : > { %v9047_v33 = vperm.slane %v9040_v28, %v6730_v5 }
 0xbee   : > { %v5926_v45 = vsel %vm224_vm0, 0.0, %v5925_v55 }
 0xbef   : > { %v5545_v35 = vrot.slane %v9047_v33, 4 }
 0xbf1   : > { %v5546_v21 = vsel %vm224_vm0, 0.0, %v5545_v35  ;;  %v6265_v35 = vrot.slane %v6252_v26, 4 }
 0xbf2   : > { %5624 = vrot.lane.b32.xlu1 %v5572_v18, %s6676_s21  ;;  %5288 = vrot.lane.b32.xlu0 %v5246_v29, %s6682_s27  ;;  %v9067_v7 = vpop.permute.xlu0 %6019  ;;  %v9114_v29 = vperm.slane %v5690_v12, %v6730_v5  ;;  %v9135_v18 = vpop.permute.xlu1 %6189 }
 0xbf3   : > { %5794 = vrot.lane.b32.xlu2 %v5742_v63, %s6676_s21  ;;  %v9080_v57 = vperm.slane %v9067_v7, %v6723_v4  ;;  %v9120_v63 = vperm.slane %v9111_v17, %v6723_v4  ;;  %v6266_v1 = vsel %vm224_vm0, 0.0, %v6265_v35  ;;  %v5695_v35 = vrot.slane %v5690_v12, 4 }
 0xbf4   : > { %v5715_v20 = vrot.slane %v9114_v29, 4  ;;  %v5044_v12 = vsel %vm224_vm0, 0.0, %v5043_v56  ;;  %v5553_v56 = vrot.slane %v8965_v39, 4 }
 0xbf5   : > { %v9090_v22 = vperm.slane %v9080_v57, %v6730_v5  ;;  %v9127_v8 = vperm.slane %v9120_v63, %v6730_v5 }
 0xbf6   : > { %v5716_v19 = vsel %vm224_vm0, 0.0, %v5715_v20  ;;  %v5554_v39 = vsel %vm224_vm0, 0.0, %v5553_v56  ;;  %v5865_v56 = vrot.slane %v9120_v63, 4 }
 0xbf7   : > { %9999 = vst [vmem:[#allocation6_spill] sm:$0xff] %v9090_v22  ;;  %v6055_v0 = vrot.slane %v9090_v22, 4 }
 0xbf9   : > { %v6056_v27 = vsel %vm224_vm0, 0.0, %v6055_v0 }
 0xbfa   : > { %6134 = vrot.lane.b32.xlu1 %v9061_v48, %s6676_s21  ;;  %5592 = vrot.lane.b32.xlu0 %v5546_v21, %s6677_s22  ;;  %v5185_v21 = vrot.slane %v5180_v10, 4  ;;  %v5885_v10 = vrot.slane %v9127_v8, 4 }
 0xbfb   : > { %6304 = vrot.lane.b32.xlu2 %v6252_v26, %s6676_s21 }
 0xbfc   : > { %v5186_v26 = vsel %vm224_vm0, 0.0, %v5185_v21  ;;  %v5886_v0 = vsel %vm224_vm0, 0.0, %v5885_v10  ;;  %v5015_v21 = vrot.slane %v9020_v31, 4  ;;  %v9182_v10 = vperm.slane %v5044_v12, %v6723_v4 }
 0xbfd   : > { %v5723_v12 = vrot.slane %v8921_v54, 4 }
 0xbfe   : > { %v5068_v30 = vperm.slane %v9182_v10, %v6730_v5 }
 0xc02   : > { %5118 = vrot.lane.b32.xlu1 %v5076_v60, %s6682_s27  ;;  %5798 = vrot.lane.b32.xlu0 %v5756_v24, %s6682_s27  ;;  %v5383_v60 = vrot.slane %v8962_v23, 4  ;;  %v9141_v24 = vperm.slane %v5186_v26, %v6730_v5  ;;  %v5016_v26 = vsel %vm224_vm0, 0.0, %v5015_v21 }
 0xc03   : > { %5252 = vrot.lane.b32.xlu2 %v5206_v62, %s6677_s22  ;;  %v6200_v62 = vperm.slane %v9135_v18, %v6723_v4 }
 0xc0a   : > { %6102 = vrot.lane.b32.xlu0 %v6056_v27, %s6677_s22  ;;  %5422 = vrot.lane.b32.xlu1 %v5376_v47, %s6677_s22  ;;  %v5384_v27 = vsel %vm224_vm0, 0.0, %v5383_v60  ;;  %v9149_v47 = vperm.slane %v6200_v62, %v6730_v5  ;;  %v9185_v60 = vperm.slane %v5016_v26, %v6730_v5 }
 0xc0b   : > { %5458 = vrot.lane.b32.xlu2 %v5416_v41, %s6682_s27  ;;  %v9155_v23 = vperm.slane %v5384_v27, %v6723_v4  ;;  %v6095_v41 = vrot.slane %v9061_v48, 4  ;;  %v5696_v48 = vsel %vm224_vm0, 0.0, %v5695_v35 }
 0xc0c   : > { %v6225_v15 = vrot.slane %v9149_v47, 4  ;;  %v9179_v31 = vperm.slane %v5696_v48, %v6730_v5 }
 0xc0d   : > { %v9164_v20 = vperm.slane %v9155_v23, %v6730_v5 }
 0xc12   : > { %6308 = vrot.lane.b32.xlu0 %v6266_v1, %s6682_s27  ;;  %5628 = vrot.lane.b32.xlu1 %v5586_v9, %s6682_s27  ;;  %v6096_v1 = vsel %vm224_vm0, 0.0, %v6095_v41  ;;  %v6226_v9 = vsel %vm224_vm0, 0.0, %v6225_v15  ;;  %v6205_v15 = vrot.slane %v6200_v62, 4 }
 0xc13   : > { %5762 = vrot.lane.b32.xlu2 %v5716_v19, %s6677_s22  ;;  %v5893_v19 = vrot.slane %v8984_v36, 4 }
 0xc14   : > { %v6206_v48 = vsel %vm224_vm0, 0.0, %v6205_v15 }
 0xc15   : > { %v5894_v55 = vsel %vm224_vm0, 0.0, %v5893_v19  ;;  %v9230_v19 = vperm.slane %v5554_v39, %v6723_v4  ;;  %v6063_v39 = vrot.slane %v8988_v3, 4 }
 0xc16   : > { %v9199_v27 = vperm.slane %v5894_v55, %v6723_v4  ;;  %v5724_v55 = vsel %vm224_vm0, 0.0, %v5723_v12  ;;  %v5866_v12 = vsel %vm224_vm0, 0.0, %v5865_v56 }
 0xc17   : > { %v5578_v54 = vperm.slane %v9230_v19, %v6730_v5  ;;  %v9245_v15 = vperm.slane %v5724_v55, %v6723_v4  ;;  %v5874_v63 = vperm.slane %v5866_v12, %v6730_v5  ;;  %v6234_v12 = vsel %vm224_vm0, 0.0, %v6233_v58 }
 0xc18   : > { %v9212_v21 = vperm.slane %v9199_v27, %v6730_v5 }
 0xc1a   : > { %5256 = vrot.lane.b32.xlu0 %v9141_v24, %s6676_s21  ;;  %5932 = vrot.lane.b32.xlu1 %v5886_v0, %s6677_s22  ;;  %v5214_v0 = vsel %vm224_vm0, 0.0, %v5213_v37 }
 0xc1b   : > { %5968 = vrot.lane.b32.xlu2 %v5926_v45, %s6682_s27  ;;  %v9196_v36 = vperm.slane %v5214_v0, %v6723_v4  ;;  %v5355_v45 = vrot.slane %v9084_v32, 4  ;;  %v5525_v32 = vrot.slane %v9040_v28, 4  ;;  %v9227_v28 = vperm.slane %v6206_v48, %v6730_v5 }
 0xc1c   : > { %v9253_v48 = vperm.slane %v9245_v15, %v6730_v5 }
 0xc1d   : > { %v9207_v35 = vperm.slane %v9196_v36, %v6730_v5  ;;  %v5526_v37 = vsel %vm224_vm0, 0.0, %v5525_v32 }
 0xc1e   : > { %v9235_v0 = vperm.slane %v5526_v37, %v6730_v5  ;;  %v6035_v37 = vrot.slane %v9080_v57, 4 }
 0xc20   : > { %v6036_v3 = vsel %vm224_vm0, 0.0, %v6035_v37 }
 0xc21   : > { %v9273_v40 = vperm.slane %v6036_v3, %v6730_v5 }
 0xc22   : > { %5462 = vrot.lane.b32.xlu0 %v9164_v20, %s6678_s23  ;;  %6138 = vrot.lane.b32.xlu1 %v6096_v1, %s6682_s27  ;;  %v5356_v1 = vsel %vm224_vm0, 0.0, %v5355_v45 }
 0xc23   : > { %6272 = vrot.lane.b32.xlu2 %v6226_v9, %s6677_s22  ;;  %v5364_v62 = vperm.slane %v5356_v1, %v6730_v5  ;;  %v5077_v1 = vrot.slane %v5068_v30, 4 }
 0xc25   : > { %v5078_v55 = vsel %vm224_vm0, 0.0, %v5077_v1  ;;  %v5377_v56 = vrot.slane %v5364_v62, 4 }
 0xc27   : > { %v5378_v50 = vsel %vm224_vm0, 0.0, %v5377_v56 }
 0xc2a   : > { %5766 = vrot.lane.b32.xlu0 %v9179_v31, %s6676_s21  ;;  %5086 = vrot.lane.b32.xlu1 %v9185_v60, %s6676_s21 }
 0xc2b   : > { %5122 = vrot.lane.b32.xlu2 %v5068_v30, %s6678_s23  ;;  %v6064_v30 = vsel %vm224_vm0, 0.0, %v6063_v39 }
 0xc2c   : > { %v9203_v41 = vpop.permute.xlu2 %5110  ;;  %v9268_v57 = vperm.slane %v6064_v30, %v6723_v4  ;;  %v5587_v30 = vrot.slane %v5578_v54, 4 }
 0xc2e   : > { %v5588_v22 = vsel %vm224_vm0, 0.0, %v5587_v30 }
 0xc2f   : > { %v5281_v9 = vpop.permute.xlu0 %5280 }
 0xc30   : > { %v5314_v1 = vsel %vm356_vm1, %v8911_v38, %v5281_v9  ;;  %v9284_v38 = vperm.slane %v6234_v12, %v6723_v4 }
 0xc32   : > { %5972 = vrot.lane.b32.xlu0 %v9212_v21, %s6678_s23  ;;  %5292 = vrot.lane.b32.xlu1 %v9207_v35, %s6678_s23 }
 0xc33   : > { %5426 = vrot.lane.b32.xlu2 %v5364_v62, %s6676_s21  ;;  %v6088_v62 = vperm.slane %v9268_v57, %v6730_v5 }
 0xc35   : > { %v9232_v26 = vpop.permute.xlu2 %5620 }
 0xc37   : > { %v5791_v45 = vpop.permute.xlu0 %5790 }
 0xc38   : > { %v5824_v56 = vsel %vm356_vm1, %v8929_v25, %v5791_v45 }
 0xc3a   : > { %6276 = vrot.lane.b32.xlu0 %v9227_v28, %s6676_s21  ;;  %5596 = vrot.lane.b32.xlu1 %v9235_v0, %s6676_s21 }
 0xc3b   : > { %5632 = vrot.lane.b32.xlu2 %v5578_v54, %s6678_s23 }
 0xc3d   : > { %v9249_v32 = vpop.permute.xlu2 %6130 }
 0xc3f   : > { %v6301_v52 = vpop.permute.xlu0 %6300 }
 0xc42   : > { %5126 = vrot.lane.b32.xlu0 %v5078_v55, %s6679_s24  ;;  %5802 = vrot.lane.b32.xlu1 %v9253_v48, %s6678_s23 }
 0xc43   : > { %5936 = vrot.lane.b32.xlu2 %v5874_v63, %s6676_s21 }
 0xc45   : > { %v5285_v55 = vpop.permute.xlu2 %5284 }
 0xc46   : > { %v5315_v39 = vsel %vm358_vm2, %v5314_v1, %v5285_v55  ;;  %v9294_v55 = vperm.slane %v9284_v38, %v6730_v5 }
 0xc4a   : > { %5430 = vrot.lane.b32.xlu0 %v5378_v50, %s6682_s27  ;;  %6106 = vrot.lane.b32.xlu1 %v9273_v40, %s6676_s21  ;;  %v5037_v50 = vrot.slane %v9185_v60, 4 }
 0xc4b   : > { %6142 = vrot.lane.b32.xlu2 %v6088_v62, %s6678_s23 }
 0xc4c   : > { %v5451_v9 = vpop.permute.xlu1 %5450  ;;  %v5455_v37 = vpop.permute.xlu0 %5454 }
 0xc4d   : > { %v5484_v58 = vsel %vm356_vm1, %v8973_v13, %v5451_v9  ;;  %v5795_v1 = vpop.permute.xlu2 %5794  ;;  %v5038_v13 = vsel %vm224_vm0, 0.0, %v5037_v50  ;;  %v5207_v9 = vrot.slane %v9141_v24, 4 }
 0xc4e   : > { %v5485_v3 = vsel %vm358_vm2, %v5484_v58, %v5455_v37  ;;  %v9297_v12 = vsel %vm358_vm2, %v5824_v56, %v5795_v1  ;;  %v5887_v37 = vrot.slane %v5874_v63, 4  ;;  %v5247_v56 = vrot.slane %v9207_v35, 4 }
 0xc4f   : > { %v5208_v1 = vsel %vm224_vm0, 0.0, %v5207_v9  ;;  %v5005_v63 = vrot.slane %v9011_v16, 4 }
 0xc50   : > { %v5888_v50 = vsel %vm224_vm0, 0.0, %v5887_v37 }
 0xc52   : > { %5636 = vrot.lane.b32.xlu0 %v5588_v22, %s6679_s24  ;;  %6312 = vrot.lane.b32.xlu1 %v9294_v55, %s6678_s23  ;;  %v6334_v22 = vsel %vm356_vm1, %v8946_v43, %v6301_v52  ;;  %v5248_v52 = vsel %vm224_vm0, 0.0, %v5247_v56  ;;  %v5717_v56 = vrot.slane %v9179_v31, 4  ;;  %v6164_v31 = vsel %vm356_vm1, %v9002_v11, %v9249_v32 }
 0xc53   : > { %5090 = vrot.lane.b32.xlu2 %v5038_v13, %s6682_s27  ;;  %v5417_v13 = vrot.slane %v9164_v20, 4  ;;  %v5654_v20 = vsel %vm356_vm1, %v8976_v6, %v9232_v26  ;;  %v5757_v26 = vrot.slane %v9253_v48, 4  ;;  %v5515_v48 = vrot.slane %v9035_v44, 4 }
 0xc54   : > { %v5961_v25 = vpop.permute.xlu1 %5960  ;;  %v5965_v45 = vpop.permute.xlu0 %5964  ;;  %v6057_v11 = vrot.slane %v9273_v40, 4 }
 0xc55   : > { %v5994_v54 = vsel %vm356_vm1, %v8998_v59, %v5961_v25  ;;  %v6305_v58 = vpop.permute.xlu2 %6304  ;;  %v5144_v59 = vsel %vm356_vm1, %v8959_v14, %v9203_v41  ;;  %v6097_v25 = vrot.slane %v6088_v62, 4  ;;  %v5006_v14 = vsel %vm224_vm0, 0.0, %v5005_v63 }
 0xc56   : > { %v9310_v60 = vsel %vm358_vm2, %v5994_v54, %v5965_v45  ;;  %v9315_v30 = vsel %vm358_vm2, %v6334_v22, %v6305_v58  ;;  %v5547_v54 = vrot.slane %v9235_v0, 4  ;;  %v5418_v41 = vsel %vm224_vm0, 0.0, %v5417_v13 }
 0xc57   : > { %v6098_v9 = vsel %vm224_vm0, 0.0, %v6097_v25  ;;  %v9341_v16 = vperm.slane %v5006_v14, %v6723_v4  ;;  %v5927_v63 = vrot.slane %v9212_v21, 4  ;;  %v6058_v14 = vsel %vm224_vm0, 0.0, %v6057_v11 }
 0xc58   : > { %v5548_v62 = vsel %vm224_vm0, 0.0, %v5547_v54  ;;  %v5516_v54 = vsel %vm224_vm0, 0.0, %v5515_v48  ;;  %v5403_v11 = vrot.slane %v9155_v23, 4  ;;  %v5685_v23 = vrot.slane %v9101_v53, 4 }
 0xc59   : > { %v5928_v44 = vsel %vm224_vm0, 0.0, %v5927_v63  ;;  %v9393_v21 = vperm.slane %v5516_v54, %v6723_v4 }
 0xc5a   : > { %5260 = vrot.lane.b32.xlu1 %v5208_v1, %s6682_s27  ;;  %5940 = vrot.lane.b32.xlu0 %v5888_v50, %s6682_s27  ;;  %v9357_v50 = vperm.slane %v9341_v16, %v6730_v5 }
 0xc5b   : > { %5296 = vrot.lane.b32.xlu2 %v5248_v52, %s6679_s24  ;;  %v5718_v52 = vsel %vm224_vm0, 0.0, %v5717_v56  ;;  %v5175_v56 = vrot.slane %v9055_v42, 4 }
 0xc5c   : > { %v5115_v43 = vpop.permute.xlu1 %5114  ;;  %v9326_v24 = vpop.permute.xlu0 %5082 }
 0xc5d   : > { %v5145_v35 = vsel %vm358_vm2, %v5144_v59, %v5115_v43  ;;  %v9332_v45 = vpop.permute.xlu2 %5252  ;;  %v5233_v59 = vrot.slane %v9196_v36, 4 }
 0xc5f   : > { %v5234_v13 = vsel %vm224_vm0, 0.0, %v5233_v59 }
 0xc60   : > { %v9385_v32 = vperm.slane %v5234_v13, %v6730_v5 }
 0xc62   : > { %5466 = vrot.lane.b32.xlu1 %v5418_v41, %s6679_s24  ;;  %6146 = vrot.lane.b32.xlu0 %v6098_v9, %s6679_s24 }
 0xc63   : > { %5600 = vrot.lane.b32.xlu2 %v5548_v62, %s6682_s27  ;;  %v6227_v62 = vrot.slane %v9227_v28, 4  ;;  %v5176_v28 = vsel %vm224_vm0, 0.0, %v5175_v56 }
 0xc64   : > { %v5625_v0 = vpop.permute.xlu1 %5624  ;;  %v5289_v37 = vpop.permute.xlu0 %5288 }
 0xc65   : > { %v9349_v22 = vsel %vm358_vm2, %v5654_v20, %v5625_v0  ;;  %v9352_v58 = vsel %vm360_vm3, %v5315_v39, %v5289_v37  ;;  %v5459_v1 = vpop.permute.xlu2 %5458  ;;  %v5758_v39 = vsel %vm224_vm0, 0.0, %v5757_v26  ;;  %v9405_v37 = vperm.slane %v9393_v21, %v6730_v5 }
 0xc66   : > { %v9360_v6 = vsel %vm360_vm3, %v5485_v3, %v5459_v1  ;;  %v6267_v26 = vrot.slane %v9294_v55, 4  ;;  %v6228_v59 = vsel %vm224_vm0, 0.0, %v6227_v62  ;;  %v6025_v55 = vrot.slane %v9067_v7, 4 }
 0xc68   : > { %v6268_v42 = vsel %vm224_vm0, 0.0, %v6267_v26  ;;  %v6026_v7 = vsel %vm224_vm0, 0.0, %v6025_v55 }
 0xc69   : > { %v9448_v54 = vperm.slane %v6026_v7, %v6723_v4 }
 0xc6a   : > { %5770 = vrot.lane.b32.xlu1 %v5718_v52, %s6682_s27  ;;  %5094 = vrot.lane.b32.xlu0 %v9357_v50, %s6678_s23 }
 0xc6b   : > { %5806 = vrot.lane.b32.xlu2 %v5758_v39, %s6679_s24  ;;  %v9429_v39 = vperm.slane %v5176_v28, %v6723_v4  ;;  %v9464_v56 = vperm.slane %v9448_v54, %v6730_v5 }
 0xc6c   : > { %v6135_v43 = vpop.permute.xlu1 %6134  ;;  %v9372_v3 = vpop.permute.xlu0 %5592 }
 0xc6d   : > { %v9377_v36 = vsel %vm358_vm2, %v6164_v31, %v6135_v43  ;;  %v9381_v25 = vpop.permute.xlu2 %5762  ;;  %v9444_v13 = vperm.slane %v9429_v39, %v6730_v5 }
 0xc72   : > { %5976 = vrot.lane.b32.xlu1 %v5928_v44, %s6679_s24  ;;  %5300 = vrot.lane.b32.xlu0 %v9385_v32, %s6680_s25 }
 0xc73   : > { %6110 = vrot.lane.b32.xlu2 %v6058_v14, %s6682_s27 }
 0xc74   : > { %v5119_v41 = vpop.permute.xlu1 %5118  ;;  %v5799_v9 = vpop.permute.xlu0 %5798 }
 0xc75   : > { %v5146_v40 = vsel %vm360_vm3, %v5145_v35, %v5119_v41  ;;  %v9400_v20 = vsel %vm360_vm3, %v9297_v12, %v5799_v9  ;;  %v5969_v0 = vpop.permute.xlu2 %5968  ;;  %v5743_v35 = vrot.slane %v9245_v15, 4  ;;  %v5063_v12 = vrot.slane %v9182_v10, 4 }
 0xc76   : > { %v9410_v1 = vsel %vm360_vm3, %v9310_v60, %v5969_v0  ;;  %v5345_v15 = vrot.slane %v9069_v49, 4 }
 0xc77   : > { %v5064_v10 = vsel %vm224_vm0, 0.0, %v5063_v12  ;;  %v5744_v31 = vsel %vm224_vm0, 0.0, %v5743_v35  ;;  %v5404_v12 = vsel %vm224_vm0, 0.0, %v5403_v11 }
 0xc78   : > { %v5072_v48 = vperm.slane %v5064_v10, %v6730_v5  ;;  %v9435_v63 = vperm.slane %v5744_v31, %v6730_v5  ;;  %v5346_v49 = vsel %vm224_vm0, 0.0, %v5345_v15  ;;  %v9478_v53 = vperm.slane %v5404_v12, %v6730_v5 }
 0xc79   : > { %v9451_v44 = vperm.slane %v5346_v49, %v6723_v4 }
 0xc7a   : > { %6280 = vrot.lane.b32.xlu1 %v6228_v59, %s6682_s27  ;;  %5604 = vrot.lane.b32.xlu0 %v9405_v37, %s6678_s23  ;;  %v5573_v59 = vrot.slane %v9230_v19, 4  ;;  %v5079_v12 = vrot.slane %v5072_v48, 4 }
 0xc7b   : > { %6316 = vrot.lane.b32.xlu2 %v6268_v42, %s6679_s24  ;;  %v5370_v26 = vperm.slane %v9451_v44, %v6730_v5 }
 0xc7c   : > { %v9421_v52 = vpop.permute.xlu0 %6102  ;;  %v5423_v60 = vpop.permute.xlu1 %5422  ;;  %v5574_v55 = vsel %vm224_vm0, 0.0, %v5573_v59  ;;  %v6195_v59 = vrot.slane %v9135_v18, 4  ;;  %v5137_v18 = vsel %vm356_vm1, %v9025_v51, %v9326_v24 }
 0xc7d   : > { %v9431_v43 = vpop.permute.xlu2 %6272 }
 0xc82   : > { %5130 = vrot.lane.b32.xlu1 %v5072_v48, %s6680_s25  ;;  %5810 = vrot.lane.b32.xlu0 %v9435_v63, %s6680_s25  ;;  %v6196_v48 = vsel %vm224_vm0, 0.0, %v6195_v59 }
 0xc83   : > { %5264 = vrot.lane.b32.xlu2 %v9444_v13, %s6678_s23 }
 0xc84   : > { %v6309_v14 = vpop.permute.xlu0 %6308  ;;  %v5629_v41 = vpop.permute.xlu1 %5628 }
 0xc85   : > { %v9457_v9 = vsel %vm360_vm3, %v9315_v30, %v6309_v14  ;;  %v5656_v62 = vsel %vm360_vm3, %v9349_v22, %v5629_v41  ;;  %v5123_v0 = vpop.permute.xlu2 %5122  ;;  %v6253_v30 = vrot.slane %v9284_v38, 4  ;;  %v5686_v22 = vsel %vm224_vm0, 0.0, %v5685_v23 }
 0xc86   : > { %v9469_v35 = vsel %vm362_vm4, %v5146_v40, %v5123_v0  ;;  %v5307_v40 = vsel %vm356_vm1, %v9074_v61, %v9332_v45  ;;  %v5855_v38 = vrot.slane %v9111_v17, 4  ;;  %v9493_v10 = vperm.slane %v5686_v22, %v6723_v4 }
 0xc87   : > { %v6254_v15 = vsel %vm224_vm0, 0.0, %v6253_v30  ;;  %v5477_v61 = vsel %vm356_vm1, %v9094_v34, %v5423_v60  ;;  %v5582_v17 = vperm.slane %v5574_v55, %v6730_v5  ;;  %v5913_v34 = vrot.slane %v9199_v27, 4 }
 0xc88   : > { %v9502_v7 = vperm.slane %v6254_v15, %v6730_v5  ;;  %v5856_v49 = vsel %vm224_vm0, 0.0, %v5855_v38  ;;  %v9510_v11 = vperm.slane %v9493_v10, %v6730_v5 }
 0xc89   : > { %v9514_v60 = vperm.slane %v5856_v49, %v6723_v4  ;;  %v9553_v49 = vperm.slane %v6196_v48, %v6723_v4  ;;  %v4907_v4 = vrot.slane %v8796_v2, 4  ;;  %v5039_v2 = vrot.slane %v9357_v50, 4 }
 0xc8a   : > { %5434 = vrot.lane.b32.xlu1 %v5370_v26, %s6678_s23  ;;  %6114 = vrot.lane.b32.xlu0 %v9464_v56, %s6678_s23 }
 0xc8b   : > { %5470 = vrot.lane.b32.xlu2 %v9478_v53, %s6680_s25  ;;  %v5880_v27 = vperm.slane %v9514_v60, %v6730_v5  ;;  %v4908_v59 = vsel %vm224_vm0, 0.0, %v4907_v4  ;;  %v5549_v4 = vrot.slane %v9405_v37, 4 }
 0xc8c   : > { %v5257_v28 = vpop.permute.xlu0 %5256  ;;  %v5933_v42 = vpop.permute.xlu1 %5932 }
 0xc8d   : > { %v9488_v19 = vsel %vm358_vm2, %v5307_v40, %v5257_v28  ;;  %v5427_v45 = vpop.permute.xlu2 %5426  ;;  %v5914_v40 = vsel %vm224_vm0, 0.0, %v5913_v34  ;;  %v6083_v28 = vrot.slane %v9268_v57, 4  ;;  %v5987_v51 = vsel %vm356_vm1, %v9127_v8, %v5933_v42 }
 0xc8e   : > { %v9498_v31 = vsel %vm358_vm2, %v5477_v61, %v5427_v45  ;;  %v5379_v61 = vrot.slane %v5370_v26, 4  ;;  %v9566_v26 = vperm.slane %v9553_v49, %v6730_v5 }
 0xc8f   : > { %v6084_v45 = vsel %vm224_vm0, 0.0, %v6083_v28 }
 0xc90   : > { %v5380_v34 = vsel %vm224_vm0, 0.0, %v5379_v61 }
 0xc92   : > { %5640 = vrot.lane.b32.xlu1 %v5582_v17, %s6680_s25  ;;  %6320 = vrot.lane.b32.xlu0 %v9502_v7, %s6680_s25 }
 0xc93   : > { %5774 = vrot.lane.b32.xlu2 %v9510_v11, %s6678_s23 }
 0xc94   : > { %v5463_v14 = vpop.permute.xlu0 %5462  ;;  %v6139_v41 = vpop.permute.xlu1 %6138 }
 0xc95   : > { %v9520_v23 = vsel %vm362_vm4, %v9360_v6, %v5463_v14  ;;  %v6166_v0 = vsel %vm360_vm3, %v9377_v36, %v6139_v41  ;;  %v5633_v30 = vpop.permute.xlu2 %5632  ;;  %v5080_v6 = vsel %vm224_vm0, 0.0, %v5079_v12  ;;  %v9536_v36 = vperm.slane %v5914_v40, %v6730_v5 }
 0xc96   : > { %v9528_v22 = vsel %vm362_vm4, %v5656_v62, %v5633_v30  ;;  %v5817_v62 = vsel %vm356_vm1, %v9114_v29, %v9381_v25  ;;  %v6092_v25 = vperm.slane %v6084_v45, %v6730_v5  ;;  %v5589_v12 = vrot.slane %v5582_v17, 4 }
 0xc97   : > { %v5040_v17 = vsel %vm224_vm0, 0.0, %v5039_v2 }
 0xc98   : > { %v5590_v28 = vsel %vm224_vm0, 0.0, %v5589_v12 }
 0xc9a   : > { %5134 = vrot.lane.b32.xlu0 %v5080_v6, %s6681_s26  ;;  %5944 = vrot.lane.b32.xlu1 %v5880_v27, %s6678_s23 }
 0xc9b   : > { %5980 = vrot.lane.b32.xlu2 %v9536_v36, %s6680_s25 }
 0xc9c   : > { %v5767_v57 = vpop.permute.xlu0 %5766  ;;  %v5087_v38 = vpop.permute.xlu1 %5086 }
 0xc9d   : > { %v9548_v55 = vsel %vm358_vm2, %v5817_v62, %v5767_v57  ;;  %v5138_v15 = vsel %vm358_vm2, %v5137_v18, %v5087_v38  ;;  %v5937_v29 = vpop.permute.xlu2 %5936  ;;  %v5209_v18 = vrot.slane %v9444_v13, 4  ;;  %v5889_v62 = vrot.slane %v5880_v27, 4 }
 0xc9e   : > { %v9558_v24 = vsel %vm358_vm2, %v5987_v51, %v5937_v29  ;;  %v5419_v27 = vrot.slane %v9478_v53, 4  ;;  %v4893_v29 = vrot.slane %v8788_v46, 4  ;;  %v5550_v46 = vsel %vm224_vm0, 0.0, %v5549_v4 }
 0xca2   : > { %5438 = vrot.lane.b32.xlu0 %v5380_v34, %s6679_s24  ;;  %6150 = vrot.lane.b32.xlu1 %v6092_v25, %s6680_s25 }
 0xca3   : > { %6284 = vrot.lane.b32.xlu2 %v9566_v26, %s6678_s23 }
 0xca4   : > { %v5973_v14 = vpop.permute.xlu0 %5972  ;;  %v5293_v8 = vpop.permute.xlu1 %5292 }
 0xca5   : > { %v9573_v42 = vsel %vm362_vm4, %v9410_v1, %v5973_v14  ;;  %v5317_v41 = vsel %vm362_vm4, %v9352_v58, %v5293_v8  ;;  %v6143_v30 = vpop.permute.xlu2 %6142  ;;  %v5647_v1 = vsel %vm356_vm1, %v9047_v33, %v9372_v3  ;;  %v6327_v58 = vsel %vm356_vm1, %v9149_v47, %v9431_v43 }
 0xca6   : > { %v9579_v40 = vsel %vm362_vm4, %v6166_v0, %v6143_v30  ;;  %v5249_v47 = vrot.slane %v9385_v32, 4  ;;  %v5210_v3 = vsel %vm224_vm0, 0.0, %v5209_v18  ;;  %v5890_v43 = vsel %vm224_vm0, 0.0, %v5889_v62 }
 0xca7   : > { %v5420_v14 = vsel %vm224_vm0, 0.0, %v5419_v27  ;;  %v5719_v30 = vrot.slane %v9510_v11, 4  ;;  %v6059_v62 = vrot.slane %v9464_v56, 4 }
 0xca8   : > { %v5250_v38 = vsel %vm224_vm0, 0.0, %v5249_v47  ;;  %v5875_v47 = vrot.slane %v9514_v60, 4  ;;  %v6229_v60 = vrot.slane %v9566_v26, 4  ;;  %v5195_v26 = vrot.slane %v9429_v39, 4 }
 0xcaa   : > { %5644 = vrot.lane.b32.xlu0 %v5590_v28, %s6681_s26  ;;  %4956 = vrot.lane.b32.xlu1 %v4908_v59, %s6679_s24 }
 0xcab   : > { %5098 = vrot.lane.b32.xlu2 %v5040_v17, %s6679_s24 }
 0xcac   : > { %v6277_v0 = vpop.permute.xlu0 %6276  ;;  %v5597_v6 = vpop.permute.xlu1 %5596 }
 0xcad   : > { %v9594_v50 = vsel %vm358_vm2, %v6327_v58, %v6277_v0  ;;  %v5648_v48 = vsel %vm358_vm2, %v5647_v1, %v5597_v6  ;;  %v5091_v57 = vpop.permute.xlu2 %5090  ;;  %v5365_v1 = vrot.slane %v9451_v44, 4  ;;  %v5720_v58 = vsel %vm224_vm0, 0.0, %v5719_v30 }
 0xcae   : > { %v9599_v33 = vsel %vm360_vm3, %v5138_v15, %v5091_v57  ;;  %v6099_v15 = vrot.slane %v6092_v25, 4  ;;  %v5929_v44 = vrot.slane %v9536_v36, 4 }
 0xcaf   : > { %v5366_v6 = vsel %vm224_vm0, 0.0, %v5365_v1 }
 0xcb0   : > { %v6100_v8 = vsel %vm224_vm0, 0.0, %v6099_v15  ;;  %v5374_v57 = vperm.slane %v5366_v6, %v6730_v5  ;;  %v5025_v15 = vrot.slane %v9341_v16, 4 }
 0xcb2   : > { %5268 = vrot.lane.b32.xlu1 %v5210_v3, %s6679_s24  ;;  %5948 = vrot.lane.b32.xlu0 %v5890_v43, %s6679_s24 }
 0xcb3   : > { %5304 = vrot.lane.b32.xlu2 %v5250_v38, %s6681_s26  ;;  %v5876_v38 = vsel %vm224_vm0, 0.0, %v5875_v47 }
 0xcb4   : > { %v5127_v61 = vpop.permute.xlu0 %5126  ;;  %v5803_v45 = vpop.permute.xlu1 %5802  ;;  %v5884_v27 = vperm.slane %v5876_v38, %v6730_v5 }
 0xcb5   : > { %v9610_v13 = vsel %vm364_vm5, %v9469_v35, %v5127_v61  ;;  %v5827_v32 = vsel %vm362_vm4, %v9400_v20, %v5803_v45  ;;  %v5297_v51 = vpop.permute.xlu2 %5296  ;;  %v4894_v20 = vsel %vm224_vm0, 0.0, %v4893_v29  ;;  %v10000_v35 = vld [vmem:[#allocation6_spill] sm:$0xff] }
 0xcb6   : > { %v9617_v34 = vsel %vm364_vm5, %v5317_v41, %v5297_v51  ;;  %v6157_v53 = vsel %vm356_vm1, %v10000_v35, %v9421_v52  ;;  %v4902_v59 = vperm.slane %v4894_v20, %v6730_v5  ;;  %v5759_v52 = vrot.slane %v9435_v63, 4 }
 0xcb7   : > { %v5196_v35 = vsel %vm224_vm0, 0.0, %v5195_v26  ;;  %v5891_v6 = vrot.slane %v5884_v27, 4 }
 0xcb9   : > { %v5892_v47 = vsel %vm224_vm0, 0.0, %v5891_v6 }
 0xcba   : > { %5474 = vrot.lane.b32.xlu1 %v5420_v14, %s6681_s26  ;;  %6154 = vrot.lane.b32.xlu0 %v6100_v8, %s6681_s26  ;;  %v5026_v14 = vsel %vm224_vm0, 0.0, %v5025_v15 }
 0xcbb   : > { %5608 = vrot.lane.b32.xlu2 %v5550_v46, %s6679_s24  ;;  %v5535_v46 = vrot.slane %v9393_v21, 4 }
 0xcbc   : > { %v5431_v25 = vpop.permute.xlu0 %5430  ;;  %v6107_v41 = vpop.permute.xlu1 %6106 }
 0xcbd   : > { %v9632_v37 = vsel %vm360_vm3, %v9498_v31, %v5431_v25  ;;  %v6158_v12 = vsel %vm358_vm2, %v6157_v53, %v6107_v41  ;;  %v5601_v2 = vpop.permute.xlu2 %5600  ;;  %v5760_v31 = vsel %vm224_vm0, 0.0, %v5759_v52  ;;  %v5034_v53 = vperm.slane %v5026_v14, %v6730_v5 }
 0xcbe   : > { %v9638_v28 = vsel %vm360_vm3, %v5648_v48, %v5601_v2  ;;  %v5536_v21 = vsel %vm224_vm0, 0.0, %v5535_v46 }
 0xcbf   : > { %v5544_v1 = vperm.slane %v5536_v21, %v6730_v5 }
 0xcc1   : > { %v5551_v15 = vrot.slane %v5544_v1, 4 }
 0xcc2   : > { %5778 = vrot.lane.b32.xlu1 %v5720_v58, %s6679_s24  ;;  %4960 = vrot.lane.b32.xlu0 %v4902_v59, %s6680_s25  ;;  %v6045_v58 = vrot.slane %v9448_v54, 4 }
 0xcc3   : > { %5814 = vrot.lane.b32.xlu2 %v5760_v31, %s6681_s26 }
 0xcc4   : > { %v5637_v17 = vpop.permute.xlu0 %5636  ;;  %v6313_v11 = vpop.permute.xlu1 %6312 }
 0xcc5   : > { %v9649_v0 = vsel %vm364_vm5, %v9528_v22, %v5637_v17  ;;  %v6337_v63 = vsel %vm362_vm4, %v9457_v9, %v6313_v11  ;;  %v5807_v48 = vpop.permute.xlu2 %5806  ;;  %v5930_v22 = vsel %vm224_vm0, 0.0, %v5929_v44  ;;  %v6060_v9 = vsel %vm224_vm0, 0.0, %v6059_v62 }
 0xcc6   : > { %v9656_v18 = vsel %vm364_vm5, %v5827_v32, %v5807_v48  ;;  %v6269_v32 = vrot.slane %v9502_v7, 4  ;;  %v6046_v44 = vsel %vm224_vm0, 0.0, %v6045_v58 }
 0xcc8   : > { %v6270_v51 = vsel %vm224_vm0, 0.0, %v6269_v32 }
 0xcca   : > { %5984 = vrot.lane.b32.xlu1 %v5930_v22, %s6681_s26  ;;  %5442 = vrot.lane.b32.xlu0 %v5374_v57, %s6680_s25 }
 0xccb   : > { %6118 = vrot.lane.b32.xlu2 %v6060_v9, %s6679_s24 }
 0xccc   : > { %v5261_v36 = vpop.permute.xlu1 %5260  ;;  %v5941_v3 = vpop.permute.xlu0 %5940 }
 0xccd   : > { %v5309_v43 = vsel %vm360_vm3, %v9488_v19, %v5261_v36  ;;  %v9670_v56 = vsel %vm360_vm3, %v9558_v24, %v5941_v3  ;;  %v6111_v61 = vpop.permute.xlu2 %6110  ;;  %v6230_v19 = vsel %vm224_vm0, 0.0, %v6229_v60  ;;  %v4909_v24 = vrot.slane %v4902_v59, 4 }
 0xcce   : > { %v9675_v45 = vsel %vm360_vm3, %v6158_v12, %v6111_v61  ;;  %v5381_v59 = vrot.slane %v5374_v57, 4  ;;  %v6054_v57 = vperm.slane %v6046_v44, %v6730_v5  ;;  %v5041_v3 = vrot.slane %v5034_v53, 4 }
 0xccf   : > { %v4910_v20 = vsel %vm224_vm0, 0.0, %v4909_v24 }
 0xcd0   : > { %v5382_v31 = vsel %vm224_vm0, 0.0, %v5381_v59  ;;  %v5042_v61 = vsel %vm224_vm0, 0.0, %v5041_v3  ;;  %v6061_v14 = vrot.slane %v6054_v57, 4 }
 0xcd2   : > { %6288 = vrot.lane.b32.xlu1 %v6230_v19, %s6679_s24  ;;  %5952 = vrot.lane.b32.xlu0 %v5884_v27, %s6680_s25 }
 0xcd3   : > { %6324 = vrot.lane.b32.xlu2 %v6270_v51, %s6681_s26  ;;  %v5552_v51 = vsel %vm224_vm0, 0.0, %v5551_v15 }
 0xcd4   : > { %v5467_v29 = vpop.permute.xlu1 %5466  ;;  %v6147_v4 = vpop.permute.xlu0 %6146 }
 0xcd5   : > { %v5488_v7 = vsel %vm364_vm5, %v9520_v23, %v5467_v29  ;;  %v9690_v16 = vsel %vm364_vm5, %v9579_v40, %v6147_v4  ;;  %v6317_v8 = vpop.permute.xlu2 %6316  ;;  %v5204_v23 = vperm.slane %v5196_v35, %v6730_v5  ;;  %v5705_v40 = vrot.slane %v9493_v10, 4 }
 0xcd6   : > { %v9695_v39 = vsel %vm364_vm5, %v6337_v63, %v6317_v8 }
 0xcd7   : > { %v5706_v10 = vsel %vm224_vm0, 0.0, %v5705_v40  ;;  %v5211_v38 = vrot.slane %v5204_v23, 4 }
 0xcda   : > { %5102 = vrot.lane.b32.xlu1 %v5034_v53, %s6680_s25  ;;  %4964 = vrot.lane.b32.xlu0 %v4910_v20, %s6681_s26  ;;  %v6062_v53 = vsel %vm224_vm0, 0.0, %v6061_v14  ;;  %v10002_v14 = vld [vmem:[#allocation4_spill] sm:$0xff] }
 0xcdb   : > { %5272 = vrot.lane.b32.xlu2 %v5204_v23, %s6680_s25 }
 0xcdc   : > { %v5771_v25 = vpop.permute.xlu1 %5770  ;;  %v5095_v41 = vpop.permute.xlu0 %5094 }
 0xcdd   : > { %v5819_v12 = vsel %vm360_vm3, %v9548_v55, %v5771_v25  ;;  %v9709_v30 = vsel %vm362_vm4, %v9599_v33, %v5095_v41  ;;  %v5265_v2 = vpop.permute.xlu2 %5264  ;;  %v5714_v55 = vperm.slane %v5706_v10, %v6730_v5  ;;  %v6215_v33 = vrot.slane %v9553_v49, 4 }
 0xcde   : > { %v9713_v52 = vsel %vm362_vm4, %v5309_v43, %v5265_v2 }
 0xcdf   : > { %v6216_v49 = vsel %vm224_vm0, 0.0, %v6215_v33  ;;  %v5721_v26 = vrot.slane %v5714_v55, 4 }
 0xce1   : > { %v5722_v29 = vsel %vm224_vm0, 0.0, %v5721_v26 }
 0xce2   : > { %5612 = vrot.lane.b32.xlu1 %v5544_v1, %s6680_s25  ;;  %5446 = vrot.lane.b32.xlu0 %v5382_v31, %s6681_s26 }
 0xce3   : > { %5782 = vrot.lane.b32.xlu2 %v5714_v55, %s6680_s25 }
 0xce4   : > { %v5977_v17 = vpop.permute.xlu1 %5976  ;;  %v5301_v11 = vpop.permute.xlu0 %5300 }
 0xce5   : > { %v5998_v63 = vsel %vm364_vm5, %v9573_v42, %v5977_v17  ;;  %v9728_v54 = vsel %vm366_vm6, %v9617_v34, %v5301_v11  ;;  %v5471_v48 = vpop.permute.xlu2 %5470  ;;  %v6224_v42 = vperm.slane %v6216_v49, %v6730_v5  ;;  %v5212_v5 = vsel %vm224_vm0, 0.0, %v5211_v38 }
 0xce6   : > { %v9732_v62 = vsel %vm366_vm6, %v5488_v7, %v5471_v48 }
 0xce7   : > { %v6231_v35 = vrot.slane %v6224_v42, 4 }
 0xce9   : > { %v6232_v46 = vsel %vm224_vm0, 0.0, %v6231_v35 }
 0xcea   : > { %6122 = vrot.lane.b32.xlu1 %v6054_v57, %s6680_s25  ;;  %5956 = vrot.lane.b32.xlu0 %v5892_v47, %s6681_s26 }
 0xceb   : > { %6292 = vrot.lane.b32.xlu2 %v6224_v42, %s6680_s25 }
 0xcec   : > { %v6281_v34 = vpop.permute.xlu1 %6280  ;;  %v5605_v22 = vpop.permute.xlu0 %5604 }
 0xced   : > { %v6329_v9 = vsel %vm360_vm3, %v9594_v50, %v6281_v34  ;;  %v5650_v36 = vsel %vm362_vm4, %v9638_v28, %v5605_v22  ;;  %v5775_v43 = vpop.permute.xlu2 %5774 }
 0xcee   : > { %v9746_v60 = vsel %vm362_vm4, %v5819_v12, %v5775_v43 }
 0xcf2   : > { %5106 = vrot.lane.b32.xlu1 %v5042_v61, %s6681_s26  ;;  %v10001_v61 = vld [vmem:[#allocation5_spill] sm:$0xff] }
 0xcf3   : > { %5276 = vrot.lane.b32.xlu2 %v5212_v5, %s6681_s26 }
 0xcf4   : > { %v5131_v32 = vpop.permute.xlu1 %5130  ;;  %v5811_v27 = vpop.permute.xlu0 %5810 }
 0xcf5   : > { %v5149_v50 = vsel %vm366_vm6, %v9610_v13, %v5131_v32  ;;  %v9756_v28 = vsel %vm366_vm6, %v9656_v18, %v5811_v27  ;;  %v5981_v19 = vpop.permute.xlu2 %5980 }
 0xcf6   : > { %v9759_v24 = vsel %vm366_vm6, %v5998_v63, %v5981_v19 }
 0xcfa   : > { %5616 = vrot.lane.b32.xlu1 %v5552_v51, %s6681_s26 }
 0xcfb   : > { %5786 = vrot.lane.b32.xlu2 %v5722_v29, %s6681_s26 }
 0xcfc   : > { %v5435_v4 = vpop.permute.xlu1 %5434  ;;  %v6115_v7 = vpop.permute.xlu0 %6114 }
 0xcfd   : > { %v9767_v13 = vsel %vm362_vm4, %v9632_v37, %v5435_v4  ;;  %v6160_v18 = vsel %vm362_vm4, %v9675_v45, %v6115_v7  ;;  %v6285_v8 = vpop.permute.xlu2 %6284 }
 0xcfe   : > { %v9772_v20 = vsel %vm362_vm4, %v6329_v9, %v6285_v8  ;;  %v4989_v8 = vmul.f32 %v10002_v14, %v10002_v14 }
 0xd02   : > { %6126 = vrot.lane.b32.xlu1 %v6062_v53, %s6681_s26 }
 0xd03   : > { %6296 = vrot.lane.b32.xlu2 %v6232_v46, %s6681_s26 }
 0xd04   : > { %v5641_v23 = vpop.permute.xlu1 %5640  ;;  %v6321_v40 = vpop.permute.xlu0 %6320 }
 0xd05   : > { %v5659_v37 = vsel %vm366_vm6, %v9649_v0, %v5641_v23  ;;  %v9782_v45 = vsel %vm366_vm6, %v9695_v39, %v6321_v40  ;;  %v5099_v25 = vpop.permute.xlu2 %5098 }
 0xd06   : > { %v9786_v41 = vsel %vm364_vm5, %v9709_v30, %v5099_v25 }
 0xd0c   : > { %v5135_v12 = vpop.permute.xlu0 %5134  ;;  %v5945_v21 = vpop.permute.xlu1 %5944 }
 0xd0d   : > { %v9789_v59 = vsel %vm368_vm7, %v5149_v50, %v5135_v12  ;;  %v9793_v2 = vsel %vm362_vm4, %v9670_v56, %v5945_v21  ;;  %v5305_v10 = vpop.permute.xlu2 %5304 }
 0xd0e   : > { %v5320_v38 = vsel %vm368_vm7, %v9728_v54, %v5305_v10 }
 0xd0f   : > { %v5330_v15 = vmul.f32 %v5320_v38, %v5320_v38  ;;  %v5323_v4 = vrot.slane %v5320_v38, 7 }
 0xd11   : > { %v5333_v23 = vrot.slane %v5330_v15, 7 }
 0xd14   : > { %v5439_v0 = vpop.permute.xlu0 %5438  ;;  %v6151_v1 = vpop.permute.xlu1 %6150 }
 0xd15   : > { %v6169_v39 = vsel %vm366_vm6, %v9690_v16, %v6151_v1  ;;  %v5609_v58 = vpop.permute.xlu2 %5608  ;;  %v5481_v21 = vsel %vm364_vm5, %v9767_v13, %v5439_v0 }
 0xd16   : > { %v9798_v31 = vsel %vm364_vm5, %v5650_v36, %v5609_v58 }
 0xd1c   : > { %v5645_v30 = vpop.permute.xlu0 %5644  ;;  %v4957_v55 = vpop.permute.xlu1 %4956 }
 0xd1d   : > { %v9801_v33 = vsel %vm368_vm7, %v5659_v37, %v5645_v30  ;;  %v5815_v17 = vpop.permute.xlu2 %5814  ;;  %v4978_v5 = vsel %vm364_vm5, %v10001_v61, %v4957_v55 }
 0xd24   : > { %v5269_v11 = vpop.permute.xlu1 %5268  ;;  %v9803_v63 = vpop.permute.xlu0 %5948 }
 0xd25   : > { %v6119_v56 = vpop.permute.xlu2 %6118  ;;  %v5311_v26 = vsel %vm364_vm5, %v9713_v52, %v5269_v11 }
 0xd26   : > { %v9806_v44 = vsel %vm364_vm5, %v6160_v18, %v6119_v56 }
 0xd2c   : > { %v5475_v6 = vpop.permute.xlu1 %5474  ;;  %v6155_v48 = vpop.permute.xlu0 %6154 }
 0xd2d   : > { %v9809_v16 = vsel %vm368_vm7, %v6169_v39, %v6155_v48  ;;  %v6325_v49 = vpop.permute.xlu2 %6324  ;;  %v5490_v54 = vsel %vm368_vm7, %v9732_v62, %v5475_v6  ;;  %v5830_v62 = vsel %vm368_vm7, %v9756_v28, %v5815_v17 }
 0xd2e   : > { %v5500_v25 = vmul.f32 %v5490_v54, %v5490_v54  ;;  %v5493_v1 = vrot.slane %v5490_v54, 7  ;;  %v5840_v30 = vmul.f32 %v5830_v62, %v5830_v62  ;;  %v5833_v56 = vrot.slane %v5830_v62, 7 }
 0xd30   : > { %v5503_v17 = vrot.slane %v5500_v25, 7  ;;  %v5843_v38 = vrot.slane %v5840_v30, 7 }
 0xd34   : > { %v5779_v57 = vpop.permute.xlu1 %5778  ;;  %v4961_v47 = vpop.permute.xlu0 %4960 }
 0xd35   : > { %v5273_v42 = vpop.permute.xlu2 %5272  ;;  %v4979_v32 = vsel %vm366_vm6, %v4978_v5, %v4961_v47  ;;  %v5821_v13 = vsel %vm364_vm5, %v9746_v60, %v5779_v57 }
 0xd36   : > { %v5312_v7 = vsel %vm366_vm6, %v5311_v26, %v5273_v42 }
 0xd3c   : > { %v5985_v34 = vpop.permute.xlu1 %5984  ;;  %v5443_v22 = vpop.permute.xlu0 %5442 }
 0xd3d   : > { %v5783_v9 = vpop.permute.xlu2 %5782  ;;  %v5482_v39 = vsel %vm366_vm6, %v5481_v21, %v5443_v22  ;;  %v6000_v6 = vsel %vm368_vm7, %v9759_v24, %v5985_v34  ;;  %v6340_v24 = vsel %vm368_vm7, %v9782_v45, %v6325_v49 }
 0xd3e   : > { %v5822_v48 = vsel %vm366_vm6, %v5821_v13, %v5783_v9  ;;  %v6010_v34 = vmul.f32 %v6000_v6, %v6000_v6  ;;  %v5991_v9 = vsel %vm364_vm5, %v9793_v2, %v9803_v63  ;;  %v6003_v5 = vrot.slane %v6000_v6, 7 }
 0xd3f   : > { %v6350_v15 = vmul.f32 %v6340_v24, %v6340_v24  ;;  %v6343_v63 = vrot.slane %v6340_v24, 7 }
 0xd40   : > { %v6013_v26 = vrot.slane %v6010_v34, 7 }
 0xd44   : > { %v6289_v36 = vpop.permute.xlu1 %6288  ;;  %v5953_v3 = vpop.permute.xlu0 %5952 }
 0xd45   : > { %v9811_v43 = vpop.permute.xlu2 %6292 }
 0xd4c   : > { %v9818_v27 = vpop.permute.xlu1 %5102  ;;  %v4965_v50 = vpop.permute.xlu0 %4964 }
 0xd4d   : > { %v4980_v19 = vsel %vm368_vm7, %v4979_v32, %v4965_v50  ;;  %v5277_v18 = vpop.permute.xlu2 %5276  ;;  %v6331_v32 = vsel %vm364_vm5, %v9772_v20, %v6289_v36  ;;  %v5992_v50 = vsel %vm366_vm6, %v5991_v9, %v5953_v3  ;;  %v6363_v9 = vld [vmem:[#allocation2 + $0x20] sm:$0xff] }
 0xd4e   : > { %v4983_v51 = vrot.slane %v4980_v19, 7  ;;  %v4990_v29 = vmul.f32 %v4980_v19, %v4980_v19  ;;  %v5313_v46 = vsel %vm368_vm7, %v5312_v7, %v5277_v18  ;;  %v5160_v18 = vmul.f32 %v9789_v59, %v9789_v59 }
 0xd4f   : > { %v5324_v40 = vsel %vm380_vm8, %v5313_v46, %v5323_v4  ;;  %v5329_v37 = vmul.f32 %v5313_v46, %v5313_v46  ;;  %v6353_v4 = vrot.slane %v6350_v15, 7  ;;  %v6378_v15 = vld [vmem:[%s9986_s1 + $0x8] sm:$0xf] }
 0xd50   : > { %v4984_v35 = vsel %vm380_vm8, %v10002_v14, %v4983_v51  ;;  %v4993_v53 = vrot.slane %v4990_v29, 7  ;;  %5327 = vst.msk [vmem:[#allocation2 + $0x35] ss:$8 sm:$0x3] %vm6986_vm9, %v5324_v40  ;;  %v6332_v29 = vsel %vm366_vm6, %v6331_v32, %v9811_v43  ;;  %v5153_v14 = vrot.slane %v9789_v59, 7  ;;  %v6362_v32 = vld [vmem:[#allocation2 + $0x18] sm:$0xff] }
 0xd51   : > { %4987 = vst.msk [vmem:[#allocation2 + $0x33] ss:$8 sm:$0x3] %vm6986_vm9, %v4984_v35  ;;  %v5334_v10 = vsel %vm380_vm8, %v5329_v37, %v5333_v23  ;;  %v5163_v46 = vrot.slane %v5160_v18, 7  ;;  %v5663_v59 = vrot.slane %v9801_v33, 7 }
 0xd52   : > { %v4994_v12 = vsel %vm380_vm8, %v4989_v8, %v4993_v53  ;;  %5337 = vst.msk [vmem:[#allocation2 + $0x81] ss:$8 sm:$0x3] %vm6986_vm9, %v5334_v10  ;;  %v5142_v8 = vsel %vm366_vm6, %v9786_v41, %v9818_v27  ;;  %v5670_v41 = vmul.f32 %v9801_v33, %v9801_v33  ;;  %v6180_v33 = vmul.f32 %v9809_v16, %v9809_v16 }
 0xd53   : > { %4997 = vst.msk [vmem:[#allocation2 + $0x77] ss:$8 sm:$0x3] %vm6986_vm9, %v4994_v12 }
 0xd54   : > { %v5613_v28 = vpop.permute.xlu1 %5612  ;;  %v5447_v58 = vpop.permute.xlu0 %5446  ;;  %v5673_v12 = vrot.slane %v5670_v41, 7  ;;  %v6183_v30 = vrot.slane %v6180_v33, 7 }
 0xd55   : > { %v5483_v55 = vsel %vm368_vm7, %v5482_v39, %v5447_v58  ;;  %v5787_v47 = vpop.permute.xlu2 %5786  ;;  %v5652_v27 = vsel %vm366_vm6, %v9798_v31, %v5613_v28  ;;  %v6173_v31 = vrot.slane %v9809_v16, 7  ;;  %v6379_v16 = vld [vmem:[%s9987_s2] sm:$0xff] }
 0xd56   : > { %v5494_v0 = vsel %vm380_vm8, %v5483_v55, %v5493_v1  ;;  %v5499_v11 = vmul.f32 %v5483_v55, %v5483_v55  ;;  %v5823_v22 = vsel %vm368_vm7, %v5822_v48, %v5787_v47  ;;  %v6371_v47 = vld [vmem:[#allocation2 + $0x60] sm:$0xff] }
 0xd57   : > { %5497 = vst.msk [vmem:[#allocation2 + $0x36] ss:$8 sm:$0x3] %vm6986_vm9, %v5494_v0  ;;  %v5834_v60 = vsel %vm380_vm8, %v5823_v22, %v5833_v56  ;;  %v5839_v57 = vmul.f32 %v5823_v22, %v5823_v22  ;;  %v6685_v0 = vmov 0   ;;  %v6369_v22 = vld [vmem:[#allocation2 + $0x50] sm:$0xff] }
 0xd58   : > { %v5504_v42 = vsel %vm380_vm8, %v5499_v11, %v5503_v17  ;;  %5837 = vst.msk [vmem:[#allocation2 + $0x40] ss:$8 sm:$0x3] %vm6986_vm9, %v5834_v60  ;;  %6644 = vset.pattern.permute.xlu0 %v6685_v0  ;;  %6645 = vset.pattern.permute.xlu1 %v6685_v0  ;;  %v6686_v11 = vmov 1.0  }
 0xd59   : > { %5507 = vst.msk [vmem:[#allocation2 + $0x82] ss:$8 sm:$0x3] %vm6986_vm9, %v5504_v42  ;;  %v5844_v61 = vsel %vm380_vm8, %v5839_v57, %v5843_v38  ;;  %6383 = vperm.xlu0 %6644, %v6379_v16   ;;  %6459 = vmatpush.msra.mxu2 %v6686_v11  ;;  %v6372_v42 = vld [vmem:[#allocation2 + $0x68] sm:$0xff]  ;;  %v6370_v38 = vld [vmem:[#allocation2 + $0x58] sm:$0xff] }
 0xd5a   : > { %5847 = vst.msk [vmem:[#allocation2 + $0x84] ss:$8 sm:$0x3] %vm6986_vm9, %v5844_v61  ;;  %6482 = vmatpush.msra.mxu3 %v6686_v11  ;;  %v6373_v6 = vld [vmem:[#allocation2 + $0x70] sm:$0xff]  ;;  %v6374_v48 = vld [vmem:[#allocation2 + $0x78] sm:$0xff]  ;;  %v6364_v61 = vld [vmem:[#allocation2 + $0x28] sm:$0xff] }
 0xd5b   : > { %6460 = vmatpush.msra.mxu2 %v6686_v11 }
 0xd5c   : > { %v6123_v45 = vpop.permute.xlu1 %6122  ;;  %v5957_v49 = vpop.permute.xlu0 %5956  ;;  %6483 = vmatpush.msra.mxu3 %v6686_v11 }
 0xd5d   : > { %v5993_v19 = vsel %vm368_vm7, %v5992_v50, %v5957_v49  ;;  %v6297_v20 = vpop.permute.xlu2 %6296  ;;  %v6162_v39 = vsel %vm366_vm6, %v9806_v44, %v6123_v45  ;;  %v6380_v44 = vld [vmem:[%s9987_s2 + $0x8] sm:$0xf]  ;;  %6461 = vmatpush.msra.mxu2 %v6686_v11  ;;  %v6377_v50 = vld [vmem:[%s9986_s1] sm:$0xff] }
 0xd5e   : > { %v6004_v51 = vsel %vm380_vm8, %v5993_v19, %v6003_v5  ;;  %v6009_v2 = vmul.f32 %v5993_v19, %v5993_v19  ;;  %v6333_v3 = vsel %vm368_vm7, %v6332_v29, %v6297_v20  ;;  %6388 = vperm.xlu1 %6645, %v6380_v44   ;;  %6484 = vmatpush.msra.mxu3 %v6686_v11  ;;  %v6361_v5 = vld [vmem:[#allocation2 + $0x10] sm:$0xff]  ;;  %v6359_v45 = vld [vmem:[#allocation2] sm:$0xff]  ;;  %v6360_v49 = vld [vmem:[#allocation2 + $0x8] sm:$0xff] }
 0xd5f   : > { %6007 = vst.msk [vmem:[#allocation2 + $0x41] ss:$8 sm:$0x3] %vm6986_vm9, %v6004_v51  ;;  %v6344_v54 = vsel %vm380_vm8, %v6333_v3, %v6343_v63  ;;  %v6349_v7 = vmul.f32 %v6333_v3, %v6333_v3  ;;  %6462 = vmatpush.msra.mxu2 %v6686_v11 }
 0xd60   : > { %v6014_v36 = vsel %vm380_vm8, %v6009_v2, %v6013_v26  ;;  %6347 = vst.msk [vmem:[#allocation2 + $0x43] ss:$8 sm:$0x3] %vm6986_vm9, %v6344_v54  ;;  %6485 = vmatpush.msra.mxu3 %v6686_v11 }
 0xd61   : > { %6017 = vst.msk [vmem:[#allocation2 + $0x85] ss:$8 sm:$0x3] %vm6986_vm9, %v6014_v36  ;;  %v6354_v43 = vsel %vm380_vm8, %v6349_v7, %v6353_v4  ;;  %6463 = vmatpush.msra.mxu2 %v6686_v11 }
 0xd62   : > { %6357 = vst.msk [vmem:[#allocation2 + $0x87] ss:$8 sm:$0x3] %vm6986_vm9, %v6354_v43  ;;  %6486 = vmatpush.msra.mxu3 %v6686_v11 }
 0xd63   : > { %6464 = vmatpush.msra.mxu2 %v6686_v11 }
 0xd64   : > { %v5107_v35 = vpop.permute.xlu1 %5106  ;;  %6487 = vmatpush.msra.mxu3 %v6686_v11 }
 0xd65   : > { %v5143_v53 = vsel %vm368_vm7, %v5142_v8, %v5107_v35  ;;  %6465 = vmatpush.msra.mxu2 %v6686_v11 }
 0xd66   : > { %v5154_v23 = vsel %vm380_vm8, %v5143_v53, %v5153_v14  ;;  %v5159_v40 = vmul.f32 %v5143_v53, %v5143_v53  ;;  %6488 = vmatpush.msra.mxu3 %v6686_v11 }
 0xd67   : > { %5157 = vst.msk [vmem:[#allocation2 + $0x34] ss:$8 sm:$0x3] %vm6986_vm9, %v5154_v23  ;;  %6466 = vmatpush.msra.mxu2 %v6686_v11 }
 0xd68   : > { %v5164_v37 = vsel %vm380_vm8, %v5159_v40, %v5163_v46  ;;  %6489 = vmatpush.msra.mxu3 %v6686_v11 }
 0xd69   : > { %5167 = vst.msk [vmem:[#allocation2 + $0x80] ss:$8 sm:$0x3] %vm6986_vm9, %v5164_v37  ;;  %6467 = vmatpush.msra.mxu2 %v6686_v11 }
 0xd6a   : > { %6490 = vmatpush.msra.mxu3 %v6686_v11 }
 0xd6b   : > { %6468 = vmatpush.msra.mxu2 %v6686_v11 }
 0xd6c   : > { %v5617_v62 = vpop.permute.xlu1 %5616  ;;  %6491 = vmatpush.msra.mxu3 %v6686_v11 }
 0xd6d   : > { %v5653_v25 = vsel %vm368_vm7, %v5652_v27, %v5617_v62  ;;  %6469 = vmatpush.msra.mxu2 %v6686_v11 }
 0xd6e   : > { %v5664_v21 = vsel %vm380_vm8, %v5653_v25, %v5663_v59  ;;  %v5669_v10 = vmul.f32 %v5653_v25, %v5653_v25  ;;  %6492 = vmatpush.msra.mxu3 %v6686_v11 }
 0xd6f   : > { %5667 = vst.msk [vmem:[#allocation2 + $0x37] ss:$8 sm:$0x3] %vm6986_vm9, %v5664_v21  ;;  %6470 = vmatpush.msra.mxu2 %v6686_v11 }
 0xd70   : > { %v5674_v1 = vsel %vm380_vm8, %v5669_v10, %v5673_v12  ;;  %6493 = vmatpush.msra.mxu3 %v6686_v11 }
 0xd71   : > { %5677 = vst.msk [vmem:[#allocation2 + $0x83] ss:$8 sm:$0x3] %vm6986_vm9, %v5674_v1  ;;  %6471 = vmatpush.msra.mxu2 %v6686_v11 }
 0xd72   : > { %6494 = vmatpush.msra.mxu3 %v6686_v11 }
 0xd73   : > { %6472 = vmatpush.msra.mxu2 %v6686_v11 }
 0xd74   : > { %v6127_v28 = vpop.permute.xlu1 %6126  ;;  %6495 = vmatpush.msra.mxu3 %v6686_v11 }
 0xd75   : > { %v6163_v58 = vsel %vm368_vm7, %v6162_v39, %v6127_v28  ;;  %6473 = vmatpush.msra.mxu2 %v6686_v11 }
 0xd76   : > { %v6174_v55 = vsel %vm380_vm8, %v6163_v58, %v6173_v31  ;;  %v6179_v17 = vmul.f32 %v6163_v58, %v6163_v58  ;;  %v6365_v24 = vld [vmem:[#allocation2 + $0x30] sm:$0xff]  ;;  %v6366_v34 = vld [vmem:[#allocation2 + $0x38] sm:$0xff]  ;;  %6496 = vmatpush.msra.mxu3 %v6686_v11 }
 0xd77   : > { %6177 = vst.msk [vmem:[#allocation2 + $0x42] ss:$8 sm:$0x3] %vm6986_vm9, %v6174_v55  ;;  %6474 = vmatpush.msra.mxu2 %v6686_v11 }
 0xd78   : > { %v6184_v13 = vsel %vm380_vm8, %v6179_v17, %v6183_v30  ;;  %6497 = vmatpush.msra.mxu3 %v6686_v11 }
 0xd79   : > { %6187 = vst.msk [vmem:[#allocation2 + $0x86] ss:$8 sm:$0x3] %vm6986_vm9, %v6184_v13 }
 0xd7e   : > { %v6367_v60 = vld [vmem:[#allocation2 + $0x40] sm:$0xff]  ;;  %v6368_v57 = vld [vmem:[#allocation2 + $0x48] sm:$0xff] }
 0xd80   : > { %v6375_v52 = vld [vmem:[#allocation2 + $0x80] sm:$0xff]  ;;  %v6376_v56 = vld [vmem:[#allocation2 + $0x88] sm:$0xff] }
 0xd81   : > { %6405 = vmatpush.msra.mxu0 %v6375_v52  ;;  %6428 = vmatpush.msra.mxu1 %v6376_v56 }
 0xd83   : > { %6406 = vmatpush.msra.mxu0 %v6373_v6  ;;  %6429 = vmatpush.msra.mxu1 %v6374_v48 }
 0xd85   : > { %6407 = vmatpush.msra.mxu0 %v6371_v47  ;;  %6430 = vmatpush.msra.mxu1 %v6372_v42 }
 0xd87   : > { %6408 = vmatpush.msra.mxu0 %v6369_v22  ;;  %6431 = vmatpush.msra.mxu1 %v6370_v38 }
 0xd89   : > { %6409 = vmatpush.msra.mxu0 %v6367_v60  ;;  %6432 = vmatpush.msra.mxu1 %v6368_v57 }
 0xd8b   : > { %6410 = vmatpush.msra.mxu0 %v6365_v24  ;;  %6433 = vmatpush.msra.mxu1 %v6366_v34 }
 0xd8d   : > { %6411 = vmatpush.msra.mxu0 %v6363_v9  ;;  %6434 = vmatpush.msra.mxu1 %v6364_v61 }
 0xd8f   : > { %6412 = vmatpush.msra.mxu0 %v6361_v5  ;;  %6435 = vmatpush.msra.mxu1 %v6362_v32 }
 0xd91   : > { %6413 = vmatpush.msra.mxu0 %v6359_v45  ;;  %6436 = vmatpush.msra.mxu1 %v6360_v49 }
 0xd92   : > { %6614 = vmatmul.msk.f32.vlgmr.msra.gmra.mxu0 %vm6391_vm12, %v6377_v50  ;;  %6616 = vmatmul.msk.f32.vlgmr.msra.gmra.mxu1 %vm6391_vm12, %v6377_v50 }
 0xd9a   : > { %6615 = vmatmul.msk.f32.gmra.mxu0 %vm6391_vm12, %v6378_v15  ;;  %6617 = vmatmul.msk.f32.gmra.mxu1 %vm6391_vm12, %v6378_v15 }
 0xdcb   : > { %v6384_v51 = vpop.permute.xlu0 %6383 }
 0xdd0   : > { %v6389_v2 = vpop.permute.xlu1 %6388 }
 0xe0f   : > { %v6415_v19 = vpop.f32.mrf.mxu0  ;;  %v6438_v26 = vpop.f32.mrf.mxu1 }
 0xe10   : > { %v6416_v63 = vadd.f32 %v6415_v19, %v6384_v51  ;;  %v6439_v29 = vadd.f32 %v6438_v26, %v6384_v51 }
 0xe12   : > { %v6444_v54 = vmul.f32 %v6416_v63, %v6416_v63  ;;  %v6445_v7 = vmul.f32 %v6439_v29, %v6439_v29 }
 0xe17   : > { %v6418_v20 = vpop.f32.mrf.mxu0  ;;  %v6441_v36 = vpop.f32.mrf.mxu1 }
 0xe18   : > { %v6419_v3 = vadd.f32 %v6418_v20, %v6389_v2  ;;  %v6442_v4 = vadd.f32 %v6441_v36, %v6389_v2 }
 0xe1a   : > { %v6448_v18 = vrot.slane %v6419_v3, 4  ;;  %v6449_v43 = vrot.slane %v6442_v4, 4 }
 0xe1c   : > { %v6452_v14 = vsub.f32 %v6444_v54, %v6448_v18  ;;  %v6453_v8 = vsub.f32 %v6445_v7, %v6449_v43 }
 0xe1e   : > { %v6455_v35 = vsel %vm6454_vm13, %v6416_v63, %v6452_v14  ;;  %v6456_v53 = vsel %vm6454_vm13, %v6439_v29, %v6453_v8 }
 0xe1f   : > { %6475 = vmatmul.f32.vlgmr.msra.gmra.mxu2 %v6455_v35  ;;  %6508 = vst [vmem:[%s205_s17] sm:$0xff] %v6455_v35  ;;  %6498 = vmatmul.f32.vlgmr.msra.gmra.mxu3 %v6456_v53  ;;  %v6457_v46 = vmul.f32 %v6455_v35, %v6455_v35  ;;  %v6458_v23 = vmul.f32 %v6456_v53, %v6456_v53 }
 0xe20   : > { %6509 = vst [vmem:[%s205_s17 + $0x8] sm:$0xff] %v6456_v53 }
 0xe27   : > { %6478 = vmatmul.f32.gmra.mxu2 %v6457_v46  ;;  %6501 = vmatmul.f32.gmra.mxu3 %v6458_v23 }
 0xea2   : > { %v6476_v40 = vpop.f32.mrf.mxu2  ;;  %v6499_v37 = vpop.f32.mrf.mxu3 }
 0xea3   : > { %v6500_v41 = vadd.f32 %v6499_v37, %v6476_v40 }
 0xea5   : > { %6506 = vst.msk [vmem:[%s210_s19] sm:$0xff] %vm6505_vm14, %v6500_v41 }
 0xeaa   : > { %v6479_v59 = vpop.f32.mrf.mxu2  ;;  %v6502_v27 = vpop.f32.mrf.mxu3 }
 0xeab   : > { %v6503_v62 = vadd.f32 %v6502_v27, %v6479_v59 }
 0xead   : > { %6507 = vst.msk [vmem:[%s210_s19 + $0x8] sm:$0xff] %vm6505_vm14, %v6503_v62 }
 0xeae PF: > { %s15_s15 = sadd.s32 1, %s6672_s15  }
 0xeaf   : > { %p12_p4 = scmp.ge.s32.totalorder %s15_s15, 4  }
 0xeb1   :  { %14 = sbr.rel (!%p12_p4) target bundleno = 1 (0x1), region = 145 }

</bundles_post_ra>
